<compile_context>
chip_gen: v6e
topology: v6e:2x2x1
jax: 0.10.0
libtpu: 0.0.40
codegen_flags: <defaults>
</compile_context>

<pallas_src>
import functools

import jax
import jax.numpy as jnp
from jax.experimental import pallas as pl
from jax.experimental.pallas import tpu as pltpu


def _round_up(x, m):
    return (x + m - 1) // m * m


def _cdiv(a, b):
    return -(-a // b)


def wsgn_kernel(x_ref, w1_ref, b1_ref, wh_ref, bh_ref, gmean_ref, ivar_ref,
                cls_ref, loc_ref):
    Bt, T, C = x_ref.shape
    K_pad = gmean_ref.shape[-1]
    rows = Bt * T

    # (Bt, T, C) -> (Bt*T, C): tile-aligned collapse (C multiple of 128).
    x = x_ref[...].reshape(rows, C)                               # bf16

    # logits 1x1 conv + ReLU (dropout layers are identity in eval mode).
    h = jnp.dot(x, w1_ref[...], preferred_element_type=jnp.float32)
    h = jnp.maximum(h + b1_ref[...], 0.0)                         # f32 (rows, C)

    # Fused cls|loc 1x1 convs: single (rows, C) @ (C, 2*K_pad) MXU pass.
    heads = jnp.dot(h.astype(jnp.bfloat16), wh_ref[...],
                    preferred_element_type=jnp.float32) + bh_ref[...]

    # s_Cls: softmax over classes (padded classes have -1e30 bias -> exp == 0).
    # Stored immediately so its temporaries retire before the loc epilogue.
    cls = heads[:, :K_pad]
    cls = cls - jnp.max(cls, axis=-1, keepdims=True)
    cls_e = jnp.exp(cls)
    cls_sm = cls_e * pl.reciprocal(jnp.sum(cls_e, axis=-1, keepdims=True),
                                   approx=True)
    cls_ref[...] = cls_sm.reshape(Bt, T, K_pad)

    # loc epilogue: stash the raw logits in the (VMEM-resident) output block,
    # then rewrite it in lane chunks so live f32 temporaries stay bounded when
    # the row slab is large.  All three terms are independent per class lane.
    loc_ref[...] = heads[:, K_pad:].reshape(Bt, T, K_pad)

    kc = 256 if K_pad % 256 == 0 else 128        # lane-chunk (divides K_pad)
    n_chunks = K_pad // kc
    inv_t = 1.0 / T

    def _chunk(c, carry):
        off = pl.multiple_of(c * kc, kc)
        lc = loc_ref[:, :, pl.ds(off, kc)]                        # (Bt, T, kc) f32
        # s_Loc: softmax over time.
        e = jnp.exp(lc - jnp.max(lc, axis=1, keepdims=True))
        sm = e * pl.reciprocal(jnp.sum(e, axis=1, keepdims=True), approx=True)
        # Z_Loc: exp(-(x - mean_over_time(x))^2)
        mu = jnp.sum(lc, axis=1, keepdims=True) * inv_t
        z = jnp.exp(-jnp.square(lc - mu))
        # G_Loc: exp(-(x - mean_k)^2 / std_k^2); 1/std^2 precomputed in wrapper.
        g = jnp.exp(-jnp.square(lc - gmean_ref[:, pl.ds(off, kc)])
                    * ivar_ref[:, pl.ds(off, kc)])
        loc_ref[:, :, pl.ds(off, kc)] = (sm + z + g) * (1.0 / 3.0)
        return carry

    jax.lax.fori_loop(0, n_chunks, _chunk, 0, unroll=True)


def _chip_config():
    """(target_rows_per_step, vmem_limit_bytes), tuned per TPU generation."""
    try:
        info = pltpu.get_tpu_info()
        vmem = int(getattr(info, "vmem_capacity_bytes", 0) or 0)
    except Exception:
        vmem = 0
    if vmem >= 96 * 1024 * 1024:
        # v5e / v6e: 128 MiB VMEM per TensorCore -> go wide.
        return 1024, 80 * 1024 * 1024
    # v7x (64 MiB per TC) or unknown: conservative slab + limit.
    return 512, 48 * 1024 * 1024


def _const_spec(shape, single_buffer):
    index_map = lambda i: tuple(0 for _ in shape)
    if single_buffer:
        # Block index never changes across the grid; a single buffer avoids
        # wasting VMEM on a second copy (headroom mostly matters on v7x).
        return pl.BlockSpec(shape, index_map, pipeline_mode=pl.Buffered(1))
    return pl.BlockSpec(shape, index_map)


@functools.partial(
    jax.jit, static_argnames=("target_rows", "vmem_limit", "buffered_consts"))
def _wsgn_impl(x_nchw, w1, b1, wc, bc, wl, bl, gmean, gstd, *,
               target_rows, vmem_limit, buffered_consts):
    N, C, T, W = x_nchw.shape
    assert W == 1, "spatial_squeeze requires width == 1"
    K = wc.shape[0]
    K_pad = _round_up(K, 128)          # lane-dense class dim (16->128, 400->512)

    # Batch tiling: ~target_rows rows per grid step fills the MXU and amortizes
    # per-step pipeline overhead.  Keep >= 2 grid steps (and prefer an even
    # count) so v7x's two TensorCores both get work on the "parallel" axis.
    Bt = max(1, min(N, max(1, target_rows // max(T, 1))))
    steps = _cdiv(N, Bt)
    if steps < 2 and N >= 2:
        Bt = _cdiv(N, 2)
        steps = _cdiv(N, Bt)
    elif steps > 1 and steps % 2 == 1:
        Bt = max(1, _cdiv(N, steps + 1))
        steps = _cdiv(N, Bt)
    N_pad = steps * Bt

    # Glue: bf16 MXU inputs, cast BEFORE the transpose to halve its HBM traffic;
    # allow_input_fusion lets XLA fold the transpose/pad into the input DMA.
    # TODO(synk): confirm in xprof that the NCHW->NTC transpose fuses; if not,
    # feed (Bt, C, T) blocks and contract C in-kernel via lax.dot_general.
    x = jnp.transpose(x_nchw[..., 0].astype(jnp.bfloat16), (0, 2, 1))   # (N, T, C)
    if N_pad != N:
        x = jnp.pad(x, ((0, N_pad - N), (0, 0), (0, 0)))

    # Conv weights (Cout, Cin, 1, 1) -> (Cin, Cout); fuse cls|loc heads, pad K.
    w1t = jnp.transpose(w1.reshape(C, C)).astype(jnp.bfloat16)          # (C, C)
    wct = jnp.transpose(wc.reshape(K, C)).astype(jnp.bfloat16)          # (C, K)
    wlt = jnp.transpose(wl.reshape(K, C)).astype(jnp.bfloat16)          # (C, K)
    pad_k = ((0, 0), (0, K_pad - K))
    wh = jnp.concatenate([jnp.pad(wct, pad_k), jnp.pad(wlt, pad_k)], axis=1)

    b1r = b1.reshape(1, C).astype(jnp.float32)
    # Padded cls classes get a -1e30 bias (softmax ignores them); padded loc
    # classes get 0 (their outputs are sliced away below).
    bc_pad = jnp.pad(bc.astype(jnp.float32), (0, K_pad - K), constant_values=-1e30)
    bl_pad = jnp.pad(bl.astype(jnp.float32), (0, K_pad - K))
    bh = jnp.concatenate([bc_pad, bl_pad]).reshape(1, 2 * K_pad)

    gm = jnp.pad(gmean.astype(jnp.float32), (0, K_pad - K)).reshape(1, K_pad)
    ivar = jnp.pad(1.0 / jnp.square(gstd.astype(jnp.float32)), (0, K_pad - K),
                   constant_values=1.0).reshape(1, K_pad)

    n_in = 7
    rows_total = N_pad * T
    cost = pl.CostEstimate(
        flops=2 * rows_total * C * (C + 2 * K_pad),
        transcendentals=4 * rows_total * K_pad,
        bytes_accessed=(rows_total * C * 2                 # x (bf16)
                        + C * C * 2 + C * 2 * K_pad * 2    # weights (bf16)
                        + 2 * rows_total * K_pad * 4),     # two f32 outputs
    )

    cls_ntk, loc_ntk = pl.pallas_call(
        wsgn_kernel,
        out_shape=(
            jax.ShapeDtypeStruct((N_pad, T, K_pad), jnp.float32),
            jax.ShapeDtypeStruct((N_pad, T, K_pad), jnp.float32),
        ),
        grid_spec=pltpu.PrefetchScalarGridSpec(
            num_scalar_prefetch=0,
            grid=(steps,),
            in_specs=[
                pl.BlockSpec((Bt, T, C), lambda i: (i, 0, 0)),      # x row slab
                _const_spec((C, C), buffered_consts),               # w1t
                _const_spec((1, C), buffered_consts),               # b1
                _const_spec((C, 2 * K_pad), buffered_consts),       # fused head W
                _const_spec((1, 2 * K_pad), buffered_consts),       # fused head b
                _const_spec((1, K_pad), buffered_consts),           # G_Loc mean
                _const_spec((1, K_pad), buffered_consts),           # 1 / std^2
            ],
            out_specs=[
                pl.BlockSpec((Bt, T, K_pad), lambda i: (i, 0, 0)),
                pl.BlockSpec((Bt, T, K_pad), lambda i: (i, 0, 0)),
            ],
        ),
        compiler_params=pltpu.CompilerParams(
            dimension_semantics=("parallel",),
            vmem_limit_bytes=vmem_limit,
            allow_input_fusion=[True] + [False] * (n_in - 1),
        ),
        cost_estimate=cost,
    )(x, w1t, b1r, wh, bh, gm, ivar)

    # Drop padding; back to the PyTorch output layout (N, K, T).  Kept outside
    # the kernel: T is small here, so an in-kernel transposed store would be a
    # masked vst; keep the (N, T, K) layout downstream if the consumer allows.
    cls_out = jnp.transpose(cls_ntk[:N, :, :K], (0, 2, 1))
    loc_out = jnp.transpose(loc_ntk[:N, :, :K], (0, 2, 1))
    return cls_out, loc_out


def wsgn_forward(x_nchw, w1, b1, wc, bc, wl, bl, gmean, gstd):
    """x_nchw: (N, 1024, T, 1).  Returns (cls_x, loc_x), both (N, K, T)."""
    target_rows, vmem_limit = _chip_config()
    args = (x_nchw, w1, b1, wc, bc, wl, bl, gmean, gstd)
    try:
        out = _wsgn_impl(*args, target_rows=target_rows, vmem_limit=vmem_limit,
                         buffered_consts=True)
        jax.block_until_ready(out)
        return out
    except Exception:
        # pipeline_mode=pl.Buffered(1) unsupported on this jax build/backend:
        # retry with default double-buffered constants (perf-only fallback).
        return _wsgn_impl(*args, target_rows=target_rows, vmem_limit=vmem_limit,
                          buffered_consts=False)


def wsgn_reference(x_nchw, w1, b1, wc, bc, wl, bl, gmean, gstd):
    """Pure-JAX reference mirroring the PyTorch forward (eval mode).

    Matmul inputs are rounded to bf16 (same as the kernel's MXU feed) so the
    comparison isolates kernel logic from bf16 quantization error.
    """
    N, C, T, W = x_nchw.shape
    K = wc.shape[0]
    rb = lambda a: a.astype(jnp.bfloat16).astype(jnp.float32)
    hi = jax.lax.Precision.HIGHEST
    x = rb(x_nchw[..., 0].astype(jnp.float32))                       # (N, C, T)
    h = jnp.einsum("oc,nct->not", rb(w1.reshape(C, C)), x, precision=hi)
    h = jax.nn.relu(h + b1[None, :, None])
    h = rb(h)
    cls = jnp.einsum("kc,nct->nkt", rb(wc.reshape(K, C)), h, precision=hi) \
        + bc[None, :, None]
    loc = jnp.einsum("kc,nct->nkt", rb(wl.reshape(K, C)), h, precision=hi) \
        + bl[None, :, None]
    cls_sm = jax.nn.softmax(cls, axis=1)
    loc_sm = jax.nn.softmax(loc, axis=2)
    z = jnp.exp(-(loc - jnp.mean(loc, axis=2, keepdims=True)) ** 2)
    g = jnp.exp(-(loc - gmean[None, :, None]) ** 2 / gstd[None, :, None] ** 2)
    return cls_sm, (loc_sm + z + g) / 3.0


if __name__ == "__main__":
    # Small but module-consistent shapes: conv in_channels fixed at 1024.
    N, C, T, W = 2, 1024, 8, 1
    K = 16  # num_classes (small instead of the default 400)

    key = jax.random.PRNGKey(0)
    ks = jax.random.split(key, 9)
    x = jax.random.normal(ks[0], (N, C, T, W), dtype=jnp.float32)

    scale = 1.0 / jnp.sqrt(jnp.float32(C))
    w1 = jax.random.normal(ks[1], (C, C, 1, 1), dtype=jnp.float32) * scale
    b1 = jax.random.normal(ks[2], (C,), dtype=jnp.float32) * 0.01
    wc = jax.random.normal(ks[3], (K, C, 1, 1), dtype=jnp.float32) * scale
    bc = jax.random.normal(ks[4], (K,), dtype=jnp.float32) * 0.01
    wl = jax.random.normal(ks[5], (K, C, 1, 1), dtype=jnp.float32) * scale
    bl = jax.random.normal(ks[6], (K,), dtype=jnp.float32) * 0.01
    gmean = jax.random.normal(ks[7], (K,), dtype=jnp.float32)   # G_Loc mean ~ randn
    gstd = jnp.ones((K,), dtype=jnp.float32)                    # G_Loc std = ones

    cls_out, loc_out = wsgn_forward(x, w1, b1, wc, bc, wl, bl, gmean, gstd)
    jax.block_until_ready((cls_out, loc_out))

    cls_ref, loc_ref = wsgn_reference(x, w1, b1, wc, bc, wl, bl, gmean, gstd)
    assert cls_out.shape == (N, K, T) and loc_out.shape == (N, K, T)
    # Tolerance covers bf16 MXU rounding plus the approx (EUP) reciprocal
    # (~2^-12 relative) used for both softmax denominators.
    assert jnp.allclose(cls_out, cls_ref, atol=2e-3, rtol=2e-3), float(
        jnp.max(jnp.abs(cls_out - cls_ref)))
    assert jnp.allclose(loc_out, loc_ref, atol=2e-3, rtol=2e-3), float(
        jnp.max(jnp.abs(loc_out - loc_ref)))

    print("KERNEL_OK")
</pallas_src>

<mosaic_0001>
module attributes {stable_mosaic.version = 11 : i64} {
  func.func @wsgn_kernel(%arg0: i32, %arg1: memref<1x8x1024xbf16, #tpu.memory_space<vmem>>, %arg2: memref<1024x1024xbf16, #tpu.memory_space<vmem>>, %arg3: memref<1x1024xf32, #tpu.memory_space<vmem>>, %arg4: memref<1024x256xbf16, #tpu.memory_space<vmem>>, %arg5: memref<1x256xf32, #tpu.memory_space<vmem>>, %arg6: memref<1x128xf32, #tpu.memory_space<vmem>>, %arg7: memref<1x128xf32, #tpu.memory_space<vmem>>, %arg8: memref<1x8x128xf32, #tpu.memory_space<vmem>>, %arg9: memref<1x8x128xf32, #tpu.memory_space<vmem>>) attributes {dimension_semantics = [#tpu.dimension_semantics<parallel>], iteration_bounds = array<i64: 2>, scalar_prefetch = 0 : i64, scratch_operands = 0 : i64, tpu.core_type = #tpu.core_type<tc>, window_params = [{transform_indices = @transform_0, window_bounds = array<i64: 1, 8, 1024>}, {pipeline_mode = #tpu.pipeline_mode<synchronous>, transform_indices = @transform_1, window_bounds = array<i64: 1024, 1024>}, {pipeline_mode = #tpu.pipeline_mode<synchronous>, transform_indices = @transform_2, window_bounds = array<i64: 1, 1024>}, {pipeline_mode = #tpu.pipeline_mode<synchronous>, transform_indices = @transform_3, window_bounds = array<i64: 1024, 256>}, {pipeline_mode = #tpu.pipeline_mode<synchronous>, transform_indices = @transform_4, window_bounds = array<i64: 1, 256>}, {pipeline_mode = #tpu.pipeline_mode<synchronous>, transform_indices = @transform_5, window_bounds = array<i64: 1, 128>}, {pipeline_mode = #tpu.pipeline_mode<synchronous>, transform_indices = @transform_6, window_bounds = array<i64: 1, 128>}, {transform_indices = @transform_7, window_bounds = array<i64: 1, 8, 128>}, {transform_indices = @transform_8, window_bounds = array<i64: 1, 8, 128>}]} {
    %c0 = arith.constant 0 : index
    %c0_0 = arith.constant 0 : index
    %c0_1 = arith.constant 0 : index
    %0 = vector.load %arg1[%c0, %c0_0, %c0_1] : memref<1x8x1024xbf16, #tpu.memory_space<vmem>>, vector<1x8x1024xbf16>
    %1 = vector.shape_cast %0 : vector<1x8x1024xbf16> to vector<8x1024xbf16>
    %c0_2 = arith.constant 0 : index
    %c0_3 = arith.constant 0 : index
    %2 = vector.load %arg2[%c0_2, %c0_3] : memref<1024x1024xbf16, #tpu.memory_space<vmem>>, vector<1024x1024xbf16>
    %cst = arith.constant dense<0.000000e+00> : vector<8x1024xf32>
    %3 = tpu.matmul %1, %2, %cst {dimension_numbers = #tpu.dot_dimension_numbers<[1], [0], [0], [1], [0, 0, 1, 1], [], []>} : vector<8x1024xbf16>, vector<1024x1024xbf16>, vector<8x1024xf32> -> vector<8x1024xf32>
    %c0_4 = arith.constant 0 : index
    %c0_5 = arith.constant 0 : index
    %4 = vector.load %arg3[%c0_4, %c0_5] : memref<1x1024xf32, #tpu.memory_space<vmem>>, vector<1x1024xf32>
    %5 = vector.broadcast %4 : vector<1x1024xf32> to vector<8x1024xf32>
    %6 = arith.addf %3, %5 : vector<8x1024xf32>
    %cst_6 = arith.constant 0.000000e+00 : f32
    %7 = vector.broadcast %cst_6 : f32 to vector<8x1024xf32>
    %8 = arith.maximumf %6, %7 : vector<8x1024xf32>
    %9 = arith.truncf %8 : vector<8x1024xf32> to vector<8x1024xbf16>
    %c0_7 = arith.constant 0 : index
    %c0_8 = arith.constant 0 : index
    %10 = vector.load %arg4[%c0_7, %c0_8] : memref<1024x256xbf16, #tpu.memory_space<vmem>>, vector<1024x256xbf16>
    %cst_9 = arith.constant dense<0.000000e+00> : vector<8x256xf32>
    %11 = tpu.matmul %9, %10, %cst_9 {dimension_numbers = #tpu.dot_dimension_numbers<[1], [0], [0], [1], [0, 0, 1, 1], [], []>} : vector<8x1024xbf16>, vector<1024x256xbf16>, vector<8x256xf32> -> vector<8x256xf32>
    %c0_10 = arith.constant 0 : index
    %c0_11 = arith.constant 0 : index
    %12 = vector.load %arg5[%c0_10, %c0_11] : memref<1x256xf32, #tpu.memory_space<vmem>>, vector<1x256xf32>
    %13 = vector.broadcast %12 : vector<1x256xf32> to vector<8x256xf32>
    %14 = arith.addf %11, %13 : vector<8x256xf32>
    %15 = vector.extract_strided_slice %14 {offsets = [0, 0], sizes = [8, 128], strides = [1, 1]} : vector<8x256xf32> to vector<8x128xf32>
    %cst_12 = arith.constant dense<0xFF800000> : vector<8xf32>
    %16 = vector.multi_reduction <maximumf>, %15, %cst_12 [1] : vector<8x128xf32> to vector<8xf32>
    %17 = vector.shape_cast %16 : vector<8xf32> to vector<8x1xf32>
    %18 = vector.broadcast %17 : vector<8x1xf32> to vector<8x128xf32>
    %19 = arith.subf %15, %18 : vector<8x128xf32>
    %20 = math.exp %19 : vector<8x128xf32>
    %cst_13 = arith.constant dense<0.000000e+00> : vector<8xf32>
    %21 = vector.multi_reduction <add>, %20, %cst_13 [1] : vector<8x128xf32> to vector<8xf32>
    %22 = vector.shape_cast %21 : vector<8xf32> to vector<8x1xf32>
    %23 = tpu.reciprocal %22 {approx = true} : vector<8x1xf32> -> vector<8x1xf32>
    %24 = vector.broadcast %23 : vector<8x1xf32> to vector<8x128xf32>
    %25 = arith.mulf %20, %24 : vector<8x128xf32>
    %26 = vector.shape_cast %25 : vector<8x128xf32> to vector<1x8x128xf32>
    %c0_14 = arith.constant 0 : index
    %c0_15 = arith.constant 0 : index
    %c0_16 = arith.constant 0 : index
    %27 = vector.load %arg8[%c0_14, %c0_15, %c0_16] : memref<1x8x128xf32, #tpu.memory_space<vmem>>, vector<1x8x128xf32>
    tpu.vector_store %arg8[%c0_14, %c0_15, %c0_16], %26 {strides = array<i32>} : memref<1x8x128xf32, #tpu.memory_space<vmem>>, vector<1x8x128xf32>,
    %28 = vector.extract_strided_slice %14 {offsets = [0, 128], sizes = [8, 128], strides = [1, 1]} : vector<8x256xf32> to vector<8x128xf32>
    %29 = vector.shape_cast %28 : vector<8x128xf32> to vector<1x8x128xf32>
    %c0_17 = arith.constant 0 : index
    %c0_18 = arith.constant 0 : index
    %c0_19 = arith.constant 0 : index
    %30 = vector.load %arg9[%c0_17, %c0_18, %c0_19] : memref<1x8x128xf32, #tpu.memory_space<vmem>>, vector<1x8x128xf32>
    tpu.vector_store %arg9[%c0_17, %c0_18, %c0_19], %29 {strides = array<i32>} : memref<1x8x128xf32, #tpu.memory_space<vmem>>, vector<1x8x128xf32>,
    %c0_i32 = arith.constant 0 : i32
    %c128_i32 = arith.constant 128 : i32
    %31 = arith.muli %c0_i32, %c128_i32 : i32
    %32 = tpu.assume_multiple %31, 128 : i32
    %c0_20 = arith.constant 0 : index
    %c0_21 = arith.constant 0 : index
    %33 = arith.index_cast %32 : i32 to index
    %34 = vector.load %arg9[%c0_20, %c0_21, %33] : memref<1x8x128xf32, #tpu.memory_space<vmem>>, vector<1x8x128xf32>
    %cst_22 = arith.constant dense<0xFF800000> : vector<1x128xf32>
    %35 = vector.multi_reduction <maximumf>, %34, %cst_22 [1] : vector<1x8x128xf32> to vector<1x128xf32>
    %36 = vector.shape_cast %35 : vector<1x128xf32> to vector<1x1x128xf32>
    %37 = vector.broadcast %36 : vector<1x1x128xf32> to vector<1x8x128xf32>
    %38 = arith.subf %34, %37 : vector<1x8x128xf32>
    %39 = math.exp %38 : vector<1x8x128xf32>
    %cst_23 = arith.constant dense<0.000000e+00> : vector<1x128xf32>
    %40 = vector.multi_reduction <add>, %39, %cst_23 [1] : vector<1x8x128xf32> to vector<1x128xf32>
    %41 = vector.shape_cast %40 : vector<1x128xf32> to vector<1x1x128xf32>
    %42 = tpu.reciprocal %41 {approx = true} : vector<1x1x128xf32> -> vector<1x1x128xf32>
    %43 = vector.broadcast %42 : vector<1x1x128xf32> to vector<1x8x128xf32>
    %44 = arith.mulf %39, %43 : vector<1x8x128xf32>
    %cst_24 = arith.constant dense<0.000000e+00> : vector<1x128xf32>
    %45 = vector.multi_reduction <add>, %34, %cst_24 [1] : vector<1x8x128xf32> to vector<1x128xf32>
    %46 = vector.shape_cast %45 : vector<1x128xf32> to vector<1x1x128xf32>
    %cst_25 = arith.constant 1.250000e-01 : f32
    %47 = vector.broadcast %cst_25 : f32 to vector<1x1x128xf32>
    %48 = arith.mulf %46, %47 : vector<1x1x128xf32>
    %49 = vector.broadcast %48 : vector<1x1x128xf32> to vector<1x8x128xf32>
    %50 = arith.subf %34, %49 : vector<1x8x128xf32>
    %51 = arith.mulf %50, %50 : vector<1x8x128xf32>
    %cst_26 = arith.constant 0.000000e+00 : f32
    %52 = vector.broadcast %cst_26 : f32 to vector<1x8x128xf32>
    %53 = arith.subf %52, %51 : vector<1x8x128xf32>
    %54 = math.exp %53 : vector<1x8x128xf32>
    %c0_27 = arith.constant 0 : index
    %55 = arith.index_cast %32 : i32 to index
    %56 = vector.load %arg6[%c0_27, %55] : memref<1x128xf32, #tpu.memory_space<vmem>>, vector<1x128xf32>
    %57 = vector.shape_cast %56 : vector<1x128xf32> to vector<1x1x128xf32>
    %58 = vector.broadcast %57 : vector<1x1x128xf32> to vector<1x8x128xf32>
    %59 = arith.subf %34, %58 : vector<1x8x128xf32>
    %60 = arith.mulf %59, %59 : vector<1x8x128xf32>
    %cst_28 = arith.constant 0.000000e+00 : f32
    %61 = vector.broadcast %cst_28 : f32 to vector<1x8x128xf32>
    %62 = arith.subf %61, %60 : vector<1x8x128xf32>
    %c0_29 = arith.constant 0 : index
    %63 = arith.index_cast %32 : i32 to index
    %64 = vector.load %arg7[%c0_29, %63] : memref<1x128xf32, #tpu.memory_space<vmem>>, vector<1x128xf32>
    %65 = vector.shape_cast %64 : vector<1x128xf32> to vector<1x1x128xf32>
    %66 = vector.broadcast %65 : vector<1x1x128xf32> to vector<1x8x128xf32>
    %67 = arith.mulf %62, %66 : vector<1x8x128xf32>
    %68 = math.exp %67 : vector<1x8x128xf32>
    %69 = arith.addf %44, %54 : vector<1x8x128xf32>
    %70 = arith.addf %69, %68 : vector<1x8x128xf32>
    %cst_30 = arith.constant 0.333333343 : f32
    %71 = vector.broadcast %cst_30 : f32 to vector<1x8x128xf32>
    %72 = arith.mulf %70, %71 : vector<1x8x128xf32>
    %c0_31 = arith.constant 0 : index
    %c0_32 = arith.constant 0 : index
    %73 = arith.index_cast %32 : i32 to index
    %74 = vector.load %arg9[%c0_31, %c0_32, %73] : memref<1x8x128xf32, #tpu.memory_space<vmem>>, vector<1x8x128xf32>
    tpu.vector_store %arg9[%c0_31, %c0_32, %73], %72 {strides = array<i32>} : memref<1x8x128xf32, #tpu.memory_space<vmem>>, vector<1x8x128xf32>,
    %c1_i32 = arith.constant 1 : i32
    return
  }
  func.func @transform_0(%arg0: i32) -> (i32, i32, i32) {
    %c0_i32 = arith.constant 0 : i32
    %c0_i32_0 = arith.constant 0 : i32
    %c0_i32_1 = arith.constant 0 : i32
    return %arg0, %c0_i32, %c0_i32_0 : i32, i32, i32
  }
  func.func @transform_1(%arg0: i32) -> (i32, i32) {
    %c0_i32 = arith.constant 0 : i32
    %c0_i32_0 = arith.constant 0 : i32
    %c0_i32_1 = arith.constant 0 : i32
    return %c0_i32, %c0_i32_0 : i32, i32
  }
  func.func @transform_2(%arg0: i32) -> (i32, i32) {
    %c0_i32 = arith.constant 0 : i32
    %c0_i32_0 = arith.constant 0 : i32
    %c0_i32_1 = arith.constant 0 : i32
    return %c0_i32, %c0_i32_0 : i32, i32
  }
  func.func @transform_3(%arg0: i32) -> (i32, i32) {
    %c0_i32 = arith.constant 0 : i32
    %c0_i32_0 = arith.constant 0 : i32
    %c0_i32_1 = arith.constant 0 : i32
    return %c0_i32, %c0_i32_0 : i32, i32
  }
  func.func @transform_4(%arg0: i32) -> (i32, i32) {
    %c0_i32 = arith.constant 0 : i32
    %c0_i32_0 = arith.constant 0 : i32
    %c0_i32_1 = arith.constant 0 : i32
    return %c0_i32, %c0_i32_0 : i32, i32
  }
  func.func @transform_5(%arg0: i32) -> (i32, i32) {
    %c0_i32 = arith.constant 0 : i32
    %c0_i32_0 = arith.constant 0 : i32
    %c0_i32_1 = arith.constant 0 : i32
    return %c0_i32, %c0_i32_0 : i32, i32
  }
  func.func @transform_6(%arg0: i32) -> (i32, i32) {
    %c0_i32 = arith.constant 0 : i32
    %c0_i32_0 = arith.constant 0 : i32
    %c0_i32_1 = arith.constant 0 : i32
    return %c0_i32, %c0_i32_0 : i32, i32
  }
  func.func @transform_7(%arg0: i32) -> (i32, i32, i32) {
    %c0_i32 = arith.constant 0 : i32
    %c0_i32_0 = arith.constant 0 : i32
    %c0_i32_1 = arith.constant 0 : i32
    return %arg0, %c0_i32, %c0_i32_0 : i32, i32, i32
  }
  func.func @transform_8(%arg0: i32) -> (i32, i32, i32) {
    %c0_i32 = arith.constant 0 : i32
    %c0_i32_0 = arith.constant 0 : i32
    %c0_i32_1 = arith.constant 0 : i32
    return %arg0, %c0_i32, %c0_i32_0 : i32, i32, i32
  }
}

module attributes {stable_mosaic.version = 11 : i64} {
  func.func @wsgn_kernel(%arg0: i32, %arg1: memref<1x8x1024xbf16, #tpu.memory_space<vmem>>, %arg2: memref<1024x1024xbf16, #tpu.memory_space<vmem>>, %arg3: memref<1x1024xf32, #tpu.memory_space<vmem>>, %arg4: memref<1024x256xbf16, #tpu.memory_space<vmem>>, %arg5: memref<1x256xf32, #tpu.memory_space<vmem>>, %arg6: memref<1x128xf32, #tpu.memory_space<vmem>>, %arg7: memref<1x128xf32, #tpu.memory_space<vmem>>, %arg8: memref<1x8x128xf32, #tpu.memory_space<vmem>>, %arg9: memref<1x8x128xf32, #tpu.memory_space<vmem>>) attributes {dimension_semantics = [#tpu.dimension_semantics<parallel>], iteration_bounds = array<i64: 2>, scalar_prefetch = 0 : i64, scratch_operands = 0 : i64, tpu.core_type = #tpu.core_type<tc>, window_params = [{transform_indices = @transform_0, window_bounds = array<i64: 1, 8, 1024>}, {pipeline_mode = #tpu.pipeline_mode<synchronous>, transform_indices = @transform_1, window_bounds = array<i64: 1024, 1024>}, {pipeline_mode = #tpu.pipeline_mode<synchronous>, transform_indices = @transform_2, window_bounds = array<i64: 1, 1024>}, {pipeline_mode = #tpu.pipeline_mode<synchronous>, transform_indices = @transform_3, window_bounds = array<i64: 1024, 256>}, {pipeline_mode = #tpu.pipeline_mode<synchronous>, transform_indices = @transform_4, window_bounds = array<i64: 1, 256>}, {pipeline_mode = #tpu.pipeline_mode<synchronous>, transform_indices = @transform_5, window_bounds = array<i64: 1, 128>}, {pipeline_mode = #tpu.pipeline_mode<synchronous>, transform_indices = @transform_6, window_bounds = array<i64: 1, 128>}, {transform_indices = @transform_7, window_bounds = array<i64: 1, 8, 128>}, {transform_indices = @transform_8, window_bounds = array<i64: 1, 8, 128>}]} {
    %c0 = arith.constant 0 : index
    %c0_0 = arith.constant 0 : index
    %c0_1 = arith.constant 0 : index
    %0 = vector.load %arg1[%c0, %c0_0, %c0_1] : memref<1x8x1024xbf16, #tpu.memory_space<vmem>>, vector<1x8x1024xbf16>
    %1 = vector.shape_cast %0 : vector<1x8x1024xbf16> to vector<8x1024xbf16>
    %c0_2 = arith.constant 0 : index
    %c0_3 = arith.constant 0 : index
    %2 = vector.load %arg2[%c0_2, %c0_3] : memref<1024x1024xbf16, #tpu.memory_space<vmem>>, vector<1024x1024xbf16>
    %cst = arith.constant dense<0.000000e+00> : vector<8x1024xf32>
    %3 = tpu.matmul %1, %2, %cst {dimension_numbers = #tpu.dot_dimension_numbers<[1], [0], [0], [1], [0, 0, 1, 1], [], []>} : vector<8x1024xbf16>, vector<1024x1024xbf16>, vector<8x1024xf32> -> vector<8x1024xf32>
    %c0_4 = arith.constant 0 : index
    %c0_5 = arith.constant 0 : index
    %4 = vector.load %arg3[%c0_4, %c0_5] : memref<1x1024xf32, #tpu.memory_space<vmem>>, vector<1x1024xf32>
    %5 = vector.broadcast %4 : vector<1x1024xf32> to vector<8x1024xf32>
    %6 = arith.addf %3, %5 : vector<8x1024xf32>
    %cst_6 = arith.constant 0.000000e+00 : f32
    %7 = vector.broadcast %cst_6 : f32 to vector<8x1024xf32>
    %8 = arith.maximumf %6, %7 : vector<8x1024xf32>
    %9 = arith.truncf %8 : vector<8x1024xf32> to vector<8x1024xbf16>
    %c0_7 = arith.constant 0 : index
    %c0_8 = arith.constant 0 : index
    %10 = vector.load %arg4[%c0_7, %c0_8] : memref<1024x256xbf16, #tpu.memory_space<vmem>>, vector<1024x256xbf16>
    %cst_9 = arith.constant dense<0.000000e+00> : vector<8x256xf32>
    %11 = tpu.matmul %9, %10, %cst_9 {dimension_numbers = #tpu.dot_dimension_numbers<[1], [0], [0], [1], [0, 0, 1, 1], [], []>} : vector<8x1024xbf16>, vector<1024x256xbf16>, vector<8x256xf32> -> vector<8x256xf32>
    %c0_10 = arith.constant 0 : index
    %c0_11 = arith.constant 0 : index
    %12 = vector.load %arg5[%c0_10, %c0_11] : memref<1x256xf32, #tpu.memory_space<vmem>>, vector<1x256xf32>
    %13 = vector.broadcast %12 : vector<1x256xf32> to vector<8x256xf32>
    %14 = arith.addf %11, %13 : vector<8x256xf32>
    %15 = vector.extract_strided_slice %14 {offsets = [0, 0], sizes = [8, 128], strides = [1, 1]} : vector<8x256xf32> to vector<8x128xf32>
    %cst_12 = arith.constant dense<0xFF800000> : vector<8xf32>
    %16 = vector.multi_reduction <maximumf>, %15, %cst_12 [1] : vector<8x128xf32> to vector<8xf32>
    %17 = vector.shape_cast %16 : vector<8xf32> to vector<8x1xf32>
    %18 = vector.broadcast %17 : vector<8x1xf32> to vector<8x128xf32>
    %19 = arith.subf %15, %18 : vector<8x128xf32>
    %20 = math.exp %19 : vector<8x128xf32>
    %cst_13 = arith.constant dense<0.000000e+00> : vector<8xf32>
    %21 = vector.multi_reduction <add>, %20, %cst_13 [1] : vector<8x128xf32> to vector<8xf32>
    %22 = vector.shape_cast %21 : vector<8xf32> to vector<8x1xf32>
    %23 = tpu.reciprocal %22 {approx = true} : vector<8x1xf32> -> vector<8x1xf32>
    %24 = vector.broadcast %23 : vector<8x1xf32> to vector<8x128xf32>
    %25 = arith.mulf %20, %24 : vector<8x128xf32>
    %26 = vector.shape_cast %25 : vector<8x128xf32> to vector<1x8x128xf32>
    %c0_14 = arith.constant 0 : index
    %c0_15 = arith.constant 0 : index
    %c0_16 = arith.constant 0 : index
    %27 = vector.load %arg8[%c0_14, %c0_15, %c0_16] : memref<1x8x128xf32, #tpu.memory_space<vmem>>, vector<1x8x128xf32>
    tpu.vector_store %arg8[%c0_14, %c0_15, %c0_16], %26 {strides = array<i32>} : memref<1x8x128xf32, #tpu.memory_space<vmem>>, vector<1x8x128xf32>,
    %28 = vector.extract_strided_slice %14 {offsets = [0, 128], sizes = [8, 128], strides = [1, 1]} : vector<8x256xf32> to vector<8x128xf32>
    %29 = vector.shape_cast %28 : vector<8x128xf32> to vector<1x8x128xf32>
    %c0_17 = arith.constant 0 : index
    %c0_18 = arith.constant 0 : index
    %c0_19 = arith.constant 0 : index
    %30 = vector.load %arg9[%c0_17, %c0_18, %c0_19] : memref<1x8x128xf32, #tpu.memory_space<vmem>>, vector<1x8x128xf32>
    tpu.vector_store %arg9[%c0_17, %c0_18, %c0_19], %29 {strides = array<i32>} : memref<1x8x128xf32, #tpu.memory_space<vmem>>, vector<1x8x128xf32>,
    %c0_i32 = arith.constant 0 : i32
    %c128_i32 = arith.constant 128 : i32
    %31 = arith.muli %c0_i32, %c128_i32 : i32
    %32 = tpu.assume_multiple %31, 128 : i32
    %c0_20 = arith.constant 0 : index
    %c0_21 = arith.constant 0 : index
    %33 = arith.index_cast %32 : i32 to index
    %34 = vector.load %arg9[%c0_20, %c0_21, %33] : memref<1x8x128xf32, #tpu.memory_space<vmem>>, vector<1x8x128xf32>
    %cst_22 = arith.constant dense<0xFF800000> : vector<1x128xf32>
    %35 = vector.multi_reduction <maximumf>, %34, %cst_22 [1] : vector<1x8x128xf32> to vector<1x128xf32>
    %36 = vector.shape_cast %35 : vector<1x128xf32> to vector<1x1x128xf32>
    %37 = vector.broadcast %36 : vector<1x1x128xf32> to vector<1x8x128xf32>
    %38 = arith.subf %34, %37 : vector<1x8x128xf32>
    %39 = math.exp %38 : vector<1x8x128xf32>
    %cst_23 = arith.constant dense<0.000000e+00> : vector<1x128xf32>
    %40 = vector.multi_reduction <add>, %39, %cst_23 [1] : vector<1x8x128xf32> to vector<1x128xf32>
    %41 = vector.shape_cast %40 : vector<1x128xf32> to vector<1x1x128xf32>
    %42 = tpu.reciprocal %41 {approx = true} : vector<1x1x128xf32> -> vector<1x1x128xf32>
    %43 = vector.broadcast %42 : vector<1x1x128xf32> to vector<1x8x128xf32>
    %44 = arith.mulf %39, %43 : vector<1x8x128xf32>
    %cst_24 = arith.constant dense<0.000000e+00> : vector<1x128xf32>
    %45 = vector.multi_reduction <add>, %34, %cst_24 [1] : vector<1x8x128xf32> to vector<1x128xf32>
    %46 = vector.shape_cast %45 : vector<1x128xf32> to vector<1x1x128xf32>
    %cst_25 = arith.constant 1.250000e-01 : f32
    %47 = vector.broadcast %cst_25 : f32 to vector<1x1x128xf32>
    %48 = arith.mulf %46, %47 : vector<1x1x128xf32>
    %49 = vector.broadcast %48 : vector<1x1x128xf32> to vector<1x8x128xf32>
    %50 = arith.subf %34, %49 : vector<1x8x128xf32>
    %51 = arith.mulf %50, %50 : vector<1x8x128xf32>
    %cst_26 = arith.constant 0.000000e+00 : f32
    %52 = vector.broadcast %cst_26 : f32 to vector<1x8x128xf32>
    %53 = arith.subf %52, %51 : vector<1x8x128xf32>
    %54 = math.exp %53 : vector<1x8x128xf32>
    %c0_27 = arith.constant 0 : index
    %55 = arith.index_cast %32 : i32 to index
    %56 = vector.load %arg6[%c0_27, %55] : memref<1x128xf32, #tpu.memory_space<vmem>>, vector<1x128xf32>
    %57 = vector.shape_cast %56 : vector<1x128xf32> to vector<1x1x128xf32>
    %58 = vector.broadcast %57 : vector<1x1x128xf32> to vector<1x8x128xf32>
    %59 = arith.subf %34, %58 : vector<1x8x128xf32>
    %60 = arith.mulf %59, %59 : vector<1x8x128xf32>
    %cst_28 = arith.constant 0.000000e+00 : f32
    %61 = vector.broadcast %cst_28 : f32 to vector<1x8x128xf32>
    %62 = arith.subf %61, %60 : vector<1x8x128xf32>
    %c0_29 = arith.constant 0 : index
    %63 = arith.index_cast %32 : i32 to index
    %64 = vector.load %arg7[%c0_29, %63] : memref<1x128xf32, #tpu.memory_space<vmem>>, vector<1x128xf32>
    %65 = vector.shape_cast %64 : vector<1x128xf32> to vector<1x1x128xf32>
    %66 = vector.broadcast %65 : vector<1x1x128xf32> to vector<1x8x128xf32>
    %67 = arith.mulf %62, %66 : vector<1x8x128xf32>
    %68 = math.exp %67 : vector<1x8x128xf32>
    %69 = arith.addf %44, %54 : vector<1x8x128xf32>
    %70 = arith.addf %69, %68 : vector<1x8x128xf32>
    %cst_30 = arith.constant 0.333333343 : f32
    %71 = vector.broadcast %cst_30 : f32 to vector<1x8x128xf32>
    %72 = arith.mulf %70, %71 : vector<1x8x128xf32>
    %c0_31 = arith.constant 0 : index
    %c0_32 = arith.constant 0 : index
    %73 = arith.index_cast %32 : i32 to index
    %74 = vector.load %arg9[%c0_31, %c0_32, %73] : memref<1x8x128xf32, #tpu.memory_space<vmem>>, vector<1x8x128xf32>
    tpu.vector_store %arg9[%c0_31, %c0_32, %73], %72 {strides = array<i32>} : memref<1x8x128xf32, #tpu.memory_space<vmem>>, vector<1x8x128xf32>,
    %c1_i32 = arith.constant 1 : i32
    return
  }
  func.func @transform_0(%arg0: i32) -> (i32, i32, i32) {
    %c0_i32 = arith.constant 0 : i32
    %c0_i32_0 = arith.constant 0 : i32
    %c0_i32_1 = arith.constant 0 : i32
    return %arg0, %c0_i32, %c0_i32_0 : i32, i32, i32
  }
  func.func @transform_1(%arg0: i32) -> (i32, i32) {
    %c0_i32 = arith.constant 0 : i32
    %c0_i32_0 = arith.constant 0 : i32
    %c0_i32_1 = arith.constant 0 : i32
    return %c0_i32, %c0_i32_0 : i32, i32
  }
  func.func @transform_2(%arg0: i32) -> (i32, i32) {
    %c0_i32 = arith.constant 0 : i32
    %c0_i32_0 = arith.constant 0 : i32
    %c0_i32_1 = arith.constant 0 : i32
    return %c0_i32, %c0_i32_0 : i32, i32
  }
  func.func @transform_3(%arg0: i32) -> (i32, i32) {
    %c0_i32 = arith.constant 0 : i32
    %c0_i32_0 = arith.constant 0 : i32
    %c0_i32_1 = arith.constant 0 : i32
    return %c0_i32, %c0_i32_0 : i32, i32
  }
  func.func @transform_4(%arg0: i32) -> (i32, i32) {
    %c0_i32 = arith.constant 0 : i32
    %c0_i32_0 = arith.constant 0 : i32
    %c0_i32_1 = arith.constant 0 : i32
    return %c0_i32, %c0_i32_0 : i32, i32
  }
  func.func @transform_5(%arg0: i32) -> (i32, i32) {
    %c0_i32 = arith.constant 0 : i32
    %c0_i32_0 = arith.constant 0 : i32
    %c0_i32_1 = arith.constant 0 : i32
    return %c0_i32, %c0_i32_0 : i32, i32
  }
  func.func @transform_6(%arg0: i32) -> (i32, i32) {
    %c0_i32 = arith.constant 0 : i32
    %c0_i32_0 = arith.constant 0 : i32
    %c0_i32_1 = arith.constant 0 : i32
    return %c0_i32, %c0_i32_0 : i32, i32
  }
  func.func @transform_7(%arg0: i32) -> (i32, i32, i32) {
    %c0_i32 = arith.constant 0 : i32
    %c0_i32_0 = arith.constant 0 : i32
    %c0_i32_1 = arith.constant 0 : i32
    return %arg0, %c0_i32, %c0_i32_0 : i32, i32, i32
  }
  func.func @transform_8(%arg0: i32) -> (i32, i32, i32) {
    %c0_i32 = arith.constant 0 : i32
    %c0_i32_0 = arith.constant 0 : i32
    %c0_i32_1 = arith.constant 0 : i32
    return %arg0, %c0_i32, %c0_i32_0 : i32, i32, i32
  }
}

</mosaic_0001>

<bundles_post_ra>
// kernel: _wsgn_impl.2
= control target key start
LH: loop header
LB: loop body
LE: loop exit
PB: predicated region body
PF: predicated region fallthrough
CT: control target
= control target key end

     0   :  { %s6326_s27 = smov 0   ;;  %s8481_s0 = inlined_call_operand.vmem [shape: bf16[1024,1024], index: 0, kind: input, shape index: {}]   ;;  %s8482_s1 = inlined_call_operand.vmem [shape: f32[1,1024], index: 1, kind: input, shape index: {}]   ;;  %s8483_s2 = inlined_call_operand.vmem [shape: bf16[1024,256], index: 2, kind: input, shape index: {}]   ;;  %s8484_s3 = inlined_call_operand.vmem [shape: f32[1,256], index: 3, kind: input, shape index: {}]   ;;  %s8485_s4 = inlined_call_operand.vmem [shape: f32[1,128], index: 4, kind: input, shape index: {}]   ;;  %s8486_s5 = inlined_call_operand.vmem [shape: f32[1,128], index: 5, kind: input, shape index: {}]   ;;  %s8487_s6 = inlined_call_operand.vmem [shape: f32[2,1024,8,1], index: 6, kind: input, shape index: {}]   ;;  %s8488_s7 = inlined_call_operand.vmem [shape: f32[2,8,128], index: 7, kind: output, shape index: {0}]   ;;  %s8489_s8 = inlined_call_operand.vmem [shape: f32[2,8,128], index: 8, kind: output, shape index: {1}]  }
   0x1 LB: > { %s6332_s28 = sadd.s32 4294967295, %s6278_s27   ;;  %p5380_p0 = scmp.ge.s32.totalorder %s6278_s27, 1  ;;  %s6278_s27 = sphi %s6326_s27, %s19_s27  }
   0x2   : > { %p268_p1 = scmp.lt.s32.totalorder %s6278_s27, 3 }
   0x4   : > { %p269_p2 = pnand %p5380_p0, %p268_p1 }
   0x6   : > { %272 = sbr.rel (%p269_p2) target bundleno = 1248 (0x4e0), region = 48 }
   0xb   : > { %v523_v0 = vld [vmem:[%s8481_s0 + $0x1c0] sm:$0xff]  ;;  %s321_s19 = ssub.s32 1, %s6332_s28  ;;  %s5383_s18 = sshll.u32 %s6332_s28, 6 }
   0xc   : > { %v527_v1 = vld [vmem:[%s8481_s0 + $0x1e0] sm:$0xff]  ;;  %s322_s12 = sor.u32 %s6332_s28, %s321_s19  ;;  %s6423_s26 = scalar_lea.vmem %s8487_s6, %s5383_s18 }
   0xd   : > { %v651_v2 = vld [vmem:[%s8481_s0 + $0x5c0] sm:$0xff]  ;;  %v5463_v3 = vcombine.high %v523_v0, %v527_v1  ;;  %v5462_v5 = vcombine.low %v523_v0, %v527_v1  ;;  %p323_p3 = scmp.lt.s32.totalorder %s322_s12, 0  ;;  %p311_p4 = scmp.lt.s32.totalorder %s6332_s28, 1 }
   0xe   : > { %v655_v4 = vld [vmem:[%s8481_s0 + $0x5e0] sm:$0xff] }
   0xf   : > { %v515_v6 = vld [vmem:[%s8481_s0 + $0x180] sm:$0xff]  ;;  %v5591_v8 = vcombine.high %v651_v2, %v655_v4  ;;  %v5590_v9 = vcombine.low %v651_v2, %v655_v4  ;;  %3609 = vmatprep.subr.bf16.mxu0 %v5463_v3  ;;  %s6398_s9 = scalar_select %p323_p3, 0, 255 }
  0x10   : > { %v519_v7 = vld [vmem:[%s8481_s0 + $0x1a0] sm:$0xff]  ;;  %3610 = vmatpush1.bf16.msra.mxu0 %v5462_v5  ;;  %s8491_s28 = smov (!%p311_p4, %s6332_s28), 1 }
  0x11   : > { %v5455_v10 = vcombine.high %v515_v6, %v519_v7  ;;  %v643_v11 = vld [vmem:[%s8481_s0 + $0x580] sm:$0xff]  ;;  %3650 = vmatprep.subr.bf16.mxu1 %v5591_v8  ;;  %v5454_v18 = vcombine.low %v515_v6, %v519_v7  ;;  %s327_s20 = sand.u32 255, %s6398_s9  ;;  %v6280_v6 = vmov 0.0   ;;  %s5381_s16 = sshll.u32 %s8491_s28, 3 }
  0x12   : > { %v647_v12 = vld [vmem:[%s8481_s0 + $0x5a0] sm:$0xff]  ;;  %3651 = vmatpush1.bf16.msra.mxu1 %v5590_v9  ;;  %s6425_s29 = sand.u32 15, %s327_s20  ;;  %s6433_s12 = sand.u32 240, %s327_s20 }
  0x13   : > { %v507_v13 = vld [vmem:[%s8481_s0 + $0x140] sm:$0xff]  ;;  %v5583_v14 = vcombine.high %v643_v11, %v647_v12  ;;  %3611 = vmatprep.subr.bf16.mxu0 %v5455_v10  ;;  %v5582_v19 = vcombine.low %v643_v11, %v647_v12  ;;  %s318_s20 = scalar_lea.vmem %s8489_s8, %s5381_s16  ;;  %s314_s21 = scalar_lea.vmem %s8488_s7, %s5381_s16 }
  0x14   : > { %v511_v15 = vld [vmem:[%s8481_s0 + $0x160] sm:$0xff]  ;;  %3612 = vmatpush1.bf16.msra.mxu0 %v5454_v18 }
  0x15   : > { %v635_v16 = vld [vmem:[%s8481_s0 + $0x540] sm:$0xff]  ;;  %v5447_v20 = vcombine.high %v507_v13, %v511_v15  ;;  %3652 = vmatprep.subr.bf16.mxu1 %v5583_v14  ;;  %v5446_v26 = vcombine.low %v507_v13, %v511_v15 }
  0x16   : > { %v639_v17 = vld [vmem:[%s8481_s0 + $0x560] sm:$0xff]  ;;  %3653 = vmatpush1.bf16.msra.mxu1 %v5582_v19 }
  0x17   : > { %v5575_v21 = vcombine.high %v635_v16, %v639_v17  ;;  %v499_v22 = vld [vmem:[%s8481_s0 + $0x100] sm:$0xff]  ;;  %3613 = vmatprep.subr.bf16.mxu0 %v5447_v20  ;;  %v5574_v27 = vcombine.low %v635_v16, %v639_v17 }
  0x18   : > { %v503_v23 = vld [vmem:[%s8481_s0 + $0x120] sm:$0xff]  ;;  %3614 = vmatpush1.bf16.msra.mxu0 %v5446_v26 }
  0x19   : > { %v627_v24 = vld [vmem:[%s8481_s0 + $0x500] sm:$0xff]  ;;  %v5439_v28 = vcombine.high %v499_v22, %v503_v23  ;;  %3654 = vmatprep.subr.bf16.mxu1 %v5575_v21  ;;  %v5438_v34 = vcombine.low %v499_v22, %v503_v23 }
  0x1a   : > { %v631_v25 = vld [vmem:[%s8481_s0 + $0x520] sm:$0xff]  ;;  %3655 = vmatpush1.bf16.msra.mxu1 %v5574_v27 }
  0x1b   : > { %v5567_v29 = vcombine.high %v627_v24, %v631_v25  ;;  %v491_v30 = vld [vmem:[%s8481_s0 + $0xc0] sm:$0xff]  ;;  %3615 = vmatprep.subr.bf16.mxu0 %v5439_v28  ;;  %v5566_v35 = vcombine.low %v627_v24, %v631_v25 }
  0x1c   : > { %v495_v31 = vld [vmem:[%s8481_s0 + $0xe0] sm:$0xff]  ;;  %3616 = vmatpush1.bf16.msra.mxu0 %v5438_v34 }
  0x1d   : > { %v619_v32 = vld [vmem:[%s8481_s0 + $0x4c0] sm:$0xff]  ;;  %v5431_v36 = vcombine.high %v491_v30, %v495_v31  ;;  %3656 = vmatprep.subr.bf16.mxu1 %v5567_v29  ;;  %v5430_v42 = vcombine.low %v491_v30, %v495_v31 }
  0x1e   : > { %v623_v33 = vld [vmem:[%s8481_s0 + $0x4e0] sm:$0xff]  ;;  %3657 = vmatpush1.bf16.msra.mxu1 %v5566_v35 }
  0x1f   : > { %v5559_v37 = vcombine.high %v619_v32, %v623_v33  ;;  %v483_v38 = vld [vmem:[%s8481_s0 + $0x80] sm:$0xff]  ;;  %3617 = vmatprep.subr.bf16.mxu0 %v5431_v36  ;;  %v5558_v43 = vcombine.low %v619_v32, %v623_v33 }
  0x20   : > { %v487_v39 = vld [vmem:[%s8481_s0 + $0xa0] sm:$0xff]  ;;  %3618 = vmatpush1.bf16.msra.mxu0 %v5430_v42 }
  0x21   : > { %v611_v40 = vld [vmem:[%s8481_s0 + $0x480] sm:$0xff]  ;;  %v5423_v44 = vcombine.high %v483_v38, %v487_v39  ;;  %3658 = vmatprep.subr.bf16.mxu1 %v5559_v37  ;;  %v5422_v50 = vcombine.low %v483_v38, %v487_v39 }
  0x22   : > { %v615_v41 = vld [vmem:[%s8481_s0 + $0x4a0] sm:$0xff]  ;;  %3659 = vmatpush1.bf16.msra.mxu1 %v5558_v43 }
  0x23   : > { %v5551_v45 = vcombine.high %v611_v40, %v615_v41  ;;  %v475_v46 = vld [vmem:[%s8481_s0 + $0x40] sm:$0xff]  ;;  %3619 = vmatprep.subr.bf16.mxu0 %v5423_v44  ;;  %v5550_v53 = vcombine.low %v611_v40, %v615_v41 }
  0x24   : > { %v479_v47 = vld [vmem:[%s8481_s0 + $0x60] sm:$0xff]  ;;  %3620 = vmatpush1.bf16.msra.mxu0 %v5422_v50 }
  0x25   : > { %v603_v48 = vld [vmem:[%s8481_s0 + $0x440] sm:$0xff]  ;;  %v5415_v54 = vcombine.high %v475_v46, %v479_v47  ;;  %3660 = vmatprep.subr.bf16.mxu1 %v5551_v45  ;;  %v5414_v0 = vcombine.low %v475_v46, %v479_v47 }
  0x26   : > { %v607_v49 = vld [vmem:[%s8481_s0 + $0x460] sm:$0xff]  ;;  %3661 = vmatpush1.bf16.msra.mxu1 %v5550_v53 }
  0x27   : > { %v467_v51 = vld [vmem:[%s8481_s0] sm:$0xff]  ;;  %v5543_v58 = vcombine.high %v603_v48, %v607_v49  ;;  %v5542_v1 = vcombine.low %v603_v48, %v607_v49  ;;  %3621 = vmatprep.subr.bf16.mxu0 %v5415_v54 }
  0x28   : > { %v471_v52 = vld [vmem:[%s8481_s0 + $0x20] sm:$0xff]  ;;  %3622 = vmatpush1.bf16.msra.mxu0 %v5414_v0 }
  0x29   : > { %v595_v55 = vld [vmem:[%s8481_s0 + $0x400] sm:$0xff]  ;;  %v5407_v5 = vcombine.high %v467_v51, %v471_v52  ;;  %3662 = vmatprep.subr.bf16.mxu1 %v5543_v58  ;;  %v5406_v18 = vcombine.low %v467_v51, %v471_v52 }
  0x2a   : > { %v599_v56 = vld [vmem:[%s8481_s0 + $0x420] sm:$0xff]  ;;  %3663 = vmatpush1.bf16.msra.mxu1 %v5542_v1 }
  0x2b   : > { %v329_v57 = vld [vmem:[%s6423_s26] ss:$8 sm:%s6425_s29]  ;;  %v5384_v60 = vld [vmem:[%s6423_s26 + $0x1] ss:$8 sm:%s6425_s29]  ;;  %v5535_v10 = vcombine.high %v595_v55, %v599_v56  ;;  %3623 = vmatprep.subr.bf16.mxu0 %v5407_v5  ;;  %v5534_v20 = vcombine.low %v595_v55, %v599_v56 }
  0x2c   : > { %v331_v59 = vld [vmem:[%s6423_s26] ss:$8 sm:%s6433_s12]  ;;  %v5385_v62 = vld [vmem:[%s6423_s26 + $0x1] ss:$8 sm:%s6433_s12]  ;;  %3624 = vmatpush1.bf16.msra.mxu0 %v5406_v18 }
  0x2d   : > { %v332_v61 = vor.u32 %v331_v59, %v329_v57  ;;  %v5386_v63 = vld [vmem:[%s6423_s26 + $0x2] ss:$8 sm:%s6425_s29]  ;;  %v349_v2 = vor.u32 %v5385_v62, %v5384_v60  ;;  %v5388_v4 = vld [vmem:[%s6423_s26 + $0x3] ss:$8 sm:%s6425_s29]  ;;  %3664 = vmatprep.subr.bf16.mxu1 %v5535_v10 }
  0x2e   : > { %v5387_v3 = vld [vmem:[%s6423_s26 + $0x2] ss:$8 sm:%s6433_s12]  ;;  %v5389_v9 = vld [vmem:[%s6423_s26 + $0x3] ss:$8 sm:%s6433_s12]  ;;  %3665 = vmatpush1.bf16.msra.mxu1 %v5534_v20 }
  0x2f   : > { %v333_v7 = vpack.c.bf16 %v6280_v6, %v332_v61  ;;  %v367_v8 = vor.u32 %v5387_v3, %v5386_v63  ;;  %v587_v11 = vld [vmem:[%s8481_s0 + $0x3c0] sm:$0xff]  ;;  %v351_v13 = vpack.c.bf16 %v6280_v6, %v349_v2  ;;  %v385_v14 = vor.u32 %v5389_v9, %v5388_v4 }
  0x30   : > { %v591_v12 = vld [vmem:[%s8481_s0 + $0x3e0] sm:$0xff] }
  0x31   : > { %v715_v15 = vld [vmem:[%s8481_s0 + $0x7c0] sm:$0xff]  ;;  %336 = vst [vmem:[#allocation2] sm:$0xf] %v333_v7  ;;  %v369_v17 = vpack.c.bf16 %v6280_v6, %v367_v8  ;;  %354 = vst [vmem:[#allocation2 + $0x4] sm:$0xf] %v351_v13  ;;  %v387_v19 = vpack.c.bf16 %v6280_v6, %v385_v14  ;;  %v5527_v21 = vcombine.high %v587_v11, %v591_v12 }
  0x32   : > { %v719_v16 = vld [vmem:[%s8481_s0 + $0x7e0] sm:$0xff]  ;;  %v5526_v27 = vcombine.low %v587_v11, %v591_v12 }
  0x33   : > { %372 = vst [vmem:[#allocation2 + $0x8] sm:$0xf] %v369_v17  ;;  %v5655_v22 = vcombine.high %v715_v15, %v719_v16  ;;  %v579_v23 = vld [vmem:[%s8481_s0 + $0x380] sm:$0xff]  ;;  %390 = vst [vmem:[#allocation2 + $0xc] sm:$0xf] %v387_v19  ;;  %3625 = vmatprep.subr.bf16.mxu0 %v5527_v21  ;;  %v5654_v28 = vcombine.low %v715_v15, %v719_v16 }
  0x34   : > { %v583_v24 = vld [vmem:[%s8481_s0 + $0x3a0] sm:$0xff]  ;;  %3626 = vmatpush2.bf16.msra.mxu0 %v5526_v27 }
  0x35   : > { %v707_v25 = vld [vmem:[%s8481_s0 + $0x780] sm:$0xff]  ;;  %v5519_v29 = vcombine.high %v579_v23, %v583_v24  ;;  %3666 = vmatprep.subr.bf16.mxu1 %v5655_v22  ;;  %v5518_v36 = vcombine.low %v579_v23, %v583_v24 }
  0x36   : > { %v711_v26 = vld [vmem:[%s8481_s0 + $0x7a0] sm:$0xff]  ;;  %3667 = vmatpush2.bf16.msra.mxu1 %v5654_v28 }
  0x37   : > { %v5647_v30 = vcombine.high %v707_v25, %v711_v26  ;;  %v571_v31 = vld [vmem:[%s8481_s0 + $0x340] sm:$0xff]  ;;  %3627 = vmatprep.subr.bf16.mxu0 %v5519_v29  ;;  %v5646_v38 = vcombine.low %v707_v25, %v711_v26 }
  0x38   : > { %v575_v32 = vld [vmem:[%s8481_s0 + $0x360] sm:$0xff]  ;;  %3628 = vmatpush2.bf16.msra.mxu0 %v5518_v36 }
  0x39   : > { %v699_v33 = vld [vmem:[%s8481_s0 + $0x740] sm:$0xff]  ;;  %v5511_v39 = vcombine.high %v571_v31, %v575_v32  ;;  %3668 = vmatprep.subr.bf16.mxu1 %v5647_v30  ;;  %v5510_v47 = vcombine.low %v571_v31, %v575_v32 }
  0x3a   : > { %v703_v34 = vld [vmem:[%s8481_s0 + $0x760] sm:$0xff]  ;;  %v6509_v40 = vld [vmem:[#allocation2 + $0x8] sm:$0xff]  ;;  %3669 = vmatpush2.bf16.msra.mxu1 %v5646_v38 }
  0x3b   : > { %v6503_v35 = vld [vmem:[#allocation2] sm:$0xff]  ;;  %v5639_v41 = vcombine.high %v699_v33, %v703_v34  ;;  %v6520_v44 = vcombine.high %v6509_v40, %v6509_v40  ;;  %3629 = vmatprep.subr.bf16.mxu0 %v5511_v39  ;;  %v5638_v48 = vcombine.low %v699_v33, %v703_v34 }
  0x3c   : > { %v6507_v37 = vcombine.high %v6503_v35, %v6503_v35  ;;  %v563_v42 = vld [vmem:[%s8481_s0 + $0x300] sm:$0xff]  ;;  %3630 = vmatpush2.bf16.msra.mxu0 %v5510_v47 }
  0x3d   : > { %v567_v43 = vld [vmem:[%s8481_s0 + $0x320] sm:$0xff]  ;;  %3682 = vmatprep.mubr.bf16.mxu1 %v6520_v44  ;;  %3670 = vmatprep.subr.bf16.mxu1 %v5639_v41 }
  0x3e   : > { %3641 = vmatprep.mubr.bf16.mxu0 %v6507_v37  ;;  %v691_v45 = vld [vmem:[%s8481_s0 + $0x700] sm:$0xff]  ;;  %v5503_v49 = vcombine.high %v563_v42, %v567_v43  ;;  %v5502_v55 = vcombine.low %v563_v42, %v567_v43  ;;  %3671 = vmatpush2.bf16.msra.mxu1 %v5638_v48 }
  0x3f   : > { %v695_v46 = vld [vmem:[%s8481_s0 + $0x720] sm:$0xff] }
  0x40   : > { %v5631_v50 = vcombine.high %v691_v45, %v695_v46  ;;  %v555_v51 = vld [vmem:[%s8481_s0 + $0x2c0] sm:$0xff]  ;;  %3631 = vmatprep.subr.bf16.mxu0 %v5503_v49  ;;  %v5630_v56 = vcombine.low %v691_v45, %v695_v46  ;;  %v6617_v49 = vcombine.low %v6503_v35, %v6503_v35 }
  0x41   : > { %v559_v52 = vld [vmem:[%s8481_s0 + $0x2e0] sm:$0xff]  ;;  %3632 = vmatpush2.bf16.msra.mxu0 %v5502_v55 }
  0x42   : > { %v683_v53 = vld [vmem:[%s8481_s0 + $0x6c0] sm:$0xff]  ;;  %v5495_v57 = vcombine.high %v555_v51, %v559_v52  ;;  %3672 = vmatprep.subr.bf16.mxu1 %v5631_v50  ;;  %v5494_v1 = vcombine.low %v555_v51, %v559_v52 }
  0x43   : > { %v687_v54 = vld [vmem:[%s8481_s0 + $0x6e0] sm:$0xff]  ;;  %3673 = vmatpush2.bf16.msra.mxu1 %v5630_v56 }
  0x44   : > { %v547_v58 = vld [vmem:[%s8481_s0 + $0x280] sm:$0xff]  ;;  %v5623_v59 = vcombine.high %v683_v53, %v687_v54  ;;  %3633 = vmatprep.subr.bf16.mxu0 %v5495_v57  ;;  %v5622_v8 = vcombine.low %v683_v53, %v687_v54  ;;  %v6629_v53 = vcombine.low %v6509_v40, %v6509_v40 }
  0x45   : > { %v551_v60 = vld [vmem:[%s8481_s0 + $0x2a0] sm:$0xff]  ;;  %3634 = vmatpush2.bf16.msra.mxu0 %v5494_v1 }
  0x46   : > { %v675_v61 = vld [vmem:[%s8481_s0 + $0x680] sm:$0xff]  ;;  %v5487_v9 = vcombine.high %v547_v58, %v551_v60  ;;  %3674 = vmatprep.subr.bf16.mxu1 %v5623_v59  ;;  %v5486_v22 = vcombine.low %v547_v58, %v551_v60 }
  0x47   : > { %v679_v62 = vld [vmem:[%s8481_s0 + $0x6a0] sm:$0xff]  ;;  %3675 = vmatpush2.bf16.msra.mxu1 %v5622_v8 }
  0x48   : > { %v5390_v63 = vld [vmem:[%s6423_s26 + $0x4] ss:$8 sm:%s6425_s29]  ;;  %v5392_v5 = vld [vmem:[%s6423_s26 + $0x5] ss:$8 sm:%s6425_s29]  ;;  %v5615_v13 = vcombine.high %v675_v61, %v679_v62  ;;  %3635 = vmatprep.subr.bf16.mxu0 %v5487_v9  ;;  %v5614_v24 = vcombine.low %v675_v61, %v679_v62 }
  0x49   : > { %v5391_v0 = vld [vmem:[%s6423_s26 + $0x4] ss:$8 sm:%s6433_s12]  ;;  %v5393_v7 = vld [vmem:[%s6423_s26 + $0x5] ss:$8 sm:%s6433_s12]  ;;  %3636 = vmatpush2.bf16.msra.mxu0 %v5486_v22 }
  0x4a   : > { %v539_v2 = vld [vmem:[%s8481_s0 + $0x240] sm:$0xff]  ;;  %v403_v4 = vor.u32 %v5391_v0, %v5390_v63  ;;  %v421_v10 = vor.u32 %v5393_v7, %v5392_v5  ;;  %3676 = vmatprep.subr.bf16.mxu1 %v5615_v13 }
  0x4b   : > { %v543_v3 = vld [vmem:[%s8481_s0 + $0x260] sm:$0xff]  ;;  %3677 = vmatpush2.bf16.msra.mxu1 %v5614_v24 }
  0x4c   : > { %v5394_v11 = vld [vmem:[%s6423_s26 + $0x6] ss:$8 sm:%s6425_s29]  ;;  %v405_v14 = vpack.c.bf16 %v6280_v6, %v403_v4  ;;  %v5396_v16 = vld [vmem:[%s6423_s26 + $0x7] ss:$8 sm:%s6425_s29]  ;;  %v423_v20 = vpack.c.bf16 %v6280_v6, %v421_v10  ;;  %v5479_v25 = vcombine.high %v539_v2, %v543_v3 }
  0x4d   : > { %v5395_v12 = vld [vmem:[%s6423_s26 + $0x6] ss:$8 sm:%s6433_s12]  ;;  %v5397_v17 = vld [vmem:[%s6423_s26 + $0x7] ss:$8 sm:%s6433_s12] }
  0x4e   : > { %v439_v15 = vor.u32 %v5395_v12, %v5394_v11  ;;  %v667_v18 = vld [vmem:[%s8481_s0 + $0x640] sm:$0xff]  ;;  %v457_v21 = vor.u32 %v5397_v17, %v5396_v16  ;;  %408 = vst [vmem:[#allocation2 + $0x10] sm:$0xf] %v405_v14  ;;  %426 = vst [vmem:[#allocation2 + $0x14] sm:$0xf] %v423_v20  ;;  %3637 = vmatprep.subr.bf16.mxu0 %v5479_v25 }
  0x4f   : > { %v671_v19 = vld [vmem:[%s8481_s0 + $0x660] sm:$0xff] }
  0x50   : > { %v441_v23 = vpack.c.bf16 %v6280_v6, %v439_v15  ;;  %v459_v26 = vpack.c.bf16 %v6280_v6, %v457_v21  ;;  %v5607_v27 = vcombine.high %v667_v18, %v671_v19  ;;  %v531_v28 = vld [vmem:[%s8481_s0 + $0x200] sm:$0xff]  ;;  %v5478_v6 = vcombine.low %v539_v2, %v543_v3 }
  0x51   : > { %v535_v29 = vld [vmem:[%s8481_s0 + $0x220] sm:$0xff]  ;;  %v5606_v32 = vcombine.low %v667_v18, %v671_v19 }
  0x52   : > { %444 = vst [vmem:[#allocation2 + $0x18] sm:$0xf] %v441_v23  ;;  %v659_v30 = vld [vmem:[%s8481_s0 + $0x600] sm:$0xff]  ;;  %462 = vst [vmem:[#allocation2 + $0x1c] sm:$0xf] %v459_v26  ;;  %v5471_v33 = vcombine.high %v531_v28, %v535_v29  ;;  %3678 = vmatprep.subr.bf16.mxu1 %v5607_v27  ;;  %3638 = vmatpush2.bf16.msra.mxu0 %v5478_v6  ;;  %v5470_v42 = vcombine.low %v531_v28, %v535_v29 }
  0x53   : > { %v663_v31 = vld [vmem:[%s8481_s0 + $0x620] sm:$0xff]  ;;  %3679 = vmatpush2.bf16.msra.mxu1 %v5606_v32 }
  0x54   : > { %v5599_v34 = vcombine.high %v659_v30, %v663_v31  ;;  %v779_v36 = vld [vmem:[%s8481_s0 + $0x9c0] sm:$0xff]  ;;  %3639 = vmatprep.subr.bf16.mxu0 %v5471_v33  ;;  %v5598_v43 = vcombine.low %v659_v30, %v663_v31 }
  0x55   : > { %v783_v38 = vld [vmem:[%s8481_s0 + $0x9e0] sm:$0xff]  ;;  %v6625_v52 = vld [vmem:[#allocation2 + $0x10] sm:$0xff] }
  0x56   : > { %v907_v39 = vld [vmem:[%s8481_s0 + $0xdc0] sm:$0xff]  ;;  %v5719_v45 = vcombine.high %v779_v36, %v783_v38  ;;  %3680 = vmatprep.subr.bf16.mxu1 %v5599_v34  ;;  %3640 = vmatpush2.bf16.msra.mxu0 %v5470_v42  ;;  %v5718_v54 = vcombine.low %v779_v36, %v783_v38  ;;  %v6641_v40 = vcombine.high %v6625_v52, %v6625_v52 }
  0x57   : > { %v911_v41 = vld [vmem:[%s8481_s0 + $0xde0] sm:$0xff]  ;;  %3681 = vmatpush2.bf16.msra.mxu1 %v5598_v43 }
  0x58   : > { %v5847_v46 = vcombine.high %v907_v39, %v911_v41  ;;  %v771_v47 = vld [vmem:[%s8481_s0 + $0x980] sm:$0xff]  ;;  %3691 = vmatprep.subr.bf16.mxu0 %v5719_v45  ;;  %v5846_v35 = vcombine.low %v907_v39, %v911_v41 }
  0x59   : > { %v775_v48 = vld [vmem:[%s8481_s0 + $0x9a0] sm:$0xff]  ;;  %v6631_v55 = vld [vmem:[#allocation2 + $0x18] sm:$0xff]  ;;  %3642 = vmatmul.mubr.bf16.vlgmr.msra.gmra.mxu0 %v6617_v49 }
  0x5a   : > { %v899_v50 = vld [vmem:[%s8481_s0 + $0xd80] sm:$0xff]  ;;  %v5711_v56 = vcombine.high %v771_v47, %v775_v48  ;;  %3732 = vmatprep.subr.bf16.mxu1 %v5847_v46  ;;  %v6652_v62 = vcombine.high %v6631_v55, %v6631_v55  ;;  %3683 = vmatmul.mubr.bf16.vlgmr.msra.gmra.mxu1 %v6629_v53  ;;  %v5710_v63 = vcombine.low %v771_v47, %v775_v48 }
  0x5b   : > { %v903_v51 = vld [vmem:[%s8481_s0 + $0xda0] sm:$0xff]  ;;  %3692 = vmatpush1.bf16.msra.mxu0 %v5718_v54  ;;  %3733 = vmatpush1.bf16.msra.mxu1 %v5846_v35 }
  0x5c   : > { %v5839_v57 = vcombine.high %v899_v50, %v903_v51  ;;  %v763_v58 = vld [vmem:[%s8481_s0 + $0x940] sm:$0xff]  ;;  %3693 = vmatprep.subr.bf16.mxu0 %v5711_v56  ;;  %v5838_v0 = vcombine.low %v899_v50, %v903_v51  ;;  %3723 = vmatprep.mubr.bf16.mxu0 %v6641_v40 }
  0x5d   : > { %v767_v59 = vld [vmem:[%s8481_s0 + $0x960] sm:$0xff]  ;;  %3764 = vmatprep.mubr.bf16.mxu1 %v6652_v62 }
  0x5e   : > { %v891_v60 = vld [vmem:[%s8481_s0 + $0xd40] sm:$0xff]  ;;  %v5703_v1 = vcombine.high %v763_v58, %v767_v59  ;;  %3734 = vmatprep.subr.bf16.mxu1 %v5839_v57  ;;  %v5702_v8 = vcombine.low %v763_v58, %v767_v59 }
  0x5f   : > { %v895_v61 = vld [vmem:[%s8481_s0 + $0xd60] sm:$0xff]  ;;  %3694 = vmatpush1.bf16.msra.mxu0 %v5710_v63  ;;  %3735 = vmatpush1.bf16.msra.mxu1 %v5838_v0 }
  0x60   : > { %v5831_v2 = vcombine.high %v891_v60, %v895_v61  ;;  %v755_v3 = vld [vmem:[%s8481_s0 + $0x900] sm:$0xff]  ;;  %3695 = vmatprep.subr.bf16.mxu0 %v5703_v1  ;;  %v5830_v9 = vcombine.low %v891_v60, %v895_v61 }
  0x61   : > { %v759_v4 = vld [vmem:[%s8481_s0 + $0x920] sm:$0xff] }
  0x62   : > { %v883_v5 = vld [vmem:[%s8481_s0 + $0xd00] sm:$0xff]  ;;  %v5695_v10 = vcombine.high %v755_v3, %v759_v4  ;;  %3736 = vmatprep.subr.bf16.mxu1 %v5831_v2  ;;  %v5694_v16 = vcombine.low %v755_v3, %v759_v4 }
  0x63   : > { %v887_v7 = vld [vmem:[%s8481_s0 + $0xd20] sm:$0xff]  ;;  %3696 = vmatpush1.bf16.msra.mxu0 %v5702_v8  ;;  %3737 = vmatpush1.bf16.msra.mxu1 %v5830_v9 }
  0x64   : > { %v5823_v11 = vcombine.high %v883_v5, %v887_v7  ;;  %v747_v12 = vld [vmem:[%s8481_s0 + $0x8c0] sm:$0xff]  ;;  %3697 = vmatprep.subr.bf16.mxu0 %v5695_v10  ;;  %v5822_v17 = vcombine.low %v883_v5, %v887_v7 }
  0x65   : > { %v751_v13 = vld [vmem:[%s8481_s0 + $0x8e0] sm:$0xff] }
  0x66   : > { %v875_v14 = vld [vmem:[%s8481_s0 + $0xcc0] sm:$0xff]  ;;  %v5687_v18 = vcombine.high %v747_v12, %v751_v13  ;;  %3738 = vmatprep.subr.bf16.mxu1 %v5823_v11  ;;  %v5686_v24 = vcombine.low %v747_v12, %v751_v13 }
  0x67   : > { %v879_v15 = vld [vmem:[%s8481_s0 + $0xce0] sm:$0xff]  ;;  %3698 = vmatpush1.bf16.msra.mxu0 %v5694_v16  ;;  %3739 = vmatpush1.bf16.msra.mxu1 %v5822_v17 }
  0x68   : > { %v739_v19 = vld [vmem:[%s8481_s0 + $0x880] sm:$0xff]  ;;  %v5815_v22 = vcombine.high %v875_v14, %v879_v15  ;;  %3699 = vmatprep.subr.bf16.mxu0 %v5687_v18  ;;  %v5814_v25 = vcombine.low %v875_v14, %v879_v15 }
  0x69   : > { %v743_v20 = vld [vmem:[%s8481_s0 + $0x8a0] sm:$0xff] }
  0x6a   : > { %v867_v21 = vld [vmem:[%s8481_s0 + $0xc80] sm:$0xff]  ;;  %v5679_v26 = vcombine.high %v739_v19, %v743_v20  ;;  %3740 = vmatprep.subr.bf16.mxu1 %v5815_v22  ;;  %v5678_v6 = vcombine.low %v739_v19, %v743_v20 }
  0x6b   : > { %v871_v23 = vld [vmem:[%s8481_s0 + $0xca0] sm:$0xff]  ;;  %3700 = vmatpush1.bf16.msra.mxu0 %v5686_v24  ;;  %3741 = vmatpush1.bf16.msra.mxu1 %v5814_v25 }
  0x6c   : > { %v731_v27 = vld [vmem:[%s8481_s0 + $0x840] sm:$0xff]  ;;  %v5807_v30 = vcombine.high %v867_v21, %v871_v23  ;;  %3701 = vmatprep.subr.bf16.mxu0 %v5679_v26  ;;  %v5806_v32 = vcombine.low %v867_v21, %v871_v23 }
  0x6d   : > { %v735_v28 = vld [vmem:[%s8481_s0 + $0x860] sm:$0xff] }
  0x6e   : > { %v859_v29 = vld [vmem:[%s8481_s0 + $0xc40] sm:$0xff]  ;;  %v5671_v33 = vcombine.high %v731_v27, %v735_v28  ;;  %3742 = vmatprep.subr.bf16.mxu1 %v5807_v30  ;;  %v5670_v42 = vcombine.low %v731_v27, %v735_v28 }
  0x6f   : > { %v863_v31 = vld [vmem:[%s8481_s0 + $0xc60] sm:$0xff]  ;;  %3702 = vmatpush1.bf16.msra.mxu0 %v5678_v6  ;;  %3743 = vmatpush1.bf16.msra.mxu1 %v5806_v32 }
  0x70   : > { %v723_v34 = vld [vmem:[%s8481_s0 + $0x800] sm:$0xff]  ;;  %v5799_v39 = vcombine.high %v859_v29, %v863_v31  ;;  %3703 = vmatprep.subr.bf16.mxu0 %v5671_v33  ;;  %v5798_v43 = vcombine.low %v859_v29, %v863_v31 }
  0x71   : > { %v727_v36 = vld [vmem:[%s8481_s0 + $0x820] sm:$0xff] }
  0x72   : > { %v851_v38 = vld [vmem:[%s8481_s0 + $0xc00] sm:$0xff]  ;;  %v5663_v45 = vcombine.high %v723_v34, %v727_v36  ;;  %3744 = vmatprep.subr.bf16.mxu1 %v5799_v39  ;;  %v5662_v54 = vcombine.low %v723_v34, %v727_v36 }
  0x73   : > { %v855_v41 = vld [vmem:[%s8481_s0 + $0xc20] sm:$0xff]  ;;  %3704 = vmatpush1.bf16.msra.mxu0 %v5670_v42  ;;  %3745 = vmatpush1.bf16.msra.mxu1 %v5798_v43 }
  0x74   : > { %v843_v46 = vld [vmem:[%s8481_s0 + $0xbc0] sm:$0xff]  ;;  %v5791_v50 = vcombine.high %v851_v38, %v855_v41  ;;  %3705 = vmatprep.subr.bf16.mxu0 %v5663_v45  ;;  %v5790_v35 = vcombine.low %v851_v38, %v855_v41 }
  0x75   : > { %v847_v47 = vld [vmem:[%s8481_s0 + $0xbe0] sm:$0xff] }
  0x76   : > { %v971_v48 = vld [vmem:[%s8481_s0 + $0xfc0] sm:$0xff]  ;;  %v5783_v56 = vcombine.high %v843_v46, %v847_v47  ;;  %3746 = vmatprep.subr.bf16.mxu1 %v5791_v50  ;;  %v5782_v63 = vcombine.low %v843_v46, %v847_v47 }
  0x77   : > { %v975_v51 = vld [vmem:[%s8481_s0 + $0xfe0] sm:$0xff]  ;;  %3706 = vmatpush1.bf16.msra.mxu0 %v5662_v54  ;;  %3747 = vmatpush1.bf16.msra.mxu1 %v5790_v35 }
  0x78   : > { %v835_v57 = vld [vmem:[%s8481_s0 + $0xb80] sm:$0xff]  ;;  %v5911_v60 = vcombine.high %v971_v48, %v975_v51  ;;  %3707 = vmatprep.subr.bf16.mxu0 %v5783_v56  ;;  %v5910_v0 = vcombine.low %v971_v48, %v975_v51 }
  0x79   : > { %v839_v58 = vld [vmem:[%s8481_s0 + $0xba0] sm:$0xff] }
  0x7a   : > { %v963_v59 = vld [vmem:[%s8481_s0 + $0xf80] sm:$0xff]  ;;  %v5775_v1 = vcombine.high %v835_v57, %v839_v58  ;;  %3748 = vmatprep.subr.bf16.mxu1 %v5911_v60  ;;  %v5774_v8 = vcombine.low %v835_v57, %v839_v58  ;;  %v524_v57 = vld [vmem:[%s8481_s0 + $0x1c8] sm:$0xff] }
  0x7b   : > { %v967_v61 = vld [vmem:[%s8481_s0 + $0xfa0] sm:$0xff]  ;;  %3708 = vmatpush2.bf16.msra.mxu0 %v5782_v63  ;;  %3749 = vmatpush2.bf16.msra.mxu1 %v5910_v0  ;;  %v528_v58 = vld [vmem:[%s8481_s0 + $0x1e8] sm:$0xff] }
  0x7c   : > { %v827_v2 = vld [vmem:[%s8481_s0 + $0xb40] sm:$0xff]  ;;  %v5903_v5 = vcombine.high %v963_v59, %v967_v61  ;;  %3709 = vmatprep.subr.bf16.mxu0 %v5775_v1  ;;  %v5902_v9 = vcombine.low %v963_v59, %v967_v61  ;;  %v652_v59 = vld [vmem:[%s8481_s0 + $0x5c8] sm:$0xff]  ;;  %v5465_v1 = vcombine.high %v524_v57, %v528_v58 }
  0x7d   : > { %v831_v3 = vld [vmem:[%s8481_s0 + $0xb60] sm:$0xff]  ;;  %v656_v61 = vld [vmem:[%s8481_s0 + $0x5e8] sm:$0xff] }
  0x7e   : > { %v955_v4 = vld [vmem:[%s8481_s0 + $0xf40] sm:$0xff]  ;;  %v5767_v10 = vcombine.high %v827_v2, %v831_v3  ;;  %3750 = vmatprep.subr.bf16.mxu1 %v5903_v5  ;;  %v5766_v16 = vcombine.low %v827_v2, %v831_v3  ;;  %v516_v2 = vld [vmem:[%s8481_s0 + $0x188] sm:$0xff]  ;;  %v5593_v5 = vcombine.high %v652_v59, %v656_v61 }
  0x7f   : > { %v959_v7 = vld [vmem:[%s8481_s0 + $0xf60] sm:$0xff]  ;;  %3710 = vmatpush2.bf16.msra.mxu0 %v5774_v8  ;;  %3751 = vmatpush2.bf16.msra.mxu1 %v5902_v9  ;;  %v520_v3 = vld [vmem:[%s8481_s0 + $0x1a8] sm:$0xff]  ;;  %v6839_v8 = vcombine.low %v6625_v52, %v6625_v52  ;;  %v6843_v9 = vcombine.low %v6631_v55, %v6631_v55 }
  0x80   : > { %v819_v11 = vld [vmem:[%s8481_s0 + $0xb00] sm:$0xff]  ;;  %v5895_v14 = vcombine.high %v955_v4, %v959_v7  ;;  %3711 = vmatprep.subr.bf16.mxu0 %v5767_v10  ;;  %v5894_v17 = vcombine.low %v955_v4, %v959_v7  ;;  %v644_v4 = vld [vmem:[%s8481_s0 + $0x588] sm:$0xff]  ;;  %v5464_v10 = vcombine.low %v524_v57, %v528_v58 }
  0x81   : > { %v823_v12 = vld [vmem:[%s8481_s0 + $0xb20] sm:$0xff]  ;;  %v648_v7 = vld [vmem:[%s8481_s0 + $0x5a8] sm:$0xff] }
  0x82   : > { %v947_v13 = vld [vmem:[%s8481_s0 + $0xf00] sm:$0xff]  ;;  %v5759_v18 = vcombine.high %v819_v11, %v823_v12  ;;  %3752 = vmatprep.subr.bf16.mxu1 %v5895_v14  ;;  %v5758_v24 = vcombine.low %v819_v11, %v823_v12  ;;  %v5592_v11 = vcombine.low %v652_v59, %v656_v61  ;;  %v5457_v12 = vcombine.high %v516_v2, %v520_v3  ;;  %v512_v14 = vld [vmem:[%s8481_s0 + $0x168] sm:$0xff] }
  0x83   : > { %v951_v15 = vld [vmem:[%s8481_s0 + $0xf20] sm:$0xff]  ;;  %3712 = vmatpush2.bf16.msra.mxu0 %v5766_v16  ;;  %3753 = vmatpush2.bf16.msra.mxu1 %v5894_v17  ;;  %v5585_v52 = vcombine.high %v644_v4, %v648_v7  ;;  %v636_v55 = vld [vmem:[%s8481_s0 + $0x548] sm:$0xff]  ;;  %v5456_v16 = vcombine.low %v516_v2, %v520_v3  ;;  %v5584_v17 = vcombine.low %v644_v4, %v648_v7 }
  0x84   : > { %v811_v19 = vld [vmem:[%s8481_s0 + $0xac0] sm:$0xff]  ;;  %v5887_v22 = vcombine.high %v947_v13, %v951_v15  ;;  %3713 = vmatprep.subr.bf16.mxu0 %v5759_v18  ;;  %v5886_v25 = vcombine.low %v947_v13, %v951_v15  ;;  %v508_v13 = vld [vmem:[%s8481_s0 + $0x148] sm:$0xff] }
  0x85   : > { %v815_v20 = vld [vmem:[%s8481_s0 + $0xae0] sm:$0xff]  ;;  %v640_v15 = vld [vmem:[%s8481_s0 + $0x568] sm:$0xff]  ;;  %v5449_v18 = vcombine.high %v508_v13, %v512_v14 }
  0x86   : > { %v939_v21 = vld [vmem:[%s8481_s0 + $0xec0] sm:$0xff]  ;;  %v5751_v26 = vcombine.high %v811_v19, %v815_v20  ;;  %3754 = vmatprep.subr.bf16.mxu1 %v5887_v22  ;;  %v5750_v6 = vcombine.low %v811_v19, %v815_v20  ;;  %v500_v19 = vld [vmem:[%s8481_s0 + $0x108] sm:$0xff]  ;;  %v5577_v22 = vcombine.high %v636_v55, %v640_v15 }
  0x87   : > { %v943_v23 = vld [vmem:[%s8481_s0 + $0xee0] sm:$0xff]  ;;  %3714 = vmatpush2.bf16.msra.mxu0 %v5758_v24  ;;  %3755 = vmatpush2.bf16.msra.mxu1 %v5886_v25  ;;  %v504_v20 = vld [vmem:[%s8481_s0 + $0x128] sm:$0xff]  ;;  %v5448_v24 = vcombine.low %v508_v13, %v512_v14  ;;  %v5576_v25 = vcombine.low %v636_v55, %v640_v15 }
  0x88   : > { %v803_v27 = vld [vmem:[%s8481_s0 + $0xa80] sm:$0xff]  ;;  %v5879_v30 = vcombine.high %v939_v21, %v943_v23  ;;  %3715 = vmatprep.subr.bf16.mxu0 %v5751_v26  ;;  %v5878_v32 = vcombine.low %v939_v21, %v943_v23  ;;  %v628_v21 = vld [vmem:[%s8481_s0 + $0x508] sm:$0xff]  ;;  %v5441_v26 = vcombine.high %v500_v19, %v504_v20 }
  0x89   : > { %v807_v28 = vld [vmem:[%s8481_s0 + $0xaa0] sm:$0xff]  ;;  %v632_v23 = vld [vmem:[%s8481_s0 + $0x528] sm:$0xff] }
  0x8a   : > { %v931_v29 = vld [vmem:[%s8481_s0 + $0xe80] sm:$0xff]  ;;  %v5743_v33 = vcombine.high %v803_v27, %v807_v28  ;;  %3756 = vmatprep.subr.bf16.mxu1 %v5879_v30  ;;  %v5742_v42 = vcombine.low %v803_v27, %v807_v28  ;;  %v492_v27 = vld [vmem:[%s8481_s0 + $0xc8] sm:$0xff]  ;;  %v5569_v30 = vcombine.high %v628_v21, %v632_v23 }
  0x8b   : > { %v935_v31 = vld [vmem:[%s8481_s0 + $0xea0] sm:$0xff]  ;;  %3716 = vmatpush2.bf16.msra.mxu0 %v5750_v6  ;;  %3757 = vmatpush2.bf16.msra.mxu1 %v5878_v32  ;;  %v496_v28 = vld [vmem:[%s8481_s0 + $0xe8] sm:$0xff]  ;;  %v5440_v6 = vcombine.low %v500_v19, %v504_v20  ;;  %v5568_v32 = vcombine.low %v628_v21, %v632_v23 }
  0x8c   : > { %v795_v34 = vld [vmem:[%s8481_s0 + $0xa40] sm:$0xff]  ;;  %v5871_v39 = vcombine.high %v931_v29, %v935_v31  ;;  %3717 = vmatprep.subr.bf16.mxu0 %v5743_v33  ;;  %v5870_v43 = vcombine.low %v931_v29, %v935_v31  ;;  %v620_v29 = vld [vmem:[%s8481_s0 + $0x4c8] sm:$0xff]  ;;  %v5433_v33 = vcombine.high %v492_v27, %v496_v28 }
  0x8d   : > { %v799_v36 = vld [vmem:[%s8481_s0 + $0xa60] sm:$0xff]  ;;  %v624_v31 = vld [vmem:[%s8481_s0 + $0x4e8] sm:$0xff] }
  0x8e   : > { %v923_v38 = vld [vmem:[%s8481_s0 + $0xe40] sm:$0xff]  ;;  %v5735_v45 = vcombine.high %v795_v34, %v799_v36  ;;  %3758 = vmatprep.subr.bf16.mxu1 %v5871_v39  ;;  %v5734_v54 = vcombine.low %v795_v34, %v799_v36  ;;  %v5561_v34 = vcombine.high %v620_v29, %v624_v31  ;;  %v484_v36 = vld [vmem:[%s8481_s0 + $0x88] sm:$0xff] }
  0x8f   : > { %v927_v41 = vld [vmem:[%s8481_s0 + $0xe60] sm:$0xff]  ;;  %3718 = vmatpush2.bf16.msra.mxu0 %v5742_v42  ;;  %3759 = vmatpush2.bf16.msra.mxu1 %v5870_v43  ;;  %v612_v39 = vld [vmem:[%s8481_s0 + $0x488] sm:$0xff]  ;;  %v5432_v42 = vcombine.low %v492_v27, %v496_v28  ;;  %v5560_v43 = vcombine.low %v620_v29, %v624_v31 }
  0x90   : > { %v787_v46 = vld [vmem:[%s8481_s0 + $0xa00] sm:$0xff]  ;;  %v5863_v50 = vcombine.high %v923_v38, %v927_v41  ;;  %3719 = vmatprep.subr.bf16.mxu0 %v5735_v45  ;;  %v5862_v35 = vcombine.low %v923_v38, %v927_v41  ;;  %v488_v38 = vld [vmem:[%s8481_s0 + $0xa8] sm:$0xff] }
  0x91   : > { %v791_v47 = vld [vmem:[%s8481_s0 + $0xa20] sm:$0xff]  ;;  %v616_v41 = vld [vmem:[%s8481_s0 + $0x4a8] sm:$0xff]  ;;  %v5425_v45 = vcombine.high %v484_v36, %v488_v38 }
  0x92   : > { %v915_v48 = vld [vmem:[%s8481_s0 + $0xe00] sm:$0xff]  ;;  %v5727_v56 = vcombine.high %v787_v46, %v791_v47  ;;  %3760 = vmatprep.subr.bf16.mxu1 %v5863_v50  ;;  %v5726_v63 = vcombine.low %v787_v46, %v791_v47  ;;  %v5553_v46 = vcombine.high %v612_v39, %v616_v41  ;;  %v476_v47 = vld [vmem:[%s8481_s0 + $0x48] sm:$0xff] }
  0x93   : > { %v919_v51 = vld [vmem:[%s8481_s0 + $0xe20] sm:$0xff]  ;;  %3720 = vmatpush2.bf16.msra.mxu0 %v5734_v54  ;;  %3761 = vmatpush2.bf16.msra.mxu1 %v5862_v35  ;;  %v604_v50 = vld [vmem:[%s8481_s0 + $0x448] sm:$0xff]  ;;  %v5424_v54 = vcombine.low %v484_v36, %v488_v38  ;;  %v5552_v35 = vcombine.low %v612_v39, %v616_v41 }
  0x94   : > { %v5855_v60 = vcombine.high %v915_v48, %v919_v51  ;;  %3721 = vmatprep.subr.bf16.mxu0 %v5727_v56  ;;  %v5854_v0 = vcombine.low %v915_v48, %v919_v51  ;;  %v480_v48 = vld [vmem:[%s8481_s0 + $0x68] sm:$0xff] }
  0x95   : > { %v608_v51 = vld [vmem:[%s8481_s0 + $0x468] sm:$0xff]  ;;  %v5417_v56 = vcombine.high %v476_v47, %v480_v48 }
  0x96   : > { %3762 = vmatprep.subr.bf16.mxu1 %v5855_v60  ;;  %v5545_v57 = vcombine.high %v604_v50, %v608_v51  ;;  %v468_v58 = vld [vmem:[%s8481_s0 + $0x8] sm:$0xff] }
  0x97   : > { %3722 = vmatpush2.bf16.msra.mxu0 %v5726_v63  ;;  %3763 = vmatpush2.bf16.msra.mxu1 %v5854_v0  ;;  %v472_v59 = vld [vmem:[%s8481_s0 + $0x28] sm:$0xff]  ;;  %v5416_v63 = vcombine.low %v476_v47, %v480_v48  ;;  %v5544_v0 = vcombine.low %v604_v50, %v608_v51 }
  0x98   : > { %3773 = vmatprep.subr.bf16.mxu0 %v5465_v1  ;;  %3814 = vmatprep.subr.bf16.mxu1 %v5593_v5  ;;  %v596_v60 = vld [vmem:[%s8481_s0 + $0x408] sm:$0xff]  ;;  %v5409_v1 = vcombine.high %v468_v58, %v472_v59 }
  0x99   : > { %v600_v61 = vld [vmem:[%s8481_s0 + $0x428] sm:$0xff] }
  0x9a   : > { %3724 = vmatmul.mubr.bf16.vlgmr.msra.gmra.mxu0 %v6839_v8  ;;  %3765 = vmatmul.mubr.bf16.vlgmr.msra.gmra.mxu1 %v6843_v9  ;;  %v5537_v2 = vcombine.high %v596_v60, %v600_v61  ;;  %v588_v3 = vld [vmem:[%s8481_s0 + $0x3c8] sm:$0xff] }
  0x9b   : > { %3774 = vmatpush1.bf16.msra.mxu0 %v5464_v10  ;;  %3815 = vmatpush1.bf16.msra.mxu1 %v5592_v11  ;;  %v592_v4 = vld [vmem:[%s8481_s0 + $0x3e8] sm:$0xff]  ;;  %v5408_v10 = vcombine.low %v468_v58, %v472_v59  ;;  %v5536_v11 = vcombine.low %v596_v60, %v600_v61 }
  0x9c   : > { %3775 = vmatprep.subr.bf16.mxu0 %v5457_v12  ;;  %3816 = vmatprep.subr.bf16.mxu1 %v5585_v52  ;;  %v716_v5 = vld [vmem:[%s8481_s0 + $0x7c8] sm:$0xff]  ;;  %v5529_v12 = vcombine.high %v588_v3, %v592_v4 }
  0x9d   : > { %3805 = vmatprep.mubr.bf16.mxu0 %v6507_v37  ;;  %3846 = vmatprep.mubr.bf16.mxu1 %v6520_v44  ;;  %v720_v7 = vld [vmem:[%s8481_s0 + $0x7e8] sm:$0xff] }
  0x9e   : > { %v5657_v13 = vcombine.high %v716_v5, %v720_v7  ;;  %v580_v14 = vld [vmem:[%s8481_s0 + $0x388] sm:$0xff] }
  0x9f   : > { %3776 = vmatpush1.bf16.msra.mxu0 %v5456_v16  ;;  %3817 = vmatpush1.bf16.msra.mxu1 %v5584_v17  ;;  %v584_v52 = vld [vmem:[%s8481_s0 + $0x3a8] sm:$0xff]  ;;  %v5528_v16 = vcombine.low %v588_v3, %v592_v4  ;;  %v5656_v17 = vcombine.low %v716_v5, %v720_v7 }
  0xa0   : > { %3777 = vmatprep.subr.bf16.mxu0 %v5449_v18  ;;  %3818 = vmatprep.subr.bf16.mxu1 %v5577_v22  ;;  %v708_v55 = vld [vmem:[%s8481_s0 + $0x788] sm:$0xff]  ;;  %v5521_v18 = vcombine.high %v580_v14, %v584_v52 }
  0xa1   : > { %v712_v15 = vld [vmem:[%s8481_s0 + $0x7a8] sm:$0xff] }
  0xa2   : > { %v5649_v19 = vcombine.high %v708_v55, %v712_v15  ;;  %v572_v20 = vld [vmem:[%s8481_s0 + $0x348] sm:$0xff] }
  0xa3   : > { %3778 = vmatpush1.bf16.msra.mxu0 %v5448_v24  ;;  %3819 = vmatpush1.bf16.msra.mxu1 %v5576_v25  ;;  %v576_v21 = vld [vmem:[%s8481_s0 + $0x368] sm:$0xff]  ;;  %v5520_v24 = vcombine.low %v580_v14, %v584_v52  ;;  %v5648_v25 = vcombine.low %v708_v55, %v712_v15 }
  0xa4   : > { %3779 = vmatprep.subr.bf16.mxu0 %v5441_v26  ;;  %3820 = vmatprep.subr.bf16.mxu1 %v5569_v30  ;;  %v700_v22 = vld [vmem:[%s8481_s0 + $0x748] sm:$0xff]  ;;  %v5513_v26 = vcombine.high %v572_v20, %v576_v21 }
  0xa5   : > { %v704_v23 = vld [vmem:[%s8481_s0 + $0x768] sm:$0xff] }
  0xa6   : > { %v5641_v27 = vcombine.high %v700_v22, %v704_v23  ;;  %v564_v28 = vld [vmem:[%s8481_s0 + $0x308] sm:$0xff] }
  0xa7   : > { %3780 = vmatpush1.bf16.msra.mxu0 %v5440_v6  ;;  %3821 = vmatpush1.bf16.msra.mxu1 %v5568_v32  ;;  %v568_v29 = vld [vmem:[%s8481_s0 + $0x328] sm:$0xff]  ;;  %v5512_v6 = vcombine.low %v572_v20, %v576_v21  ;;  %v5640_v32 = vcombine.low %v700_v22, %v704_v23 }
  0xa8   : > { %3781 = vmatprep.subr.bf16.mxu0 %v5433_v33  ;;  %3822 = vmatprep.subr.bf16.mxu1 %v5561_v34  ;;  %v692_v30 = vld [vmem:[%s8481_s0 + $0x708] sm:$0xff]  ;;  %v5505_v33 = vcombine.high %v564_v28, %v568_v29 }
  0xa9   : > { %v696_v31 = vld [vmem:[%s8481_s0 + $0x728] sm:$0xff] }
  0xaa   : > { %v5633_v34 = vcombine.high %v692_v30, %v696_v31  ;;  %v556_v36 = vld [vmem:[%s8481_s0 + $0x2c8] sm:$0xff] }
  0xab   : > { %3782 = vmatpush1.bf16.msra.mxu0 %v5432_v42  ;;  %3823 = vmatpush1.bf16.msra.mxu1 %v5560_v43  ;;  %v560_v38 = vld [vmem:[%s8481_s0 + $0x2e8] sm:$0xff]  ;;  %v5504_v42 = vcombine.low %v564_v28, %v568_v29  ;;  %v5632_v43 = vcombine.low %v692_v30, %v696_v31 }
  0xac   : > { %3783 = vmatprep.subr.bf16.mxu0 %v5425_v45  ;;  %3824 = vmatprep.subr.bf16.mxu1 %v5553_v46  ;;  %v684_v39 = vld [vmem:[%s8481_s0 + $0x6c8] sm:$0xff]  ;;  %v5497_v45 = vcombine.high %v556_v36, %v560_v38 }
  0xad   : > { %v688_v41 = vld [vmem:[%s8481_s0 + $0x6e8] sm:$0xff] }
  0xae   : > { %v5625_v46 = vcombine.high %v684_v39, %v688_v41  ;;  %v548_v47 = vld [vmem:[%s8481_s0 + $0x288] sm:$0xff] }
  0xaf   : > { %3784 = vmatpush1.bf16.msra.mxu0 %v5424_v54  ;;  %3825 = vmatpush1.bf16.msra.mxu1 %v5552_v35  ;;  %v552_v48 = vld [vmem:[%s8481_s0 + $0x2a8] sm:$0xff]  ;;  %v5496_v54 = vcombine.low %v556_v36, %v560_v38  ;;  %v5624_v35 = vcombine.low %v684_v39, %v688_v41 }
  0xb0   : > { %3785 = vmatprep.subr.bf16.mxu0 %v5417_v56  ;;  %3826 = vmatprep.subr.bf16.mxu1 %v5545_v57  ;;  %v676_v50 = vld [vmem:[%s8481_s0 + $0x688] sm:$0xff]  ;;  %v5489_v56 = vcombine.high %v548_v47, %v552_v48 }
  0xb1   : > { %v680_v51 = vld [vmem:[%s8481_s0 + $0x6a8] sm:$0xff] }
  0xb2   : > { %v5617_v57 = vcombine.high %v676_v50, %v680_v51  ;;  %v540_v58 = vld [vmem:[%s8481_s0 + $0x248] sm:$0xff] }
  0xb3   : > { %3786 = vmatpush1.bf16.msra.mxu0 %v5416_v63  ;;  %3827 = vmatpush1.bf16.msra.mxu1 %v5544_v0  ;;  %v544_v59 = vld [vmem:[%s8481_s0 + $0x268] sm:$0xff]  ;;  %v5488_v63 = vcombine.low %v548_v47, %v552_v48  ;;  %v5616_v0 = vcombine.low %v676_v50, %v680_v51 }
  0xb4   : > { %3787 = vmatprep.subr.bf16.mxu0 %v5409_v1  ;;  %3828 = vmatprep.subr.bf16.mxu1 %v5537_v2  ;;  %v668_v60 = vld [vmem:[%s8481_s0 + $0x648] sm:$0xff]  ;;  %v5481_v1 = vcombine.high %v540_v58, %v544_v59 }
  0xb5   : > { %v672_v61 = vld [vmem:[%s8481_s0 + $0x668] sm:$0xff] }
  0xb6   : > { %v5609_v2 = vcombine.high %v668_v60, %v672_v61  ;;  %v532_v3 = vld [vmem:[%s8481_s0 + $0x208] sm:$0xff] }
  0xb7   : > { %3788 = vmatpush1.bf16.msra.mxu0 %v5408_v10  ;;  %3829 = vmatpush1.bf16.msra.mxu1 %v5536_v11  ;;  %v536_v4 = vld [vmem:[%s8481_s0 + $0x228] sm:$0xff]  ;;  %v5480_v10 = vcombine.low %v540_v58, %v544_v59  ;;  %v5608_v11 = vcombine.low %v668_v60, %v672_v61 }
  0xb8   : > { %3789 = vmatprep.subr.bf16.mxu0 %v5529_v12  ;;  %3830 = vmatprep.subr.bf16.mxu1 %v5657_v13  ;;  %v660_v5 = vld [vmem:[%s8481_s0 + $0x608] sm:$0xff]  ;;  %v5473_v12 = vcombine.high %v532_v3, %v536_v4 }
  0xb9   : > { %v664_v7 = vld [vmem:[%s8481_s0 + $0x628] sm:$0xff] }
  0xba   : > { %v5601_v13 = vcombine.high %v660_v5, %v664_v7  ;;  %v780_v14 = vld [vmem:[%s8481_s0 + $0x9c8] sm:$0xff] }
  0xbb   : > { %3790 = vmatpush2.bf16.msra.mxu0 %v5528_v16  ;;  %3831 = vmatpush2.bf16.msra.mxu1 %v5656_v17  ;;  %v784_v52 = vld [vmem:[%s8481_s0 + $0x9e8] sm:$0xff]  ;;  %v5472_v16 = vcombine.low %v532_v3, %v536_v4  ;;  %v5600_v17 = vcombine.low %v660_v5, %v664_v7 }
  0xbc   : > { %3791 = vmatprep.subr.bf16.mxu0 %v5521_v18  ;;  %3832 = vmatprep.subr.bf16.mxu1 %v5649_v19  ;;  %v908_v55 = vld [vmem:[%s8481_s0 + $0xdc8] sm:$0xff]  ;;  %v5721_v18 = vcombine.high %v780_v14, %v784_v52 }
  0xbd   : > { %v912_v15 = vld [vmem:[%s8481_s0 + $0xde8] sm:$0xff] }
  0xbe   : > { %v5849_v19 = vcombine.high %v908_v55, %v912_v15  ;;  %v772_v20 = vld [vmem:[%s8481_s0 + $0x988] sm:$0xff] }
  0xbf   : > { %3792 = vmatpush2.bf16.msra.mxu0 %v5520_v24  ;;  %3833 = vmatpush2.bf16.msra.mxu1 %v5648_v25  ;;  %v776_v21 = vld [vmem:[%s8481_s0 + $0x9a8] sm:$0xff]  ;;  %v5720_v24 = vcombine.low %v780_v14, %v784_v52  ;;  %v5848_v25 = vcombine.low %v908_v55, %v912_v15 }
  0xc0   : > { %3793 = vmatprep.subr.bf16.mxu0 %v5513_v26  ;;  %3834 = vmatprep.subr.bf16.mxu1 %v5641_v27  ;;  %v900_v22 = vld [vmem:[%s8481_s0 + $0xd88] sm:$0xff]  ;;  %v5713_v26 = vcombine.high %v772_v20, %v776_v21 }
  0xc1   : > { %v904_v23 = vld [vmem:[%s8481_s0 + $0xda8] sm:$0xff] }
  0xc2   : > { %v5841_v27 = vcombine.high %v900_v22, %v904_v23  ;;  %v764_v28 = vld [vmem:[%s8481_s0 + $0x948] sm:$0xff] }
  0xc3   : > { %3794 = vmatpush2.bf16.msra.mxu0 %v5512_v6  ;;  %3835 = vmatpush2.bf16.msra.mxu1 %v5640_v32  ;;  %v768_v29 = vld [vmem:[%s8481_s0 + $0x968] sm:$0xff]  ;;  %v5712_v6 = vcombine.low %v772_v20, %v776_v21  ;;  %v5840_v32 = vcombine.low %v900_v22, %v904_v23 }
  0xc4   : > { %3795 = vmatprep.subr.bf16.mxu0 %v5505_v33  ;;  %3836 = vmatprep.subr.bf16.mxu1 %v5633_v34  ;;  %v892_v30 = vld [vmem:[%s8481_s0 + $0xd48] sm:$0xff]  ;;  %v5705_v33 = vcombine.high %v764_v28, %v768_v29 }
  0xc5   : > { %v896_v31 = vld [vmem:[%s8481_s0 + $0xd68] sm:$0xff] }
  0xc6   : > { %v5833_v34 = vcombine.high %v892_v30, %v896_v31  ;;  %v756_v36 = vld [vmem:[%s8481_s0 + $0x908] sm:$0xff] }
  0xc7   : > { %3796 = vmatpush2.bf16.msra.mxu0 %v5504_v42  ;;  %3837 = vmatpush2.bf16.msra.mxu1 %v5632_v43  ;;  %v760_v38 = vld [vmem:[%s8481_s0 + $0x928] sm:$0xff]  ;;  %v5704_v42 = vcombine.low %v764_v28, %v768_v29  ;;  %v5832_v43 = vcombine.low %v892_v30, %v896_v31 }
  0xc8   : > { %3797 = vmatprep.subr.bf16.mxu0 %v5497_v45  ;;  %3838 = vmatprep.subr.bf16.mxu1 %v5625_v46  ;;  %v884_v39 = vld [vmem:[%s8481_s0 + $0xd08] sm:$0xff]  ;;  %v5697_v45 = vcombine.high %v756_v36, %v760_v38 }
  0xc9   : > { %v888_v41 = vld [vmem:[%s8481_s0 + $0xd28] sm:$0xff] }
  0xca   : > { %v5825_v46 = vcombine.high %v884_v39, %v888_v41  ;;  %v748_v47 = vld [vmem:[%s8481_s0 + $0x8c8] sm:$0xff] }
  0xcb   : > { %3798 = vmatpush2.bf16.msra.mxu0 %v5496_v54  ;;  %3839 = vmatpush2.bf16.msra.mxu1 %v5624_v35  ;;  %v752_v48 = vld [vmem:[%s8481_s0 + $0x8e8] sm:$0xff]  ;;  %v5696_v54 = vcombine.low %v756_v36, %v760_v38  ;;  %v5824_v35 = vcombine.low %v884_v39, %v888_v41 }
  0xcc   : > { %3799 = vmatprep.subr.bf16.mxu0 %v5489_v56  ;;  %3840 = vmatprep.subr.bf16.mxu1 %v5617_v57  ;;  %v876_v50 = vld [vmem:[%s8481_s0 + $0xcc8] sm:$0xff]  ;;  %v5689_v56 = vcombine.high %v748_v47, %v752_v48 }
  0xcd   : > { %v880_v51 = vld [vmem:[%s8481_s0 + $0xce8] sm:$0xff] }
  0xce   : > { %v5817_v57 = vcombine.high %v876_v50, %v880_v51  ;;  %v740_v58 = vld [vmem:[%s8481_s0 + $0x888] sm:$0xff] }
  0xcf   : > { %3800 = vmatpush2.bf16.msra.mxu0 %v5488_v63  ;;  %3841 = vmatpush2.bf16.msra.mxu1 %v5616_v0  ;;  %v744_v59 = vld [vmem:[%s8481_s0 + $0x8a8] sm:$0xff]  ;;  %v5688_v63 = vcombine.low %v748_v47, %v752_v48  ;;  %v5816_v0 = vcombine.low %v876_v50, %v880_v51 }
  0xd0   : > { %3801 = vmatprep.subr.bf16.mxu0 %v5481_v1  ;;  %3842 = vmatprep.subr.bf16.mxu1 %v5609_v2  ;;  %v868_v60 = vld [vmem:[%s8481_s0 + $0xc88] sm:$0xff]  ;;  %v5681_v1 = vcombine.high %v740_v58, %v744_v59 }
  0xd1   : > { %v872_v61 = vld [vmem:[%s8481_s0 + $0xca8] sm:$0xff] }
  0xd2   : > { %v5809_v2 = vcombine.high %v868_v60, %v872_v61  ;;  %v732_v3 = vld [vmem:[%s8481_s0 + $0x848] sm:$0xff] }
  0xd3   : > { %3802 = vmatpush2.bf16.msra.mxu0 %v5480_v10  ;;  %3843 = vmatpush2.bf16.msra.mxu1 %v5608_v11  ;;  %v736_v4 = vld [vmem:[%s8481_s0 + $0x868] sm:$0xff]  ;;  %v5680_v10 = vcombine.low %v740_v58, %v744_v59  ;;  %v5808_v11 = vcombine.low %v868_v60, %v872_v61 }
  0xd4   : > { %3803 = vmatprep.subr.bf16.mxu0 %v5473_v12  ;;  %3844 = vmatprep.subr.bf16.mxu1 %v5601_v13  ;;  %v860_v5 = vld [vmem:[%s8481_s0 + $0xc48] sm:$0xff]  ;;  %v5673_v12 = vcombine.high %v732_v3, %v736_v4 }
  0xd5   : > { %v864_v7 = vld [vmem:[%s8481_s0 + $0xc68] sm:$0xff] }
  0xd6   : > { %v5801_v13 = vcombine.high %v860_v5, %v864_v7  ;;  %v724_v14 = vld [vmem:[%s8481_s0 + $0x808] sm:$0xff] }
  0xd7   : > { %3804 = vmatpush2.bf16.msra.mxu0 %v5472_v16  ;;  %3845 = vmatpush2.bf16.msra.mxu1 %v5600_v17  ;;  %v728_v52 = vld [vmem:[%s8481_s0 + $0x828] sm:$0xff]  ;;  %v5672_v16 = vcombine.low %v732_v3, %v736_v4  ;;  %v5800_v17 = vcombine.low %v860_v5, %v864_v7 }
  0xd8   : > { %3855 = vmatprep.subr.bf16.mxu0 %v5721_v18  ;;  %3896 = vmatprep.subr.bf16.mxu1 %v5849_v19  ;;  %v852_v55 = vld [vmem:[%s8481_s0 + $0xc08] sm:$0xff]  ;;  %v5665_v18 = vcombine.high %v724_v14, %v728_v52 }
  0xd9   : > { %v856_v15 = vld [vmem:[%s8481_s0 + $0xc28] sm:$0xff] }
  0xda   : > { %3806 = vmatmul.mubr.bf16.vlgmr.msra.gmra.mxu0 %v6617_v49  ;;  %3847 = vmatmul.mubr.bf16.vlgmr.msra.gmra.mxu1 %v6629_v53  ;;  %v5793_v19 = vcombine.high %v852_v55, %v856_v15  ;;  %v844_v20 = vld [vmem:[%s8481_s0 + $0xbc8] sm:$0xff] }
  0xdb   : > { %3856 = vmatpush1.bf16.msra.mxu0 %v5720_v24  ;;  %3897 = vmatpush1.bf16.msra.mxu1 %v5848_v25  ;;  %v848_v21 = vld [vmem:[%s8481_s0 + $0xbe8] sm:$0xff]  ;;  %v5664_v24 = vcombine.low %v724_v14, %v728_v52  ;;  %v5792_v25 = vcombine.low %v852_v55, %v856_v15 }
  0xdc   : > { %3857 = vmatprep.subr.bf16.mxu0 %v5713_v26  ;;  %3898 = vmatprep.subr.bf16.mxu1 %v5841_v27  ;;  %v972_v22 = vld [vmem:[%s8481_s0 + $0xfc8] sm:$0xff]  ;;  %v5785_v26 = vcombine.high %v844_v20, %v848_v21 }
  0xdd   : > { %3887 = vmatprep.mubr.bf16.mxu0 %v6641_v40  ;;  %3928 = vmatprep.mubr.bf16.mxu1 %v6652_v62  ;;  %v976_v23 = vld [vmem:[%s8481_s0 + $0xfe8] sm:$0xff] }
  0xde   : > { %v5913_v27 = vcombine.high %v972_v22, %v976_v23  ;;  %v836_v28 = vld [vmem:[%s8481_s0 + $0xb88] sm:$0xff] }
  0xdf   : > { %3858 = vmatpush1.bf16.msra.mxu0 %v5712_v6  ;;  %3899 = vmatpush1.bf16.msra.mxu1 %v5840_v32  ;;  %v840_v29 = vld [vmem:[%s8481_s0 + $0xba8] sm:$0xff]  ;;  %v5784_v6 = vcombine.low %v844_v20, %v848_v21  ;;  %v5912_v32 = vcombine.low %v972_v22, %v976_v23 }
  0xe0   : > { %3859 = vmatprep.subr.bf16.mxu0 %v5705_v33  ;;  %3900 = vmatprep.subr.bf16.mxu1 %v5833_v34  ;;  %v964_v30 = vld [vmem:[%s8481_s0 + $0xf88] sm:$0xff]  ;;  %v5777_v33 = vcombine.high %v836_v28, %v840_v29 }
  0xe1   : > { %v968_v31 = vld [vmem:[%s8481_s0 + $0xfa8] sm:$0xff] }
  0xe2   : > { %v5905_v34 = vcombine.high %v964_v30, %v968_v31  ;;  %v828_v36 = vld [vmem:[%s8481_s0 + $0xb48] sm:$0xff] }
  0xe3   : > { %3860 = vmatpush1.bf16.msra.mxu0 %v5704_v42  ;;  %3901 = vmatpush1.bf16.msra.mxu1 %v5832_v43  ;;  %v832_v38 = vld [vmem:[%s8481_s0 + $0xb68] sm:$0xff]  ;;  %v5776_v42 = vcombine.low %v836_v28, %v840_v29  ;;  %v5904_v43 = vcombine.low %v964_v30, %v968_v31  ;;  %v525_v30 = vld [vmem:[%s8481_s0 + $0x1d0] sm:$0xff] }
  0xe4   : > { %3861 = vmatprep.subr.bf16.mxu0 %v5697_v45  ;;  %3902 = vmatprep.subr.bf16.mxu1 %v5825_v46  ;;  %v956_v39 = vld [vmem:[%s8481_s0 + $0xf48] sm:$0xff]  ;;  %v5769_v45 = vcombine.high %v828_v36, %v832_v38  ;;  %v529_v31 = vld [vmem:[%s8481_s0 + $0x1f0] sm:$0xff] }
  0xe5   : > { %v960_v41 = vld [vmem:[%s8481_s0 + $0xf68] sm:$0xff] }
  0xe6   : > { %v5897_v46 = vcombine.high %v956_v39, %v960_v41  ;;  %v820_v47 = vld [vmem:[%s8481_s0 + $0xb08] sm:$0xff] }
  0xe7   : > { %3862 = vmatpush1.bf16.msra.mxu0 %v5696_v54  ;;  %3903 = vmatpush1.bf16.msra.mxu1 %v5824_v35  ;;  %v824_v48 = vld [vmem:[%s8481_s0 + $0xb28] sm:$0xff]  ;;  %v5768_v54 = vcombine.low %v828_v36, %v832_v38  ;;  %v5896_v35 = vcombine.low %v956_v39, %v960_v41  ;;  %v7231_v38 = vld [vmem:[%s8482_s1] sm:$0xff]  ;;  %v5467_v39 = vcombine.high %v525_v30, %v529_v31 }
  0xe8   : > { %3863 = vmatprep.subr.bf16.mxu0 %v5689_v56  ;;  %3904 = vmatprep.subr.bf16.mxu1 %v5817_v57  ;;  %v948_v50 = vld [vmem:[%s8481_s0 + $0xf08] sm:$0xff]  ;;  %v5761_v56 = vcombine.high %v820_v47, %v824_v48 }
  0xe9   : > { %v952_v51 = vld [vmem:[%s8481_s0 + $0xf28] sm:$0xff] }
  0xea   : > { %v5889_v57 = vcombine.high %v948_v50, %v952_v51  ;;  %v812_v58 = vld [vmem:[%s8481_s0 + $0xac8] sm:$0xff] }
  0xeb   : > { %3864 = vmatpush1.bf16.msra.mxu0 %v5688_v63  ;;  %3905 = vmatpush1.bf16.msra.mxu1 %v5816_v0  ;;  %v816_v59 = vld [vmem:[%s8481_s0 + $0xae8] sm:$0xff]  ;;  %v5760_v63 = vcombine.low %v820_v47, %v824_v48  ;;  %v5888_v0 = vcombine.low %v948_v50, %v952_v51  ;;  %v649_v47 = vld [vmem:[%s8481_s0 + $0x5b0] sm:$0xff]  ;;  %v5466_v50 = vcombine.low %v525_v30, %v529_v31 }
  0xec   : > { %3865 = vmatprep.subr.bf16.mxu0 %v5681_v1  ;;  %3906 = vmatprep.subr.bf16.mxu1 %v5809_v2  ;;  %v940_v60 = vld [vmem:[%s8481_s0 + $0xec8] sm:$0xff]  ;;  %v5753_v1 = vcombine.high %v812_v58, %v816_v59 }
  0xed   : > { %v944_v61 = vld [vmem:[%s8481_s0 + $0xee8] sm:$0xff] }
  0xee   : > { %v5881_v2 = vcombine.high %v940_v60, %v944_v61  ;;  %v804_v3 = vld [vmem:[%s8481_s0 + $0xa88] sm:$0xff] }
  0xef   : > { %3866 = vmatpush1.bf16.msra.mxu0 %v5680_v10  ;;  %3907 = vmatpush1.bf16.msra.mxu1 %v5808_v11  ;;  %v808_v4 = vld [vmem:[%s8481_s0 + $0xaa8] sm:$0xff]  ;;  %v5752_v10 = vcombine.low %v812_v58, %v816_v59  ;;  %v5880_v11 = vcombine.low %v940_v60, %v944_v61  ;;  %v513_v58 = vld [vmem:[%s8481_s0 + $0x170] sm:$0xff] }
  0xf0   : > { %3867 = vmatprep.subr.bf16.mxu0 %v5673_v12  ;;  %3908 = vmatprep.subr.bf16.mxu1 %v5801_v13  ;;  %v932_v5 = vld [vmem:[%s8481_s0 + $0xe88] sm:$0xff]  ;;  %v5745_v12 = vcombine.high %v804_v3, %v808_v4  ;;  %v637_v60 = vld [vmem:[%s8481_s0 + $0x550] sm:$0xff] }
  0xf1   : > { %v936_v7 = vld [vmem:[%s8481_s0 + $0xea8] sm:$0xff]  ;;  %v641_v61 = vld [vmem:[%s8481_s0 + $0x570] sm:$0xff] }
  0xf2   : > { %v5873_v13 = vcombine.high %v932_v5, %v936_v7  ;;  %v796_v14 = vld [vmem:[%s8481_s0 + $0xa48] sm:$0xff] }
  0xf3   : > { %3868 = vmatpush1.bf16.msra.mxu0 %v5672_v16  ;;  %3909 = vmatpush1.bf16.msra.mxu1 %v5800_v17  ;;  %v800_v52 = vld [vmem:[%s8481_s0 + $0xa68] sm:$0xff]  ;;  %v5744_v16 = vcombine.low %v804_v3, %v808_v4  ;;  %v981_v17 = vlaneseq }
  0xf4   : > { %3869 = vmatprep.subr.bf16.mxu0 %v5665_v18  ;;  %3910 = vmatprep.subr.bf16.mxu1 %v5793_v19  ;;  %v924_v55 = vld [vmem:[%s8481_s0 + $0xe48] sm:$0xff]  ;;  %v5872_v18 = vcombine.low %v932_v5, %v936_v7  ;;  %v5737_v19 = vcombine.high %v796_v14, %v800_v52 }
  0xf5   : > { %v928_v15 = vld [vmem:[%s8481_s0 + $0xe68] sm:$0xff] }
  0xf6   : > { %v5865_v20 = vcombine.high %v924_v55, %v928_v15  ;;  %v788_v21 = vld [vmem:[%s8481_s0 + $0xa08] sm:$0xff] }
  0xf7   : > { %3870 = vmatpush1.bf16.msra.mxu0 %v5664_v24  ;;  %3911 = vmatpush1.bf16.msra.mxu1 %v5792_v25  ;;  %v792_v22 = vld [vmem:[%s8481_s0 + $0xa28] sm:$0xff]  ;;  %v5736_v25 = vcombine.low %v796_v14, %v800_v52  ;;  %v629_v52 = vld [vmem:[%s8481_s0 + $0x510] sm:$0xff] }
  0xf8   : > { %3871 = vmatprep.subr.bf16.mxu0 %v5785_v26  ;;  %3912 = vmatprep.subr.bf16.mxu1 %v5913_v27  ;;  %v916_v23 = vld [vmem:[%s8481_s0 + $0xe08] sm:$0xff]  ;;  %v7213_v26 = vshrl.u32 %v981_v17, 7  ;;  %v5864_v27 = vcombine.low %v924_v55, %v928_v15  ;;  %v5729_v28 = vcombine.high %v788_v21, %v792_v22  ;;  %v633_v55 = vld [vmem:[%s8481_s0 + $0x530] sm:$0xff] }
  0xf9   : > { %v920_v24 = vld [vmem:[%s8481_s0 + $0xe28] sm:$0xff] }
  0xfa   : > { %v5857_v29 = vcombine.high %v916_v23, %v920_v24  ;;  %v5856_v36 = vcombine.low %v916_v23, %v920_v24  ;;  %v493_v23 = vld [vmem:[%s8481_s0 + $0xd0] sm:$0xff] }
  0xfb   : > { %3872 = vmatpush2.bf16.msra.mxu0 %v5784_v6  ;;  %3913 = vmatpush2.bf16.msra.mxu1 %v5912_v32  ;;  %v653_v6 = vld [vmem:[%s8481_s0 + $0x5d0] sm:$0xff] }
  0xfc   : > { %3873 = vmatprep.subr.bf16.mxu0 %v5777_v33  ;;  %3914 = vmatprep.subr.bf16.mxu1 %v5905_v34  ;;  %v657_v32 = vld [vmem:[%s8481_s0 + $0x5f0] sm:$0xff]  ;;  %v5728_v33 = vcombine.low %v788_v21, %v792_v22  ;;  %v983_v34 = vsub.s32 0, %v7213_v26  ;;  %v5571_v22 = vcombine.high %v629_v52, %v633_v55 }
  0xfd   : > { %v5595_v41 = vcombine.high %v653_v6, %v657_v32  ;;  %v5594_v51 = vcombine.low %v653_v6, %v657_v32  ;;  %v497_v24 = vld [vmem:[%s8481_s0 + $0xf0] sm:$0xff] }
  0xfe   : > { %v984_v48 = vrot.slane %v7231_v38, %v983_v34  ;;  %v5435_v30 = vcombine.high %v493_v23, %v497_v24  ;;  %v485_v6 = vld [vmem:[%s8481_s0 + $0x90] sm:$0xff] }
  0xff   : > { %3874 = vmatpush2.bf16.msra.mxu0 %v5776_v42  ;;  %3915 = vmatpush2.bf16.msra.mxu1 %v5904_v43  ;;  %v987_v42 = vsub.s32 1, %v7213_v26  ;;  %v517_v43 = vld [vmem:[%s8481_s0 + $0x190] sm:$0xff] }
 0x100   : > { %3875 = vmatprep.subr.bf16.mxu0 %v5769_v45  ;;  %3916 = vmatprep.subr.bf16.mxu1 %v5897_v46  ;;  %v521_v45 = vld [vmem:[%s8481_s0 + $0x1b0] sm:$0xff] }
 0x101   : > { %v645_v46 = vld [vmem:[%s8481_s0 + $0x590] sm:$0xff] }
 0x102   : > { %v5586_v3 = vcombine.low %v645_v46, %v649_v47  ;;  %v489_v32 = vld [vmem:[%s8481_s0 + $0xb0] sm:$0xff] }
 0x103   : > { %3876 = vmatpush2.bf16.msra.mxu0 %v5768_v54  ;;  %3917 = vmatpush2.bf16.msra.mxu1 %v5896_v35  ;;  %v5459_v54 = vcombine.high %v517_v43, %v521_v45  ;;  %v988_v35 = vrot.slane %v7231_v38, %v987_v42 }
 0x104   : > { %3877 = vmatprep.subr.bf16.mxu0 %v5761_v56  ;;  %3918 = vmatprep.subr.bf16.mxu1 %v5889_v57  ;;  %v5587_v56 = vcombine.high %v645_v46, %v649_v47  ;;  %v509_v57 = vld [vmem:[%s8481_s0 + $0x150] sm:$0xff] }
 0x105   : > { %v5451_v4 = vcombine.high %v509_v57, %v513_v58  ;;  %v5450_v17 = vcombine.low %v509_v57, %v513_v58  ;;  %v477_v46 = vld [vmem:[%s8481_s0 + $0x50] sm:$0xff] }
 0x106   : > { %v481_v47 = vld [vmem:[%s8481_s0 + $0x70] sm:$0xff] }
 0x107   : > { %3878 = vmatpush2.bf16.msra.mxu0 %v5760_v63  ;;  %3919 = vmatpush2.bf16.msra.mxu1 %v5888_v0  ;;  %v469_v57 = vld [vmem:[%s8481_s0 + $0x10] sm:$0xff] }
 0x108   : > { %3879 = vmatprep.subr.bf16.mxu0 %v5753_v1  ;;  %3920 = vmatprep.subr.bf16.mxu1 %v5881_v2  ;;  %v5458_v1 = vcombine.low %v517_v43, %v521_v45  ;;  %v5427_v43 = vcombine.high %v485_v6, %v489_v32  ;;  %v473_v58 = vld [vmem:[%s8481_s0 + $0x30] sm:$0xff] }
 0x10b   : > { %3880 = vmatpush2.bf16.msra.mxu0 %v5752_v10  ;;  %3921 = vmatpush2.bf16.msra.mxu1 %v5880_v11  ;;  %v5579_v11 = vcombine.high %v637_v60, %v641_v61 }
 0x10c   : > { %3881 = vmatprep.subr.bf16.mxu0 %v5745_v12  ;;  %3922 = vmatprep.subr.bf16.mxu1 %v5873_v13  ;;  %v501_v12 = vld [vmem:[%s8481_s0 + $0x110] sm:$0xff] }
 0x10d   : > { %v505_v13 = vld [vmem:[%s8481_s0 + $0x130] sm:$0xff] }
 0x10f   : > { %3882 = vmatpush2.bf16.msra.mxu0 %v5744_v16  ;;  %3923 = vmatpush2.bf16.msra.mxu1 %v5872_v18 }
 0x110   : > { %3883 = vmatprep.subr.bf16.mxu0 %v5737_v19  ;;  %3924 = vmatprep.subr.bf16.mxu1 %v5865_v20  ;;  %v5578_v19 = vcombine.low %v637_v60, %v641_v61  ;;  %v5443_v20 = vcombine.high %v501_v12, %v505_v13  ;;  %v601_v60 = vld [vmem:[%s8481_s0 + $0x430] sm:$0xff]  ;;  %v5418_v61 = vcombine.low %v477_v46, %v481_v47 }
 0x113   : > { %3884 = vmatpush2.bf16.msra.mxu0 %v5736_v25  ;;  %3925 = vmatpush2.bf16.msra.mxu1 %v5864_v27  ;;  %v621_v25 = vld [vmem:[%s8481_s0 + $0x4d0] sm:$0xff] }
 0x114   : > { %3885 = vmatprep.subr.bf16.mxu0 %v5729_v28  ;;  %3926 = vmatprep.subr.bf16.mxu1 %v5857_v29  ;;  %v625_v27 = vld [vmem:[%s8481_s0 + $0x4f0] sm:$0xff]  ;;  %v5442_v28 = vcombine.low %v501_v12, %v505_v13  ;;  %v5570_v29 = vcombine.low %v629_v52, %v633_v55 }
 0x115   : > { %v5563_v31 = vcombine.high %v621_v25, %v625_v27  ;;  %v585_v52 = vld [vmem:[%s8481_s0 + $0x3b0] sm:$0xff] }
 0x116   : > { %v709_v55 = vld [vmem:[%s8481_s0 + $0x790] sm:$0xff] }
 0x117   : > { %3886 = vmatpush2.bf16.msra.mxu0 %v5728_v33  ;;  %3927 = vmatpush2.bf16.msra.mxu1 %v5856_v36  ;;  %v613_v33 = vld [vmem:[%s8481_s0 + $0x490] sm:$0xff] }
 0x118   : > { %3937 = vmatprep.subr.bf16.mxu0 %v5467_v39  ;;  %3978 = vmatprep.subr.bf16.mxu1 %v5595_v41  ;;  %v617_v36 = vld [vmem:[%s8481_s0 + $0x4b0] sm:$0xff]  ;;  %v5434_v39 = vcombine.low %v493_v23, %v497_v24  ;;  %v5562_v41 = vcombine.low %v621_v25, %v625_v27 }
 0x119   : > { %v3643_v59 = vpop.f32.mrf.mxu0  ;;  %v5555_v45 = vcombine.high %v613_v33, %v617_v36  ;;  %v701_v23 = vld [vmem:[%s8481_s0 + $0x750] sm:$0xff] }
 0x11a   : > { %3888 = vmatmul.mubr.bf16.vlgmr.msra.gmra.mxu0 %v6839_v8  ;;  %v3644_v63 = vadd.f32 %v3643_v59, %v984_v48  ;;  %v3684_v0 = vpop.f32.mrf.mxu1  ;;  %3929 = vmatmul.mubr.bf16.vlgmr.msra.gmra.mxu1 %v6843_v9  ;;  %v605_v48 = vld [vmem:[%s8481_s0 + $0x450] sm:$0xff] }
 0x11b   : > { %3938 = vmatpush1.bf16.msra.mxu0 %v5466_v50  ;;  %3979 = vmatpush1.bf16.msra.mxu1 %v5594_v51  ;;  %v3645_v2 = vpop.f32.mrf.mxu0  ;;  %v609_v50 = vld [vmem:[%s8481_s0 + $0x470] sm:$0xff]  ;;  %v5426_v51 = vcombine.low %v485_v6, %v489_v32 }
 0x11c   : > { %3939 = vmatprep.subr.bf16.mxu0 %v5459_v54  ;;  %v7266_v5 = vadd.f32 %v3684_v0, %v3644_v63  ;;  %v3646_v7 = vadd.f32 %v3645_v2, %v988_v35  ;;  %v3686_v10 = vpop.f32.mrf.mxu1  ;;  %3980 = vmatprep.subr.bf16.mxu1 %v5587_v56  ;;  %v5554_v54 = vcombine.low %v613_v33, %v617_v36  ;;  %v597_v59 = vld [vmem:[%s8481_s0 + $0x410] sm:$0xff] }
 0x11d   : > { %3969 = vmatprep.mubr.bf16.mxu0 %v6507_v37  ;;  %v3647_v14 = vpop.f32.mrf.mxu0  ;;  %4010 = vmatprep.mubr.bf16.mxu1 %v6520_v44  ;;  %v5419_v35 = vcombine.high %v477_v46, %v481_v47  ;;  %v5547_v56 = vcombine.high %v605_v48, %v609_v50  ;;  %v5546_v63 = vcombine.low %v605_v48, %v609_v50  ;;  %v589_v2 = vld [vmem:[%s8481_s0 + $0x3d0] sm:$0xff] }
 0x11e   : > { %v7282_v15 = vadd.f32 %v3686_v10, %v3646_v7  ;;  %v3688_v16 = vpop.f32.mrf.mxu1  ;;  %v5411_v0 = vcombine.high %v469_v57, %v473_v58  ;;  %v721_v7 = vld [vmem:[%s8481_s0 + $0x7f0] sm:$0xff]  ;;  %v5410_v10 = vcombine.low %v469_v57, %v473_v58 }
 0x11f   : > { %3940 = vmatpush1.bf16.msra.mxu0 %v5458_v1  ;;  %3981 = vmatpush1.bf16.msra.mxu1 %v5586_v3  ;;  %v3648_v18 = vpop.f32.mrf.mxu0  ;;  %v5539_v1 = vcombine.high %v597_v59, %v601_v60  ;;  %v593_v3 = vld [vmem:[%s8481_s0 + $0x3f0] sm:$0xff] }
 0x120   : > { %3941 = vmatprep.subr.bf16.mxu0 %v5451_v4  ;;  %v3689_v21 = vpop.f32.mrf.mxu1  ;;  %3982 = vmatprep.subr.bf16.mxu1 %v5579_v11  ;;  %v717_v4 = vld [vmem:[%s8481_s0 + $0x7d0] sm:$0xff]  ;;  %v5538_v11 = vcombine.low %v597_v59, %v601_v60  ;;  %v5531_v12 = vcombine.high %v589_v2, %v593_v3 }
 0x121   : > { %v5659_v13 = vcombine.high %v717_v4, %v721_v7  ;;  %v581_v14 = vld [vmem:[%s8481_s0 + $0x390] sm:$0xff]  ;;  %v5658_v18 = vcombine.low %v717_v4, %v721_v7 }
 0x122   : > { %v713_v16 = vld [vmem:[%s8481_s0 + $0x7b0] sm:$0xff]  ;;  %v5522_v25 = vcombine.low %v581_v14, %v585_v52 }
 0x123   : > { %3942 = vmatpush1.bf16.msra.mxu0 %v5450_v17  ;;  %3983 = vmatpush1.bf16.msra.mxu1 %v5578_v19  ;;  %v5530_v17 = vcombine.low %v589_v2, %v593_v3  ;;  %v5523_v19 = vcombine.high %v581_v14, %v585_v52  ;;  %v573_v21 = vld [vmem:[%s8481_s0 + $0x350] sm:$0xff]  ;;  %v5650_v27 = vcombine.low %v709_v55, %v713_v16 }
 0x124   : > { %3943 = vmatprep.subr.bf16.mxu0 %v5443_v20  ;;  %3984 = vmatprep.subr.bf16.mxu1 %v5571_v22  ;;  %v5651_v20 = vcombine.high %v709_v55, %v713_v16  ;;  %v577_v22 = vld [vmem:[%s8481_s0 + $0x370] sm:$0xff] }
 0x125   : > { %v705_v24 = vld [vmem:[%s8481_s0 + $0x770] sm:$0xff]  ;;  %v5514_v33 = vcombine.low %v573_v21, %v577_v22 }
 0x126   : > { %v693_v6 = vld [vmem:[%s8481_s0 + $0x710] sm:$0xff]  ;;  %v5642_v36 = vcombine.low %v701_v23, %v705_v24 }
 0x127   : > { %3944 = vmatpush1.bf16.msra.mxu0 %v5442_v28  ;;  %3985 = vmatpush1.bf16.msra.mxu1 %v5570_v29  ;;  %v5515_v28 = vcombine.high %v573_v21, %v577_v22  ;;  %v5643_v29 = vcombine.high %v701_v23, %v705_v24  ;;  %v697_v32 = vld [vmem:[%s8481_s0 + $0x730] sm:$0xff] }
 0x128   : > { %3945 = vmatprep.subr.bf16.mxu0 %v5435_v30  ;;  %3986 = vmatprep.subr.bf16.mxu1 %v5563_v31  ;;  %v565_v30 = vld [vmem:[%s8481_s0 + $0x310] sm:$0xff]  ;;  %v5634_v50 = vcombine.low %v693_v6, %v697_v32 }
 0x129   : > { %v569_v31 = vld [vmem:[%s8481_s0 + $0x330] sm:$0xff] }
 0x12a   : > { %v685_v46 = vld [vmem:[%s8481_s0 + $0x6d0] sm:$0xff]  ;;  %v5506_v48 = vcombine.low %v565_v30, %v569_v31 }
 0x12b   : > { %3946 = vmatpush1.bf16.msra.mxu0 %v5434_v39  ;;  %3987 = vmatpush1.bf16.msra.mxu1 %v5562_v41  ;;  %v5507_v39 = vcombine.high %v565_v30, %v569_v31  ;;  %v5635_v41 = vcombine.high %v693_v6, %v697_v32  ;;  %v689_v47 = vld [vmem:[%s8481_s0 + $0x6f0] sm:$0xff] }
 0x12c   : > { %3947 = vmatprep.subr.bf16.mxu0 %v5427_v43  ;;  %3988 = vmatprep.subr.bf16.mxu1 %v5555_v45  ;;  %v557_v43 = vld [vmem:[%s8481_s0 + $0x2d0] sm:$0xff]  ;;  %v5626_v60 = vcombine.low %v685_v46, %v689_v47 }
 0x12d   : > { %v561_v45 = vld [vmem:[%s8481_s0 + $0x2f0] sm:$0xff] }
 0x12e   : > { %v677_v57 = vld [vmem:[%s8481_s0 + $0x690] sm:$0xff]  ;;  %v5498_v59 = vcombine.low %v557_v43, %v561_v45 }
 0x12f   : > { %3948 = vmatpush1.bf16.msra.mxu0 %v5426_v51  ;;  %3989 = vmatpush1.bf16.msra.mxu1 %v5554_v54  ;;  %v5499_v51 = vcombine.high %v557_v43, %v561_v45  ;;  %v5627_v54 = vcombine.high %v685_v46, %v689_v47  ;;  %v681_v58 = vld [vmem:[%s8481_s0 + $0x6b0] sm:$0xff] }
 0x130   : > { %3949 = vmatprep.subr.bf16.mxu0 %v5419_v35  ;;  %3990 = vmatprep.subr.bf16.mxu1 %v5547_v56  ;;  %v549_v35 = vld [vmem:[%s8481_s0 + $0x290] sm:$0xff]  ;;  %v5618_v7 = vcombine.low %v677_v57, %v681_v58 }
 0x131   : > { %v553_v56 = vld [vmem:[%s8481_s0 + $0x2b0] sm:$0xff] }
 0x132   : > { %v669_v2 = vld [vmem:[%s8481_s0 + $0x650] sm:$0xff]  ;;  %v5490_v4 = vcombine.low %v549_v35, %v553_v56 }
 0x133   : > { %3950 = vmatpush1.bf16.msra.mxu0 %v5418_v61  ;;  %3991 = vmatpush1.bf16.msra.mxu1 %v5546_v63  ;;  %v5491_v61 = vcombine.high %v549_v35, %v553_v56  ;;  %v5619_v63 = vcombine.high %v677_v57, %v681_v58  ;;  %v673_v3 = vld [vmem:[%s8481_s0 + $0x670] sm:$0xff] }
 0x134   : > { %3951 = vmatprep.subr.bf16.mxu0 %v5411_v0  ;;  %3992 = vmatprep.subr.bf16.mxu1 %v5539_v1  ;;  %v541_v0 = vld [vmem:[%s8481_s0 + $0x250] sm:$0xff]  ;;  %v5610_v16 = vcombine.low %v669_v2, %v673_v3 }
 0x135   : > { %v545_v1 = vld [vmem:[%s8481_s0 + $0x270] sm:$0xff] }
 0x136   : > { %v661_v14 = vld [vmem:[%s8481_s0 + $0x610] sm:$0xff]  ;;  %v5482_v55 = vcombine.low %v541_v0, %v545_v1 }
 0x137   : > { %3952 = vmatpush1.bf16.msra.mxu0 %v5410_v10  ;;  %3993 = vmatpush1.bf16.msra.mxu1 %v5538_v11  ;;  %v5483_v10 = vcombine.high %v541_v0, %v545_v1  ;;  %v5611_v11 = vcombine.high %v669_v2, %v673_v3  ;;  %v665_v52 = vld [vmem:[%s8481_s0 + $0x630] sm:$0xff] }
 0x138   : > { %3953 = vmatprep.subr.bf16.mxu0 %v5531_v12  ;;  %3994 = vmatprep.subr.bf16.mxu1 %v5659_v13  ;;  %v533_v12 = vld [vmem:[%s8481_s0 + $0x210] sm:$0xff]  ;;  %v5602_v24 = vcombine.low %v661_v14, %v665_v52 }
 0x139   : > { %v537_v13 = vld [vmem:[%s8481_s0 + $0x230] sm:$0xff] }
 0x13a   : > { %v909_v21 = vld [vmem:[%s8481_s0 + $0xdd0] sm:$0xff]  ;;  %v5474_v23 = vcombine.low %v533_v12, %v537_v13 }
 0x13b   : > { %3954 = vmatpush2.bf16.msra.mxu0 %v5530_v17  ;;  %3995 = vmatpush2.bf16.msra.mxu1 %v5658_v18  ;;  %v5475_v17 = vcombine.high %v533_v12, %v537_v13  ;;  %v5603_v18 = vcombine.high %v661_v14, %v665_v52  ;;  %v913_v22 = vld [vmem:[%s8481_s0 + $0xdf0] sm:$0xff] }
 0x13c   : > { %3955 = vmatprep.subr.bf16.mxu0 %v5523_v19  ;;  %3996 = vmatprep.subr.bf16.mxu1 %v5651_v20  ;;  %v781_v19 = vld [vmem:[%s8481_s0 + $0x9d0] sm:$0xff]  ;;  %v5850_v32 = vcombine.low %v909_v21, %v913_v22 }
 0x13d   : > { %v785_v20 = vld [vmem:[%s8481_s0 + $0x9f0] sm:$0xff] }
 0x13e   : > { %v901_v30 = vld [vmem:[%s8481_s0 + $0xd90] sm:$0xff]  ;;  %v5722_v6 = vcombine.low %v781_v19, %v785_v20 }
 0x13f   : > { %3956 = vmatpush2.bf16.msra.mxu0 %v5522_v25  ;;  %3997 = vmatpush2.bf16.msra.mxu1 %v5650_v27  ;;  %v5723_v25 = vcombine.high %v781_v19, %v785_v20  ;;  %v5851_v27 = vcombine.high %v909_v21, %v913_v22  ;;  %v905_v31 = vld [vmem:[%s8481_s0 + $0xdb0] sm:$0xff] }
 0x140   : > { %3957 = vmatprep.subr.bf16.mxu0 %v5515_v28  ;;  %3998 = vmatprep.subr.bf16.mxu1 %v5643_v29  ;;  %v773_v28 = vld [vmem:[%s8481_s0 + $0x990] sm:$0xff] }
 0x141   : > { %v777_v29 = vld [vmem:[%s8481_s0 + $0x9b0] sm:$0xff] }
 0x142   : > { %v893_v45 = vld [vmem:[%s8481_s0 + $0xd50] sm:$0xff] }
 0x143   : > { %3958 = vmatpush2.bf16.msra.mxu0 %v5514_v33  ;;  %3999 = vmatpush2.bf16.msra.mxu1 %v5642_v36  ;;  %v5715_v33 = vcombine.high %v773_v28, %v777_v29  ;;  %v5843_v36 = vcombine.high %v901_v30, %v905_v31  ;;  %v897_v46 = vld [vmem:[%s8481_s0 + $0xd70] sm:$0xff] }
 0x144   : > { %3959 = vmatprep.subr.bf16.mxu0 %v5507_v39  ;;  %4000 = vmatprep.subr.bf16.mxu1 %v5635_v41  ;;  %v765_v39 = vld [vmem:[%s8481_s0 + $0x950] sm:$0xff] }
 0x145   : > { %v769_v41 = vld [vmem:[%s8481_s0 + $0x970] sm:$0xff] }
 0x146   : > { %v5707_v35 = vcombine.high %v765_v39, %v769_v41  ;;  %v5706_v2 = vcombine.low %v765_v39, %v769_v41  ;;  %v749_v12 = vld [vmem:[%s8481_s0 + $0x8d0] sm:$0xff] }
 0x147   : > { %3960 = vmatpush2.bf16.msra.mxu0 %v5506_v48  ;;  %4001 = vmatpush2.bf16.msra.mxu1 %v5634_v50  ;;  %v5714_v50 = vcombine.low %v773_v28, %v777_v29  ;;  %v753_v13 = vld [vmem:[%s8481_s0 + $0x8f0] sm:$0xff] }
 0x148   : > { %3961 = vmatprep.subr.bf16.mxu0 %v5499_v51  ;;  %4002 = vmatprep.subr.bf16.mxu1 %v5627_v54  ;;  %v5842_v54 = vcombine.low %v901_v30, %v905_v31  ;;  %v877_v14 = vld [vmem:[%s8481_s0 + $0xcd0] sm:$0xff] }
 0x149   : > { %v881_v52 = vld [vmem:[%s8481_s0 + $0xcf0] sm:$0xff] }
 0x14a   : > { %v741_v19 = vld [vmem:[%s8481_s0 + $0x890] sm:$0xff] }
 0x14b   : > { %3962 = vmatpush2.bf16.msra.mxu0 %v5498_v59  ;;  %4003 = vmatpush2.bf16.msra.mxu1 %v5626_v60  ;;  %v5835_v59 = vcombine.high %v893_v45, %v897_v46  ;;  %v761_v60 = vld [vmem:[%s8481_s0 + $0x930] sm:$0xff] }
 0x14c   : > { %3963 = vmatprep.subr.bf16.mxu0 %v5491_v61  ;;  %4004 = vmatprep.subr.bf16.mxu1 %v5619_v63  ;;  %v885_v63 = vld [vmem:[%s8481_s0 + $0xd10] sm:$0xff] }
 0x14d   : > { %v745_v20 = vld [vmem:[%s8481_s0 + $0x8b0] sm:$0xff] }
 0x14e   : > { %v869_v21 = vld [vmem:[%s8481_s0 + $0xc90] sm:$0xff] }
 0x14f   : > { %3964 = vmatpush2.bf16.msra.mxu0 %v5490_v4  ;;  %4005 = vmatpush2.bf16.msra.mxu1 %v5618_v7  ;;  %v5834_v4 = vcombine.low %v893_v45, %v897_v46  ;;  %v873_v22 = vld [vmem:[%s8481_s0 + $0xcb0] sm:$0xff] }
 0x150   : > { %3965 = vmatprep.subr.bf16.mxu0 %v5483_v10  ;;  %4006 = vmatprep.subr.bf16.mxu1 %v5611_v11  ;;  %v733_v28 = vld [vmem:[%s8481_s0 + $0x850] sm:$0xff] }
 0x151   : > { %v737_v29 = vld [vmem:[%s8481_s0 + $0x870] sm:$0xff] }
 0x152   : > { %v861_v30 = vld [vmem:[%s8481_s0 + $0xc50] sm:$0xff]  ;;  %v5674_v46 = vcombine.low %v733_v28, %v737_v29 }
 0x153   : > { %3966 = vmatpush2.bf16.msra.mxu0 %v5482_v55  ;;  %4007 = vmatpush2.bf16.msra.mxu1 %v5610_v16  ;;  %v865_v31 = vld [vmem:[%s8481_s0 + $0xc70] sm:$0xff] }
 0x154   : > { %3967 = vmatprep.subr.bf16.mxu0 %v5475_v17  ;;  %4008 = vmatprep.subr.bf16.mxu1 %v5603_v18  ;;  %v5691_v17 = vcombine.high %v749_v12, %v753_v13  ;;  %v5819_v18 = vcombine.high %v877_v14, %v881_v52  ;;  %v725_v39 = vld [vmem:[%s8481_s0 + $0x810] sm:$0xff] }
 0x155   : > { %v729_v41 = vld [vmem:[%s8481_s0 + $0x830] sm:$0xff] }
 0x156   : > { %v857_v45 = vld [vmem:[%s8481_s0 + $0xc30] sm:$0xff] }
 0x157   : > { %3968 = vmatpush2.bf16.msra.mxu0 %v5474_v23  ;;  %4009 = vmatpush2.bf16.msra.mxu1 %v5602_v24  ;;  %v5690_v23 = vcombine.low %v749_v12, %v753_v13  ;;  %v5818_v24 = vcombine.low %v877_v14, %v881_v52  ;;  %v957_v12 = vld [vmem:[%s8481_s0 + $0xf50] sm:$0xff] }
 0x158   : > { %4019 = vmatprep.subr.bf16.mxu0 %v5723_v25  ;;  %4060 = vmatprep.subr.bf16.mxu1 %v5851_v27  ;;  %v5683_v25 = vcombine.high %v741_v19, %v745_v20  ;;  %v5811_v27 = vcombine.high %v869_v21, %v873_v22  ;;  %v961_v13 = vld [vmem:[%s8481_s0 + $0xf70] sm:$0xff] }
 0x15a   : > { %v3725_v43 = vpop.f32.mrf.mxu0  ;;  %3970 = vmatmul.mubr.bf16.vlgmr.msra.gmra.mxu0 %v6617_v49  ;;  %v3766_v48 = vpop.f32.mrf.mxu1  ;;  %4011 = vmatmul.mubr.bf16.vlgmr.msra.gmra.mxu1 %v6629_v53 }
 0x15b   : > { %v3726_v47 = vadd.f32 %v3725_v43, %v7266_v5  ;;  %4020 = vmatpush1.bf16.msra.mxu0 %v5722_v6  ;;  %4061 = vmatpush1.bf16.msra.mxu1 %v5850_v32  ;;  %v757_v5 = vld [vmem:[%s8481_s0 + $0x910] sm:$0xff]  ;;  %v5682_v6 = vcombine.low %v741_v19, %v745_v20  ;;  %v5810_v32 = vcombine.low %v869_v21, %v873_v22 }
 0x15c   : > { %v3727_v51 = vpop.f32.mrf.mxu0  ;;  %4021 = vmatprep.subr.bf16.mxu0 %v5715_v33  ;;  %v3768_v58 = vpop.f32.mrf.mxu1  ;;  %4062 = vmatprep.subr.bf16.mxu1 %v5843_v36  ;;  %v5699_v7 = vcombine.high %v757_v5, %v761_v60  ;;  %v5698_v55 = vcombine.low %v757_v5, %v761_v60  ;;  %v5675_v33 = vcombine.high %v733_v28, %v737_v29  ;;  %v853_v43 = vld [vmem:[%s8481_s0 + $0xc10] sm:$0xff] }
 0x15d   : > { %v7467_v56 = vadd.f32 %v3766_v48, %v3726_v47  ;;  %v3728_v57 = vadd.f32 %v3727_v51, %v7282_v15  ;;  %4051 = vmatprep.mubr.bf16.mxu0 %v6641_v40  ;;  %v889_v15 = vld [vmem:[%s8481_s0 + $0xd30] sm:$0xff]  ;;  %4092 = vmatprep.mubr.bf16.mxu1 %v6652_v62  ;;  %v5803_v36 = vcombine.high %v861_v30, %v865_v31 }
 0x15e   : > { %v3729_v61 = vpop.f32.mrf.mxu0  ;;  %v3770_v1 = vpop.f32.mrf.mxu1  ;;  %v5827_v11 = vcombine.high %v885_v63, %v889_v15  ;;  %v5826_v16 = vcombine.low %v885_v63, %v889_v15  ;;  %v5802_v47 = vcombine.low %v861_v30, %v865_v31  ;;  %v5667_v48 = vcombine.high %v725_v39, %v729_v41  ;;  %v845_v51 = vld [vmem:[%s8481_s0 + $0xbd0] sm:$0xff] }
 0x15f   : > { %v7484_v0 = vadd.f32 %v3768_v58, %v3728_v57  ;;  %4022 = vmatpush1.bf16.msra.mxu0 %v5714_v50  ;;  %4063 = vmatpush1.bf16.msra.mxu1 %v5842_v54  ;;  %v5795_v50 = vcombine.high %v853_v43, %v857_v45  ;;  %v849_v54 = vld [vmem:[%s8481_s0 + $0xbf0] sm:$0xff]  ;;  %v5666_v58 = vcombine.low %v725_v39, %v729_v41 }
 0x160   : > { %v3730_v3 = vpop.f32.mrf.mxu0  ;;  %4023 = vmatprep.subr.bf16.mxu0 %v5707_v35  ;;  %v3771_v10 = vpop.f32.mrf.mxu1  ;;  %4064 = vmatprep.subr.bf16.mxu1 %v5835_v59  ;;  %v973_v35 = vld [vmem:[%s8481_s0 + $0xfd0] sm:$0xff]  ;;  %v5794_v59 = vcombine.low %v853_v43, %v857_v45  ;;  %v5787_v5 = vcombine.high %v845_v51, %v849_v54  ;;  %v5898_v22 = vcombine.low %v957_v12, %v961_v13 }
 0x161   : > { %v977_v57 = vld [vmem:[%s8481_s0 + $0xff0] sm:$0xff] }
 0x162   : > { %v5915_v60 = vcombine.high %v973_v35, %v977_v57  ;;  %v837_v61 = vld [vmem:[%s8481_s0 + $0xb90] sm:$0xff]  ;;  %v5914_v3 = vcombine.low %v973_v35, %v977_v57 }
 0x163   : > { %4024 = vmatpush1.bf16.msra.mxu0 %v5706_v2  ;;  %4065 = vmatpush1.bf16.msra.mxu1 %v5834_v4  ;;  %v841_v63 = vld [vmem:[%s8481_s0 + $0xbb0] sm:$0xff]  ;;  %v5786_v2 = vcombine.low %v845_v51, %v849_v54 }
 0x164   : > { %4025 = vmatprep.subr.bf16.mxu0 %v5699_v7  ;;  %4066 = vmatprep.subr.bf16.mxu1 %v5827_v11  ;;  %v965_v15 = vld [vmem:[%s8481_s0 + $0xf90] sm:$0xff]  ;;  %v5779_v4 = vcombine.high %v837_v61, %v841_v63  ;;  %v5778_v14 = vcombine.low %v837_v61, %v841_v63 }
 0x165   : > { %v969_v1 = vld [vmem:[%s8481_s0 + $0xfb0] sm:$0xff] }
 0x166   : > { %v5907_v7 = vcombine.high %v965_v15, %v969_v1  ;;  %v829_v10 = vld [vmem:[%s8481_s0 + $0xb50] sm:$0xff]  ;;  %v5906_v52 = vcombine.low %v965_v15, %v969_v1 }
 0x167   : > { %4026 = vmatpush1.bf16.msra.mxu0 %v5698_v55  ;;  %4067 = vmatpush1.bf16.msra.mxu1 %v5826_v16  ;;  %v833_v11 = vld [vmem:[%s8481_s0 + $0xb70] sm:$0xff]  ;;  %v5899_v16 = vcombine.high %v957_v12, %v961_v13  ;;  %v991_v13 = vsub.s32 2, %v7213_v26 }
 0x168   : > { %4027 = vmatprep.subr.bf16.mxu0 %v5691_v17  ;;  %4068 = vmatprep.subr.bf16.mxu1 %v5819_v18  ;;  %v5771_v55 = vcombine.high %v829_v10, %v833_v11  ;;  %v821_v17 = vld [vmem:[%s8481_s0 + $0xb10] sm:$0xff]  ;;  %v5770_v21 = vcombine.low %v829_v10, %v833_v11  ;;  %v654_v10 = vld [vmem:[%s8481_s0 + $0x5d8] sm:$0xff] }
 0x169   : > { %v825_v18 = vld [vmem:[%s8481_s0 + $0xb30] sm:$0xff]  ;;  %v658_v11 = vld [vmem:[%s8481_s0 + $0x5f8] sm:$0xff] }
 0x16a   : > { %v949_v19 = vld [vmem:[%s8481_s0 + $0xf10] sm:$0xff]  ;;  %v5762_v30 = vcombine.low %v821_v17, %v825_v18 }
 0x16b   : > { %4028 = vmatpush1.bf16.msra.mxu0 %v5690_v23  ;;  %4069 = vmatpush1.bf16.msra.mxu1 %v5818_v24  ;;  %v953_v20 = vld [vmem:[%s8481_s0 + $0xf30] sm:$0xff]  ;;  %v5763_v23 = vcombine.high %v821_v17, %v825_v18  ;;  %v518_v17 = vld [vmem:[%s8481_s0 + $0x198] sm:$0xff] }
 0x16c   : > { %4029 = vmatprep.subr.bf16.mxu0 %v5683_v25  ;;  %4070 = vmatprep.subr.bf16.mxu1 %v5811_v27  ;;  %v5891_v24 = vcombine.high %v949_v19, %v953_v20  ;;  %v813_v25 = vld [vmem:[%s8481_s0 + $0xad0] sm:$0xff]  ;;  %v5890_v31 = vcombine.low %v949_v19, %v953_v20  ;;  %v522_v18 = vld [vmem:[%s8481_s0 + $0x1b8] sm:$0xff] }
 0x16d   : > { %v817_v27 = vld [vmem:[%s8481_s0 + $0xaf0] sm:$0xff]  ;;  %v646_v19 = vld [vmem:[%s8481_s0 + $0x598] sm:$0xff] }
 0x16e   : > { %v941_v28 = vld [vmem:[%s8481_s0 + $0xed0] sm:$0xff]  ;;  %v5754_v43 = vcombine.low %v813_v25, %v817_v27  ;;  %v650_v20 = vld [vmem:[%s8481_s0 + $0x5b8] sm:$0xff] }
 0x16f   : > { %4030 = vmatpush1.bf16.msra.mxu0 %v5682_v6  ;;  %4071 = vmatpush1.bf16.msra.mxu1 %v5810_v32  ;;  %v945_v29 = vld [vmem:[%s8481_s0 + $0xef0] sm:$0xff]  ;;  %v5755_v6 = vcombine.high %v813_v25, %v817_v27  ;;  %v5589_v27 = vcombine.high %v646_v19, %v650_v20 }
 0x170   : > { %4031 = vmatprep.subr.bf16.mxu0 %v5675_v33  ;;  %4072 = vmatprep.subr.bf16.mxu1 %v5803_v36  ;;  %v5883_v32 = vcombine.high %v941_v28, %v945_v29  ;;  %v805_v33 = vld [vmem:[%s8481_s0 + $0xa90] sm:$0xff]  ;;  %v5882_v45 = vcombine.low %v941_v28, %v945_v29  ;;  %v510_v28 = vld [vmem:[%s8481_s0 + $0x158] sm:$0xff] }
 0x171   : > { %v809_v36 = vld [vmem:[%s8481_s0 + $0xab0] sm:$0xff]  ;;  %v514_v29 = vld [vmem:[%s8481_s0 + $0x178] sm:$0xff] }
 0x172   : > { %v933_v39 = vld [vmem:[%s8481_s0 + $0xe90] sm:$0xff]  ;;  %v5746_v35 = vcombine.low %v805_v33, %v809_v36 }
 0x173   : > { %4032 = vmatpush1.bf16.msra.mxu0 %v5674_v46  ;;  %4073 = vmatpush1.bf16.msra.mxu1 %v5802_v47  ;;  %v937_v41 = vld [vmem:[%s8481_s0 + $0xeb0] sm:$0xff]  ;;  %v5747_v46 = vcombine.high %v805_v33, %v809_v36  ;;  %v5460_v33 = vcombine.low %v518_v17, %v522_v18 }
 0x174   : > { %4033 = vmatprep.subr.bf16.mxu0 %v5667_v48  ;;  %4074 = vmatprep.subr.bf16.mxu1 %v5795_v50  ;;  %v5875_v47 = vcombine.high %v933_v39, %v937_v41  ;;  %v797_v48 = vld [vmem:[%s8481_s0 + $0xa50] sm:$0xff]  ;;  %v5874_v57 = vcombine.low %v933_v39, %v937_v41  ;;  %v5588_v39 = vcombine.low %v646_v19, %v650_v20  ;;  %v482_v19 = vld [vmem:[%s8481_s0 + $0x78] sm:$0xff] }
 0x175   : > { %v801_v50 = vld [vmem:[%s8481_s0 + $0xa70] sm:$0xff]  ;;  %v5453_v41 = vcombine.high %v510_v28, %v514_v29  ;;  %v606_v20 = vld [vmem:[%s8481_s0 + $0x458] sm:$0xff] }
 0x176   : > { %v925_v51 = vld [vmem:[%s8481_s0 + $0xe50] sm:$0xff]  ;;  %v5738_v15 = vcombine.low %v797_v48, %v801_v50 }
 0x177   : > { %4034 = vmatpush1.bf16.msra.mxu0 %v5666_v58  ;;  %4075 = vmatpush1.bf16.msra.mxu1 %v5794_v59  ;;  %v929_v54 = vld [vmem:[%s8481_s0 + $0xe70] sm:$0xff]  ;;  %v5739_v58 = vcombine.high %v797_v48, %v801_v50  ;;  %v502_v48 = vld [vmem:[%s8481_s0 + $0x118] sm:$0xff] }
 0x178   : > { %4035 = vmatprep.subr.bf16.mxu0 %v5787_v5  ;;  %4076 = vmatprep.subr.bf16.mxu1 %v5915_v60  ;;  %v5867_v59 = vcombine.high %v925_v51, %v929_v54  ;;  %v789_v5 = vld [vmem:[%s8481_s0 + $0xa10] sm:$0xff]  ;;  %v5866_v1 = vcombine.low %v925_v51, %v929_v54  ;;  %v506_v50 = vld [vmem:[%s8481_s0 + $0x138] sm:$0xff] }
 0x179   : > { %v793_v60 = vld [vmem:[%s8481_s0 + $0xa30] sm:$0xff]  ;;  %v630_v54 = vld [vmem:[%s8481_s0 + $0x518] sm:$0xff] }
 0x17a   : > { %v917_v61 = vld [vmem:[%s8481_s0 + $0xe10] sm:$0xff]  ;;  %v5730_v12 = vcombine.low %v789_v5, %v793_v60 }
 0x17b   : > { %4036 = vmatpush2.bf16.msra.mxu0 %v5786_v2  ;;  %4077 = vmatpush2.bf16.msra.mxu1 %v5914_v3  ;;  %v921_v63 = vld [vmem:[%s8481_s0 + $0xe30] sm:$0xff]  ;;  %v5731_v2 = vcombine.high %v789_v5, %v793_v60  ;;  %v5445_v60 = vcombine.high %v502_v48, %v506_v50 }
 0x17c   : > { %4037 = vmatprep.subr.bf16.mxu0 %v5779_v4  ;;  %4078 = vmatprep.subr.bf16.mxu1 %v5907_v7  ;;  %v5859_v3 = vcombine.high %v917_v61, %v921_v63  ;;  %v526_v4 = vld [vmem:[%s8481_s0 + $0x1d8] sm:$0xff] }
 0x17d   : > { %v530_v7 = vld [vmem:[%s8481_s0 + $0x1f8] sm:$0xff] }
 0x17f   : > { %4038 = vmatpush2.bf16.msra.mxu0 %v5778_v14  ;;  %4079 = vmatpush2.bf16.msra.mxu1 %v5906_v52  ;;  %v5858_v14 = vcombine.low %v917_v61, %v921_v63  ;;  %v5469_v52 = vcombine.high %v526_v4, %v530_v7 }
 0x180   : > { %4039 = vmatprep.subr.bf16.mxu0 %v5771_v55  ;;  %4080 = vmatprep.subr.bf16.mxu1 %v5899_v16  ;;  %v5597_v55 = vcombine.high %v654_v10, %v658_v11  ;;  %v995_v16 = vsub.s32 3, %v7213_v26 }
 0x182   : > { %v996_v25 = vrot.slane %v7231_v38, %v995_v16 }
 0x183   : > { %4040 = vmatpush2.bf16.msra.mxu0 %v5770_v21  ;;  %4081 = vmatpush2.bf16.msra.mxu1 %v5898_v22  ;;  %v992_v21 = vrot.slane %v7231_v38, %v991_v13  ;;  %v5468_v22 = vcombine.low %v526_v4, %v530_v7  ;;  %v642_v38 = vld [vmem:[%s8481_s0 + $0x578] sm:$0xff] }
 0x184   : > { %4041 = vmatprep.subr.bf16.mxu0 %v5763_v23  ;;  %4082 = vmatprep.subr.bf16.mxu1 %v5891_v24  ;;  %v5596_v23 = vcombine.low %v654_v10, %v658_v11  ;;  %v5461_v24 = vcombine.high %v518_v17, %v522_v18  ;;  %v486_v11 = vld [vmem:[%s8481_s0 + $0x98] sm:$0xff] }
 0x185   : > { %v614_v13 = vld [vmem:[%s8481_s0 + $0x498] sm:$0xff] }
 0x186   : > { %v478_v18 = vld [vmem:[%s8481_s0 + $0x58] sm:$0xff] }
 0x187   : > { %4042 = vmatpush2.bf16.msra.mxu0 %v5762_v30  ;;  %4083 = vmatpush2.bf16.msra.mxu1 %v5890_v31  ;;  %v638_v31 = vld [vmem:[%s8481_s0 + $0x558] sm:$0xff] }
 0x188   : > { %4043 = vmatprep.subr.bf16.mxu0 %v5755_v6  ;;  %4084 = vmatprep.subr.bf16.mxu1 %v5883_v32 }
 0x18b   : > { %4044 = vmatpush2.bf16.msra.mxu0 %v5754_v43  ;;  %4085 = vmatpush2.bf16.msra.mxu1 %v5882_v45 }
 0x18c   : > { %4045 = vmatprep.subr.bf16.mxu0 %v5747_v46  ;;  %4086 = vmatprep.subr.bf16.mxu1 %v5875_v47  ;;  %v5581_v47 = vcombine.high %v638_v31, %v642_v38 }
 0x18f   : > { %4046 = vmatpush2.bf16.msra.mxu0 %v5746_v35  ;;  %4087 = vmatpush2.bf16.msra.mxu1 %v5874_v57  ;;  %v634_v35 = vld [vmem:[%s8481_s0 + $0x538] sm:$0xff] }
 0x190   : > { %4047 = vmatprep.subr.bf16.mxu0 %v5739_v58  ;;  %4088 = vmatprep.subr.bf16.mxu1 %v5867_v59  ;;  %v5452_v59 = vcombine.low %v510_v28, %v514_v29  ;;  %v5573_v63 = vcombine.high %v630_v54, %v634_v35  ;;  %v5572_v4 = vcombine.low %v630_v54, %v634_v35  ;;  %v474_v28 = vld [vmem:[%s8481_s0 + $0x38] sm:$0xff] }
 0x191   : > { %v598_v29 = vld [vmem:[%s8481_s0 + $0x418] sm:$0xff] }
 0x192   : > { %v710_v54 = vld [vmem:[%s8481_s0 + $0x798] sm:$0xff] }
 0x193   : > { %4048 = vmatpush2.bf16.msra.mxu0 %v5738_v15  ;;  %4089 = vmatpush2.bf16.msra.mxu1 %v5866_v1  ;;  %v494_v15 = vld [vmem:[%s8481_s0 + $0xd8] sm:$0xff] }
 0x194   : > { %4049 = vmatprep.subr.bf16.mxu0 %v5731_v2  ;;  %4090 = vmatprep.subr.bf16.mxu1 %v5859_v3  ;;  %v622_v1 = vld [vmem:[%s8481_s0 + $0x4d8] sm:$0xff]  ;;  %v5444_v3 = vcombine.low %v502_v48, %v506_v50 }
 0x195   : > { %v626_v2 = vld [vmem:[%s8481_s0 + $0x4f8] sm:$0xff] }
 0x196   : > { %v5565_v10 = vcombine.high %v622_v1, %v626_v2  ;;  %v582_v50 = vld [vmem:[%s8481_s0 + $0x398] sm:$0xff] }
 0x197   : > { %4050 = vmatpush2.bf16.msra.mxu0 %v5730_v12  ;;  %4091 = vmatpush2.bf16.msra.mxu1 %v5858_v14  ;;  %v490_v12 = vld [vmem:[%s8481_s0 + $0xb8] sm:$0xff] }
 0x198   : > { %4101 = vmatprep.subr.bf16.mxu0 %v5469_v52  ;;  %4142 = vmatprep.subr.bf16.mxu1 %v5597_v55  ;;  %v618_v14 = vld [vmem:[%s8481_s0 + $0x4b8] sm:$0xff]  ;;  %v5564_v55 = vcombine.low %v622_v1, %v626_v2  ;;  %v5429_v16 = vcombine.high %v486_v11, %v490_v12 }
 0x199   : > { %v5557_v17 = vcombine.high %v614_v13, %v618_v14  ;;  %v714_v35 = vld [vmem:[%s8481_s0 + $0x7b8] sm:$0xff] }
 0x19a   : > { %v3807_v30 = vpop.f32.mrf.mxu0  ;;  %4052 = vmatmul.mubr.bf16.vlgmr.msra.gmra.mxu0 %v6839_v8  ;;  %v3848_v32 = vpop.f32.mrf.mxu1  ;;  %4093 = vmatmul.mubr.bf16.vlgmr.msra.gmra.mxu1 %v6843_v9  ;;  %v5652_v1 = vcombine.low %v710_v54, %v714_v35 }
 0x19b   : > { %v3808_v6 = vadd.f32 %v3807_v30, %v992_v21  ;;  %4102 = vmatpush1.bf16.msra.mxu0 %v5468_v22  ;;  %4143 = vmatpush1.bf16.msra.mxu1 %v5596_v23  ;;  %v610_v21 = vld [vmem:[%s8481_s0 + $0x478] sm:$0xff]  ;;  %v5428_v22 = vcombine.low %v486_v11, %v490_v12  ;;  %v5556_v23 = vcombine.low %v614_v13, %v618_v14 }
 0x19c   : > { %v3809_v36 = vpop.f32.mrf.mxu0  ;;  %4103 = vmatprep.subr.bf16.mxu0 %v5461_v24  ;;  %v3850_v46 = vpop.f32.mrf.mxu1  ;;  %4144 = vmatprep.subr.bf16.mxu1 %v5589_v27  ;;  %v5421_v24 = vcombine.high %v478_v18, %v482_v19  ;;  %v470_v27 = vld [vmem:[%s8481_s0 + $0x18] sm:$0xff] }
 0x19d   : > { %v7672_v43 = vadd.f32 %v3848_v32, %v3808_v6  ;;  %v3810_v45 = vadd.f32 %v3809_v36, %v996_v25  ;;  %4133 = vmatprep.mubr.bf16.mxu0 %v6507_v37  ;;  %4174 = vmatprep.mubr.bf16.mxu1 %v6520_v44  ;;  %v5580_v37 = vcombine.low %v638_v31, %v642_v38  ;;  %v498_v44 = vld [vmem:[%s8481_s0 + $0xf8] sm:$0xff] }
 0x19e   : > { %v3811_v51 = vpop.f32.mrf.mxu0  ;;  %v3852_v58 = vpop.f32.mrf.mxu1  ;;  %v5437_v7 = vcombine.high %v494_v15, %v498_v44  ;;  %v5436_v52 = vcombine.low %v494_v15, %v498_v44  ;;  %v5549_v25 = vcombine.high %v606_v20, %v610_v21  ;;  %v602_v30 = vld [vmem:[%s8481_s0 + $0x438] sm:$0xff]  ;;  %v5420_v31 = vcombine.low %v478_v18, %v482_v19 }
 0x19f   : > { %v7688_v57 = vadd.f32 %v3850_v46, %v3810_v45  ;;  %4104 = vmatpush1.bf16.msra.mxu0 %v5460_v33  ;;  %4145 = vmatpush1.bf16.msra.mxu1 %v5588_v39  ;;  %v5548_v38 = vcombine.low %v606_v20, %v610_v21  ;;  %v5413_v6 = vcombine.high %v470_v27, %v474_v28  ;;  %v590_v33 = vld [vmem:[%s8481_s0 + $0x3d8] sm:$0xff] }
 0x1a0   : > { %v3812_v5 = vpop.f32.mrf.mxu0  ;;  %4105 = vmatprep.subr.bf16.mxu0 %v5453_v41  ;;  %v3853_v61 = vpop.f32.mrf.mxu1  ;;  %4146 = vmatprep.subr.bf16.mxu1 %v5581_v47  ;;  %v5541_v32 = vcombine.high %v598_v29, %v602_v30  ;;  %v594_v36 = vld [vmem:[%s8481_s0 + $0x3f8] sm:$0xff]  ;;  %v5412_v45 = vcombine.low %v470_v27, %v474_v28  ;;  %v5540_v46 = vcombine.low %v598_v29, %v602_v30 }
 0x1a1   : > { %v718_v39 = vld [vmem:[%s8481_s0 + $0x7d8] sm:$0xff]  ;;  %v5533_v47 = vcombine.high %v590_v33, %v594_v36  ;;  %v5532_v58 = vcombine.low %v590_v33, %v594_v36 }
 0x1a2   : > { %v722_v41 = vld [vmem:[%s8481_s0 + $0x7f8] sm:$0xff] }
 0x1a3   : > { %4106 = vmatpush1.bf16.msra.mxu0 %v5452_v59  ;;  %4147 = vmatpush1.bf16.msra.mxu1 %v5580_v37  ;;  %v5661_v48 = vcombine.high %v718_v39, %v722_v41  ;;  %v586_v51 = vld [vmem:[%s8481_s0 + $0x3b8] sm:$0xff]  ;;  %v5660_v59 = vcombine.low %v718_v39, %v722_v41  ;;  %v5653_v37 = vcombine.high %v710_v54, %v714_v35 }
 0x1a4   : > { %4107 = vmatprep.subr.bf16.mxu0 %v5445_v60  ;;  %4148 = vmatprep.subr.bf16.mxu1 %v5573_v63  ;;  %v5525_v5 = vcombine.high %v582_v50, %v586_v51  ;;  %v574_v60 = vld [vmem:[%s8481_s0 + $0x358] sm:$0xff]  ;;  %v5524_v44 = vcombine.low %v582_v50, %v586_v51 }
 0x1a5   : > { %v578_v61 = vld [vmem:[%s8481_s0 + $0x378] sm:$0xff] }
 0x1a6   : > { %v702_v63 = vld [vmem:[%s8481_s0 + $0x758] sm:$0xff]  ;;  %v5517_v2 = vcombine.high %v574_v60, %v578_v61  ;;  %v5516_v12 = vcombine.low %v574_v60, %v578_v61 }
 0x1a7   : > { %4108 = vmatpush1.bf16.msra.mxu0 %v5444_v3  ;;  %4149 = vmatpush1.bf16.msra.mxu1 %v5572_v4  ;;  %v706_v15 = vld [vmem:[%s8481_s0 + $0x778] sm:$0xff] }
 0x1a8   : > { %4109 = vmatprep.subr.bf16.mxu0 %v5437_v7  ;;  %4150 = vmatprep.subr.bf16.mxu1 %v5565_v10  ;;  %v5645_v3 = vcombine.high %v702_v63, %v706_v15  ;;  %v566_v4 = vld [vmem:[%s8481_s0 + $0x318] sm:$0xff]  ;;  %v5644_v13 = vcombine.low %v702_v63, %v706_v15 }
 0x1a9   : > { %v570_v7 = vld [vmem:[%s8481_s0 + $0x338] sm:$0xff] }
 0x1aa   : > { %v694_v10 = vld [vmem:[%s8481_s0 + $0x718] sm:$0xff]  ;;  %v5509_v14 = vcombine.high %v566_v4, %v570_v7  ;;  %v5508_v19 = vcombine.low %v566_v4, %v570_v7 }
 0x1ab   : > { %4110 = vmatpush1.bf16.msra.mxu0 %v5436_v52  ;;  %4151 = vmatpush1.bf16.msra.mxu1 %v5564_v55  ;;  %v698_v11 = vld [vmem:[%s8481_s0 + $0x738] sm:$0xff] }
 0x1ac   : > { %4111 = vmatprep.subr.bf16.mxu0 %v5429_v16  ;;  %4152 = vmatprep.subr.bf16.mxu1 %v5557_v17  ;;  %v5637_v52 = vcombine.high %v694_v10, %v698_v11  ;;  %v558_v55 = vld [vmem:[%s8481_s0 + $0x2d8] sm:$0xff]  ;;  %v5636_v20 = vcombine.low %v694_v10, %v698_v11 }
 0x1ad   : > { %v562_v16 = vld [vmem:[%s8481_s0 + $0x2f8] sm:$0xff] }
 0x1ae   : > { %v686_v17 = vld [vmem:[%s8481_s0 + $0x6d8] sm:$0xff]  ;;  %v5501_v21 = vcombine.high %v558_v55, %v562_v16  ;;  %v5500_v28 = vcombine.low %v558_v55, %v562_v16 }
 0x1af   : > { %4112 = vmatpush1.bf16.msra.mxu0 %v5428_v22  ;;  %4153 = vmatpush1.bf16.msra.mxu1 %v5556_v23  ;;  %v690_v18 = vld [vmem:[%s8481_s0 + $0x6f8] sm:$0xff] }
 0x1b0   : > { %4113 = vmatprep.subr.bf16.mxu0 %v5421_v24  ;;  %4154 = vmatprep.subr.bf16.mxu1 %v5549_v25  ;;  %v5629_v22 = vcombine.high %v686_v17, %v690_v18  ;;  %v550_v23 = vld [vmem:[%s8481_s0 + $0x298] sm:$0xff]  ;;  %v5628_v29 = vcombine.low %v686_v17, %v690_v18 }
 0x1b1   : > { %v554_v24 = vld [vmem:[%s8481_s0 + $0x2b8] sm:$0xff] }
 0x1b2   : > { %v678_v25 = vld [vmem:[%s8481_s0 + $0x698] sm:$0xff]  ;;  %v5493_v30 = vcombine.high %v550_v23, %v554_v24  ;;  %v5492_v36 = vcombine.low %v550_v23, %v554_v24 }
 0x1b3   : > { %4114 = vmatpush1.bf16.msra.mxu0 %v5420_v31  ;;  %4155 = vmatpush1.bf16.msra.mxu1 %v5548_v38  ;;  %v682_v27 = vld [vmem:[%s8481_s0 + $0x6b8] sm:$0xff] }
 0x1b4   : > { %4115 = vmatprep.subr.bf16.mxu0 %v5413_v6  ;;  %4156 = vmatprep.subr.bf16.mxu1 %v5541_v32  ;;  %v5621_v31 = vcombine.high %v678_v25, %v682_v27  ;;  %v542_v38 = vld [vmem:[%s8481_s0 + $0x258] sm:$0xff]  ;;  %v5620_v39 = vcombine.low %v678_v25, %v682_v27 }
 0x1b5   : > { %v546_v6 = vld [vmem:[%s8481_s0 + $0x278] sm:$0xff] }
 0x1b6   : > { %v670_v32 = vld [vmem:[%s8481_s0 + $0x658] sm:$0xff]  ;;  %v5485_v41 = vcombine.high %v542_v38, %v546_v6  ;;  %v5484_v51 = vcombine.low %v542_v38, %v546_v6 }
 0x1b7   : > { %4116 = vmatpush1.bf16.msra.mxu0 %v5412_v45  ;;  %4157 = vmatpush1.bf16.msra.mxu1 %v5540_v46  ;;  %v674_v33 = vld [vmem:[%s8481_s0 + $0x678] sm:$0xff] }
 0x1b8   : > { %4117 = vmatprep.subr.bf16.mxu0 %v5533_v47  ;;  %4158 = vmatprep.subr.bf16.mxu1 %v5661_v48  ;;  %v5613_v45 = vcombine.high %v670_v32, %v674_v33  ;;  %v534_v46 = vld [vmem:[%s8481_s0 + $0x218] sm:$0xff]  ;;  %v5612_v54 = vcombine.low %v670_v32, %v674_v33 }
 0x1b9   : > { %v538_v47 = vld [vmem:[%s8481_s0 + $0x238] sm:$0xff] }
 0x1ba   : > { %v662_v48 = vld [vmem:[%s8481_s0 + $0x618] sm:$0xff]  ;;  %v5477_v35 = vcombine.high %v534_v46, %v538_v47  ;;  %v5476_v61 = vcombine.low %v534_v46, %v538_v47 }
 0x1bb   : > { %4118 = vmatpush2.bf16.msra.mxu0 %v5532_v58  ;;  %4159 = vmatpush2.bf16.msra.mxu1 %v5660_v59  ;;  %v666_v50 = vld [vmem:[%s8481_s0 + $0x638] sm:$0xff] }
 0x1bc   : > { %4119 = vmatprep.subr.bf16.mxu0 %v5525_v5  ;;  %4160 = vmatprep.subr.bf16.mxu1 %v5653_v37  ;;  %v5605_v58 = vcombine.high %v662_v48, %v666_v50  ;;  %v782_v59 = vld [vmem:[%s8481_s0 + $0x9d8] sm:$0xff]  ;;  %v5604_v63 = vcombine.low %v662_v48, %v666_v50 }
 0x1bd   : > { %v786_v5 = vld [vmem:[%s8481_s0 + $0x9f8] sm:$0xff] }
 0x1be   : > { %v910_v37 = vld [vmem:[%s8481_s0 + $0xdd8] sm:$0xff]  ;;  %v5725_v15 = vcombine.high %v782_v59, %v786_v5  ;;  %v5724_v7 = vcombine.low %v782_v59, %v786_v5 }
 0x1bf   : > { %4120 = vmatpush2.bf16.msra.mxu0 %v5524_v44  ;;  %4161 = vmatpush2.bf16.msra.mxu1 %v5652_v1  ;;  %v914_v60 = vld [vmem:[%s8481_s0 + $0xdf8] sm:$0xff] }
 0x1c0   : > { %4121 = vmatprep.subr.bf16.mxu0 %v5517_v2  ;;  %4162 = vmatprep.subr.bf16.mxu1 %v5645_v3  ;;  %v5853_v44 = vcombine.high %v910_v37, %v914_v60  ;;  %v774_v1 = vld [vmem:[%s8481_s0 + $0x998] sm:$0xff]  ;;  %v5852_v10 = vcombine.low %v910_v37, %v914_v60 }
 0x1c1   : > { %v778_v2 = vld [vmem:[%s8481_s0 + $0x9b8] sm:$0xff] }
 0x1c2   : > { %v902_v3 = vld [vmem:[%s8481_s0 + $0xd98] sm:$0xff]  ;;  %v5717_v11 = vcombine.high %v774_v1, %v778_v2 }
 0x1c3   : > { %4122 = vmatpush2.bf16.msra.mxu0 %v5516_v12  ;;  %4163 = vmatpush2.bf16.msra.mxu1 %v5644_v13  ;;  %v906_v4 = vld [vmem:[%s8481_s0 + $0xdb8] sm:$0xff] }
 0x1c4   : > { %4123 = vmatprep.subr.bf16.mxu0 %v5509_v14  ;;  %4164 = vmatprep.subr.bf16.mxu1 %v5637_v52  ;;  %v5845_v12 = vcombine.high %v902_v3, %v906_v4  ;;  %v766_v13 = vld [vmem:[%s8481_s0 + $0x958] sm:$0xff] }
 0x1c5   : > { %v770_v14 = vld [vmem:[%s8481_s0 + $0x978] sm:$0xff] }
 0x1c6   : > { %v894_v55 = vld [vmem:[%s8481_s0 + $0xd58] sm:$0xff] }
 0x1c7   : > { %4124 = vmatpush2.bf16.msra.mxu0 %v5508_v19  ;;  %4165 = vmatpush2.bf16.msra.mxu1 %v5636_v20  ;;  %v898_v16 = vld [vmem:[%s8481_s0 + $0xd78] sm:$0xff]  ;;  %v5716_v19 = vcombine.low %v774_v1, %v778_v2 }
 0x1c8   : > { %4125 = vmatprep.subr.bf16.mxu0 %v5501_v21  ;;  %4166 = vmatprep.subr.bf16.mxu1 %v5629_v22  ;;  %v5709_v21 = vcombine.high %v766_v13, %v770_v14  ;;  %v5837_v24 = vcombine.high %v894_v55, %v898_v16  ;;  %v886_v27 = vld [vmem:[%s8481_s0 + $0xd18] sm:$0xff]  ;;  %v5836_v38 = vcombine.low %v894_v55, %v898_v16 }
 0x1c9   : > { %v750_v33 = vld [vmem:[%s8481_s0 + $0x8d8] sm:$0xff] }
 0x1ca   : > { %v742_v48 = vld [vmem:[%s8481_s0 + $0x898] sm:$0xff] }
 0x1cb   : > { %4126 = vmatpush2.bf16.msra.mxu0 %v5500_v28  ;;  %4167 = vmatpush2.bf16.msra.mxu1 %v5628_v29  ;;  %v890_v28 = vld [vmem:[%s8481_s0 + $0xd38] sm:$0xff] }
 0x1cc   : > { %4127 = vmatprep.subr.bf16.mxu0 %v5493_v30  ;;  %4168 = vmatprep.subr.bf16.mxu1 %v5621_v31  ;;  %v5708_v30 = vcombine.low %v766_v13, %v770_v14  ;;  %v5829_v32 = vcombine.high %v886_v27, %v890_v28  ;;  %v746_v50 = vld [vmem:[%s8481_s0 + $0x8b8] sm:$0xff] }
 0x1cd   : > { %v5685_v59 = vcombine.high %v742_v48, %v746_v50  ;;  %v734_v37 = vld [vmem:[%s8481_s0 + $0x858] sm:$0xff] }
 0x1ce   : > { %v738_v60 = vld [vmem:[%s8481_s0 + $0x878] sm:$0xff] }
 0x1cf   : > { %4128 = vmatpush2.bf16.msra.mxu0 %v5492_v36  ;;  %4169 = vmatpush2.bf16.msra.mxu1 %v5620_v39  ;;  %v754_v36 = vld [vmem:[%s8481_s0 + $0x8f8] sm:$0xff]  ;;  %v5677_v1 = vcombine.high %v734_v37, %v738_v60 }
 0x1d0   : > { %4129 = vmatprep.subr.bf16.mxu0 %v5485_v41  ;;  %4170 = vmatprep.subr.bf16.mxu1 %v5613_v45  ;;  %v882_v39 = vld [vmem:[%s8481_s0 + $0xcf8] sm:$0xff]  ;;  %v5828_v45 = vcombine.low %v886_v27, %v890_v28  ;;  %v5693_v46 = vcombine.high %v750_v33, %v754_v36 }
 0x1d1   : > { %v850_v55 = vld [vmem:[%s8481_s0 + $0xbf8] sm:$0xff] }
 0x1d2   : > { %v974_v16 = vld [vmem:[%s8481_s0 + $0xfd8] sm:$0xff] }
 0x1d3   : > { %4130 = vmatpush2.bf16.msra.mxu0 %v5484_v51  ;;  %4171 = vmatpush2.bf16.msra.mxu1 %v5612_v54  ;;  %v870_v51 = vld [vmem:[%s8481_s0 + $0xc98] sm:$0xff] }
 0x1d4   : > { %4131 = vmatprep.subr.bf16.mxu0 %v5477_v35  ;;  %4172 = vmatprep.subr.bf16.mxu1 %v5605_v58  ;;  %v874_v54 = vld [vmem:[%s8481_s0 + $0xcb8] sm:$0xff]  ;;  %v5692_v35 = vcombine.low %v750_v33, %v754_v36 }
 0x1d5   : > { %v5813_v5 = vcombine.high %v870_v51, %v874_v54 }
 0x1d7   : > { %4132 = vmatpush2.bf16.msra.mxu0 %v5476_v61  ;;  %4173 = vmatpush2.bf16.msra.mxu1 %v5604_v63  ;;  %v862_v61 = vld [vmem:[%s8481_s0 + $0xc58] sm:$0xff] }
 0x1d8   : > { %4183 = vmatprep.subr.bf16.mxu0 %v5725_v15  ;;  %4224 = vmatprep.subr.bf16.mxu1 %v5853_v44  ;;  %v866_v63 = vld [vmem:[%s8481_s0 + $0xc78] sm:$0xff]  ;;  %v5684_v15 = vcombine.low %v742_v48, %v746_v50  ;;  %v5812_v44 = vcombine.low %v870_v51, %v874_v54 }
 0x1d9   : > { %v5805_v2 = vcombine.high %v862_v61, %v866_v63  ;;  %v814_v54 = vld [vmem:[%s8481_s0 + $0xad8] sm:$0xff] }
 0x1da   : > { %v3889_v52 = vpop.f32.mrf.mxu0  ;;  %4134 = vmatmul.mubr.bf16.vlgmr.msra.gmra.mxu0 %v6617_v49  ;;  %v3930_v18 = vpop.f32.mrf.mxu1  ;;  %4175 = vmatmul.mubr.bf16.vlgmr.msra.gmra.mxu1 %v6629_v53  ;;  %v5844_v49 = vcombine.low %v902_v3, %v906_v4  ;;  %v762_v53 = vld [vmem:[%s8481_s0 + $0x938] sm:$0xff] }
 0x1db   : > { %v3890_v17 = vadd.f32 %v3889_v52, %v7672_v43  ;;  %4184 = vmatpush1.bf16.msra.mxu0 %v5724_v7  ;;  %4225 = vmatpush1.bf16.msra.mxu1 %v5852_v10  ;;  %v758_v43 = vld [vmem:[%s8481_s0 + $0x918] sm:$0xff] }
 0x1dc   : > { %v7873_v20 = vpop.f32.mrf.mxu0  ;;  %4185 = vmatprep.subr.bf16.mxu0 %v5717_v11  ;;  %v7877_v23 = vpop.f32.mrf.mxu1  ;;  %4226 = vmatprep.subr.bf16.mxu1 %v5845_v12  ;;  %v5701_v6 = vcombine.high %v758_v43, %v762_v53  ;;  %v5700_v41 = vcombine.low %v758_v43, %v762_v53  ;;  %v726_v3 = vld [vmem:[%s8481_s0 + $0x818] sm:$0xff]  ;;  %v5676_v11 = vcombine.low %v734_v37, %v738_v60 }
 0x1dd   : > { %v7875_v22 = vadd.f32 %v3930_v18, %v3890_v17  ;;  %4215 = vmatprep.mubr.bf16.mxu0 %v6641_v40  ;;  %4256 = vmatprep.mubr.bf16.mxu1 %v6652_v62  ;;  %v878_v62 = vld [vmem:[%s8481_s0 + $0xcd8] sm:$0xff]  ;;  %v5804_v12 = vcombine.low %v862_v61, %v866_v63 }
 0x1de   : > { %v3893_v25 = vpop.f32.mrf.mxu0  ;;  %v3934_v29 = vpop.f32.mrf.mxu1  ;;  %v5821_v47 = vcombine.high %v878_v62, %v882_v39  ;;  %v5820_v58 = vcombine.low %v878_v62, %v882_v39  ;;  %v730_v4 = vld [vmem:[%s8481_s0 + $0x838] sm:$0xff] }
 0x1df   : > { %4186 = vmatpush1.bf16.msra.mxu0 %v5716_v19  ;;  %4227 = vmatpush1.bf16.msra.mxu1 %v5844_v49  ;;  %v854_v7 = vld [vmem:[%s8481_s0 + $0xc18] sm:$0xff]  ;;  %v5669_v13 = vcombine.high %v726_v3, %v730_v4  ;;  %v5668_v18 = vcombine.low %v726_v3, %v730_v4 }
 0x1e0   : > { %v3894_v31 = vpop.f32.mrf.mxu0  ;;  %4187 = vmatprep.subr.bf16.mxu0 %v5709_v21  ;;  %v3935_v40 = vpop.f32.mrf.mxu1  ;;  %4228 = vmatprep.subr.bf16.mxu1 %v5837_v24  ;;  %v858_v10 = vld [vmem:[%s8481_s0 + $0xc38] sm:$0xff] }
 0x1e1   : > { %v5797_v14 = vcombine.high %v854_v7, %v858_v10  ;;  %v846_v52 = vld [vmem:[%s8481_s0 + $0xbd8] sm:$0xff]  ;;  %v5796_v19 = vcombine.low %v854_v7, %v858_v10 }
 0x1e2   : > { %v978_v17 = vld [vmem:[%s8481_s0 + $0xff8] sm:$0xff]  ;;  %v5789_v49 = vcombine.high %v846_v52, %v850_v55  ;;  %v5788_v27 = vcombine.low %v846_v52, %v850_v55 }
 0x1e3   : > { %4188 = vmatpush1.bf16.msra.mxu0 %v5708_v30  ;;  %4229 = vmatpush1.bf16.msra.mxu1 %v5836_v38  ;;  %v5917_v21 = vcombine.high %v974_v16, %v978_v17  ;;  %v838_v24 = vld [vmem:[%s8481_s0 + $0xb98] sm:$0xff]  ;;  %v5916_v28 = vcombine.low %v974_v16, %v978_v17 }
 0x1e4   : > { %4189 = vmatprep.subr.bf16.mxu0 %v5701_v6  ;;  %4230 = vmatprep.subr.bf16.mxu1 %v5829_v32  ;;  %v842_v43 = vld [vmem:[%s8481_s0 + $0xbb8] sm:$0xff] }
 0x1e5   : > { %v966_v53 = vld [vmem:[%s8481_s0 + $0xf98] sm:$0xff]  ;;  %v5781_v29 = vcombine.high %v838_v24, %v842_v43  ;;  %v5780_v32 = vcombine.low %v838_v24, %v842_v43 }
 0x1e6   : > { %v970_v25 = vld [vmem:[%s8481_s0 + $0xfb8] sm:$0xff] }
 0x1e7   : > { %4190 = vmatpush1.bf16.msra.mxu0 %v5700_v41  ;;  %4231 = vmatpush1.bf16.msra.mxu1 %v5828_v45  ;;  %v5909_v30 = vcombine.high %v966_v53, %v970_v25  ;;  %v830_v31 = vld [vmem:[%s8481_s0 + $0xb58] sm:$0xff]  ;;  %v5908_v33 = vcombine.low %v966_v53, %v970_v25 }
 0x1e8   : > { %4191 = vmatprep.subr.bf16.mxu0 %v5693_v46  ;;  %4232 = vmatprep.subr.bf16.mxu1 %v5821_v47  ;;  %v834_v38 = vld [vmem:[%s8481_s0 + $0xb78] sm:$0xff] }
 0x1e9   : > { %v958_v6 = vld [vmem:[%s8481_s0 + $0xf58] sm:$0xff]  ;;  %v5773_v36 = vcombine.high %v830_v31, %v834_v38  ;;  %v5772_v47 = vcombine.low %v830_v31, %v834_v38  ;;  %v4266_v31 = vmax.f32 %v7484_v0, 0.0  ;;  %v6075_v0 = vld [vmem:[%s8483_s2 + $0x64] ss:$8 sps:$4 sm:$0xff]  }
 0x1ea   : > { %v962_v40 = vld [vmem:[%s8481_s0 + $0xf78] sm:$0xff] }
 0x1eb   : > { %4192 = vmatpush1.bf16.msra.mxu0 %v5692_v35  ;;  %4233 = vmatpush1.bf16.msra.mxu1 %v5820_v58  ;;  %v5901_v62 = vcombine.high %v958_v6, %v962_v40  ;;  %v822_v39 = vld [vmem:[%s8481_s0 + $0xb18] sm:$0xff]  ;;  %v5900_v48 = vcombine.low %v958_v6, %v962_v40 }
 0x1ec   : > { %4193 = vmatprep.subr.bf16.mxu0 %v5685_v59  ;;  %4234 = vmatprep.subr.bf16.mxu1 %v5813_v5  ;;  %v826_v41 = vld [vmem:[%s8481_s0 + $0xb38] sm:$0xff] }
 0x1ed   : > { %v950_v45 = vld [vmem:[%s8481_s0 + $0xf18] sm:$0xff]  ;;  %v5765_v50 = vcombine.high %v822_v39, %v826_v41  ;;  %v5764_v5 = vcombine.low %v822_v39, %v826_v41 }
 0x1ee   : > { %v954_v46 = vld [vmem:[%s8481_s0 + $0xf38] sm:$0xff] }
 0x1ef   : > { %4194 = vmatpush1.bf16.msra.mxu0 %v5684_v15  ;;  %4235 = vmatpush1.bf16.msra.mxu1 %v5812_v44  ;;  %v5893_v51 = vcombine.high %v950_v45, %v954_v46  ;;  %v818_v35 = vld [vmem:[%s8481_s0 + $0xaf8] sm:$0xff]  ;;  %v5892_v37 = vcombine.low %v950_v45, %v954_v46  ;;  %v6073_v46 = vld [vmem:[%s8483_s2 + $0x60] ss:$8 sps:$4 sm:$0xff]  }
 0x1f0   : > { %4195 = vmatprep.subr.bf16.mxu0 %v5677_v1  ;;  %4236 = vmatprep.subr.bf16.mxu1 %v5805_v2  ;;  %v942_v58 = vld [vmem:[%s8481_s0 + $0xed8] sm:$0xff]  ;;  %v5757_v60 = vcombine.high %v814_v54, %v818_v35  ;;  %v5756_v2 = vcombine.low %v814_v54, %v818_v35 }
 0x1f1   : > { %v946_v59 = vld [vmem:[%s8481_s0 + $0xef8] sm:$0xff] }
 0x1f2   : > { %v5885_v61 = vcombine.high %v942_v58, %v946_v59  ;;  %v806_v63 = vld [vmem:[%s8481_s0 + $0xa98] sm:$0xff]  ;;  %v5884_v3 = vcombine.low %v942_v58, %v946_v59 }
 0x1f3   : > { %4196 = vmatpush1.bf16.msra.mxu0 %v5676_v11  ;;  %4237 = vmatpush1.bf16.msra.mxu1 %v5804_v12  ;;  %v810_v15 = vld [vmem:[%s8481_s0 + $0xab8] sm:$0xff] }
 0x1f4   : > { %4197 = vmatprep.subr.bf16.mxu0 %v5669_v13  ;;  %4238 = vmatprep.subr.bf16.mxu1 %v5797_v14  ;;  %v934_v44 = vld [vmem:[%s8481_s0 + $0xe98] sm:$0xff]  ;;  %v5749_v4 = vcombine.high %v806_v63, %v810_v15  ;;  %v5748_v14 = vcombine.low %v806_v63, %v810_v15  ;;  %v6085_v63 = vld [vmem:[%s8483_s2 + $0x40] ss:$8 sps:$4 sm:$0xff]  }
 0x1f5   : > { %v938_v1 = vld [vmem:[%s8481_s0 + $0xeb8] sm:$0xff]  ;;  %v6088_v15 = vld [vmem:[%s8483_s2 + $0x140] ss:$8 sps:$4 sm:$0xff]  }
 0x1f6   : > { %v5877_v7 = vcombine.high %v934_v44, %v938_v1  ;;  %v798_v10 = vld [vmem:[%s8481_s0 + $0xa58] sm:$0xff]  ;;  %v5876_v52 = vcombine.low %v934_v44, %v938_v1 }
 0x1f7   : > { %4198 = vmatpush1.bf16.msra.mxu0 %v5668_v18  ;;  %4239 = vmatpush1.bf16.msra.mxu1 %v5796_v19  ;;  %v802_v11 = vld [vmem:[%s8481_s0 + $0xa78] sm:$0xff] }
 0x1f8   : > { %4199 = vmatprep.subr.bf16.mxu0 %v5789_v49  ;;  %4240 = vmatprep.subr.bf16.mxu1 %v5917_v21  ;;  %v926_v12 = vld [vmem:[%s8481_s0 + $0xe58] sm:$0xff]  ;;  %v5741_v55 = vcombine.high %v798_v10, %v802_v11  ;;  %v3892_v21 = vadd.f32 %v7873_v20, %v7688_v57  ;;  %v5740_v24 = vcombine.low %v798_v10, %v802_v11  ;;  %v6097_v10 = vld [vmem:[%s8483_s2 + $0x20] ss:$8 sps:$4 sm:$0xff]  }
 0x1f9   : > { %v930_v13 = vld [vmem:[%s8481_s0 + $0xe78] sm:$0xff]  ;;  %v6100_v11 = vld [vmem:[%s8483_s2 + $0x120] ss:$8 sps:$4 sm:$0xff]  }
 0x1fa   : > { %v5869_v16 = vcombine.high %v926_v12, %v930_v13  ;;  %v790_v17 = vld [vmem:[%s8481_s0 + $0xa18] sm:$0xff]  ;;  %v5868_v43 = vcombine.low %v926_v12, %v930_v13 }
 0x1fb   : > { %4200 = vmatpush2.bf16.msra.mxu0 %v5788_v27  ;;  %4241 = vmatpush2.bf16.msra.mxu1 %v5916_v28  ;;  %v794_v18 = vld [vmem:[%s8481_s0 + $0xa38] sm:$0xff]  ;;  %v3933_v27 = vadd.f32 %v7877_v23, %v3892_v21  ;;  %v8051_v23 = vld [vmem:[%s8482_s1] sm:$0xff] }
 0x1fc   : > { %4201 = vmatprep.subr.bf16.mxu0 %v5781_v29  ;;  %4242 = vmatprep.subr.bf16.mxu1 %v5909_v30  ;;  %v918_v19 = vld [vmem:[%s8481_s0 + $0xe18] sm:$0xff]  ;;  %v5733_v53 = vcombine.high %v790_v17, %v794_v18  ;;  %v5732_v28 = vcombine.low %v790_v17, %v794_v18  ;;  %v999_v29 = vsub.s32 4, %v7213_v26  ;;  %v6109_v17 = vld [vmem:[%s8483_s2] ss:$8 sps:$4 sm:$0xff]  }
 0x1fd   : > { %v922_v49 = vld [vmem:[%s8481_s0 + $0xe38] sm:$0xff]  ;;  %v4268_v38 = vmax.f32 %v3933_v27, 0.0  ;;  %v6112_v18 = vld [vmem:[%s8483_s2 + $0x100] ss:$8 sps:$4 sm:$0xff]  }
 0x1fe   : > { %v5861_v25 = vcombine.high %v918_v19, %v922_v49  ;;  %v5860_v30 = vcombine.low %v918_v19, %v922_v49  ;;  %v6069_v57 = vld [vmem:[%s8483_s2 + $0x74] ss:$8 sps:$4 sm:$0xff]   ;;  %v1000_v6 = vrot.slane %v8051_v23, %v999_v29  ;;  %v6067_v40 = vld [vmem:[%s8483_s2 + $0x70] ss:$8 sps:$4 sm:$0xff]   ;;  %v6124_v27 = vld [vmem:[%s8483_s2 + $0x1e0] ss:$8 sps:$4 sm:$0xff]  }
 0x1ff   : > { %4202 = vmatpush2.bf16.msra.mxu0 %v5780_v32  ;;  %4243 = vmatpush2.bf16.msra.mxu1 %v5908_v33  ;;  %v6072_v20 = vld [vmem:[%s8483_s2 + $0x174] ss:$8 sps:$4 sm:$0xff]   ;;  %v6070_v32 = vld [vmem:[%s8483_s2 + $0x170] ss:$8 sps:$4 sm:$0xff]   ;;  %v4274_v33 = vpack.c.bf16 %v4266_v31, %v4266_v31  ;;  %v4276_v39 = vpack.c.bf16 %v4268_v38, %v4268_v38  ;;  %v6138_v31 = vld [vmem:[%s8483_s2 + $0x1c4] ss:$8 sps:$4 sm:$0xff]  }
 0x200   : > { %4203 = vmatprep.subr.bf16.mxu0 %v5773_v36  ;;  %4244 = vmatprep.subr.bf16.mxu1 %v5901_v62  ;;  %v6078_v62 = vld [vmem:[%s8483_s2 + $0x164] ss:$8 sps:$4 sm:$0xff]   ;;  %v6079_v58 = vld [vmem:[%s8483_s2 + $0x50] ss:$8 sps:$4 sm:$0xff]   ;;  %v6093_v44 = vld [vmem:[%s8483_s2 + $0x34] ss:$8 sps:$4 sm:$0xff]  }
 0x201   : > { %v6096_v1 = vld [vmem:[%s8483_s2 + $0x134] ss:$8 sps:$4 sm:$0xff]   ;;  %v6115_v21 = vld [vmem:[%s8483_s2 + $0xf0] ss:$8 sps:$4 sm:$0xff]   ;;  %v6133_v38 = vld [vmem:[%s8483_s2 + $0xc0] ss:$8 sps:$4 sm:$0xff]  }
 0x202   : > { %v6105_v12 = vld [vmem:[%s8483_s2 + $0x14] ss:$8 sps:$4 sm:$0xff]  }
 0x203   : > { %4204 = vmatpush2.bf16.msra.mxu0 %v5772_v47  ;;  %4245 = vmatpush2.bf16.msra.mxu1 %v5900_v48  ;;  %v6081_v48 = vld [vmem:[%s8483_s2 + $0x54] ss:$8 sps:$4 sm:$0xff]  }
 0x204   : > { %4205 = vmatprep.subr.bf16.mxu0 %v5765_v50  ;;  %4246 = vmatprep.subr.bf16.mxu1 %v5893_v51  ;;  %v6084_v51 = vld [vmem:[%s8483_s2 + $0x154] ss:$8 sps:$4 sm:$0xff]  }
 0x205   : > { %v6108_v13 = vld [vmem:[%s8483_s2 + $0x114] ss:$8 sps:$4 sm:$0xff]  }
 0x206   : > { %v6117_v19 = vld [vmem:[%s8483_s2 + $0xf4] ss:$8 sps:$4 sm:$0xff]  }
 0x207   : > { %4206 = vmatpush2.bf16.msra.mxu0 %v5764_v5  ;;  %4247 = vmatpush2.bf16.msra.mxu1 %v5892_v37  ;;  %v6082_v5 = vld [vmem:[%s8483_s2 + $0x150] ss:$8 sps:$4 sm:$0xff]   ;;  %v6087_v37 = vld [vmem:[%s8483_s2 + $0x44] ss:$8 sps:$4 sm:$0xff]   ;;  %v6120_v49 = vld [vmem:[%s8483_s2 + $0x1f4] ss:$8 sps:$4 sm:$0xff]  }
 0x208   : > { %4207 = vmatprep.subr.bf16.mxu0 %v5757_v60  ;;  %4248 = vmatprep.subr.bf16.mxu1 %v5885_v61  ;;  %v6090_v61 = vld [vmem:[%s8483_s2 + $0x144] ss:$8 sps:$4 sm:$0xff]   ;;  %v6132_v29 = vld [vmem:[%s8483_s2 + $0x1d4] ss:$8 sps:$4 sm:$0xff]  }
 0x20b   : > { %4208 = vmatpush2.bf16.msra.mxu0 %v5756_v2  ;;  %4249 = vmatpush2.bf16.msra.mxu1 %v5884_v3  ;;  %v6091_v2 = vld [vmem:[%s8483_s2 + $0x30] ss:$8 sps:$4 sm:$0xff]  }
 0x20c   : > { %4209 = vmatprep.subr.bf16.mxu0 %v5749_v4  ;;  %4250 = vmatprep.subr.bf16.mxu1 %v5877_v7  ;;  %v6094_v3 = vld [vmem:[%s8483_s2 + $0x130] ss:$8 sps:$4 sm:$0xff]   ;;  %v6099_v4 = vld [vmem:[%s8483_s2 + $0x24] ss:$8 sps:$4 sm:$0xff]  }
 0x20d   : > { %v6102_v7 = vld [vmem:[%s8483_s2 + $0x124] ss:$8 sps:$4 sm:$0xff]  }
 0x20f   : > { %4210 = vmatpush2.bf16.msra.mxu0 %v5748_v14  ;;  %4251 = vmatpush2.bf16.msra.mxu1 %v5876_v52  ;;  %v6103_v14 = vld [vmem:[%s8483_s2 + $0x10] ss:$8 sps:$4 sm:$0xff]  }
 0x210   : > { %4211 = vmatprep.subr.bf16.mxu0 %v5741_v55  ;;  %4252 = vmatprep.subr.bf16.mxu1 %v5869_v16  ;;  %v6106_v52 = vld [vmem:[%s8483_s2 + $0x110] ss:$8 sps:$4 sm:$0xff]   ;;  %v6111_v55 = vld [vmem:[%s8483_s2 + $0x4] ss:$8 sps:$4 sm:$0xff]  }
 0x211   : > { %v6114_v16 = vld [vmem:[%s8483_s2 + $0x104] ss:$8 sps:$4 sm:$0xff]  }
 0x213   : > { %4212 = vmatpush2.bf16.msra.mxu0 %v5740_v24  ;;  %4253 = vmatpush2.bf16.msra.mxu1 %v5868_v43  ;;  %v6118_v24 = vld [vmem:[%s8483_s2 + $0x1f0] ss:$8 sps:$4 sm:$0xff]   ;;  %v6123_v43 = vld [vmem:[%s8483_s2 + $0xe4] ss:$8 sps:$4 sm:$0xff]  }
 0x214   : > { %4213 = vmatprep.subr.bf16.mxu0 %v5733_v53  ;;  %4254 = vmatprep.subr.bf16.mxu1 %v5861_v25  ;;  %v6126_v53 = vld [vmem:[%s8483_s2 + $0x1e4] ss:$8 sps:$4 sm:$0xff]   ;;  %v6121_v25 = vld [vmem:[%s8483_s2 + $0xe0] ss:$8 sps:$4 sm:$0xff]  }
 0x217   : > { %4214 = vmatpush2.bf16.msra.mxu0 %v5732_v28  ;;  %4255 = vmatpush2.bf16.msra.mxu1 %v5860_v30  ;;  %v6129_v28 = vld [vmem:[%s8483_s2 + $0xd4] ss:$8 sps:$4 sm:$0xff]   ;;  %v6127_v30 = vld [vmem:[%s8483_s2 + $0xd0] ss:$8 sps:$4 sm:$0xff]  }
 0x218   : > { %5061 = vmatprep.subr.bf16.mxu0 %v6069_v57  ;;  %5102 = vmatprep.subr.bf16.mxu1 %v6072_v20  ;;  %v6130_v57 = vld [vmem:[%s8483_s2 + $0x1d0] ss:$8 sps:$4 sm:$0xff]   ;;  %v6135_v20 = vld [vmem:[%s8483_s2 + $0xc4] ss:$8 sps:$4 sm:$0xff]  }
 0x21a   : > { %v3971_v36 = vpop.f32.mrf.mxu0  ;;  %4216 = vmatmul.mubr.bf16.vlgmr.msra.gmra.mxu0 %v6839_v8  ;;  %v4012_v45 = vpop.f32.mrf.mxu1  ;;  %4257 = vmatmul.mubr.bf16.vlgmr.msra.gmra.mxu1 %v6843_v9  ;;  %v6076_v8 = vld [vmem:[%s8483_s2 + $0x160] ss:$8 sps:$4 sm:$0xff]  }
 0x21b   : > { %v3972_v41 = vadd.f32 %v3971_v36, %v1000_v6  ;;  %5062 = vmatpush1.bf16.msra.mxu0 %v6067_v40  ;;  %5093 = vmatprep.mubr.bf16.mxu0 %v4274_v33  ;;  %v6136_v6 = vld [vmem:[%s8483_s2 + $0x1c0] ss:$8 sps:$4 sm:$0xff]   ;;  %v6141_v40 = vld [vmem:[%s8483_s2 + $0xb4] ss:$8 sps:$4 sm:$0xff]   ;;  %v6142_v33 = vld [vmem:[%s8483_s2 + $0x1b0] ss:$8 sps:$4 sm:$0xff]  }
 0x21c   : > { %5103 = vmatpush1.bf16.msra.mxu1 %v6070_v32  ;;  %v8071_v47 = vpop.f32.mrf.mxu0  ;;  %5134 = vmatprep.mubr.bf16.mxu1 %v4276_v39  ;;  %v8081_v9 = vpop.f32.mrf.mxu1  ;;  %v6144_v32 = vld [vmem:[%s8483_s2 + $0x1b4] ss:$8 sps:$4 sm:$0xff]   ;;  %v6147_v36 = vld [vmem:[%s8483_s2 + $0xa4] ss:$8 sps:$4 sm:$0xff]   ;;  %v6145_v39 = vld [vmem:[%s8483_s2 + $0xa0] ss:$8 sps:$4 sm:$0xff]  }
 0x21d   : > { %v8079_v50 = vadd.f32 %v4012_v45, %v3972_v41  ;;  %5063 = vmatprep.subr.bf16.mxu0 %v6075_v0  ;;  %5104 = vmatprep.subr.bf16.mxu1 %v6078_v62  ;;  %v6139_v0 = vld [vmem:[%s8483_s2 + $0xb0] ss:$8 sps:$4 sm:$0xff]   ;;  %v6150_v62 = vld [vmem:[%s8483_s2 + $0x1a4] ss:$8 sps:$4 sm:$0xff]   ;;  %v6148_v41 = vld [vmem:[%s8483_s2 + $0x1a0] ss:$8 sps:$4 sm:$0xff]  }
 0x21e   : > { %v3975_v54 = vpop.f32.mrf.mxu0  ;;  %v4016_v35 = vpop.f32.mrf.mxu1  ;;  %v6153_v45 = vld [vmem:[%s8483_s2 + $0x94] ss:$8 sps:$4 sm:$0xff]  }
 0x21f   : > { %5064 = vmatpush1.bf16.msra.mxu0 %v6073_v46  ;;  %v6156_v46 = vld [vmem:[%s8483_s2 + $0x194] ss:$8 sps:$4 sm:$0xff]   ;;  %v6159_v54 = vld [vmem:[%s8483_s2 + $0x84] ss:$8 sps:$4 sm:$0xff]  }
 0x220   : > { %5105 = vmatpush1.bf16.msra.mxu1 %v6076_v8  ;;  %v3976_v59 = vpop.f32.mrf.mxu0  ;;  %5065 = vmatprep.subr.bf16.mxu0 %v6081_v48  ;;  %v4017_v60 = vpop.f32.mrf.mxu1  ;;  %v1003_v8 = vsub.s32 5, %v7213_v26  ;;  %v6151_v48 = vld [vmem:[%s8483_s2 + $0x90] ss:$8 sps:$4 sm:$0xff]   ;;  %v6162_v35 = vld [vmem:[%s8483_s2 + $0x184] ss:$8 sps:$4 sm:$0xff]  }
 0x221   : > { %5106 = vmatprep.subr.bf16.mxu1 %v6084_v51  ;;  %v6154_v51 = vld [vmem:[%s8483_s2 + $0x190] ss:$8 sps:$4 sm:$0xff]   ;;  %v6157_v59 = vld [vmem:[%s8483_s2 + $0x80] ss:$8 sps:$4 sm:$0xff]   ;;  %v6165_v60 = vld [vmem:[%s8483_s2 + $0x274] ss:$8 sps:$4 sm:$0xff]  }
 0x223   : > { %5066 = vmatpush1.bf16.msra.mxu0 %v6079_v58  ;;  %v1004_v58 = vrot.slane %v8051_v23, %v1003_v8  ;;  %v6237_v8 = vld [vmem:[%s8483_s2 + $0x3f4] ss:$8 sps:$4 sm:$0xff]  }
 0x224   : > { %5107 = vmatpush1.bf16.msra.mxu1 %v6082_v5  ;;  %5067 = vmatprep.subr.bf16.mxu0 %v6087_v37  ;;  %v4265_v5 = vmax.f32 %v7467_v56, 0.0  ;;  %v6160_v37 = vld [vmem:[%s8483_s2 + $0x180] ss:$8 sps:$4 sm:$0xff]   ;;  %v6163_v56 = vld [vmem:[%s8483_s2 + $0x270] ss:$8 sps:$4 sm:$0xff]  }
 0x225   : > { %5108 = vmatprep.subr.bf16.mxu1 %v6090_v61  ;;  %v4267_v61 = vmax.f32 %v7875_v22, 0.0  ;;  %v6211_v22 = vld [vmem:[%s8483_s2 + $0x370] ss:$8 sps:$4 sm:$0xff]  }
 0x227   : > { %5068 = vmatpush1.bf16.msra.mxu0 %v6085_v63  ;;  %v6213_v63 = vld [vmem:[%s8483_s2 + $0x374] ss:$8 sps:$4 sm:$0xff]  }
 0x228   : > { %5109 = vmatpush1.bf16.msra.mxu1 %v6088_v15  ;;  %5069 = vmatprep.subr.bf16.mxu0 %v6093_v44  ;;  %v3974_v15 = vadd.f32 %v8071_v47, %v1004_v58  ;;  %v4273_v44 = vpack.c.bf16 %v4265_v5, %v4265_v5  ;;  %v6216_v47 = vld [vmem:[%s8483_s2 + $0x364] ss:$8 sps:$4 sm:$0xff]   ;;  %v6190_v58 = vld [vmem:[%s8483_s2 + $0x2e0] ss:$8 sps:$4 sm:$0xff]  }
 0x229   : > { %5110 = vmatprep.subr.bf16.mxu1 %v6096_v1  ;;  %v6168_v1 = vld [vmem:[%s8483_s2 + $0x264] ss:$8 sps:$4 sm:$0xff]   ;;  %v6238_v5 = vld [vmem:[%s8483_s2 + $0x3e0] ss:$8 sps:$4 sm:$0xff]  }
 0x22b   : > { %5070 = vmatpush1.bf16.msra.mxu0 %v6091_v2  ;;  %v4275_v2 = vpack.c.bf16 %v4267_v61, %v4267_v61  ;;  %v6198_v61 = vld [vmem:[%s8483_s2 + $0x2c4] ss:$8 sps:$4 sm:$0xff]  }
 0x22c   : > { %5111 = vmatpush1.bf16.msra.mxu1 %v6094_v3  ;;  %5071 = vmatprep.subr.bf16.mxu0 %v6099_v4  ;;  %v4015_v4 = vadd.f32 %v8081_v9, %v3974_v15  ;;  %v6246_v15 = vld [vmem:[%s8483_s2 + $0x3c4] ss:$8 sps:$4 sm:$0xff]  }
 0x22d   : > { %5112 = vmatprep.subr.bf16.mxu1 %v6102_v7 }
 0x22f   : > { %5072 = vmatpush1.bf16.msra.mxu0 %v6097_v10  ;;  %v6166_v10 = vld [vmem:[%s8483_s2 + $0x260] ss:$8 sps:$4 sm:$0xff]  }
 0x230   : > { %5113 = vmatpush1.bf16.msra.mxu1 %v6100_v11  ;;  %5073 = vmatprep.subr.bf16.mxu0 %v6105_v12  ;;  %v6171_v12 = vld [vmem:[%s8483_s2 + $0x254] ss:$8 sps:$4 sm:$0xff]  }
 0x231   : > { %5114 = vmatprep.subr.bf16.mxu1 %v6108_v13  ;;  %v6214_v13 = vld [vmem:[%s8483_s2 + $0x360] ss:$8 sps:$4 sm:$0xff]  }
 0x233   : > { %5074 = vmatpush1.bf16.msra.mxu0 %v6103_v14 }
 0x234   : > { %5115 = vmatpush1.bf16.msra.mxu1 %v6106_v52  ;;  %5075 = vmatprep.subr.bf16.mxu0 %v6111_v55  ;;  %v6219_v52 = vld [vmem:[%s8483_s2 + $0x354] ss:$8 sps:$4 sm:$0xff]  }
 0x235   : > { %5116 = vmatprep.subr.bf16.mxu1 %v6114_v16 }
 0x237   : > { %5076 = vmatpush1.bf16.msra.mxu0 %v6109_v17 }
 0x238   : > { %5117 = vmatpush1.bf16.msra.mxu1 %v6112_v18  ;;  %5077 = vmatprep.subr.bf16.mxu0 %v6117_v19  ;;  %v6169_v18 = vld [vmem:[%s8483_s2 + $0x250] ss:$8 sps:$4 sm:$0xff]  }
 0x239   : > { %5118 = vmatprep.subr.bf16.mxu1 %v6120_v49  ;;  %v6174_v49 = vld [vmem:[%s8483_s2 + $0x244] ss:$8 sps:$4 sm:$0xff]  }
 0x23b   : > { %5078 = vmatpush2.bf16.msra.mxu0 %v6115_v21  ;;  %v6217_v21 = vld [vmem:[%s8483_s2 + $0x350] ss:$8 sps:$4 sm:$0xff]  }
 0x23c   : > { %5119 = vmatpush2.bf16.msra.mxu1 %v6118_v24  ;;  %5079 = vmatprep.subr.bf16.mxu0 %v6123_v43 }
 0x23d   : > { %5120 = vmatprep.subr.bf16.mxu1 %v6126_v53  ;;  %v6222_v53 = vld [vmem:[%s8483_s2 + $0x344] ss:$8 sps:$4 sm:$0xff]  }
 0x23f   : > { %5080 = vmatpush2.bf16.msra.mxu0 %v6121_v25 }
 0x240   : > { %5121 = vmatpush2.bf16.msra.mxu1 %v6124_v27  ;;  %5081 = vmatprep.subr.bf16.mxu0 %v6129_v28  ;;  %v6172_v27 = vld [vmem:[%s8483_s2 + $0x240] ss:$8 sps:$4 sm:$0xff]   ;;  %v6177_v28 = vld [vmem:[%s8483_s2 + $0x234] ss:$8 sps:$4 sm:$0xff]  }
 0x241   : > { %5122 = vmatprep.subr.bf16.mxu1 %v6132_v29  ;;  %v6220_v29 = vld [vmem:[%s8483_s2 + $0x340] ss:$8 sps:$4 sm:$0xff]  }
 0x243   : > { %5082 = vmatpush2.bf16.msra.mxu0 %v6127_v30  ;;  %v6225_v30 = vld [vmem:[%s8483_s2 + $0x334] ss:$8 sps:$4 sm:$0xff]  }
 0x244   : > { %5123 = vmatpush2.bf16.msra.mxu1 %v6130_v57  ;;  %5083 = vmatprep.subr.bf16.mxu0 %v6135_v20  ;;  %v6175_v57 = vld [vmem:[%s8483_s2 + $0x230] ss:$8 sps:$4 sm:$0xff]   ;;  %v6180_v20 = vld [vmem:[%s8483_s2 + $0x224] ss:$8 sps:$4 sm:$0xff]  }
 0x245   : > { %5124 = vmatprep.subr.bf16.mxu1 %v6138_v31  ;;  %v6223_v31 = vld [vmem:[%s8483_s2 + $0x330] ss:$8 sps:$4 sm:$0xff]  }
 0x247   : > { %5084 = vmatpush2.bf16.msra.mxu0 %v6133_v38  ;;  %v6228_v38 = vld [vmem:[%s8483_s2 + $0x324] ss:$8 sps:$4 sm:$0xff]  }
 0x248   : > { %5125 = vmatpush2.bf16.msra.mxu1 %v6136_v6  ;;  %5085 = vmatprep.subr.bf16.mxu0 %v6141_v40  ;;  %v6178_v6 = vld [vmem:[%s8483_s2 + $0x220] ss:$8 sps:$4 sm:$0xff]   ;;  %v6183_v40 = vld [vmem:[%s8483_s2 + $0x214] ss:$8 sps:$4 sm:$0xff]  }
 0x249   : > { %5126 = vmatprep.subr.bf16.mxu1 %v6144_v32  ;;  %v6226_v32 = vld [vmem:[%s8483_s2 + $0x320] ss:$8 sps:$4 sm:$0xff]  }
 0x24b   : > { %5086 = vmatpush2.bf16.msra.mxu0 %v6139_v0  ;;  %v6231_v0 = vld [vmem:[%s8483_s2 + $0x314] ss:$8 sps:$4 sm:$0xff]  }
 0x24c   : > { %5127 = vmatpush2.bf16.msra.mxu1 %v6142_v33  ;;  %5087 = vmatprep.subr.bf16.mxu0 %v6147_v36  ;;  %v6181_v33 = vld [vmem:[%s8483_s2 + $0x210] ss:$8 sps:$4 sm:$0xff]   ;;  %v6186_v36 = vld [vmem:[%s8483_s2 + $0x204] ss:$8 sps:$4 sm:$0xff]  }
 0x24d   : > { %5128 = vmatprep.subr.bf16.mxu1 %v6150_v62  ;;  %v6229_v62 = vld [vmem:[%s8483_s2 + $0x310] ss:$8 sps:$4 sm:$0xff]  }
 0x24f   : > { %5088 = vmatpush2.bf16.msra.mxu0 %v6145_v39  ;;  %v6234_v39 = vld [vmem:[%s8483_s2 + $0x304] ss:$8 sps:$4 sm:$0xff]  }
 0x250   : > { %5129 = vmatpush2.bf16.msra.mxu1 %v6148_v41  ;;  %5089 = vmatprep.subr.bf16.mxu0 %v6153_v45  ;;  %v6184_v41 = vld [vmem:[%s8483_s2 + $0x200] ss:$8 sps:$4 sm:$0xff]   ;;  %v6189_v45 = vld [vmem:[%s8483_s2 + $0x2f4] ss:$8 sps:$4 sm:$0xff]  }
 0x251   : > { %5130 = vmatprep.subr.bf16.mxu1 %v6156_v46  ;;  %v6232_v46 = vld [vmem:[%s8483_s2 + $0x300] ss:$8 sps:$4 sm:$0xff]  }
 0x253   : > { %5090 = vmatpush2.bf16.msra.mxu0 %v6151_v48  ;;  %v6187_v48 = vld [vmem:[%s8483_s2 + $0x2f0] ss:$8 sps:$4 sm:$0xff]  }
 0x254   : > { %5131 = vmatpush2.bf16.msra.mxu1 %v6154_v51  ;;  %5091 = vmatprep.subr.bf16.mxu0 %v6159_v54  ;;  %v6192_v51 = vld [vmem:[%s8483_s2 + $0x2e4] ss:$8 sps:$4 sm:$0xff]   ;;  %v6235_v54 = vld [vmem:[%s8483_s2 + $0x3f0] ss:$8 sps:$4 sm:$0xff]  }
 0x255   : > { %5132 = vmatprep.subr.bf16.mxu1 %v6162_v35  ;;  %v6240_v35 = vld [vmem:[%s8483_s2 + $0x3e4] ss:$8 sps:$4 sm:$0xff]  }
 0x257   : > { %5092 = vmatpush2.bf16.msra.mxu0 %v6157_v59  ;;  %v6195_v59 = vld [vmem:[%s8483_s2 + $0x2d4] ss:$8 sps:$4 sm:$0xff]  }
 0x258   : > { %5133 = vmatpush2.bf16.msra.mxu1 %v6160_v37  ;;  %5143 = vmatprep.subr.bf16.mxu0 %v6165_v60  ;;  %v6243_v37 = vld [vmem:[%s8483_s2 + $0x3d4] ss:$8 sps:$4 sm:$0xff]   ;;  %v6193_v60 = vld [vmem:[%s8483_s2 + $0x2d0] ss:$8 sps:$4 sm:$0xff]  }
 0x259   : > { %5184 = vmatprep.subr.bf16.mxu1 %v6213_v63  ;;  %v6241_v63 = vld [vmem:[%s8483_s2 + $0x3d0] ss:$8 sps:$4 sm:$0xff]  }
 0x25a   : > { %v8271_v3 = vpop.f32.mrf.mxu0  ;;  %5094 = vmatmul.mubr.bf16.vlgmr.msra.gmra.mxu0 %v4273_v44  ;;  %v8274_v7 = vpop.f32.mrf.mxu1  ;;  %v6201_v44 = vld [vmem:[%s8483_s2 + $0x2b4] ss:$8 sps:$4 sm:$0xff]  }
 0x25b   : > { %5135 = vmatmul.mubr.bf16.vlgmr.msra.gmra.mxu1 %v4275_v2  ;;  %5144 = vmatpush1.bf16.msra.mxu0 %v6163_v56  ;;  %v6196_v56 = vld [vmem:[%s8483_s2 + $0x2c0] ss:$8 sps:$4 sm:$0xff]   ;;  %v6199_v2 = vld [vmem:[%s8483_s2 + $0x2b0] ss:$8 sps:$4 sm:$0xff]  }
 0x25c   : > { %v4055_v11 = vpop.f32.mrf.mxu0  ;;  %5145 = vmatprep.subr.bf16.mxu0 %v6168_v1  ;;  %5185 = vmatpush1.bf16.msra.mxu1 %v6211_v22  ;;  %v4096_v14 = vpop.f32.mrf.mxu1  ;;  %v6244_v1 = vld [vmem:[%s8483_s2 + $0x3c0] ss:$8 sps:$4 sm:$0xff]   ;;  %v6249_v22 = vld [vmem:[%s8483_s2 + $0x3b4] ss:$8 sps:$4 sm:$0xff]  }
 0x25d   : > { %v4056_v9 = vadd.f32 %v4055_v11, %v4015_v4  ;;  %5186 = vmatprep.subr.bf16.mxu1 %v6216_v47  ;;  %v6204_v47 = vld [vmem:[%s8483_s2 + $0x2a4] ss:$8 sps:$4 sm:$0xff]   ;;  %v6247_v4 = vld [vmem:[%s8483_s2 + $0x3b0] ss:$8 sps:$4 sm:$0xff]   ;;  %v6202_v11 = vld [vmem:[%s8483_s2 + $0x2a0] ss:$8 sps:$4 sm:$0xff]  }
 0x25e   : > { %v4057_v55 = vpop.f32.mrf.mxu0  ;;  %v4098_v17 = vpop.f32.mrf.mxu1 }
 0x25f   : > { %v4097_v16 = vadd.f32 %v4096_v14, %v4056_v9  ;;  %5146 = vmatpush1.bf16.msra.mxu0 %v6166_v10  ;;  %v6252_v10 = vld [vmem:[%s8483_s2 + $0x3a4] ss:$8 sps:$4 sm:$0xff]   ;;  %v6250_v9 = vld [vmem:[%s8483_s2 + $0x3a0] ss:$8 sps:$4 sm:$0xff]   ;;  %v6255_v14 = vld [vmem:[%s8483_s2 + $0x394] ss:$8 sps:$4 sm:$0xff]  }
 0x260   : > { %v4058_v19 = vpop.f32.mrf.mxu0  ;;  %5147 = vmatprep.subr.bf16.mxu0 %v6171_v12  ;;  %5187 = vmatpush1.bf16.msra.mxu1 %v6214_v13  ;;  %v4099_v43 = vpop.f32.mrf.mxu1  ;;  %v4054_v12 = vadd.f32 %v8271_v3, %v8079_v50  ;;  %v6207_v13 = vld [vmem:[%s8483_s2 + $0x294] ss:$8 sps:$4 sm:$0xff]   ;;  %v6205_v50 = vld [vmem:[%s8483_s2 + $0x290] ss:$8 sps:$4 sm:$0xff]  }
 0x261   : > { %v4270_v24 = vmax.f32 %v4097_v16, 0.0  ;;  %5188 = vmatprep.subr.bf16.mxu1 %v6219_v52  ;;  %v6210_v52 = vld [vmem:[%s8483_s2 + $0x284] ss:$8 sps:$4 sm:$0xff]   ;;  %v6253_v55 = vld [vmem:[%s8483_s2 + $0x390] ss:$8 sps:$4 sm:$0xff]  }
 0x262   : > { %v4095_v3 = vadd.f32 %v8274_v7, %v4054_v12  ;;  %v6258_v16 = vld [vmem:[%s8483_s2 + $0x384] ss:$8 sps:$4 sm:$0xff]   ;;  %v6208_v7 = vld [vmem:[%s8483_s2 + $0x280] ss:$8 sps:$4 sm:$0xff]  }
 0x263   : > { %v4278_v25 = vpack.c.bf16 %v4270_v24, %v4270_v24  ;;  %5148 = vmatpush1.bf16.msra.mxu0 %v6169_v18  ;;  %v6256_v18 = vld [vmem:[%s8483_s2 + $0x380] ss:$8 sps:$4 sm:$0xff]  }
 0x264   : > { %5149 = vmatprep.subr.bf16.mxu0 %v6174_v49  ;;  %5189 = vmatpush1.bf16.msra.mxu1 %v6217_v21  ;;  %v4269_v17 = vmax.f32 %v4095_v3, 0.0 }
 0x265   : > { %5175 = vmatprep.mubr.bf16.mxu0 %v4278_v25  ;;  %5190 = vmatprep.subr.bf16.mxu1 %v6222_v53 }
 0x266   : > { %v4277_v19 = vpack.c.bf16 %v4269_v17, %v4269_v17 }
 0x267   : > { %5150 = vmatpush1.bf16.msra.mxu0 %v6172_v27 }
 0x268   : > { %5151 = vmatprep.subr.bf16.mxu0 %v6177_v28  ;;  %5191 = vmatpush1.bf16.msra.mxu1 %v6220_v29  ;;  %v1007_v29 = vsub.s32 6, %v7213_v26 }
 0x269   : > { %5192 = vmatprep.subr.bf16.mxu1 %v6225_v30  ;;  %v1011_v30 = vsub.s32 7, %v7213_v26 }
 0x26b   : > { %5152 = vmatpush1.bf16.msra.mxu0 %v6175_v57  ;;  %v1008_v57 = vrot.slane %v8051_v23, %v1007_v29  ;;  %v6046_v29 = vld [vmem:[%s8485_s4] ss:$0 sm:$0xff] }
 0x26c   : > { %5153 = vmatprep.subr.bf16.mxu0 %v6180_v20  ;;  %5193 = vmatpush1.bf16.msra.mxu1 %v6223_v31  ;;  %v1012_v20 = vrot.slane %v8051_v23, %v1011_v30 }
 0x26d   : > { %5194 = vmatprep.subr.bf16.mxu1 %v6228_v38 }
 0x26f   : > { %5154 = vmatpush1.bf16.msra.mxu0 %v6178_v6 }
 0x270   : > { %5155 = vmatprep.subr.bf16.mxu0 %v6183_v40  ;;  %5195 = vmatpush1.bf16.msra.mxu1 %v6226_v32 }
 0x271   : > { %5196 = vmatprep.subr.bf16.mxu1 %v6231_v0 }
 0x273   : > { %5156 = vmatpush1.bf16.msra.mxu0 %v6181_v33 }
 0x274   : > { %5157 = vmatprep.subr.bf16.mxu0 %v6186_v36  ;;  %5197 = vmatpush1.bf16.msra.mxu1 %v6229_v62 }
 0x275   : > { %5198 = vmatprep.subr.bf16.mxu1 %v6234_v39 }
 0x277   : > { %5158 = vmatpush1.bf16.msra.mxu0 %v6184_v41 }
 0x278   : > { %5159 = vmatprep.subr.bf16.mxu0 %v6189_v45  ;;  %5199 = vmatpush1.bf16.msra.mxu1 %v6232_v46 }
 0x279   : > { %5200 = vmatprep.subr.bf16.mxu1 %v6237_v8 }
 0x27b   : > { %5160 = vmatpush2.bf16.msra.mxu0 %v6187_v48 }
 0x27c   : > { %5161 = vmatprep.subr.bf16.mxu0 %v6192_v51  ;;  %5201 = vmatpush2.bf16.msra.mxu1 %v6235_v54 }
 0x27d   : > { %5202 = vmatprep.subr.bf16.mxu1 %v6240_v35 }
 0x27f   : > { %5162 = vmatpush2.bf16.msra.mxu0 %v6190_v58 }
 0x280   : > { %5163 = vmatprep.subr.bf16.mxu0 %v6195_v59  ;;  %5203 = vmatpush2.bf16.msra.mxu1 %v6238_v5  ;;  %v4409_v59 = vld [vmem:[%s8484_s3] sm:$0x3] }
 0x281   : > { %5204 = vmatprep.subr.bf16.mxu1 %v6243_v37  ;;  %v4414_v5 = vrot.slane %v4409_v59, %v983_v34  ;;  %v4418_v37 = vrot.slane %v4409_v59, %v987_v42 }
 0x283   : > { %5164 = vmatpush2.bf16.msra.mxu0 %v6193_v60 }
 0x284   : > { %5165 = vmatprep.subr.bf16.mxu0 %v6198_v61  ;;  %5205 = vmatpush2.bf16.msra.mxu1 %v6241_v63 }
 0x285   : > { %5206 = vmatprep.subr.bf16.mxu1 %v6246_v15 }
 0x287   : > { %5166 = vmatpush2.bf16.msra.mxu0 %v6196_v56 }
 0x288   : > { %5167 = vmatprep.subr.bf16.mxu0 %v6201_v44  ;;  %5207 = vmatpush2.bf16.msra.mxu1 %v6244_v1 }
 0x289   : > { %5208 = vmatprep.subr.bf16.mxu1 %v6249_v22 }
 0x28b   : > { %5168 = vmatpush2.bf16.msra.mxu0 %v6199_v2 }
 0x28c   : > { %5169 = vmatprep.subr.bf16.mxu0 %v6204_v47  ;;  %5209 = vmatpush2.bf16.msra.mxu1 %v6247_v4 }
 0x28d   : > { %5210 = vmatprep.subr.bf16.mxu1 %v6252_v10 }
 0x28f   : > { %5170 = vmatpush2.bf16.msra.mxu0 %v6202_v11 }
 0x290   : > { %5171 = vmatprep.subr.bf16.mxu0 %v6207_v13  ;;  %5211 = vmatpush2.bf16.msra.mxu1 %v6250_v9 }
 0x291   : > { %5212 = vmatprep.subr.bf16.mxu1 %v6255_v14 }
 0x293   : > { %5172 = vmatpush2.bf16.msra.mxu0 %v6205_v50 }
 0x294   : > { %5173 = vmatprep.subr.bf16.mxu0 %v6210_v52  ;;  %5213 = vmatpush2.bf16.msra.mxu1 %v6253_v55 }
 0x295   : > { %5214 = vmatprep.subr.bf16.mxu1 %v6258_v16 }
 0x297   : > { %5174 = vmatpush2.bf16.msra.mxu0 %v6208_v7 }
 0x298   : > { %5215 = vmatpush2.bf16.msra.mxu1 %v6256_v18 }
 0x29a   : > { %v4135_v49 = vpop.f32.mrf.mxu0  ;;  %5176 = vmatmul.mubr.bf16.vlgmr.msra.gmra.mxu0 %v4277_v19  ;;  %v4176_v21 = vpop.f32.mrf.mxu1 }
 0x29b   : > { %v4136_v31 = vadd.f32 %v4135_v49, %v1008_v57 }
 0x29c   : > { %v4137_v24 = vpop.f32.mrf.mxu0  ;;  %v4178_v43 = vpop.f32.mrf.mxu1 }
 0x29d   : > { %v4138_v38 = vadd.f32 %v4137_v24, %v1012_v20  ;;  %v4177_v6 = vadd.f32 %v4176_v21, %v4136_v31 }
 0x29e   : > { %v4139_v53 = vpop.f32.mrf.mxu0  ;;  %v4180_v25 = vpop.f32.mrf.mxu1 }
 0x29f   : > { %v4179_v32 = vadd.f32 %v4178_v43, %v4138_v38 }
 0x2a0   : > { %v4140_v27 = vpop.f32.mrf.mxu0  ;;  %v4181_v28 = vpop.f32.mrf.mxu1 }
 0x2da   : > { %v4217_v40 = vpop.f32.mrf.mxu0  ;;  %v4258_v33 = vpop.f32.mrf.mxu1 }
 0x2db   : > { %v4218_v0 = vadd.f32 %v4217_v40, %v4177_v6 }
 0x2dc   : > { %v4219_v36 = vpop.f32.mrf.mxu0  ;;  %v4260_v41 = vpop.f32.mrf.mxu1 }
 0x2dd   : > { %v4259_v62 = vadd.f32 %v4258_v33, %v4218_v0  ;;  %v4220_v39 = vadd.f32 %v4219_v36, %v4179_v32  ;;  %v6047_v36 = vld [vmem:[%s8486_s5] ss:$0 sm:$0xff] }
 0x2de   : > { %v4221_v45 = vpop.f32.mrf.mxu0  ;;  %v4262_v8 = vpop.f32.mrf.mxu1 }
 0x2df   : > { %v4261_v46 = vadd.f32 %v4260_v41, %v4220_v39  ;;  %v4271_v48 = vmax.f32 %v4259_v62, 0.0 }
 0x2e0   : > { %v4222_v51 = vpop.f32.mrf.mxu0  ;;  %v4263_v35 = vpop.f32.mrf.mxu1 }
 0x2e1   : > { %v4272_v54 = vmax.f32 %v4261_v46, 0.0  ;;  %v4279_v23 = vpack.c.bf16 %v4271_v48, %v4271_v48 }
 0x2e3   : > { %v4280_v58 = vpack.c.bf16 %v4272_v54, %v4272_v54 }
 0x2e5   : > { %5216 = vmatprep.mubr.bf16.mxu1 %v4280_v58 }
 0x2e6   : > { %5217 = vmatmul.mubr.bf16.vlgmr.msra.gmra.mxu1 %v4279_v23 }
 0x31a   : > { %v5095_v60 = vpop.f32.mrf.mxu0 }
 0x31b   : > { %v5096_v61 = vadd.f32 %v5095_v60, %v4414_v5  ;;  %v5136_v63 = vpop.f32.mrf.mxu1 }
 0x31c   : > { %v5097_v15 = vpop.f32.mrf.mxu0 }
 0x31d   : > { %v5137_v56 = vadd.f32 %v5136_v63, %v5096_v61  ;;  %v5098_v44 = vadd.f32 %v5097_v15, %v4418_v37  ;;  %v5138_v1 = vpop.f32.mrf.mxu1 }
 0x31e   : > { %v5099_v22 = vpop.f32.mrf.mxu0 }
 0x31f   : > { %v5139_v2 = vadd.f32 %v5138_v1, %v5098_v44  ;;  %v5140_v47 = vpop.f32.mrf.mxu1 }
 0x320   : > { %v5100_v4 = vpop.f32.mrf.mxu0 }
 0x321   : > { %v5141_v10 = vpop.f32.mrf.mxu1 }
 0x35a   : > { %v5177_v11 = vpop.f32.mrf.mxu0 }
 0x35b   : > { %v5178_v12 = vadd.f32 %v5177_v11, %v5137_v56 }
 0x35c   : > { %v5179_v13 = vpop.f32.mrf.mxu0 }
 0x35d   : > { %v5180_v9 = vadd.f32 %v5179_v13, %v5139_v2 }
 0x35e   : > { %v5181_v34 = vpop.f32.mrf.mxu0 }
 0x360   : > { %v5182_v14 = vpop.f32.mrf.mxu0 }
 0x3a6   : > { %v5218_v26 = vpop.f32.mrf.mxu1 }
 0x3a7   : > { %v5219_v42 = vadd.f32 %v5218_v26, %v5178_v12 }
 0x3a8   : > { %v5220_v50 = vpop.f32.mrf.mxu1 }
 0x3a9   : > { %v5221_v3 = vadd.f32 %v5220_v50, %v5180_v9  ;;  %5225 = vmax.xlane.f32.xlu0 %v5219_v42 }
 0x3aa   : > { %v5222_v52 = vpop.f32.mrf.mxu1 }
 0x3ab   : > { %v5237_v55 = vrot.slane %v5221_v3, 4  ;;  %v5273_v57 = vsub.f32 %v5221_v3, %v6046_v29 }
 0x3ac   : > { %v5223_v16 = vpop.f32.mrf.mxu1 }
 0x3ad   : > { %v5238_v7 = vmax.f32 %v5221_v3, %v5237_v55  ;;  %v5255_v18 = vadd.f32 %v5237_v55, %v5221_v3  ;;  %v5274_v6 = vmul.f32 %v5273_v57, %v5273_v57 }
 0x3af   : > { %v5239_v17 = vrot.slane %v5238_v7, 2  ;;  %v5256_v21 = vrot.slane %v5255_v18, 2  ;;  %v5275_v33 = vsub.f32 0.0, %v5274_v6 }
 0x3b1   : > { %v5240_v19 = vmax.f32 %v5238_v7, %v5239_v17  ;;  %v5257_v53 = vadd.f32 %v5256_v21, %v5255_v18  ;;  %v5283_v45 = vmul.f32 %v6047_v36, %v5275_v33 }
 0x3b3   : > { %v5241_v49 = vrot.slane %v5240_v19, 1  ;;  %v5258_v27 = vrot.slane %v5257_v53, 1  ;;  %v5284_v48 = vmul.f32 1.442695, %v5283_v45 }
 0x3b5   : > { %v5242_v24 = vmax.f32 %v5240_v19, %v5241_v49  ;;  %v5259_v28 = vadd.f32 %v5258_v27, %v5257_v53 }
 0x3b7   : > { %v5243_v43 = vsub.f32 %v5221_v3, %v5242_v24  ;;  %v5260_v30 = vmul.f32 0.125, %v5259_v28 }
 0x3b9   : > { %v5244_v25 = vmul.f32 1.442695, %v5243_v43  ;;  %v5261_v20 = vsub.f32 %v5221_v3, %v5260_v30 }
 0x3bb   : > { %6259 = vpow2.f32 %v5244_v25  ;;  %v5262_v32 = vmul.f32 %v5261_v20, %v5261_v20 }
 0x3bd   : > { %v5263_v39 = vsub.f32 0.0, %v5262_v32 }
 0x3bf   : > { %v5264_v8 = vmul.f32 1.442695, %v5263_v39 }
 0x3c8   : > { %v6260_v31 = vpop.eup %6259 }
 0x3c9   : > { %v5246_v38 = vrot.slane %v6260_v31, 4 }
 0x3cb   : > { %v5247_v40 = vadd.f32 %v6260_v31, %v5246_v38 }
 0x3cd   : > { %v5248_v0 = vrot.slane %v5247_v40, 2 }
 0x3cf   : > { %v5249_v62 = vadd.f32 %v5248_v0, %v5247_v40 }
 0x3d1   : > { %v5250_v41 = vrot.slane %v5249_v62, 1 }
 0x3d3   : > { %v5251_v46 = vadd.f32 %v5250_v41, %v5249_v62 }
 0x3d5   : > { %6261 = vrcp.f32 %v5251_v46 }
 0x3d6   : > { %6263 = vpow2.f32 %v5264_v8 }
 0x3d7   : > { %6265 = vpow2.f32 %v5284_v48 }
 0x3e2   : > { %v6262_v51 = vpop.eup %6261 }
 0x3e3   : > { %v5253_v54 = vmul.f32 %v6262_v51, %v6260_v31  ;;  %v6264_v35 = vpop.eup %6263 }
 0x3e4   : > { %v6266_v23 = vpop.eup %6265 }
 0x3e5   : > { %v5286_v58 = vadd.f32 %v6264_v35, %v5253_v54 }
 0x3e7   : > { %v5287_v59 = vadd.f32 %v6266_v23, %v5286_v58 }
 0x3e9   : > { %v5288_v5 = vmul.f32 0.33333334, %v5287_v59 }
 0x3eb   : > { %5289 = vst [vmem:[%s318_s20] sm:$0xff] %v5288_v5 }
 0x432   : > { %v5226_v37 = vpop.xlane.xlu0 %5225 }
 0x433   : > { %v5227_v60 = vsub.f32 %v5219_v42, %v5226_v37 }
 0x435   : > { %v5228_v61 = vmul.f32 1.442695, %v5227_v60 }
 0x437   : > { %6267 = vpow2.f32 %v5228_v61 }
 0x444   : > { %v6268_v63 = vpop.eup %6267 }
 0x445   : > { %5230 = vadd.xlane.f32.xlu0 %v6268_v63 }
 0x4ce   : > { %v5231_v15 = vpop.xlane.xlu0 %5230 }
 0x4cf   : > { %6269 = vrcp.f32 %v5231_v15 }
 0x4dc   : > { %v6270_v56 = vpop.eup %6269 }
 0x4dd   : > { %v5233_v44 = vmul.f32 %v6270_v56, %v6268_v63 }
 0x4df   : > { %5234 = vst [vmem:[%s314_s21] sm:$0xff] %v5233_v44 }
 0x4e0 PF: > { %s19_s27 = sadd.s32 1, %s6278_s27  }
 0x4e1   : > { %p16_p5 = scmp.ge.s32.totalorder %s19_s27, 4  }
 0x4e3   :  { %18 = sbr.rel (!%p16_p5) target bundleno = 1 (0x1), region = 105 }

// kernel: _wsgn_impl.2
= control target key start
LH: loop header
LB: loop body
LE: loop exit
PB: predicated region body
PF: predicated region fallthrough
CT: control target
= control target key end

     0   :  { %s6326_s27 = smov 0   ;;  %s8481_s0 = inlined_call_operand.vmem [shape: bf16[1024,1024], index: 0, kind: input, shape index: {}]   ;;  %s8482_s1 = inlined_call_operand.vmem [shape: f32[1,1024], index: 1, kind: input, shape index: {}]   ;;  %s8483_s2 = inlined_call_operand.vmem [shape: bf16[1024,256], index: 2, kind: input, shape index: {}]   ;;  %s8484_s3 = inlined_call_operand.vmem [shape: f32[1,256], index: 3, kind: input, shape index: {}]   ;;  %s8485_s4 = inlined_call_operand.vmem [shape: f32[1,128], index: 4, kind: input, shape index: {}]   ;;  %s8486_s5 = inlined_call_operand.vmem [shape: f32[1,128], index: 5, kind: input, shape index: {}]   ;;  %s8487_s6 = inlined_call_operand.vmem [shape: f32[2,1024,8,1], index: 6, kind: input, shape index: {}]   ;;  %s8488_s7 = inlined_call_operand.vmem [shape: f32[2,8,128], index: 7, kind: output, shape index: {0}]   ;;  %s8489_s8 = inlined_call_operand.vmem [shape: f32[2,8,128], index: 8, kind: output, shape index: {1}]  }
   0x1 LB: > { %s6332_s28 = sadd.s32 4294967295, %s6278_s27   ;;  %p5380_p0 = scmp.ge.s32.totalorder %s6278_s27, 1  ;;  %s6278_s27 = sphi %s6326_s27, %s19_s27  }
   0x2   : > { %p268_p1 = scmp.lt.s32.totalorder %s6278_s27, 3 }
   0x4   : > { %p269_p2 = pnand %p5380_p0, %p268_p1 }
   0x6   : > { %272 = sbr.rel (%p269_p2) target bundleno = 1248 (0x4e0), region = 48 }
   0xb   : > { %v523_v0 = vld [vmem:[%s8481_s0 + $0x1c0] sm:$0xff]  ;;  %s321_s19 = ssub.s32 1, %s6332_s28  ;;  %s5383_s18 = sshll.u32 %s6332_s28, 6 }
   0xc   : > { %v527_v1 = vld [vmem:[%s8481_s0 + $0x1e0] sm:$0xff]  ;;  %s322_s12 = sor.u32 %s6332_s28, %s321_s19  ;;  %s6423_s26 = scalar_lea.vmem %s8487_s6, %s5383_s18 }
   0xd   : > { %v651_v2 = vld [vmem:[%s8481_s0 + $0x5c0] sm:$0xff]  ;;  %v5463_v3 = vcombine.high %v523_v0, %v527_v1  ;;  %v5462_v5 = vcombine.low %v523_v0, %v527_v1  ;;  %p323_p3 = scmp.lt.s32.totalorder %s322_s12, 0  ;;  %p311_p4 = scmp.lt.s32.totalorder %s6332_s28, 1 }
   0xe   : > { %v655_v4 = vld [vmem:[%s8481_s0 + $0x5e0] sm:$0xff] }
   0xf   : > { %v515_v6 = vld [vmem:[%s8481_s0 + $0x180] sm:$0xff]  ;;  %v5591_v8 = vcombine.high %v651_v2, %v655_v4  ;;  %v5590_v9 = vcombine.low %v651_v2, %v655_v4  ;;  %3609 = vmatprep.subr.bf16.mxu0 %v5463_v3  ;;  %s6398_s9 = scalar_select %p323_p3, 0, 255 }
  0x10   : > { %v519_v7 = vld [vmem:[%s8481_s0 + $0x1a0] sm:$0xff]  ;;  %3610 = vmatpush1.bf16.msra.mxu0 %v5462_v5  ;;  %s8491_s28 = smov (!%p311_p4, %s6332_s28), 1 }
  0x11   : > { %v5455_v10 = vcombine.high %v515_v6, %v519_v7  ;;  %v643_v11 = vld [vmem:[%s8481_s0 + $0x580] sm:$0xff]  ;;  %3650 = vmatprep.subr.bf16.mxu1 %v5591_v8  ;;  %v5454_v18 = vcombine.low %v515_v6, %v519_v7  ;;  %s327_s20 = sand.u32 255, %s6398_s9  ;;  %v6280_v6 = vmov 0.0   ;;  %s5381_s16 = sshll.u32 %s8491_s28, 3 }
  0x12   : > { %v647_v12 = vld [vmem:[%s8481_s0 + $0x5a0] sm:$0xff]  ;;  %3651 = vmatpush1.bf16.msra.mxu1 %v5590_v9  ;;  %s6425_s29 = sand.u32 15, %s327_s20  ;;  %s6433_s12 = sand.u32 240, %s327_s20 }
  0x13   : > { %v507_v13 = vld [vmem:[%s8481_s0 + $0x140] sm:$0xff]  ;;  %v5583_v14 = vcombine.high %v643_v11, %v647_v12  ;;  %3611 = vmatprep.subr.bf16.mxu0 %v5455_v10  ;;  %v5582_v19 = vcombine.low %v643_v11, %v647_v12  ;;  %s318_s20 = scalar_lea.vmem %s8489_s8, %s5381_s16  ;;  %s314_s21 = scalar_lea.vmem %s8488_s7, %s5381_s16 }
  0x14   : > { %v511_v15 = vld [vmem:[%s8481_s0 + $0x160] sm:$0xff]  ;;  %3612 = vmatpush1.bf16.msra.mxu0 %v5454_v18 }
  0x15   : > { %v635_v16 = vld [vmem:[%s8481_s0 + $0x540] sm:$0xff]  ;;  %v5447_v20 = vcombine.high %v507_v13, %v511_v15  ;;  %3652 = vmatprep.subr.bf16.mxu1 %v5583_v14  ;;  %v5446_v26 = vcombine.low %v507_v13, %v511_v15 }
  0x16   : > { %v639_v17 = vld [vmem:[%s8481_s0 + $0x560] sm:$0xff]  ;;  %3653 = vmatpush1.bf16.msra.mxu1 %v5582_v19 }
  0x17   : > { %v5575_v21 = vcombine.high %v635_v16, %v639_v17  ;;  %v499_v22 = vld [vmem:[%s8481_s0 + $0x100] sm:$0xff]  ;;  %3613 = vmatprep.subr.bf16.mxu0 %v5447_v20  ;;  %v5574_v27 = vcombine.low %v635_v16, %v639_v17 }
  0x18   : > { %v503_v23 = vld [vmem:[%s8481_s0 + $0x120] sm:$0xff]  ;;  %3614 = vmatpush1.bf16.msra.mxu0 %v5446_v26 }
  0x19   : > { %v627_v24 = vld [vmem:[%s8481_s0 + $0x500] sm:$0xff]  ;;  %v5439_v28 = vcombine.high %v499_v22, %v503_v23  ;;  %3654 = vmatprep.subr.bf16.mxu1 %v5575_v21  ;;  %v5438_v34 = vcombine.low %v499_v22, %v503_v23 }
  0x1a   : > { %v631_v25 = vld [vmem:[%s8481_s0 + $0x520] sm:$0xff]  ;;  %3655 = vmatpush1.bf16.msra.mxu1 %v5574_v27 }
  0x1b   : > { %v5567_v29 = vcombine.high %v627_v24, %v631_v25  ;;  %v491_v30 = vld [vmem:[%s8481_s0 + $0xc0] sm:$0xff]  ;;  %3615 = vmatprep.subr.bf16.mxu0 %v5439_v28  ;;  %v5566_v35 = vcombine.low %v627_v24, %v631_v25 }
  0x1c   : > { %v495_v31 = vld [vmem:[%s8481_s0 + $0xe0] sm:$0xff]  ;;  %3616 = vmatpush1.bf16.msra.mxu0 %v5438_v34 }
  0x1d   : > { %v619_v32 = vld [vmem:[%s8481_s0 + $0x4c0] sm:$0xff]  ;;  %v5431_v36 = vcombine.high %v491_v30, %v495_v31  ;;  %3656 = vmatprep.subr.bf16.mxu1 %v5567_v29  ;;  %v5430_v42 = vcombine.low %v491_v30, %v495_v31 }
  0x1e   : > { %v623_v33 = vld [vmem:[%s8481_s0 + $0x4e0] sm:$0xff]  ;;  %3657 = vmatpush1.bf16.msra.mxu1 %v5566_v35 }
  0x1f   : > { %v5559_v37 = vcombine.high %v619_v32, %v623_v33  ;;  %v483_v38 = vld [vmem:[%s8481_s0 + $0x80] sm:$0xff]  ;;  %3617 = vmatprep.subr.bf16.mxu0 %v5431_v36  ;;  %v5558_v43 = vcombine.low %v619_v32, %v623_v33 }
  0x20   : > { %v487_v39 = vld [vmem:[%s8481_s0 + $0xa0] sm:$0xff]  ;;  %3618 = vmatpush1.bf16.msra.mxu0 %v5430_v42 }
  0x21   : > { %v611_v40 = vld [vmem:[%s8481_s0 + $0x480] sm:$0xff]  ;;  %v5423_v44 = vcombine.high %v483_v38, %v487_v39  ;;  %3658 = vmatprep.subr.bf16.mxu1 %v5559_v37  ;;  %v5422_v50 = vcombine.low %v483_v38, %v487_v39 }
  0x22   : > { %v615_v41 = vld [vmem:[%s8481_s0 + $0x4a0] sm:$0xff]  ;;  %3659 = vmatpush1.bf16.msra.mxu1 %v5558_v43 }
  0x23   : > { %v5551_v45 = vcombine.high %v611_v40, %v615_v41  ;;  %v475_v46 = vld [vmem:[%s8481_s0 + $0x40] sm:$0xff]  ;;  %3619 = vmatprep.subr.bf16.mxu0 %v5423_v44  ;;  %v5550_v53 = vcombine.low %v611_v40, %v615_v41 }
  0x24   : > { %v479_v47 = vld [vmem:[%s8481_s0 + $0x60] sm:$0xff]  ;;  %3620 = vmatpush1.bf16.msra.mxu0 %v5422_v50 }
  0x25   : > { %v603_v48 = vld [vmem:[%s8481_s0 + $0x440] sm:$0xff]  ;;  %v5415_v54 = vcombine.high %v475_v46, %v479_v47  ;;  %3660 = vmatprep.subr.bf16.mxu1 %v5551_v45  ;;  %v5414_v0 = vcombine.low %v475_v46, %v479_v47 }
  0x26   : > { %v607_v49 = vld [vmem:[%s8481_s0 + $0x460] sm:$0xff]  ;;  %3661 = vmatpush1.bf16.msra.mxu1 %v5550_v53 }
  0x27   : > { %v467_v51 = vld [vmem:[%s8481_s0] sm:$0xff]  ;;  %v5543_v58 = vcombine.high %v603_v48, %v607_v49  ;;  %v5542_v1 = vcombine.low %v603_v48, %v607_v49  ;;  %3621 = vmatprep.subr.bf16.mxu0 %v5415_v54 }
  0x28   : > { %v471_v52 = vld [vmem:[%s8481_s0 + $0x20] sm:$0xff]  ;;  %3622 = vmatpush1.bf16.msra.mxu0 %v5414_v0 }
  0x29   : > { %v595_v55 = vld [vmem:[%s8481_s0 + $0x400] sm:$0xff]  ;;  %v5407_v5 = vcombine.high %v467_v51, %v471_v52  ;;  %3662 = vmatprep.subr.bf16.mxu1 %v5543_v58  ;;  %v5406_v18 = vcombine.low %v467_v51, %v471_v52 }
  0x2a   : > { %v599_v56 = vld [vmem:[%s8481_s0 + $0x420] sm:$0xff]  ;;  %3663 = vmatpush1.bf16.msra.mxu1 %v5542_v1 }
  0x2b   : > { %v329_v57 = vld [vmem:[%s6423_s26] ss:$8 sm:%s6425_s29]  ;;  %v5384_v60 = vld [vmem:[%s6423_s26 + $0x1] ss:$8 sm:%s6425_s29]  ;;  %v5535_v10 = vcombine.high %v595_v55, %v599_v56  ;;  %3623 = vmatprep.subr.bf16.mxu0 %v5407_v5  ;;  %v5534_v20 = vcombine.low %v595_v55, %v599_v56 }
  0x2c   : > { %v331_v59 = vld [vmem:[%s6423_s26] ss:$8 sm:%s6433_s12]  ;;  %v5385_v62 = vld [vmem:[%s6423_s26 + $0x1] ss:$8 sm:%s6433_s12]  ;;  %3624 = vmatpush1.bf16.msra.mxu0 %v5406_v18 }
  0x2d   : > { %v332_v61 = vor.u32 %v331_v59, %v329_v57  ;;  %v5386_v63 = vld [vmem:[%s6423_s26 + $0x2] ss:$8 sm:%s6425_s29]  ;;  %v349_v2 = vor.u32 %v5385_v62, %v5384_v60  ;;  %v5388_v4 = vld [vmem:[%s6423_s26 + $0x3] ss:$8 sm:%s6425_s29]  ;;  %3664 = vmatprep.subr.bf16.mxu1 %v5535_v10 }
  0x2e   : > { %v5387_v3 = vld [vmem:[%s6423_s26 + $0x2] ss:$8 sm:%s6433_s12]  ;;  %v5389_v9 = vld [vmem:[%s6423_s26 + $0x3] ss:$8 sm:%s6433_s12]  ;;  %3665 = vmatpush1.bf16.msra.mxu1 %v5534_v20 }
  0x2f   : > { %v333_v7 = vpack.c.bf16 %v6280_v6, %v332_v61  ;;  %v367_v8 = vor.u32 %v5387_v3, %v5386_v63  ;;  %v587_v11 = vld [vmem:[%s8481_s0 + $0x3c0] sm:$0xff]  ;;  %v351_v13 = vpack.c.bf16 %v6280_v6, %v349_v2  ;;  %v385_v14 = vor.u32 %v5389_v9, %v5388_v4 }
  0x30   : > { %v591_v12 = vld [vmem:[%s8481_s0 + $0x3e0] sm:$0xff] }
  0x31   : > { %v715_v15 = vld [vmem:[%s8481_s0 + $0x7c0] sm:$0xff]  ;;  %336 = vst [vmem:[#allocation2] sm:$0xf] %v333_v7  ;;  %v369_v17 = vpack.c.bf16 %v6280_v6, %v367_v8  ;;  %354 = vst [vmem:[#allocation2 + $0x4] sm:$0xf] %v351_v13  ;;  %v387_v19 = vpack.c.bf16 %v6280_v6, %v385_v14  ;;  %v5527_v21 = vcombine.high %v587_v11, %v591_v12 }
  0x32   : > { %v719_v16 = vld [vmem:[%s8481_s0 + $0x7e0] sm:$0xff]  ;;  %v5526_v27 = vcombine.low %v587_v11, %v591_v12 }
  0x33   : > { %372 = vst [vmem:[#allocation2 + $0x8] sm:$0xf] %v369_v17  ;;  %v5655_v22 = vcombine.high %v715_v15, %v719_v16  ;;  %v579_v23 = vld [vmem:[%s8481_s0 + $0x380] sm:$0xff]  ;;  %390 = vst [vmem:[#allocation2 + $0xc] sm:$0xf] %v387_v19  ;;  %3625 = vmatprep.subr.bf16.mxu0 %v5527_v21  ;;  %v5654_v28 = vcombine.low %v715_v15, %v719_v16 }
  0x34   : > { %v583_v24 = vld [vmem:[%s8481_s0 + $0x3a0] sm:$0xff]  ;;  %3626 = vmatpush2.bf16.msra.mxu0 %v5526_v27 }
  0x35   : > { %v707_v25 = vld [vmem:[%s8481_s0 + $0x780] sm:$0xff]  ;;  %v5519_v29 = vcombine.high %v579_v23, %v583_v24  ;;  %3666 = vmatprep.subr.bf16.mxu1 %v5655_v22  ;;  %v5518_v36 = vcombine.low %v579_v23, %v583_v24 }
  0x36   : > { %v711_v26 = vld [vmem:[%s8481_s0 + $0x7a0] sm:$0xff]  ;;  %3667 = vmatpush2.bf16.msra.mxu1 %v5654_v28 }
  0x37   : > { %v5647_v30 = vcombine.high %v707_v25, %v711_v26  ;;  %v571_v31 = vld [vmem:[%s8481_s0 + $0x340] sm:$0xff]  ;;  %3627 = vmatprep.subr.bf16.mxu0 %v5519_v29  ;;  %v5646_v38 = vcombine.low %v707_v25, %v711_v26 }
  0x38   : > { %v575_v32 = vld [vmem:[%s8481_s0 + $0x360] sm:$0xff]  ;;  %3628 = vmatpush2.bf16.msra.mxu0 %v5518_v36 }
  0x39   : > { %v699_v33 = vld [vmem:[%s8481_s0 + $0x740] sm:$0xff]  ;;  %v5511_v39 = vcombine.high %v571_v31, %v575_v32  ;;  %3668 = vmatprep.subr.bf16.mxu1 %v5647_v30  ;;  %v5510_v47 = vcombine.low %v571_v31, %v575_v32 }
  0x3a   : > { %v703_v34 = vld [vmem:[%s8481_s0 + $0x760] sm:$0xff]  ;;  %v6509_v40 = vld [vmem:[#allocation2 + $0x8] sm:$0xff]  ;;  %3669 = vmatpush2.bf16.msra.mxu1 %v5646_v38 }
  0x3b   : > { %v6503_v35 = vld [vmem:[#allocation2] sm:$0xff]  ;;  %v5639_v41 = vcombine.high %v699_v33, %v703_v34  ;;  %v6520_v44 = vcombine.high %v6509_v40, %v6509_v40  ;;  %3629 = vmatprep.subr.bf16.mxu0 %v5511_v39  ;;  %v5638_v48 = vcombine.low %v699_v33, %v703_v34 }
  0x3c   : > { %v6507_v37 = vcombine.high %v6503_v35, %v6503_v35  ;;  %v563_v42 = vld [vmem:[%s8481_s0 + $0x300] sm:$0xff]  ;;  %3630 = vmatpush2.bf16.msra.mxu0 %v5510_v47 }
  0x3d   : > { %v567_v43 = vld [vmem:[%s8481_s0 + $0x320] sm:$0xff]  ;;  %3682 = vmatprep.mubr.bf16.mxu1 %v6520_v44  ;;  %3670 = vmatprep.subr.bf16.mxu1 %v5639_v41 }
  0x3e   : > { %3641 = vmatprep.mubr.bf16.mxu0 %v6507_v37  ;;  %v691_v45 = vld [vmem:[%s8481_s0 + $0x700] sm:$0xff]  ;;  %v5503_v49 = vcombine.high %v563_v42, %v567_v43  ;;  %v5502_v55 = vcombine.low %v563_v42, %v567_v43  ;;  %3671 = vmatpush2.bf16.msra.mxu1 %v5638_v48 }
  0x3f   : > { %v695_v46 = vld [vmem:[%s8481_s0 + $0x720] sm:$0xff] }
  0x40   : > { %v5631_v50 = vcombine.high %v691_v45, %v695_v46  ;;  %v555_v51 = vld [vmem:[%s8481_s0 + $0x2c0] sm:$0xff]  ;;  %3631 = vmatprep.subr.bf16.mxu0 %v5503_v49  ;;  %v5630_v56 = vcombine.low %v691_v45, %v695_v46  ;;  %v6617_v49 = vcombine.low %v6503_v35, %v6503_v35 }
  0x41   : > { %v559_v52 = vld [vmem:[%s8481_s0 + $0x2e0] sm:$0xff]  ;;  %3632 = vmatpush2.bf16.msra.mxu0 %v5502_v55 }
  0x42   : > { %v683_v53 = vld [vmem:[%s8481_s0 + $0x6c0] sm:$0xff]  ;;  %v5495_v57 = vcombine.high %v555_v51, %v559_v52  ;;  %3672 = vmatprep.subr.bf16.mxu1 %v5631_v50  ;;  %v5494_v1 = vcombine.low %v555_v51, %v559_v52 }
  0x43   : > { %v687_v54 = vld [vmem:[%s8481_s0 + $0x6e0] sm:$0xff]  ;;  %3673 = vmatpush2.bf16.msra.mxu1 %v5630_v56 }
  0x44   : > { %v547_v58 = vld [vmem:[%s8481_s0 + $0x280] sm:$0xff]  ;;  %v5623_v59 = vcombine.high %v683_v53, %v687_v54  ;;  %3633 = vmatprep.subr.bf16.mxu0 %v5495_v57  ;;  %v5622_v8 = vcombine.low %v683_v53, %v687_v54  ;;  %v6629_v53 = vcombine.low %v6509_v40, %v6509_v40 }
  0x45   : > { %v551_v60 = vld [vmem:[%s8481_s0 + $0x2a0] sm:$0xff]  ;;  %3634 = vmatpush2.bf16.msra.mxu0 %v5494_v1 }
  0x46   : > { %v675_v61 = vld [vmem:[%s8481_s0 + $0x680] sm:$0xff]  ;;  %v5487_v9 = vcombine.high %v547_v58, %v551_v60  ;;  %3674 = vmatprep.subr.bf16.mxu1 %v5623_v59  ;;  %v5486_v22 = vcombine.low %v547_v58, %v551_v60 }
  0x47   : > { %v679_v62 = vld [vmem:[%s8481_s0 + $0x6a0] sm:$0xff]  ;;  %3675 = vmatpush2.bf16.msra.mxu1 %v5622_v8 }
  0x48   : > { %v5390_v63 = vld [vmem:[%s6423_s26 + $0x4] ss:$8 sm:%s6425_s29]  ;;  %v5392_v5 = vld [vmem:[%s6423_s26 + $0x5] ss:$8 sm:%s6425_s29]  ;;  %v5615_v13 = vcombine.high %v675_v61, %v679_v62  ;;  %3635 = vmatprep.subr.bf16.mxu0 %v5487_v9  ;;  %v5614_v24 = vcombine.low %v675_v61, %v679_v62 }
  0x49   : > { %v5391_v0 = vld [vmem:[%s6423_s26 + $0x4] ss:$8 sm:%s6433_s12]  ;;  %v5393_v7 = vld [vmem:[%s6423_s26 + $0x5] ss:$8 sm:%s6433_s12]  ;;  %3636 = vmatpush2.bf16.msra.mxu0 %v5486_v22 }
  0x4a   : > { %v539_v2 = vld [vmem:[%s8481_s0 + $0x240] sm:$0xff]  ;;  %v403_v4 = vor.u32 %v5391_v0, %v5390_v63  ;;  %v421_v10 = vor.u32 %v5393_v7, %v5392_v5  ;;  %3676 = vmatprep.subr.bf16.mxu1 %v5615_v13 }
  0x4b   : > { %v543_v3 = vld [vmem:[%s8481_s0 + $0x260] sm:$0xff]  ;;  %3677 = vmatpush2.bf16.msra.mxu1 %v5614_v24 }
  0x4c   : > { %v5394_v11 = vld [vmem:[%s6423_s26 + $0x6] ss:$8 sm:%s6425_s29]  ;;  %v405_v14 = vpack.c.bf16 %v6280_v6, %v403_v4  ;;  %v5396_v16 = vld [vmem:[%s6423_s26 + $0x7] ss:$8 sm:%s6425_s29]  ;;  %v423_v20 = vpack.c.bf16 %v6280_v6, %v421_v10  ;;  %v5479_v25 = vcombine.high %v539_v2, %v543_v3 }
  0x4d   : > { %v5395_v12 = vld [vmem:[%s6423_s26 + $0x6] ss:$8 sm:%s6433_s12]  ;;  %v5397_v17 = vld [vmem:[%s6423_s26 + $0x7] ss:$8 sm:%s6433_s12] }
  0x4e   : > { %v439_v15 = vor.u32 %v5395_v12, %v5394_v11  ;;  %v667_v18 = vld [vmem:[%s8481_s0 + $0x640] sm:$0xff]  ;;  %v457_v21 = vor.u32 %v5397_v17, %v5396_v16  ;;  %408 = vst [vmem:[#allocation2 + $0x10] sm:$0xf] %v405_v14  ;;  %426 = vst [vmem:[#allocation2 + $0x14] sm:$0xf] %v423_v20  ;;  %3637 = vmatprep.subr.bf16.mxu0 %v5479_v25 }
  0x4f   : > { %v671_v19 = vld [vmem:[%s8481_s0 + $0x660] sm:$0xff] }
  0x50   : > { %v441_v23 = vpack.c.bf16 %v6280_v6, %v439_v15  ;;  %v459_v26 = vpack.c.bf16 %v6280_v6, %v457_v21  ;;  %v5607_v27 = vcombine.high %v667_v18, %v671_v19  ;;  %v531_v28 = vld [vmem:[%s8481_s0 + $0x200] sm:$0xff]  ;;  %v5478_v6 = vcombine.low %v539_v2, %v543_v3 }
  0x51   : > { %v535_v29 = vld [vmem:[%s8481_s0 + $0x220] sm:$0xff]  ;;  %v5606_v32 = vcombine.low %v667_v18, %v671_v19 }
  0x52   : > { %444 = vst [vmem:[#allocation2 + $0x18] sm:$0xf] %v441_v23  ;;  %v659_v30 = vld [vmem:[%s8481_s0 + $0x600] sm:$0xff]  ;;  %462 = vst [vmem:[#allocation2 + $0x1c] sm:$0xf] %v459_v26  ;;  %v5471_v33 = vcombine.high %v531_v28, %v535_v29  ;;  %3678 = vmatprep.subr.bf16.mxu1 %v5607_v27  ;;  %3638 = vmatpush2.bf16.msra.mxu0 %v5478_v6  ;;  %v5470_v42 = vcombine.low %v531_v28, %v535_v29 }
  0x53   : > { %v663_v31 = vld [vmem:[%s8481_s0 + $0x620] sm:$0xff]  ;;  %3679 = vmatpush2.bf16.msra.mxu1 %v5606_v32 }
  0x54   : > { %v5599_v34 = vcombine.high %v659_v30, %v663_v31  ;;  %v779_v36 = vld [vmem:[%s8481_s0 + $0x9c0] sm:$0xff]  ;;  %3639 = vmatprep.subr.bf16.mxu0 %v5471_v33  ;;  %v5598_v43 = vcombine.low %v659_v30, %v663_v31 }
  0x55   : > { %v783_v38 = vld [vmem:[%s8481_s0 + $0x9e0] sm:$0xff]  ;;  %v6625_v52 = vld [vmem:[#allocation2 + $0x10] sm:$0xff] }
  0x56   : > { %v907_v39 = vld [vmem:[%s8481_s0 + $0xdc0] sm:$0xff]  ;;  %v5719_v45 = vcombine.high %v779_v36, %v783_v38  ;;  %3680 = vmatprep.subr.bf16.mxu1 %v5599_v34  ;;  %3640 = vmatpush2.bf16.msra.mxu0 %v5470_v42  ;;  %v5718_v54 = vcombine.low %v779_v36, %v783_v38  ;;  %v6641_v40 = vcombine.high %v6625_v52, %v6625_v52 }
  0x57   : > { %v911_v41 = vld [vmem:[%s8481_s0 + $0xde0] sm:$0xff]  ;;  %3681 = vmatpush2.bf16.msra.mxu1 %v5598_v43 }
  0x58   : > { %v5847_v46 = vcombine.high %v907_v39, %v911_v41  ;;  %v771_v47 = vld [vmem:[%s8481_s0 + $0x980] sm:$0xff]  ;;  %3691 = vmatprep.subr.bf16.mxu0 %v5719_v45  ;;  %v5846_v35 = vcombine.low %v907_v39, %v911_v41 }
  0x59   : > { %v775_v48 = vld [vmem:[%s8481_s0 + $0x9a0] sm:$0xff]  ;;  %v6631_v55 = vld [vmem:[#allocation2 + $0x18] sm:$0xff]  ;;  %3642 = vmatmul.mubr.bf16.vlgmr.msra.gmra.mxu0 %v6617_v49 }
  0x5a   : > { %v899_v50 = vld [vmem:[%s8481_s0 + $0xd80] sm:$0xff]  ;;  %v5711_v56 = vcombine.high %v771_v47, %v775_v48  ;;  %3732 = vmatprep.subr.bf16.mxu1 %v5847_v46  ;;  %v6652_v62 = vcombine.high %v6631_v55, %v6631_v55  ;;  %3683 = vmatmul.mubr.bf16.vlgmr.msra.gmra.mxu1 %v6629_v53  ;;  %v5710_v63 = vcombine.low %v771_v47, %v775_v48 }
  0x5b   : > { %v903_v51 = vld [vmem:[%s8481_s0 + $0xda0] sm:$0xff]  ;;  %3692 = vmatpush1.bf16.msra.mxu0 %v5718_v54  ;;  %3733 = vmatpush1.bf16.msra.mxu1 %v5846_v35 }
  0x5c   : > { %v5839_v57 = vcombine.high %v899_v50, %v903_v51  ;;  %v763_v58 = vld [vmem:[%s8481_s0 + $0x940] sm:$0xff]  ;;  %3693 = vmatprep.subr.bf16.mxu0 %v5711_v56  ;;  %v5838_v0 = vcombine.low %v899_v50, %v903_v51  ;;  %3723 = vmatprep.mubr.bf16.mxu0 %v6641_v40 }
  0x5d   : > { %v767_v59 = vld [vmem:[%s8481_s0 + $0x960] sm:$0xff]  ;;  %3764 = vmatprep.mubr.bf16.mxu1 %v6652_v62 }
  0x5e   : > { %v891_v60 = vld [vmem:[%s8481_s0 + $0xd40] sm:$0xff]  ;;  %v5703_v1 = vcombine.high %v763_v58, %v767_v59  ;;  %3734 = vmatprep.subr.bf16.mxu1 %v5839_v57  ;;  %v5702_v8 = vcombine.low %v763_v58, %v767_v59 }
  0x5f   : > { %v895_v61 = vld [vmem:[%s8481_s0 + $0xd60] sm:$0xff]  ;;  %3694 = vmatpush1.bf16.msra.mxu0 %v5710_v63  ;;  %3735 = vmatpush1.bf16.msra.mxu1 %v5838_v0 }
  0x60   : > { %v5831_v2 = vcombine.high %v891_v60, %v895_v61  ;;  %v755_v3 = vld [vmem:[%s8481_s0 + $0x900] sm:$0xff]  ;;  %3695 = vmatprep.subr.bf16.mxu0 %v5703_v1  ;;  %v5830_v9 = vcombine.low %v891_v60, %v895_v61 }
  0x61   : > { %v759_v4 = vld [vmem:[%s8481_s0 + $0x920] sm:$0xff] }
  0x62   : > { %v883_v5 = vld [vmem:[%s8481_s0 + $0xd00] sm:$0xff]  ;;  %v5695_v10 = vcombine.high %v755_v3, %v759_v4  ;;  %3736 = vmatprep.subr.bf16.mxu1 %v5831_v2  ;;  %v5694_v16 = vcombine.low %v755_v3, %v759_v4 }
  0x63   : > { %v887_v7 = vld [vmem:[%s8481_s0 + $0xd20] sm:$0xff]  ;;  %3696 = vmatpush1.bf16.msra.mxu0 %v5702_v8  ;;  %3737 = vmatpush1.bf16.msra.mxu1 %v5830_v9 }
  0x64   : > { %v5823_v11 = vcombine.high %v883_v5, %v887_v7  ;;  %v747_v12 = vld [vmem:[%s8481_s0 + $0x8c0] sm:$0xff]  ;;  %3697 = vmatprep.subr.bf16.mxu0 %v5695_v10  ;;  %v5822_v17 = vcombine.low %v883_v5, %v887_v7 }
  0x65   : > { %v751_v13 = vld [vmem:[%s8481_s0 + $0x8e0] sm:$0xff] }
  0x66   : > { %v875_v14 = vld [vmem:[%s8481_s0 + $0xcc0] sm:$0xff]  ;;  %v5687_v18 = vcombine.high %v747_v12, %v751_v13  ;;  %3738 = vmatprep.subr.bf16.mxu1 %v5823_v11  ;;  %v5686_v24 = vcombine.low %v747_v12, %v751_v13 }
  0x67   : > { %v879_v15 = vld [vmem:[%s8481_s0 + $0xce0] sm:$0xff]  ;;  %3698 = vmatpush1.bf16.msra.mxu0 %v5694_v16  ;;  %3739 = vmatpush1.bf16.msra.mxu1 %v5822_v17 }
  0x68   : > { %v739_v19 = vld [vmem:[%s8481_s0 + $0x880] sm:$0xff]  ;;  %v5815_v22 = vcombine.high %v875_v14, %v879_v15  ;;  %3699 = vmatprep.subr.bf16.mxu0 %v5687_v18  ;;  %v5814_v25 = vcombine.low %v875_v14, %v879_v15 }
  0x69   : > { %v743_v20 = vld [vmem:[%s8481_s0 + $0x8a0] sm:$0xff] }
  0x6a   : > { %v867_v21 = vld [vmem:[%s8481_s0 + $0xc80] sm:$0xff]  ;;  %v5679_v26 = vcombine.high %v739_v19, %v743_v20  ;;  %3740 = vmatprep.subr.bf16.mxu1 %v5815_v22  ;;  %v5678_v6 = vcombine.low %v739_v19, %v743_v20 }
  0x6b   : > { %v871_v23 = vld [vmem:[%s8481_s0 + $0xca0] sm:$0xff]  ;;  %3700 = vmatpush1.bf16.msra.mxu0 %v5686_v24  ;;  %3741 = vmatpush1.bf16.msra.mxu1 %v5814_v25 }
  0x6c   : > { %v731_v27 = vld [vmem:[%s8481_s0 + $0x840] sm:$0xff]  ;;  %v5807_v30 = vcombine.high %v867_v21, %v871_v23  ;;  %3701 = vmatprep.subr.bf16.mxu0 %v5679_v26  ;;  %v5806_v32 = vcombine.low %v867_v21, %v871_v23 }
  0x6d   : > { %v735_v28 = vld [vmem:[%s8481_s0 + $0x860] sm:$0xff] }
  0x6e   : > { %v859_v29 = vld [vmem:[%s8481_s0 + $0xc40] sm:$0xff]  ;;  %v5671_v33 = vcombine.high %v731_v27, %v735_v28  ;;  %3742 = vmatprep.subr.bf16.mxu1 %v5807_v30  ;;  %v5670_v42 = vcombine.low %v731_v27, %v735_v28 }
  0x6f   : > { %v863_v31 = vld [vmem:[%s8481_s0 + $0xc60] sm:$0xff]  ;;  %3702 = vmatpush1.bf16.msra.mxu0 %v5678_v6  ;;  %3743 = vmatpush1.bf16.msra.mxu1 %v5806_v32 }
  0x70   : > { %v723_v34 = vld [vmem:[%s8481_s0 + $0x800] sm:$0xff]  ;;  %v5799_v39 = vcombine.high %v859_v29, %v863_v31  ;;  %3703 = vmatprep.subr.bf16.mxu0 %v5671_v33  ;;  %v5798_v43 = vcombine.low %v859_v29, %v863_v31 }
  0x71   : > { %v727_v36 = vld [vmem:[%s8481_s0 + $0x820] sm:$0xff] }
  0x72   : > { %v851_v38 = vld [vmem:[%s8481_s0 + $0xc00] sm:$0xff]  ;;  %v5663_v45 = vcombine.high %v723_v34, %v727_v36  ;;  %3744 = vmatprep.subr.bf16.mxu1 %v5799_v39  ;;  %v5662_v54 = vcombine.low %v723_v34, %v727_v36 }
  0x73   : > { %v855_v41 = vld [vmem:[%s8481_s0 + $0xc20] sm:$0xff]  ;;  %3704 = vmatpush1.bf16.msra.mxu0 %v5670_v42  ;;  %3745 = vmatpush1.bf16.msra.mxu1 %v5798_v43 }
  0x74   : > { %v843_v46 = vld [vmem:[%s8481_s0 + $0xbc0] sm:$0xff]  ;;  %v5791_v50 = vcombine.high %v851_v38, %v855_v41  ;;  %3705 = vmatprep.subr.bf16.mxu0 %v5663_v45  ;;  %v5790_v35 = vcombine.low %v851_v38, %v855_v41 }
  0x75   : > { %v847_v47 = vld [vmem:[%s8481_s0 + $0xbe0] sm:$0xff] }
  0x76   : > { %v971_v48 = vld [vmem:[%s8481_s0 + $0xfc0] sm:$0xff]  ;;  %v5783_v56 = vcombine.high %v843_v46, %v847_v47  ;;  %3746 = vmatprep.subr.bf16.mxu1 %v5791_v50  ;;  %v5782_v63 = vcombine.low %v843_v46, %v847_v47 }
  0x77   : > { %v975_v51 = vld [vmem:[%s8481_s0 + $0xfe0] sm:$0xff]  ;;  %3706 = vmatpush1.bf16.msra.mxu0 %v5662_v54  ;;  %3747 = vmatpush1.bf16.msra.mxu1 %v5790_v35 }
  0x78   : > { %v835_v57 = vld [vmem:[%s8481_s0 + $0xb80] sm:$0xff]  ;;  %v5911_v60 = vcombine.high %v971_v48, %v975_v51  ;;  %3707 = vmatprep.subr.bf16.mxu0 %v5783_v56  ;;  %v5910_v0 = vcombine.low %v971_v48, %v975_v51 }
  0x79   : > { %v839_v58 = vld [vmem:[%s8481_s0 + $0xba0] sm:$0xff] }
  0x7a   : > { %v963_v59 = vld [vmem:[%s8481_s0 + $0xf80] sm:$0xff]  ;;  %v5775_v1 = vcombine.high %v835_v57, %v839_v58  ;;  %3748 = vmatprep.subr.bf16.mxu1 %v5911_v60  ;;  %v5774_v8 = vcombine.low %v835_v57, %v839_v58  ;;  %v524_v57 = vld [vmem:[%s8481_s0 + $0x1c8] sm:$0xff] }
  0x7b   : > { %v967_v61 = vld [vmem:[%s8481_s0 + $0xfa0] sm:$0xff]  ;;  %3708 = vmatpush2.bf16.msra.mxu0 %v5782_v63  ;;  %3749 = vmatpush2.bf16.msra.mxu1 %v5910_v0  ;;  %v528_v58 = vld [vmem:[%s8481_s0 + $0x1e8] sm:$0xff] }
  0x7c   : > { %v827_v2 = vld [vmem:[%s8481_s0 + $0xb40] sm:$0xff]  ;;  %v5903_v5 = vcombine.high %v963_v59, %v967_v61  ;;  %3709 = vmatprep.subr.bf16.mxu0 %v5775_v1  ;;  %v5902_v9 = vcombine.low %v963_v59, %v967_v61  ;;  %v652_v59 = vld [vmem:[%s8481_s0 + $0x5c8] sm:$0xff]  ;;  %v5465_v1 = vcombine.high %v524_v57, %v528_v58 }
  0x7d   : > { %v831_v3 = vld [vmem:[%s8481_s0 + $0xb60] sm:$0xff]  ;;  %v656_v61 = vld [vmem:[%s8481_s0 + $0x5e8] sm:$0xff] }
  0x7e   : > { %v955_v4 = vld [vmem:[%s8481_s0 + $0xf40] sm:$0xff]  ;;  %v5767_v10 = vcombine.high %v827_v2, %v831_v3  ;;  %3750 = vmatprep.subr.bf16.mxu1 %v5903_v5  ;;  %v5766_v16 = vcombine.low %v827_v2, %v831_v3  ;;  %v516_v2 = vld [vmem:[%s8481_s0 + $0x188] sm:$0xff]  ;;  %v5593_v5 = vcombine.high %v652_v59, %v656_v61 }
  0x7f   : > { %v959_v7 = vld [vmem:[%s8481_s0 + $0xf60] sm:$0xff]  ;;  %3710 = vmatpush2.bf16.msra.mxu0 %v5774_v8  ;;  %3751 = vmatpush2.bf16.msra.mxu1 %v5902_v9  ;;  %v520_v3 = vld [vmem:[%s8481_s0 + $0x1a8] sm:$0xff]  ;;  %v6839_v8 = vcombine.low %v6625_v52, %v6625_v52  ;;  %v6843_v9 = vcombine.low %v6631_v55, %v6631_v55 }
  0x80   : > { %v819_v11 = vld [vmem:[%s8481_s0 + $0xb00] sm:$0xff]  ;;  %v5895_v14 = vcombine.high %v955_v4, %v959_v7  ;;  %3711 = vmatprep.subr.bf16.mxu0 %v5767_v10  ;;  %v5894_v17 = vcombine.low %v955_v4, %v959_v7  ;;  %v644_v4 = vld [vmem:[%s8481_s0 + $0x588] sm:$0xff]  ;;  %v5464_v10 = vcombine.low %v524_v57, %v528_v58 }
  0x81   : > { %v823_v12 = vld [vmem:[%s8481_s0 + $0xb20] sm:$0xff]  ;;  %v648_v7 = vld [vmem:[%s8481_s0 + $0x5a8] sm:$0xff] }
  0x82   : > { %v947_v13 = vld [vmem:[%s8481_s0 + $0xf00] sm:$0xff]  ;;  %v5759_v18 = vcombine.high %v819_v11, %v823_v12  ;;  %3752 = vmatprep.subr.bf16.mxu1 %v5895_v14  ;;  %v5758_v24 = vcombine.low %v819_v11, %v823_v12  ;;  %v5592_v11 = vcombine.low %v652_v59, %v656_v61  ;;  %v5457_v12 = vcombine.high %v516_v2, %v520_v3  ;;  %v512_v14 = vld [vmem:[%s8481_s0 + $0x168] sm:$0xff] }
  0x83   : > { %v951_v15 = vld [vmem:[%s8481_s0 + $0xf20] sm:$0xff]  ;;  %3712 = vmatpush2.bf16.msra.mxu0 %v5766_v16  ;;  %3753 = vmatpush2.bf16.msra.mxu1 %v5894_v17  ;;  %v5585_v52 = vcombine.high %v644_v4, %v648_v7  ;;  %v636_v55 = vld [vmem:[%s8481_s0 + $0x548] sm:$0xff]  ;;  %v5456_v16 = vcombine.low %v516_v2, %v520_v3  ;;  %v5584_v17 = vcombine.low %v644_v4, %v648_v7 }
  0x84   : > { %v811_v19 = vld [vmem:[%s8481_s0 + $0xac0] sm:$0xff]  ;;  %v5887_v22 = vcombine.high %v947_v13, %v951_v15  ;;  %3713 = vmatprep.subr.bf16.mxu0 %v5759_v18  ;;  %v5886_v25 = vcombine.low %v947_v13, %v951_v15  ;;  %v508_v13 = vld [vmem:[%s8481_s0 + $0x148] sm:$0xff] }
  0x85   : > { %v815_v20 = vld [vmem:[%s8481_s0 + $0xae0] sm:$0xff]  ;;  %v640_v15 = vld [vmem:[%s8481_s0 + $0x568] sm:$0xff]  ;;  %v5449_v18 = vcombine.high %v508_v13, %v512_v14 }
  0x86   : > { %v939_v21 = vld [vmem:[%s8481_s0 + $0xec0] sm:$0xff]  ;;  %v5751_v26 = vcombine.high %v811_v19, %v815_v20  ;;  %3754 = vmatprep.subr.bf16.mxu1 %v5887_v22  ;;  %v5750_v6 = vcombine.low %v811_v19, %v815_v20  ;;  %v500_v19 = vld [vmem:[%s8481_s0 + $0x108] sm:$0xff]  ;;  %v5577_v22 = vcombine.high %v636_v55, %v640_v15 }
  0x87   : > { %v943_v23 = vld [vmem:[%s8481_s0 + $0xee0] sm:$0xff]  ;;  %3714 = vmatpush2.bf16.msra.mxu0 %v5758_v24  ;;  %3755 = vmatpush2.bf16.msra.mxu1 %v5886_v25  ;;  %v504_v20 = vld [vmem:[%s8481_s0 + $0x128] sm:$0xff]  ;;  %v5448_v24 = vcombine.low %v508_v13, %v512_v14  ;;  %v5576_v25 = vcombine.low %v636_v55, %v640_v15 }
  0x88   : > { %v803_v27 = vld [vmem:[%s8481_s0 + $0xa80] sm:$0xff]  ;;  %v5879_v30 = vcombine.high %v939_v21, %v943_v23  ;;  %3715 = vmatprep.subr.bf16.mxu0 %v5751_v26  ;;  %v5878_v32 = vcombine.low %v939_v21, %v943_v23  ;;  %v628_v21 = vld [vmem:[%s8481_s0 + $0x508] sm:$0xff]  ;;  %v5441_v26 = vcombine.high %v500_v19, %v504_v20 }
  0x89   : > { %v807_v28 = vld [vmem:[%s8481_s0 + $0xaa0] sm:$0xff]  ;;  %v632_v23 = vld [vmem:[%s8481_s0 + $0x528] sm:$0xff] }
  0x8a   : > { %v931_v29 = vld [vmem:[%s8481_s0 + $0xe80] sm:$0xff]  ;;  %v5743_v33 = vcombine.high %v803_v27, %v807_v28  ;;  %3756 = vmatprep.subr.bf16.mxu1 %v5879_v30  ;;  %v5742_v42 = vcombine.low %v803_v27, %v807_v28  ;;  %v492_v27 = vld [vmem:[%s8481_s0 + $0xc8] sm:$0xff]  ;;  %v5569_v30 = vcombine.high %v628_v21, %v632_v23 }
  0x8b   : > { %v935_v31 = vld [vmem:[%s8481_s0 + $0xea0] sm:$0xff]  ;;  %3716 = vmatpush2.bf16.msra.mxu0 %v5750_v6  ;;  %3757 = vmatpush2.bf16.msra.mxu1 %v5878_v32  ;;  %v496_v28 = vld [vmem:[%s8481_s0 + $0xe8] sm:$0xff]  ;;  %v5440_v6 = vcombine.low %v500_v19, %v504_v20  ;;  %v5568_v32 = vcombine.low %v628_v21, %v632_v23 }
  0x8c   : > { %v795_v34 = vld [vmem:[%s8481_s0 + $0xa40] sm:$0xff]  ;;  %v5871_v39 = vcombine.high %v931_v29, %v935_v31  ;;  %3717 = vmatprep.subr.bf16.mxu0 %v5743_v33  ;;  %v5870_v43 = vcombine.low %v931_v29, %v935_v31  ;;  %v620_v29 = vld [vmem:[%s8481_s0 + $0x4c8] sm:$0xff]  ;;  %v5433_v33 = vcombine.high %v492_v27, %v496_v28 }
  0x8d   : > { %v799_v36 = vld [vmem:[%s8481_s0 + $0xa60] sm:$0xff]  ;;  %v624_v31 = vld [vmem:[%s8481_s0 + $0x4e8] sm:$0xff] }
  0x8e   : > { %v923_v38 = vld [vmem:[%s8481_s0 + $0xe40] sm:$0xff]  ;;  %v5735_v45 = vcombine.high %v795_v34, %v799_v36  ;;  %3758 = vmatprep.subr.bf16.mxu1 %v5871_v39  ;;  %v5734_v54 = vcombine.low %v795_v34, %v799_v36  ;;  %v5561_v34 = vcombine.high %v620_v29, %v624_v31  ;;  %v484_v36 = vld [vmem:[%s8481_s0 + $0x88] sm:$0xff] }
  0x8f   : > { %v927_v41 = vld [vmem:[%s8481_s0 + $0xe60] sm:$0xff]  ;;  %3718 = vmatpush2.bf16.msra.mxu0 %v5742_v42  ;;  %3759 = vmatpush2.bf16.msra.mxu1 %v5870_v43  ;;  %v612_v39 = vld [vmem:[%s8481_s0 + $0x488] sm:$0xff]  ;;  %v5432_v42 = vcombine.low %v492_v27, %v496_v28  ;;  %v5560_v43 = vcombine.low %v620_v29, %v624_v31 }
  0x90   : > { %v787_v46 = vld [vmem:[%s8481_s0 + $0xa00] sm:$0xff]  ;;  %v5863_v50 = vcombine.high %v923_v38, %v927_v41  ;;  %3719 = vmatprep.subr.bf16.mxu0 %v5735_v45  ;;  %v5862_v35 = vcombine.low %v923_v38, %v927_v41  ;;  %v488_v38 = vld [vmem:[%s8481_s0 + $0xa8] sm:$0xff] }
  0x91   : > { %v791_v47 = vld [vmem:[%s8481_s0 + $0xa20] sm:$0xff]  ;;  %v616_v41 = vld [vmem:[%s8481_s0 + $0x4a8] sm:$0xff]  ;;  %v5425_v45 = vcombine.high %v484_v36, %v488_v38 }
  0x92   : > { %v915_v48 = vld [vmem:[%s8481_s0 + $0xe00] sm:$0xff]  ;;  %v5727_v56 = vcombine.high %v787_v46, %v791_v47  ;;  %3760 = vmatprep.subr.bf16.mxu1 %v5863_v50  ;;  %v5726_v63 = vcombine.low %v787_v46, %v791_v47  ;;  %v5553_v46 = vcombine.high %v612_v39, %v616_v41  ;;  %v476_v47 = vld [vmem:[%s8481_s0 + $0x48] sm:$0xff] }
  0x93   : > { %v919_v51 = vld [vmem:[%s8481_s0 + $0xe20] sm:$0xff]  ;;  %3720 = vmatpush2.bf16.msra.mxu0 %v5734_v54  ;;  %3761 = vmatpush2.bf16.msra.mxu1 %v5862_v35  ;;  %v604_v50 = vld [vmem:[%s8481_s0 + $0x448] sm:$0xff]  ;;  %v5424_v54 = vcombine.low %v484_v36, %v488_v38  ;;  %v5552_v35 = vcombine.low %v612_v39, %v616_v41 }
  0x94   : > { %v5855_v60 = vcombine.high %v915_v48, %v919_v51  ;;  %3721 = vmatprep.subr.bf16.mxu0 %v5727_v56  ;;  %v5854_v0 = vcombine.low %v915_v48, %v919_v51  ;;  %v480_v48 = vld [vmem:[%s8481_s0 + $0x68] sm:$0xff] }
  0x95   : > { %v608_v51 = vld [vmem:[%s8481_s0 + $0x468] sm:$0xff]  ;;  %v5417_v56 = vcombine.high %v476_v47, %v480_v48 }
  0x96   : > { %3762 = vmatprep.subr.bf16.mxu1 %v5855_v60  ;;  %v5545_v57 = vcombine.high %v604_v50, %v608_v51  ;;  %v468_v58 = vld [vmem:[%s8481_s0 + $0x8] sm:$0xff] }
  0x97   : > { %3722 = vmatpush2.bf16.msra.mxu0 %v5726_v63  ;;  %3763 = vmatpush2.bf16.msra.mxu1 %v5854_v0  ;;  %v472_v59 = vld [vmem:[%s8481_s0 + $0x28] sm:$0xff]  ;;  %v5416_v63 = vcombine.low %v476_v47, %v480_v48  ;;  %v5544_v0 = vcombine.low %v604_v50, %v608_v51 }
  0x98   : > { %3773 = vmatprep.subr.bf16.mxu0 %v5465_v1  ;;  %3814 = vmatprep.subr.bf16.mxu1 %v5593_v5  ;;  %v596_v60 = vld [vmem:[%s8481_s0 + $0x408] sm:$0xff]  ;;  %v5409_v1 = vcombine.high %v468_v58, %v472_v59 }
  0x99   : > { %v600_v61 = vld [vmem:[%s8481_s0 + $0x428] sm:$0xff] }
  0x9a   : > { %3724 = vmatmul.mubr.bf16.vlgmr.msra.gmra.mxu0 %v6839_v8  ;;  %3765 = vmatmul.mubr.bf16.vlgmr.msra.gmra.mxu1 %v6843_v9  ;;  %v5537_v2 = vcombine.high %v596_v60, %v600_v61  ;;  %v588_v3 = vld [vmem:[%s8481_s0 + $0x3c8] sm:$0xff] }
  0x9b   : > { %3774 = vmatpush1.bf16.msra.mxu0 %v5464_v10  ;;  %3815 = vmatpush1.bf16.msra.mxu1 %v5592_v11  ;;  %v592_v4 = vld [vmem:[%s8481_s0 + $0x3e8] sm:$0xff]  ;;  %v5408_v10 = vcombine.low %v468_v58, %v472_v59  ;;  %v5536_v11 = vcombine.low %v596_v60, %v600_v61 }
  0x9c   : > { %3775 = vmatprep.subr.bf16.mxu0 %v5457_v12  ;;  %3816 = vmatprep.subr.bf16.mxu1 %v5585_v52  ;;  %v716_v5 = vld [vmem:[%s8481_s0 + $0x7c8] sm:$0xff]  ;;  %v5529_v12 = vcombine.high %v588_v3, %v592_v4 }
  0x9d   : > { %3805 = vmatprep.mubr.bf16.mxu0 %v6507_v37  ;;  %3846 = vmatprep.mubr.bf16.mxu1 %v6520_v44  ;;  %v720_v7 = vld [vmem:[%s8481_s0 + $0x7e8] sm:$0xff] }
  0x9e   : > { %v5657_v13 = vcombine.high %v716_v5, %v720_v7  ;;  %v580_v14 = vld [vmem:[%s8481_s0 + $0x388] sm:$0xff] }
  0x9f   : > { %3776 = vmatpush1.bf16.msra.mxu0 %v5456_v16  ;;  %3817 = vmatpush1.bf16.msra.mxu1 %v5584_v17  ;;  %v584_v52 = vld [vmem:[%s8481_s0 + $0x3a8] sm:$0xff]  ;;  %v5528_v16 = vcombine.low %v588_v3, %v592_v4  ;;  %v5656_v17 = vcombine.low %v716_v5, %v720_v7 }
  0xa0   : > { %3777 = vmatprep.subr.bf16.mxu0 %v5449_v18  ;;  %3818 = vmatprep.subr.bf16.mxu1 %v5577_v22  ;;  %v708_v55 = vld [vmem:[%s8481_s0 + $0x788] sm:$0xff]  ;;  %v5521_v18 = vcombine.high %v580_v14, %v584_v52 }
  0xa1   : > { %v712_v15 = vld [vmem:[%s8481_s0 + $0x7a8] sm:$0xff] }
  0xa2   : > { %v5649_v19 = vcombine.high %v708_v55, %v712_v15  ;;  %v572_v20 = vld [vmem:[%s8481_s0 + $0x348] sm:$0xff] }
  0xa3   : > { %3778 = vmatpush1.bf16.msra.mxu0 %v5448_v24  ;;  %3819 = vmatpush1.bf16.msra.mxu1 %v5576_v25  ;;  %v576_v21 = vld [vmem:[%s8481_s0 + $0x368] sm:$0xff]  ;;  %v5520_v24 = vcombine.low %v580_v14, %v584_v52  ;;  %v5648_v25 = vcombine.low %v708_v55, %v712_v15 }
  0xa4   : > { %3779 = vmatprep.subr.bf16.mxu0 %v5441_v26  ;;  %3820 = vmatprep.subr.bf16.mxu1 %v5569_v30  ;;  %v700_v22 = vld [vmem:[%s8481_s0 + $0x748] sm:$0xff]  ;;  %v5513_v26 = vcombine.high %v572_v20, %v576_v21 }
  0xa5   : > { %v704_v23 = vld [vmem:[%s8481_s0 + $0x768] sm:$0xff] }
  0xa6   : > { %v5641_v27 = vcombine.high %v700_v22, %v704_v23  ;;  %v564_v28 = vld [vmem:[%s8481_s0 + $0x308] sm:$0xff] }
  0xa7   : > { %3780 = vmatpush1.bf16.msra.mxu0 %v5440_v6  ;;  %3821 = vmatpush1.bf16.msra.mxu1 %v5568_v32  ;;  %v568_v29 = vld [vmem:[%s8481_s0 + $0x328] sm:$0xff]  ;;  %v5512_v6 = vcombine.low %v572_v20, %v576_v21  ;;  %v5640_v32 = vcombine.low %v700_v22, %v704_v23 }
  0xa8   : > { %3781 = vmatprep.subr.bf16.mxu0 %v5433_v33  ;;  %3822 = vmatprep.subr.bf16.mxu1 %v5561_v34  ;;  %v692_v30 = vld [vmem:[%s8481_s0 + $0x708] sm:$0xff]  ;;  %v5505_v33 = vcombine.high %v564_v28, %v568_v29 }
  0xa9   : > { %v696_v31 = vld [vmem:[%s8481_s0 + $0x728] sm:$0xff] }
  0xaa   : > { %v5633_v34 = vcombine.high %v692_v30, %v696_v31  ;;  %v556_v36 = vld [vmem:[%s8481_s0 + $0x2c8] sm:$0xff] }
  0xab   : > { %3782 = vmatpush1.bf16.msra.mxu0 %v5432_v42  ;;  %3823 = vmatpush1.bf16.msra.mxu1 %v5560_v43  ;;  %v560_v38 = vld [vmem:[%s8481_s0 + $0x2e8] sm:$0xff]  ;;  %v5504_v42 = vcombine.low %v564_v28, %v568_v29  ;;  %v5632_v43 = vcombine.low %v692_v30, %v696_v31 }
  0xac   : > { %3783 = vmatprep.subr.bf16.mxu0 %v5425_v45  ;;  %3824 = vmatprep.subr.bf16.mxu1 %v5553_v46  ;;  %v684_v39 = vld [vmem:[%s8481_s0 + $0x6c8] sm:$0xff]  ;;  %v5497_v45 = vcombine.high %v556_v36, %v560_v38 }
  0xad   : > { %v688_v41 = vld [vmem:[%s8481_s0 + $0x6e8] sm:$0xff] }
  0xae   : > { %v5625_v46 = vcombine.high %v684_v39, %v688_v41  ;;  %v548_v47 = vld [vmem:[%s8481_s0 + $0x288] sm:$0xff] }
  0xaf   : > { %3784 = vmatpush1.bf16.msra.mxu0 %v5424_v54  ;;  %3825 = vmatpush1.bf16.msra.mxu1 %v5552_v35  ;;  %v552_v48 = vld [vmem:[%s8481_s0 + $0x2a8] sm:$0xff]  ;;  %v5496_v54 = vcombine.low %v556_v36, %v560_v38  ;;  %v5624_v35 = vcombine.low %v684_v39, %v688_v41 }
  0xb0   : > { %3785 = vmatprep.subr.bf16.mxu0 %v5417_v56  ;;  %3826 = vmatprep.subr.bf16.mxu1 %v5545_v57  ;;  %v676_v50 = vld [vmem:[%s8481_s0 + $0x688] sm:$0xff]  ;;  %v5489_v56 = vcombine.high %v548_v47, %v552_v48 }
  0xb1   : > { %v680_v51 = vld [vmem:[%s8481_s0 + $0x6a8] sm:$0xff] }
  0xb2   : > { %v5617_v57 = vcombine.high %v676_v50, %v680_v51  ;;  %v540_v58 = vld [vmem:[%s8481_s0 + $0x248] sm:$0xff] }
  0xb3   : > { %3786 = vmatpush1.bf16.msra.mxu0 %v5416_v63  ;;  %3827 = vmatpush1.bf16.msra.mxu1 %v5544_v0  ;;  %v544_v59 = vld [vmem:[%s8481_s0 + $0x268] sm:$0xff]  ;;  %v5488_v63 = vcombine.low %v548_v47, %v552_v48  ;;  %v5616_v0 = vcombine.low %v676_v50, %v680_v51 }
  0xb4   : > { %3787 = vmatprep.subr.bf16.mxu0 %v5409_v1  ;;  %3828 = vmatprep.subr.bf16.mxu1 %v5537_v2  ;;  %v668_v60 = vld [vmem:[%s8481_s0 + $0x648] sm:$0xff]  ;;  %v5481_v1 = vcombine.high %v540_v58, %v544_v59 }
  0xb5   : > { %v672_v61 = vld [vmem:[%s8481_s0 + $0x668] sm:$0xff] }
  0xb6   : > { %v5609_v2 = vcombine.high %v668_v60, %v672_v61  ;;  %v532_v3 = vld [vmem:[%s8481_s0 + $0x208] sm:$0xff] }
  0xb7   : > { %3788 = vmatpush1.bf16.msra.mxu0 %v5408_v10  ;;  %3829 = vmatpush1.bf16.msra.mxu1 %v5536_v11  ;;  %v536_v4 = vld [vmem:[%s8481_s0 + $0x228] sm:$0xff]  ;;  %v5480_v10 = vcombine.low %v540_v58, %v544_v59  ;;  %v5608_v11 = vcombine.low %v668_v60, %v672_v61 }
  0xb8   : > { %3789 = vmatprep.subr.bf16.mxu0 %v5529_v12  ;;  %3830 = vmatprep.subr.bf16.mxu1 %v5657_v13  ;;  %v660_v5 = vld [vmem:[%s8481_s0 + $0x608] sm:$0xff]  ;;  %v5473_v12 = vcombine.high %v532_v3, %v536_v4 }
  0xb9   : > { %v664_v7 = vld [vmem:[%s8481_s0 + $0x628] sm:$0xff] }
  0xba   : > { %v5601_v13 = vcombine.high %v660_v5, %v664_v7  ;;  %v780_v14 = vld [vmem:[%s8481_s0 + $0x9c8] sm:$0xff] }
  0xbb   : > { %3790 = vmatpush2.bf16.msra.mxu0 %v5528_v16  ;;  %3831 = vmatpush2.bf16.msra.mxu1 %v5656_v17  ;;  %v784_v52 = vld [vmem:[%s8481_s0 + $0x9e8] sm:$0xff]  ;;  %v5472_v16 = vcombine.low %v532_v3, %v536_v4  ;;  %v5600_v17 = vcombine.low %v660_v5, %v664_v7 }
  0xbc   : > { %3791 = vmatprep.subr.bf16.mxu0 %v5521_v18  ;;  %3832 = vmatprep.subr.bf16.mxu1 %v5649_v19  ;;  %v908_v55 = vld [vmem:[%s8481_s0 + $0xdc8] sm:$0xff]  ;;  %v5721_v18 = vcombine.high %v780_v14, %v784_v52 }
  0xbd   : > { %v912_v15 = vld [vmem:[%s8481_s0 + $0xde8] sm:$0xff] }
  0xbe   : > { %v5849_v19 = vcombine.high %v908_v55, %v912_v15  ;;  %v772_v20 = vld [vmem:[%s8481_s0 + $0x988] sm:$0xff] }
  0xbf   : > { %3792 = vmatpush2.bf16.msra.mxu0 %v5520_v24  ;;  %3833 = vmatpush2.bf16.msra.mxu1 %v5648_v25  ;;  %v776_v21 = vld [vmem:[%s8481_s0 + $0x9a8] sm:$0xff]  ;;  %v5720_v24 = vcombine.low %v780_v14, %v784_v52  ;;  %v5848_v25 = vcombine.low %v908_v55, %v912_v15 }
  0xc0   : > { %3793 = vmatprep.subr.bf16.mxu0 %v5513_v26  ;;  %3834 = vmatprep.subr.bf16.mxu1 %v5641_v27  ;;  %v900_v22 = vld [vmem:[%s8481_s0 + $0xd88] sm:$0xff]  ;;  %v5713_v26 = vcombine.high %v772_v20, %v776_v21 }
  0xc1   : > { %v904_v23 = vld [vmem:[%s8481_s0 + $0xda8] sm:$0xff] }
  0xc2   : > { %v5841_v27 = vcombine.high %v900_v22, %v904_v23  ;;  %v764_v28 = vld [vmem:[%s8481_s0 + $0x948] sm:$0xff] }
  0xc3   : > { %3794 = vmatpush2.bf16.msra.mxu0 %v5512_v6  ;;  %3835 = vmatpush2.bf16.msra.mxu1 %v5640_v32  ;;  %v768_v29 = vld [vmem:[%s8481_s0 + $0x968] sm:$0xff]  ;;  %v5712_v6 = vcombine.low %v772_v20, %v776_v21  ;;  %v5840_v32 = vcombine.low %v900_v22, %v904_v23 }
  0xc4   : > { %3795 = vmatprep.subr.bf16.mxu0 %v5505_v33  ;;  %3836 = vmatprep.subr.bf16.mxu1 %v5633_v34  ;;  %v892_v30 = vld [vmem:[%s8481_s0 + $0xd48] sm:$0xff]  ;;  %v5705_v33 = vcombine.high %v764_v28, %v768_v29 }
  0xc5   : > { %v896_v31 = vld [vmem:[%s8481_s0 + $0xd68] sm:$0xff] }
  0xc6   : > { %v5833_v34 = vcombine.high %v892_v30, %v896_v31  ;;  %v756_v36 = vld [vmem:[%s8481_s0 + $0x908] sm:$0xff] }
  0xc7   : > { %3796 = vmatpush2.bf16.msra.mxu0 %v5504_v42  ;;  %3837 = vmatpush2.bf16.msra.mxu1 %v5632_v43  ;;  %v760_v38 = vld [vmem:[%s8481_s0 + $0x928] sm:$0xff]  ;;  %v5704_v42 = vcombine.low %v764_v28, %v768_v29  ;;  %v5832_v43 = vcombine.low %v892_v30, %v896_v31 }
  0xc8   : > { %3797 = vmatprep.subr.bf16.mxu0 %v5497_v45  ;;  %3838 = vmatprep.subr.bf16.mxu1 %v5625_v46  ;;  %v884_v39 = vld [vmem:[%s8481_s0 + $0xd08] sm:$0xff]  ;;  %v5697_v45 = vcombine.high %v756_v36, %v760_v38 }
  0xc9   : > { %v888_v41 = vld [vmem:[%s8481_s0 + $0xd28] sm:$0xff] }
  0xca   : > { %v5825_v46 = vcombine.high %v884_v39, %v888_v41  ;;  %v748_v47 = vld [vmem:[%s8481_s0 + $0x8c8] sm:$0xff] }
  0xcb   : > { %3798 = vmatpush2.bf16.msra.mxu0 %v5496_v54  ;;  %3839 = vmatpush2.bf16.msra.mxu1 %v5624_v35  ;;  %v752_v48 = vld [vmem:[%s8481_s0 + $0x8e8] sm:$0xff]  ;;  %v5696_v54 = vcombine.low %v756_v36, %v760_v38  ;;  %v5824_v35 = vcombine.low %v884_v39, %v888_v41 }
  0xcc   : > { %3799 = vmatprep.subr.bf16.mxu0 %v5489_v56  ;;  %3840 = vmatprep.subr.bf16.mxu1 %v5617_v57  ;;  %v876_v50 = vld [vmem:[%s8481_s0 + $0xcc8] sm:$0xff]  ;;  %v5689_v56 = vcombine.high %v748_v47, %v752_v48 }
  0xcd   : > { %v880_v51 = vld [vmem:[%s8481_s0 + $0xce8] sm:$0xff] }
  0xce   : > { %v5817_v57 = vcombine.high %v876_v50, %v880_v51  ;;  %v740_v58 = vld [vmem:[%s8481_s0 + $0x888] sm:$0xff] }
  0xcf   : > { %3800 = vmatpush2.bf16.msra.mxu0 %v5488_v63  ;;  %3841 = vmatpush2.bf16.msra.mxu1 %v5616_v0  ;;  %v744_v59 = vld [vmem:[%s8481_s0 + $0x8a8] sm:$0xff]  ;;  %v5688_v63 = vcombine.low %v748_v47, %v752_v48  ;;  %v5816_v0 = vcombine.low %v876_v50, %v880_v51 }
  0xd0   : > { %3801 = vmatprep.subr.bf16.mxu0 %v5481_v1  ;;  %3842 = vmatprep.subr.bf16.mxu1 %v5609_v2  ;;  %v868_v60 = vld [vmem:[%s8481_s0 + $0xc88] sm:$0xff]  ;;  %v5681_v1 = vcombine.high %v740_v58, %v744_v59 }
  0xd1   : > { %v872_v61 = vld [vmem:[%s8481_s0 + $0xca8] sm:$0xff] }
  0xd2   : > { %v5809_v2 = vcombine.high %v868_v60, %v872_v61  ;;  %v732_v3 = vld [vmem:[%s8481_s0 + $0x848] sm:$0xff] }
  0xd3   : > { %3802 = vmatpush2.bf16.msra.mxu0 %v5480_v10  ;;  %3843 = vmatpush2.bf16.msra.mxu1 %v5608_v11  ;;  %v736_v4 = vld [vmem:[%s8481_s0 + $0x868] sm:$0xff]  ;;  %v5680_v10 = vcombine.low %v740_v58, %v744_v59  ;;  %v5808_v11 = vcombine.low %v868_v60, %v872_v61 }
  0xd4   : > { %3803 = vmatprep.subr.bf16.mxu0 %v5473_v12  ;;  %3844 = vmatprep.subr.bf16.mxu1 %v5601_v13  ;;  %v860_v5 = vld [vmem:[%s8481_s0 + $0xc48] sm:$0xff]  ;;  %v5673_v12 = vcombine.high %v732_v3, %v736_v4 }
  0xd5   : > { %v864_v7 = vld [vmem:[%s8481_s0 + $0xc68] sm:$0xff] }
  0xd6   : > { %v5801_v13 = vcombine.high %v860_v5, %v864_v7  ;;  %v724_v14 = vld [vmem:[%s8481_s0 + $0x808] sm:$0xff] }
  0xd7   : > { %3804 = vmatpush2.bf16.msra.mxu0 %v5472_v16  ;;  %3845 = vmatpush2.bf16.msra.mxu1 %v5600_v17  ;;  %v728_v52 = vld [vmem:[%s8481_s0 + $0x828] sm:$0xff]  ;;  %v5672_v16 = vcombine.low %v732_v3, %v736_v4  ;;  %v5800_v17 = vcombine.low %v860_v5, %v864_v7 }
  0xd8   : > { %3855 = vmatprep.subr.bf16.mxu0 %v5721_v18  ;;  %3896 = vmatprep.subr.bf16.mxu1 %v5849_v19  ;;  %v852_v55 = vld [vmem:[%s8481_s0 + $0xc08] sm:$0xff]  ;;  %v5665_v18 = vcombine.high %v724_v14, %v728_v52 }
  0xd9   : > { %v856_v15 = vld [vmem:[%s8481_s0 + $0xc28] sm:$0xff] }
  0xda   : > { %3806 = vmatmul.mubr.bf16.vlgmr.msra.gmra.mxu0 %v6617_v49  ;;  %3847 = vmatmul.mubr.bf16.vlgmr.msra.gmra.mxu1 %v6629_v53  ;;  %v5793_v19 = vcombine.high %v852_v55, %v856_v15  ;;  %v844_v20 = vld [vmem:[%s8481_s0 + $0xbc8] sm:$0xff] }
  0xdb   : > { %3856 = vmatpush1.bf16.msra.mxu0 %v5720_v24  ;;  %3897 = vmatpush1.bf16.msra.mxu1 %v5848_v25  ;;  %v848_v21 = vld [vmem:[%s8481_s0 + $0xbe8] sm:$0xff]  ;;  %v5664_v24 = vcombine.low %v724_v14, %v728_v52  ;;  %v5792_v25 = vcombine.low %v852_v55, %v856_v15 }
  0xdc   : > { %3857 = vmatprep.subr.bf16.mxu0 %v5713_v26  ;;  %3898 = vmatprep.subr.bf16.mxu1 %v5841_v27  ;;  %v972_v22 = vld [vmem:[%s8481_s0 + $0xfc8] sm:$0xff]  ;;  %v5785_v26 = vcombine.high %v844_v20, %v848_v21 }
  0xdd   : > { %3887 = vmatprep.mubr.bf16.mxu0 %v6641_v40  ;;  %3928 = vmatprep.mubr.bf16.mxu1 %v6652_v62  ;;  %v976_v23 = vld [vmem:[%s8481_s0 + $0xfe8] sm:$0xff] }
  0xde   : > { %v5913_v27 = vcombine.high %v972_v22, %v976_v23  ;;  %v836_v28 = vld [vmem:[%s8481_s0 + $0xb88] sm:$0xff] }
  0xdf   : > { %3858 = vmatpush1.bf16.msra.mxu0 %v5712_v6  ;;  %3899 = vmatpush1.bf16.msra.mxu1 %v5840_v32  ;;  %v840_v29 = vld [vmem:[%s8481_s0 + $0xba8] sm:$0xff]  ;;  %v5784_v6 = vcombine.low %v844_v20, %v848_v21  ;;  %v5912_v32 = vcombine.low %v972_v22, %v976_v23 }
  0xe0   : > { %3859 = vmatprep.subr.bf16.mxu0 %v5705_v33  ;;  %3900 = vmatprep.subr.bf16.mxu1 %v5833_v34  ;;  %v964_v30 = vld [vmem:[%s8481_s0 + $0xf88] sm:$0xff]  ;;  %v5777_v33 = vcombine.high %v836_v28, %v840_v29 }
  0xe1   : > { %v968_v31 = vld [vmem:[%s8481_s0 + $0xfa8] sm:$0xff] }
  0xe2   : > { %v5905_v34 = vcombine.high %v964_v30, %v968_v31  ;;  %v828_v36 = vld [vmem:[%s8481_s0 + $0xb48] sm:$0xff] }
  0xe3   : > { %3860 = vmatpush1.bf16.msra.mxu0 %v5704_v42  ;;  %3901 = vmatpush1.bf16.msra.mxu1 %v5832_v43  ;;  %v832_v38 = vld [vmem:[%s8481_s0 + $0xb68] sm:$0xff]  ;;  %v5776_v42 = vcombine.low %v836_v28, %v840_v29  ;;  %v5904_v43 = vcombine.low %v964_v30, %v968_v31  ;;  %v525_v30 = vld [vmem:[%s8481_s0 + $0x1d0] sm:$0xff] }
  0xe4   : > { %3861 = vmatprep.subr.bf16.mxu0 %v5697_v45  ;;  %3902 = vmatprep.subr.bf16.mxu1 %v5825_v46  ;;  %v956_v39 = vld [vmem:[%s8481_s0 + $0xf48] sm:$0xff]  ;;  %v5769_v45 = vcombine.high %v828_v36, %v832_v38  ;;  %v529_v31 = vld [vmem:[%s8481_s0 + $0x1f0] sm:$0xff] }
  0xe5   : > { %v960_v41 = vld [vmem:[%s8481_s0 + $0xf68] sm:$0xff] }
  0xe6   : > { %v5897_v46 = vcombine.high %v956_v39, %v960_v41  ;;  %v820_v47 = vld [vmem:[%s8481_s0 + $0xb08] sm:$0xff] }
  0xe7   : > { %3862 = vmatpush1.bf16.msra.mxu0 %v5696_v54  ;;  %3903 = vmatpush1.bf16.msra.mxu1 %v5824_v35  ;;  %v824_v48 = vld [vmem:[%s8481_s0 + $0xb28] sm:$0xff]  ;;  %v5768_v54 = vcombine.low %v828_v36, %v832_v38  ;;  %v5896_v35 = vcombine.low %v956_v39, %v960_v41  ;;  %v7231_v38 = vld [vmem:[%s8482_s1] sm:$0xff]  ;;  %v5467_v39 = vcombine.high %v525_v30, %v529_v31 }
  0xe8   : > { %3863 = vmatprep.subr.bf16.mxu0 %v5689_v56  ;;  %3904 = vmatprep.subr.bf16.mxu1 %v5817_v57  ;;  %v948_v50 = vld [vmem:[%s8481_s0 + $0xf08] sm:$0xff]  ;;  %v5761_v56 = vcombine.high %v820_v47, %v824_v48 }
  0xe9   : > { %v952_v51 = vld [vmem:[%s8481_s0 + $0xf28] sm:$0xff] }
  0xea   : > { %v5889_v57 = vcombine.high %v948_v50, %v952_v51  ;;  %v812_v58 = vld [vmem:[%s8481_s0 + $0xac8] sm:$0xff] }
  0xeb   : > { %3864 = vmatpush1.bf16.msra.mxu0 %v5688_v63  ;;  %3905 = vmatpush1.bf16.msra.mxu1 %v5816_v0  ;;  %v816_v59 = vld [vmem:[%s8481_s0 + $0xae8] sm:$0xff]  ;;  %v5760_v63 = vcombine.low %v820_v47, %v824_v48  ;;  %v5888_v0 = vcombine.low %v948_v50, %v952_v51  ;;  %v649_v47 = vld [vmem:[%s8481_s0 + $0x5b0] sm:$0xff]  ;;  %v5466_v50 = vcombine.low %v525_v30, %v529_v31 }
  0xec   : > { %3865 = vmatprep.subr.bf16.mxu0 %v5681_v1  ;;  %3906 = vmatprep.subr.bf16.mxu1 %v5809_v2  ;;  %v940_v60 = vld [vmem:[%s8481_s0 + $0xec8] sm:$0xff]  ;;  %v5753_v1 = vcombine.high %v812_v58, %v816_v59 }
  0xed   : > { %v944_v61 = vld [vmem:[%s8481_s0 + $0xee8] sm:$0xff] }
  0xee   : > { %v5881_v2 = vcombine.high %v940_v60, %v944_v61  ;;  %v804_v3 = vld [vmem:[%s8481_s0 + $0xa88] sm:$0xff] }
  0xef   : > { %3866 = vmatpush1.bf16.msra.mxu0 %v5680_v10  ;;  %3907 = vmatpush1.bf16.msra.mxu1 %v5808_v11  ;;  %v808_v4 = vld [vmem:[%s8481_s0 + $0xaa8] sm:$0xff]  ;;  %v5752_v10 = vcombine.low %v812_v58, %v816_v59  ;;  %v5880_v11 = vcombine.low %v940_v60, %v944_v61  ;;  %v513_v58 = vld [vmem:[%s8481_s0 + $0x170] sm:$0xff] }
  0xf0   : > { %3867 = vmatprep.subr.bf16.mxu0 %v5673_v12  ;;  %3908 = vmatprep.subr.bf16.mxu1 %v5801_v13  ;;  %v932_v5 = vld [vmem:[%s8481_s0 + $0xe88] sm:$0xff]  ;;  %v5745_v12 = vcombine.high %v804_v3, %v808_v4  ;;  %v637_v60 = vld [vmem:[%s8481_s0 + $0x550] sm:$0xff] }
  0xf1   : > { %v936_v7 = vld [vmem:[%s8481_s0 + $0xea8] sm:$0xff]  ;;  %v641_v61 = vld [vmem:[%s8481_s0 + $0x570] sm:$0xff] }
  0xf2   : > { %v5873_v13 = vcombine.high %v932_v5, %v936_v7  ;;  %v796_v14 = vld [vmem:[%s8481_s0 + $0xa48] sm:$0xff] }
  0xf3   : > { %3868 = vmatpush1.bf16.msra.mxu0 %v5672_v16  ;;  %3909 = vmatpush1.bf16.msra.mxu1 %v5800_v17  ;;  %v800_v52 = vld [vmem:[%s8481_s0 + $0xa68] sm:$0xff]  ;;  %v5744_v16 = vcombine.low %v804_v3, %v808_v4  ;;  %v981_v17 = vlaneseq }
  0xf4   : > { %3869 = vmatprep.subr.bf16.mxu0 %v5665_v18  ;;  %3910 = vmatprep.subr.bf16.mxu1 %v5793_v19  ;;  %v924_v55 = vld [vmem:[%s8481_s0 + $0xe48] sm:$0xff]  ;;  %v5872_v18 = vcombine.low %v932_v5, %v936_v7  ;;  %v5737_v19 = vcombine.high %v796_v14, %v800_v52 }
  0xf5   : > { %v928_v15 = vld [vmem:[%s8481_s0 + $0xe68] sm:$0xff] }
  0xf6   : > { %v5865_v20 = vcombine.high %v924_v55, %v928_v15  ;;  %v788_v21 = vld [vmem:[%s8481_s0 + $0xa08] sm:$0xff] }
  0xf7   : > { %3870 = vmatpush1.bf16.msra.mxu0 %v5664_v24  ;;  %3911 = vmatpush1.bf16.msra.mxu1 %v5792_v25  ;;  %v792_v22 = vld [vmem:[%s8481_s0 + $0xa28] sm:$0xff]  ;;  %v5736_v25 = vcombine.low %v796_v14, %v800_v52  ;;  %v629_v52 = vld [vmem:[%s8481_s0 + $0x510] sm:$0xff] }
  0xf8   : > { %3871 = vmatprep.subr.bf16.mxu0 %v5785_v26  ;;  %3912 = vmatprep.subr.bf16.mxu1 %v5913_v27  ;;  %v916_v23 = vld [vmem:[%s8481_s0 + $0xe08] sm:$0xff]  ;;  %v7213_v26 = vshrl.u32 %v981_v17, 7  ;;  %v5864_v27 = vcombine.low %v924_v55, %v928_v15  ;;  %v5729_v28 = vcombine.high %v788_v21, %v792_v22  ;;  %v633_v55 = vld [vmem:[%s8481_s0 + $0x530] sm:$0xff] }
  0xf9   : > { %v920_v24 = vld [vmem:[%s8481_s0 + $0xe28] sm:$0xff] }
  0xfa   : > { %v5857_v29 = vcombine.high %v916_v23, %v920_v24  ;;  %v5856_v36 = vcombine.low %v916_v23, %v920_v24  ;;  %v493_v23 = vld [vmem:[%s8481_s0 + $0xd0] sm:$0xff] }
  0xfb   : > { %3872 = vmatpush2.bf16.msra.mxu0 %v5784_v6  ;;  %3913 = vmatpush2.bf16.msra.mxu1 %v5912_v32  ;;  %v653_v6 = vld [vmem:[%s8481_s0 + $0x5d0] sm:$0xff] }
  0xfc   : > { %3873 = vmatprep.subr.bf16.mxu0 %v5777_v33  ;;  %3914 = vmatprep.subr.bf16.mxu1 %v5905_v34  ;;  %v657_v32 = vld [vmem:[%s8481_s0 + $0x5f0] sm:$0xff]  ;;  %v5728_v33 = vcombine.low %v788_v21, %v792_v22  ;;  %v983_v34 = vsub.s32 0, %v7213_v26  ;;  %v5571_v22 = vcombine.high %v629_v52, %v633_v55 }
  0xfd   : > { %v5595_v41 = vcombine.high %v653_v6, %v657_v32  ;;  %v5594_v51 = vcombine.low %v653_v6, %v657_v32  ;;  %v497_v24 = vld [vmem:[%s8481_s0 + $0xf0] sm:$0xff] }
  0xfe   : > { %v984_v48 = vrot.slane %v7231_v38, %v983_v34  ;;  %v5435_v30 = vcombine.high %v493_v23, %v497_v24  ;;  %v485_v6 = vld [vmem:[%s8481_s0 + $0x90] sm:$0xff] }
  0xff   : > { %3874 = vmatpush2.bf16.msra.mxu0 %v5776_v42  ;;  %3915 = vmatpush2.bf16.msra.mxu1 %v5904_v43  ;;  %v987_v42 = vsub.s32 1, %v7213_v26  ;;  %v517_v43 = vld [vmem:[%s8481_s0 + $0x190] sm:$0xff] }
 0x100   : > { %3875 = vmatprep.subr.bf16.mxu0 %v5769_v45  ;;  %3916 = vmatprep.subr.bf16.mxu1 %v5897_v46  ;;  %v521_v45 = vld [vmem:[%s8481_s0 + $0x1b0] sm:$0xff] }
 0x101   : > { %v645_v46 = vld [vmem:[%s8481_s0 + $0x590] sm:$0xff] }
 0x102   : > { %v5586_v3 = vcombine.low %v645_v46, %v649_v47  ;;  %v489_v32 = vld [vmem:[%s8481_s0 + $0xb0] sm:$0xff] }
 0x103   : > { %3876 = vmatpush2.bf16.msra.mxu0 %v5768_v54  ;;  %3917 = vmatpush2.bf16.msra.mxu1 %v5896_v35  ;;  %v5459_v54 = vcombine.high %v517_v43, %v521_v45  ;;  %v988_v35 = vrot.slane %v7231_v38, %v987_v42 }
 0x104   : > { %3877 = vmatprep.subr.bf16.mxu0 %v5761_v56  ;;  %3918 = vmatprep.subr.bf16.mxu1 %v5889_v57  ;;  %v5587_v56 = vcombine.high %v645_v46, %v649_v47  ;;  %v509_v57 = vld [vmem:[%s8481_s0 + $0x150] sm:$0xff] }
 0x105   : > { %v5451_v4 = vcombine.high %v509_v57, %v513_v58  ;;  %v5450_v17 = vcombine.low %v509_v57, %v513_v58  ;;  %v477_v46 = vld [vmem:[%s8481_s0 + $0x50] sm:$0xff] }
 0x106   : > { %v481_v47 = vld [vmem:[%s8481_s0 + $0x70] sm:$0xff] }
 0x107   : > { %3878 = vmatpush2.bf16.msra.mxu0 %v5760_v63  ;;  %3919 = vmatpush2.bf16.msra.mxu1 %v5888_v0  ;;  %v469_v57 = vld [vmem:[%s8481_s0 + $0x10] sm:$0xff] }
 0x108   : > { %3879 = vmatprep.subr.bf16.mxu0 %v5753_v1  ;;  %3920 = vmatprep.subr.bf16.mxu1 %v5881_v2  ;;  %v5458_v1 = vcombine.low %v517_v43, %v521_v45  ;;  %v5427_v43 = vcombine.high %v485_v6, %v489_v32  ;;  %v473_v58 = vld [vmem:[%s8481_s0 + $0x30] sm:$0xff] }
 0x10b   : > { %3880 = vmatpush2.bf16.msra.mxu0 %v5752_v10  ;;  %3921 = vmatpush2.bf16.msra.mxu1 %v5880_v11  ;;  %v5579_v11 = vcombine.high %v637_v60, %v641_v61 }
 0x10c   : > { %3881 = vmatprep.subr.bf16.mxu0 %v5745_v12  ;;  %3922 = vmatprep.subr.bf16.mxu1 %v5873_v13  ;;  %v501_v12 = vld [vmem:[%s8481_s0 + $0x110] sm:$0xff] }
 0x10d   : > { %v505_v13 = vld [vmem:[%s8481_s0 + $0x130] sm:$0xff] }
 0x10f   : > { %3882 = vmatpush2.bf16.msra.mxu0 %v5744_v16  ;;  %3923 = vmatpush2.bf16.msra.mxu1 %v5872_v18 }
 0x110   : > { %3883 = vmatprep.subr.bf16.mxu0 %v5737_v19  ;;  %3924 = vmatprep.subr.bf16.mxu1 %v5865_v20  ;;  %v5578_v19 = vcombine.low %v637_v60, %v641_v61  ;;  %v5443_v20 = vcombine.high %v501_v12, %v505_v13  ;;  %v601_v60 = vld [vmem:[%s8481_s0 + $0x430] sm:$0xff]  ;;  %v5418_v61 = vcombine.low %v477_v46, %v481_v47 }
 0x113   : > { %3884 = vmatpush2.bf16.msra.mxu0 %v5736_v25  ;;  %3925 = vmatpush2.bf16.msra.mxu1 %v5864_v27  ;;  %v621_v25 = vld [vmem:[%s8481_s0 + $0x4d0] sm:$0xff] }
 0x114   : > { %3885 = vmatprep.subr.bf16.mxu0 %v5729_v28  ;;  %3926 = vmatprep.subr.bf16.mxu1 %v5857_v29  ;;  %v625_v27 = vld [vmem:[%s8481_s0 + $0x4f0] sm:$0xff]  ;;  %v5442_v28 = vcombine.low %v501_v12, %v505_v13  ;;  %v5570_v29 = vcombine.low %v629_v52, %v633_v55 }
 0x115   : > { %v5563_v31 = vcombine.high %v621_v25, %v625_v27  ;;  %v585_v52 = vld [vmem:[%s8481_s0 + $0x3b0] sm:$0xff] }
 0x116   : > { %v709_v55 = vld [vmem:[%s8481_s0 + $0x790] sm:$0xff] }
 0x117   : > { %3886 = vmatpush2.bf16.msra.mxu0 %v5728_v33  ;;  %3927 = vmatpush2.bf16.msra.mxu1 %v5856_v36  ;;  %v613_v33 = vld [vmem:[%s8481_s0 + $0x490] sm:$0xff] }
 0x118   : > { %3937 = vmatprep.subr.bf16.mxu0 %v5467_v39  ;;  %3978 = vmatprep.subr.bf16.mxu1 %v5595_v41  ;;  %v617_v36 = vld [vmem:[%s8481_s0 + $0x4b0] sm:$0xff]  ;;  %v5434_v39 = vcombine.low %v493_v23, %v497_v24  ;;  %v5562_v41 = vcombine.low %v621_v25, %v625_v27 }
 0x119   : > { %v3643_v59 = vpop.f32.mrf.mxu0  ;;  %v5555_v45 = vcombine.high %v613_v33, %v617_v36  ;;  %v701_v23 = vld [vmem:[%s8481_s0 + $0x750] sm:$0xff] }
 0x11a   : > { %3888 = vmatmul.mubr.bf16.vlgmr.msra.gmra.mxu0 %v6839_v8  ;;  %v3644_v63 = vadd.f32 %v3643_v59, %v984_v48  ;;  %v3684_v0 = vpop.f32.mrf.mxu1  ;;  %3929 = vmatmul.mubr.bf16.vlgmr.msra.gmra.mxu1 %v6843_v9  ;;  %v605_v48 = vld [vmem:[%s8481_s0 + $0x450] sm:$0xff] }
 0x11b   : > { %3938 = vmatpush1.bf16.msra.mxu0 %v5466_v50  ;;  %3979 = vmatpush1.bf16.msra.mxu1 %v5594_v51  ;;  %v3645_v2 = vpop.f32.mrf.mxu0  ;;  %v609_v50 = vld [vmem:[%s8481_s0 + $0x470] sm:$0xff]  ;;  %v5426_v51 = vcombine.low %v485_v6, %v489_v32 }
 0x11c   : > { %3939 = vmatprep.subr.bf16.mxu0 %v5459_v54  ;;  %v7266_v5 = vadd.f32 %v3684_v0, %v3644_v63  ;;  %v3646_v7 = vadd.f32 %v3645_v2, %v988_v35  ;;  %v3686_v10 = vpop.f32.mrf.mxu1  ;;  %3980 = vmatprep.subr.bf16.mxu1 %v5587_v56  ;;  %v5554_v54 = vcombine.low %v613_v33, %v617_v36  ;;  %v597_v59 = vld [vmem:[%s8481_s0 + $0x410] sm:$0xff] }
 0x11d   : > { %3969 = vmatprep.mubr.bf16.mxu0 %v6507_v37  ;;  %v3647_v14 = vpop.f32.mrf.mxu0  ;;  %4010 = vmatprep.mubr.bf16.mxu1 %v6520_v44  ;;  %v5419_v35 = vcombine.high %v477_v46, %v481_v47  ;;  %v5547_v56 = vcombine.high %v605_v48, %v609_v50  ;;  %v5546_v63 = vcombine.low %v605_v48, %v609_v50  ;;  %v589_v2 = vld [vmem:[%s8481_s0 + $0x3d0] sm:$0xff] }
 0x11e   : > { %v7282_v15 = vadd.f32 %v3686_v10, %v3646_v7  ;;  %v3688_v16 = vpop.f32.mrf.mxu1  ;;  %v5411_v0 = vcombine.high %v469_v57, %v473_v58  ;;  %v721_v7 = vld [vmem:[%s8481_s0 + $0x7f0] sm:$0xff]  ;;  %v5410_v10 = vcombine.low %v469_v57, %v473_v58 }
 0x11f   : > { %3940 = vmatpush1.bf16.msra.mxu0 %v5458_v1  ;;  %3981 = vmatpush1.bf16.msra.mxu1 %v5586_v3  ;;  %v3648_v18 = vpop.f32.mrf.mxu0  ;;  %v5539_v1 = vcombine.high %v597_v59, %v601_v60  ;;  %v593_v3 = vld [vmem:[%s8481_s0 + $0x3f0] sm:$0xff] }
 0x120   : > { %3941 = vmatprep.subr.bf16.mxu0 %v5451_v4  ;;  %v3689_v21 = vpop.f32.mrf.mxu1  ;;  %3982 = vmatprep.subr.bf16.mxu1 %v5579_v11  ;;  %v717_v4 = vld [vmem:[%s8481_s0 + $0x7d0] sm:$0xff]  ;;  %v5538_v11 = vcombine.low %v597_v59, %v601_v60  ;;  %v5531_v12 = vcombine.high %v589_v2, %v593_v3 }
 0x121   : > { %v5659_v13 = vcombine.high %v717_v4, %v721_v7  ;;  %v581_v14 = vld [vmem:[%s8481_s0 + $0x390] sm:$0xff]  ;;  %v5658_v18 = vcombine.low %v717_v4, %v721_v7 }
 0x122   : > { %v713_v16 = vld [vmem:[%s8481_s0 + $0x7b0] sm:$0xff]  ;;  %v5522_v25 = vcombine.low %v581_v14, %v585_v52 }
 0x123   : > { %3942 = vmatpush1.bf16.msra.mxu0 %v5450_v17  ;;  %3983 = vmatpush1.bf16.msra.mxu1 %v5578_v19  ;;  %v5530_v17 = vcombine.low %v589_v2, %v593_v3  ;;  %v5523_v19 = vcombine.high %v581_v14, %v585_v52  ;;  %v573_v21 = vld [vmem:[%s8481_s0 + $0x350] sm:$0xff]  ;;  %v5650_v27 = vcombine.low %v709_v55, %v713_v16 }
 0x124   : > { %3943 = vmatprep.subr.bf16.mxu0 %v5443_v20  ;;  %3984 = vmatprep.subr.bf16.mxu1 %v5571_v22  ;;  %v5651_v20 = vcombine.high %v709_v55, %v713_v16  ;;  %v577_v22 = vld [vmem:[%s8481_s0 + $0x370] sm:$0xff] }
 0x125   : > { %v705_v24 = vld [vmem:[%s8481_s0 + $0x770] sm:$0xff]  ;;  %v5514_v33 = vcombine.low %v573_v21, %v577_v22 }
 0x126   : > { %v693_v6 = vld [vmem:[%s8481_s0 + $0x710] sm:$0xff]  ;;  %v5642_v36 = vcombine.low %v701_v23, %v705_v24 }
 0x127   : > { %3944 = vmatpush1.bf16.msra.mxu0 %v5442_v28  ;;  %3985 = vmatpush1.bf16.msra.mxu1 %v5570_v29  ;;  %v5515_v28 = vcombine.high %v573_v21, %v577_v22  ;;  %v5643_v29 = vcombine.high %v701_v23, %v705_v24  ;;  %v697_v32 = vld [vmem:[%s8481_s0 + $0x730] sm:$0xff] }
 0x128   : > { %3945 = vmatprep.subr.bf16.mxu0 %v5435_v30  ;;  %3986 = vmatprep.subr.bf16.mxu1 %v5563_v31  ;;  %v565_v30 = vld [vmem:[%s8481_s0 + $0x310] sm:$0xff]  ;;  %v5634_v50 = vcombine.low %v693_v6, %v697_v32 }
 0x129   : > { %v569_v31 = vld [vmem:[%s8481_s0 + $0x330] sm:$0xff] }
 0x12a   : > { %v685_v46 = vld [vmem:[%s8481_s0 + $0x6d0] sm:$0xff]  ;;  %v5506_v48 = vcombine.low %v565_v30, %v569_v31 }
 0x12b   : > { %3946 = vmatpush1.bf16.msra.mxu0 %v5434_v39  ;;  %3987 = vmatpush1.bf16.msra.mxu1 %v5562_v41  ;;  %v5507_v39 = vcombine.high %v565_v30, %v569_v31  ;;  %v5635_v41 = vcombine.high %v693_v6, %v697_v32  ;;  %v689_v47 = vld [vmem:[%s8481_s0 + $0x6f0] sm:$0xff] }
 0x12c   : > { %3947 = vmatprep.subr.bf16.mxu0 %v5427_v43  ;;  %3988 = vmatprep.subr.bf16.mxu1 %v5555_v45  ;;  %v557_v43 = vld [vmem:[%s8481_s0 + $0x2d0] sm:$0xff]  ;;  %v5626_v60 = vcombine.low %v685_v46, %v689_v47 }
 0x12d   : > { %v561_v45 = vld [vmem:[%s8481_s0 + $0x2f0] sm:$0xff] }
 0x12e   : > { %v677_v57 = vld [vmem:[%s8481_s0 + $0x690] sm:$0xff]  ;;  %v5498_v59 = vcombine.low %v557_v43, %v561_v45 }
 0x12f   : > { %3948 = vmatpush1.bf16.msra.mxu0 %v5426_v51  ;;  %3989 = vmatpush1.bf16.msra.mxu1 %v5554_v54  ;;  %v5499_v51 = vcombine.high %v557_v43, %v561_v45  ;;  %v5627_v54 = vcombine.high %v685_v46, %v689_v47  ;;  %v681_v58 = vld [vmem:[%s8481_s0 + $0x6b0] sm:$0xff] }
 0x130   : > { %3949 = vmatprep.subr.bf16.mxu0 %v5419_v35  ;;  %3990 = vmatprep.subr.bf16.mxu1 %v5547_v56  ;;  %v549_v35 = vld [vmem:[%s8481_s0 + $0x290] sm:$0xff]  ;;  %v5618_v7 = vcombine.low %v677_v57, %v681_v58 }
 0x131   : > { %v553_v56 = vld [vmem:[%s8481_s0 + $0x2b0] sm:$0xff] }
 0x132   : > { %v669_v2 = vld [vmem:[%s8481_s0 + $0x650] sm:$0xff]  ;;  %v5490_v4 = vcombine.low %v549_v35, %v553_v56 }
 0x133   : > { %3950 = vmatpush1.bf16.msra.mxu0 %v5418_v61  ;;  %3991 = vmatpush1.bf16.msra.mxu1 %v5546_v63  ;;  %v5491_v61 = vcombine.high %v549_v35, %v553_v56  ;;  %v5619_v63 = vcombine.high %v677_v57, %v681_v58  ;;  %v673_v3 = vld [vmem:[%s8481_s0 + $0x670] sm:$0xff] }
 0x134   : > { %3951 = vmatprep.subr.bf16.mxu0 %v5411_v0  ;;  %3992 = vmatprep.subr.bf16.mxu1 %v5539_v1  ;;  %v541_v0 = vld [vmem:[%s8481_s0 + $0x250] sm:$0xff]  ;;  %v5610_v16 = vcombine.low %v669_v2, %v673_v3 }
 0x135   : > { %v545_v1 = vld [vmem:[%s8481_s0 + $0x270] sm:$0xff] }
 0x136   : > { %v661_v14 = vld [vmem:[%s8481_s0 + $0x610] sm:$0xff]  ;;  %v5482_v55 = vcombine.low %v541_v0, %v545_v1 }
 0x137   : > { %3952 = vmatpush1.bf16.msra.mxu0 %v5410_v10  ;;  %3993 = vmatpush1.bf16.msra.mxu1 %v5538_v11  ;;  %v5483_v10 = vcombine.high %v541_v0, %v545_v1  ;;  %v5611_v11 = vcombine.high %v669_v2, %v673_v3  ;;  %v665_v52 = vld [vmem:[%s8481_s0 + $0x630] sm:$0xff] }
 0x138   : > { %3953 = vmatprep.subr.bf16.mxu0 %v5531_v12  ;;  %3994 = vmatprep.subr.bf16.mxu1 %v5659_v13  ;;  %v533_v12 = vld [vmem:[%s8481_s0 + $0x210] sm:$0xff]  ;;  %v5602_v24 = vcombine.low %v661_v14, %v665_v52 }
 0x139   : > { %v537_v13 = vld [vmem:[%s8481_s0 + $0x230] sm:$0xff] }
 0x13a   : > { %v909_v21 = vld [vmem:[%s8481_s0 + $0xdd0] sm:$0xff]  ;;  %v5474_v23 = vcombine.low %v533_v12, %v537_v13 }
 0x13b   : > { %3954 = vmatpush2.bf16.msra.mxu0 %v5530_v17  ;;  %3995 = vmatpush2.bf16.msra.mxu1 %v5658_v18  ;;  %v5475_v17 = vcombine.high %v533_v12, %v537_v13  ;;  %v5603_v18 = vcombine.high %v661_v14, %v665_v52  ;;  %v913_v22 = vld [vmem:[%s8481_s0 + $0xdf0] sm:$0xff] }
 0x13c   : > { %3955 = vmatprep.subr.bf16.mxu0 %v5523_v19  ;;  %3996 = vmatprep.subr.bf16.mxu1 %v5651_v20  ;;  %v781_v19 = vld [vmem:[%s8481_s0 + $0x9d0] sm:$0xff]  ;;  %v5850_v32 = vcombine.low %v909_v21, %v913_v22 }
 0x13d   : > { %v785_v20 = vld [vmem:[%s8481_s0 + $0x9f0] sm:$0xff] }
 0x13e   : > { %v901_v30 = vld [vmem:[%s8481_s0 + $0xd90] sm:$0xff]  ;;  %v5722_v6 = vcombine.low %v781_v19, %v785_v20 }
 0x13f   : > { %3956 = vmatpush2.bf16.msra.mxu0 %v5522_v25  ;;  %3997 = vmatpush2.bf16.msra.mxu1 %v5650_v27  ;;  %v5723_v25 = vcombine.high %v781_v19, %v785_v20  ;;  %v5851_v27 = vcombine.high %v909_v21, %v913_v22  ;;  %v905_v31 = vld [vmem:[%s8481_s0 + $0xdb0] sm:$0xff] }
 0x140   : > { %3957 = vmatprep.subr.bf16.mxu0 %v5515_v28  ;;  %3998 = vmatprep.subr.bf16.mxu1 %v5643_v29  ;;  %v773_v28 = vld [vmem:[%s8481_s0 + $0x990] sm:$0xff] }
 0x141   : > { %v777_v29 = vld [vmem:[%s8481_s0 + $0x9b0] sm:$0xff] }
 0x142   : > { %v893_v45 = vld [vmem:[%s8481_s0 + $0xd50] sm:$0xff] }
 0x143   : > { %3958 = vmatpush2.bf16.msra.mxu0 %v5514_v33  ;;  %3999 = vmatpush2.bf16.msra.mxu1 %v5642_v36  ;;  %v5715_v33 = vcombine.high %v773_v28, %v777_v29  ;;  %v5843_v36 = vcombine.high %v901_v30, %v905_v31  ;;  %v897_v46 = vld [vmem:[%s8481_s0 + $0xd70] sm:$0xff] }
 0x144   : > { %3959 = vmatprep.subr.bf16.mxu0 %v5507_v39  ;;  %4000 = vmatprep.subr.bf16.mxu1 %v5635_v41  ;;  %v765_v39 = vld [vmem:[%s8481_s0 + $0x950] sm:$0xff] }
 0x145   : > { %v769_v41 = vld [vmem:[%s8481_s0 + $0x970] sm:$0xff] }
 0x146   : > { %v5707_v35 = vcombine.high %v765_v39, %v769_v41  ;;  %v5706_v2 = vcombine.low %v765_v39, %v769_v41  ;;  %v749_v12 = vld [vmem:[%s8481_s0 + $0x8d0] sm:$0xff] }
 0x147   : > { %3960 = vmatpush2.bf16.msra.mxu0 %v5506_v48  ;;  %4001 = vmatpush2.bf16.msra.mxu1 %v5634_v50  ;;  %v5714_v50 = vcombine.low %v773_v28, %v777_v29  ;;  %v753_v13 = vld [vmem:[%s8481_s0 + $0x8f0] sm:$0xff] }
 0x148   : > { %3961 = vmatprep.subr.bf16.mxu0 %v5499_v51  ;;  %4002 = vmatprep.subr.bf16.mxu1 %v5627_v54  ;;  %v5842_v54 = vcombine.low %v901_v30, %v905_v31  ;;  %v877_v14 = vld [vmem:[%s8481_s0 + $0xcd0] sm:$0xff] }
 0x149   : > { %v881_v52 = vld [vmem:[%s8481_s0 + $0xcf0] sm:$0xff] }
 0x14a   : > { %v741_v19 = vld [vmem:[%s8481_s0 + $0x890] sm:$0xff] }
 0x14b   : > { %3962 = vmatpush2.bf16.msra.mxu0 %v5498_v59  ;;  %4003 = vmatpush2.bf16.msra.mxu1 %v5626_v60  ;;  %v5835_v59 = vcombine.high %v893_v45, %v897_v46  ;;  %v761_v60 = vld [vmem:[%s8481_s0 + $0x930] sm:$0xff] }
 0x14c   : > { %3963 = vmatprep.subr.bf16.mxu0 %v5491_v61  ;;  %4004 = vmatprep.subr.bf16.mxu1 %v5619_v63  ;;  %v885_v63 = vld [vmem:[%s8481_s0 + $0xd10] sm:$0xff] }
 0x14d   : > { %v745_v20 = vld [vmem:[%s8481_s0 + $0x8b0] sm:$0xff] }
 0x14e   : > { %v869_v21 = vld [vmem:[%s8481_s0 + $0xc90] sm:$0xff] }
 0x14f   : > { %3964 = vmatpush2.bf16.msra.mxu0 %v5490_v4  ;;  %4005 = vmatpush2.bf16.msra.mxu1 %v5618_v7  ;;  %v5834_v4 = vcombine.low %v893_v45, %v897_v46  ;;  %v873_v22 = vld [vmem:[%s8481_s0 + $0xcb0] sm:$0xff] }
 0x150   : > { %3965 = vmatprep.subr.bf16.mxu0 %v5483_v10  ;;  %4006 = vmatprep.subr.bf16.mxu1 %v5611_v11  ;;  %v733_v28 = vld [vmem:[%s8481_s0 + $0x850] sm:$0xff] }
 0x151   : > { %v737_v29 = vld [vmem:[%s8481_s0 + $0x870] sm:$0xff] }
 0x152   : > { %v861_v30 = vld [vmem:[%s8481_s0 + $0xc50] sm:$0xff]  ;;  %v5674_v46 = vcombine.low %v733_v28, %v737_v29 }
 0x153   : > { %3966 = vmatpush2.bf16.msra.mxu0 %v5482_v55  ;;  %4007 = vmatpush2.bf16.msra.mxu1 %v5610_v16  ;;  %v865_v31 = vld [vmem:[%s8481_s0 + $0xc70] sm:$0xff] }
 0x154   : > { %3967 = vmatprep.subr.bf16.mxu0 %v5475_v17  ;;  %4008 = vmatprep.subr.bf16.mxu1 %v5603_v18  ;;  %v5691_v17 = vcombine.high %v749_v12, %v753_v13  ;;  %v5819_v18 = vcombine.high %v877_v14, %v881_v52  ;;  %v725_v39 = vld [vmem:[%s8481_s0 + $0x810] sm:$0xff] }
 0x155   : > { %v729_v41 = vld [vmem:[%s8481_s0 + $0x830] sm:$0xff] }
 0x156   : > { %v857_v45 = vld [vmem:[%s8481_s0 + $0xc30] sm:$0xff] }
 0x157   : > { %3968 = vmatpush2.bf16.msra.mxu0 %v5474_v23  ;;  %4009 = vmatpush2.bf16.msra.mxu1 %v5602_v24  ;;  %v5690_v23 = vcombine.low %v749_v12, %v753_v13  ;;  %v5818_v24 = vcombine.low %v877_v14, %v881_v52  ;;  %v957_v12 = vld [vmem:[%s8481_s0 + $0xf50] sm:$0xff] }
 0x158   : > { %4019 = vmatprep.subr.bf16.mxu0 %v5723_v25  ;;  %4060 = vmatprep.subr.bf16.mxu1 %v5851_v27  ;;  %v5683_v25 = vcombine.high %v741_v19, %v745_v20  ;;  %v5811_v27 = vcombine.high %v869_v21, %v873_v22  ;;  %v961_v13 = vld [vmem:[%s8481_s0 + $0xf70] sm:$0xff] }
 0x15a   : > { %v3725_v43 = vpop.f32.mrf.mxu0  ;;  %3970 = vmatmul.mubr.bf16.vlgmr.msra.gmra.mxu0 %v6617_v49  ;;  %v3766_v48 = vpop.f32.mrf.mxu1  ;;  %4011 = vmatmul.mubr.bf16.vlgmr.msra.gmra.mxu1 %v6629_v53 }
 0x15b   : > { %v3726_v47 = vadd.f32 %v3725_v43, %v7266_v5  ;;  %4020 = vmatpush1.bf16.msra.mxu0 %v5722_v6  ;;  %4061 = vmatpush1.bf16.msra.mxu1 %v5850_v32  ;;  %v757_v5 = vld [vmem:[%s8481_s0 + $0x910] sm:$0xff]  ;;  %v5682_v6 = vcombine.low %v741_v19, %v745_v20  ;;  %v5810_v32 = vcombine.low %v869_v21, %v873_v22 }
 0x15c   : > { %v3727_v51 = vpop.f32.mrf.mxu0  ;;  %4021 = vmatprep.subr.bf16.mxu0 %v5715_v33  ;;  %v3768_v58 = vpop.f32.mrf.mxu1  ;;  %4062 = vmatprep.subr.bf16.mxu1 %v5843_v36  ;;  %v5699_v7 = vcombine.high %v757_v5, %v761_v60  ;;  %v5698_v55 = vcombine.low %v757_v5, %v761_v60  ;;  %v5675_v33 = vcombine.high %v733_v28, %v737_v29  ;;  %v853_v43 = vld [vmem:[%s8481_s0 + $0xc10] sm:$0xff] }
 0x15d   : > { %v7467_v56 = vadd.f32 %v3766_v48, %v3726_v47  ;;  %v3728_v57 = vadd.f32 %v3727_v51, %v7282_v15  ;;  %4051 = vmatprep.mubr.bf16.mxu0 %v6641_v40  ;;  %v889_v15 = vld [vmem:[%s8481_s0 + $0xd30] sm:$0xff]  ;;  %4092 = vmatprep.mubr.bf16.mxu1 %v6652_v62  ;;  %v5803_v36 = vcombine.high %v861_v30, %v865_v31 }
 0x15e   : > { %v3729_v61 = vpop.f32.mrf.mxu0  ;;  %v3770_v1 = vpop.f32.mrf.mxu1  ;;  %v5827_v11 = vcombine.high %v885_v63, %v889_v15  ;;  %v5826_v16 = vcombine.low %v885_v63, %v889_v15  ;;  %v5802_v47 = vcombine.low %v861_v30, %v865_v31  ;;  %v5667_v48 = vcombine.high %v725_v39, %v729_v41  ;;  %v845_v51 = vld [vmem:[%s8481_s0 + $0xbd0] sm:$0xff] }
 0x15f   : > { %v7484_v0 = vadd.f32 %v3768_v58, %v3728_v57  ;;  %4022 = vmatpush1.bf16.msra.mxu0 %v5714_v50  ;;  %4063 = vmatpush1.bf16.msra.mxu1 %v5842_v54  ;;  %v5795_v50 = vcombine.high %v853_v43, %v857_v45  ;;  %v849_v54 = vld [vmem:[%s8481_s0 + $0xbf0] sm:$0xff]  ;;  %v5666_v58 = vcombine.low %v725_v39, %v729_v41 }
 0x160   : > { %v3730_v3 = vpop.f32.mrf.mxu0  ;;  %4023 = vmatprep.subr.bf16.mxu0 %v5707_v35  ;;  %v3771_v10 = vpop.f32.mrf.mxu1  ;;  %4064 = vmatprep.subr.bf16.mxu1 %v5835_v59  ;;  %v973_v35 = vld [vmem:[%s8481_s0 + $0xfd0] sm:$0xff]  ;;  %v5794_v59 = vcombine.low %v853_v43, %v857_v45  ;;  %v5787_v5 = vcombine.high %v845_v51, %v849_v54  ;;  %v5898_v22 = vcombine.low %v957_v12, %v961_v13 }
 0x161   : > { %v977_v57 = vld [vmem:[%s8481_s0 + $0xff0] sm:$0xff] }
 0x162   : > { %v5915_v60 = vcombine.high %v973_v35, %v977_v57  ;;  %v837_v61 = vld [vmem:[%s8481_s0 + $0xb90] sm:$0xff]  ;;  %v5914_v3 = vcombine.low %v973_v35, %v977_v57 }
 0x163   : > { %4024 = vmatpush1.bf16.msra.mxu0 %v5706_v2  ;;  %4065 = vmatpush1.bf16.msra.mxu1 %v5834_v4  ;;  %v841_v63 = vld [vmem:[%s8481_s0 + $0xbb0] sm:$0xff]  ;;  %v5786_v2 = vcombine.low %v845_v51, %v849_v54 }
 0x164   : > { %4025 = vmatprep.subr.bf16.mxu0 %v5699_v7  ;;  %4066 = vmatprep.subr.bf16.mxu1 %v5827_v11  ;;  %v965_v15 = vld [vmem:[%s8481_s0 + $0xf90] sm:$0xff]  ;;  %v5779_v4 = vcombine.high %v837_v61, %v841_v63  ;;  %v5778_v14 = vcombine.low %v837_v61, %v841_v63 }
 0x165   : > { %v969_v1 = vld [vmem:[%s8481_s0 + $0xfb0] sm:$0xff] }
 0x166   : > { %v5907_v7 = vcombine.high %v965_v15, %v969_v1  ;;  %v829_v10 = vld [vmem:[%s8481_s0 + $0xb50] sm:$0xff]  ;;  %v5906_v52 = vcombine.low %v965_v15, %v969_v1 }
 0x167   : > { %4026 = vmatpush1.bf16.msra.mxu0 %v5698_v55  ;;  %4067 = vmatpush1.bf16.msra.mxu1 %v5826_v16  ;;  %v833_v11 = vld [vmem:[%s8481_s0 + $0xb70] sm:$0xff]  ;;  %v5899_v16 = vcombine.high %v957_v12, %v961_v13  ;;  %v991_v13 = vsub.s32 2, %v7213_v26 }
 0x168   : > { %4027 = vmatprep.subr.bf16.mxu0 %v5691_v17  ;;  %4068 = vmatprep.subr.bf16.mxu1 %v5819_v18  ;;  %v5771_v55 = vcombine.high %v829_v10, %v833_v11  ;;  %v821_v17 = vld [vmem:[%s8481_s0 + $0xb10] sm:$0xff]  ;;  %v5770_v21 = vcombine.low %v829_v10, %v833_v11  ;;  %v654_v10 = vld [vmem:[%s8481_s0 + $0x5d8] sm:$0xff] }
 0x169   : > { %v825_v18 = vld [vmem:[%s8481_s0 + $0xb30] sm:$0xff]  ;;  %v658_v11 = vld [vmem:[%s8481_s0 + $0x5f8] sm:$0xff] }
 0x16a   : > { %v949_v19 = vld [vmem:[%s8481_s0 + $0xf10] sm:$0xff]  ;;  %v5762_v30 = vcombine.low %v821_v17, %v825_v18 }
 0x16b   : > { %4028 = vmatpush1.bf16.msra.mxu0 %v5690_v23  ;;  %4069 = vmatpush1.bf16.msra.mxu1 %v5818_v24  ;;  %v953_v20 = vld [vmem:[%s8481_s0 + $0xf30] sm:$0xff]  ;;  %v5763_v23 = vcombine.high %v821_v17, %v825_v18  ;;  %v518_v17 = vld [vmem:[%s8481_s0 + $0x198] sm:$0xff] }
 0x16c   : > { %4029 = vmatprep.subr.bf16.mxu0 %v5683_v25  ;;  %4070 = vmatprep.subr.bf16.mxu1 %v5811_v27  ;;  %v5891_v24 = vcombine.high %v949_v19, %v953_v20  ;;  %v813_v25 = vld [vmem:[%s8481_s0 + $0xad0] sm:$0xff]  ;;  %v5890_v31 = vcombine.low %v949_v19, %v953_v20  ;;  %v522_v18 = vld [vmem:[%s8481_s0 + $0x1b8] sm:$0xff] }
 0x16d   : > { %v817_v27 = vld [vmem:[%s8481_s0 + $0xaf0] sm:$0xff]  ;;  %v646_v19 = vld [vmem:[%s8481_s0 + $0x598] sm:$0xff] }
 0x16e   : > { %v941_v28 = vld [vmem:[%s8481_s0 + $0xed0] sm:$0xff]  ;;  %v5754_v43 = vcombine.low %v813_v25, %v817_v27  ;;  %v650_v20 = vld [vmem:[%s8481_s0 + $0x5b8] sm:$0xff] }
 0x16f   : > { %4030 = vmatpush1.bf16.msra.mxu0 %v5682_v6  ;;  %4071 = vmatpush1.bf16.msra.mxu1 %v5810_v32  ;;  %v945_v29 = vld [vmem:[%s8481_s0 + $0xef0] sm:$0xff]  ;;  %v5755_v6 = vcombine.high %v813_v25, %v817_v27  ;;  %v5589_v27 = vcombine.high %v646_v19, %v650_v20 }
 0x170   : > { %4031 = vmatprep.subr.bf16.mxu0 %v5675_v33  ;;  %4072 = vmatprep.subr.bf16.mxu1 %v5803_v36  ;;  %v5883_v32 = vcombine.high %v941_v28, %v945_v29  ;;  %v805_v33 = vld [vmem:[%s8481_s0 + $0xa90] sm:$0xff]  ;;  %v5882_v45 = vcombine.low %v941_v28, %v945_v29  ;;  %v510_v28 = vld [vmem:[%s8481_s0 + $0x158] sm:$0xff] }
 0x171   : > { %v809_v36 = vld [vmem:[%s8481_s0 + $0xab0] sm:$0xff]  ;;  %v514_v29 = vld [vmem:[%s8481_s0 + $0x178] sm:$0xff] }
 0x172   : > { %v933_v39 = vld [vmem:[%s8481_s0 + $0xe90] sm:$0xff]  ;;  %v5746_v35 = vcombine.low %v805_v33, %v809_v36 }
 0x173   : > { %4032 = vmatpush1.bf16.msra.mxu0 %v5674_v46  ;;  %4073 = vmatpush1.bf16.msra.mxu1 %v5802_v47  ;;  %v937_v41 = vld [vmem:[%s8481_s0 + $0xeb0] sm:$0xff]  ;;  %v5747_v46 = vcombine.high %v805_v33, %v809_v36  ;;  %v5460_v33 = vcombine.low %v518_v17, %v522_v18 }
 0x174   : > { %4033 = vmatprep.subr.bf16.mxu0 %v5667_v48  ;;  %4074 = vmatprep.subr.bf16.mxu1 %v5795_v50  ;;  %v5875_v47 = vcombine.high %v933_v39, %v937_v41  ;;  %v797_v48 = vld [vmem:[%s8481_s0 + $0xa50] sm:$0xff]  ;;  %v5874_v57 = vcombine.low %v933_v39, %v937_v41  ;;  %v5588_v39 = vcombine.low %v646_v19, %v650_v20  ;;  %v482_v19 = vld [vmem:[%s8481_s0 + $0x78] sm:$0xff] }
 0x175   : > { %v801_v50 = vld [vmem:[%s8481_s0 + $0xa70] sm:$0xff]  ;;  %v5453_v41 = vcombine.high %v510_v28, %v514_v29  ;;  %v606_v20 = vld [vmem:[%s8481_s0 + $0x458] sm:$0xff] }
 0x176   : > { %v925_v51 = vld [vmem:[%s8481_s0 + $0xe50] sm:$0xff]  ;;  %v5738_v15 = vcombine.low %v797_v48, %v801_v50 }
 0x177   : > { %4034 = vmatpush1.bf16.msra.mxu0 %v5666_v58  ;;  %4075 = vmatpush1.bf16.msra.mxu1 %v5794_v59  ;;  %v929_v54 = vld [vmem:[%s8481_s0 + $0xe70] sm:$0xff]  ;;  %v5739_v58 = vcombine.high %v797_v48, %v801_v50  ;;  %v502_v48 = vld [vmem:[%s8481_s0 + $0x118] sm:$0xff] }
 0x178   : > { %4035 = vmatprep.subr.bf16.mxu0 %v5787_v5  ;;  %4076 = vmatprep.subr.bf16.mxu1 %v5915_v60  ;;  %v5867_v59 = vcombine.high %v925_v51, %v929_v54  ;;  %v789_v5 = vld [vmem:[%s8481_s0 + $0xa10] sm:$0xff]  ;;  %v5866_v1 = vcombine.low %v925_v51, %v929_v54  ;;  %v506_v50 = vld [vmem:[%s8481_s0 + $0x138] sm:$0xff] }
 0x179   : > { %v793_v60 = vld [vmem:[%s8481_s0 + $0xa30] sm:$0xff]  ;;  %v630_v54 = vld [vmem:[%s8481_s0 + $0x518] sm:$0xff] }
 0x17a   : > { %v917_v61 = vld [vmem:[%s8481_s0 + $0xe10] sm:$0xff]  ;;  %v5730_v12 = vcombine.low %v789_v5, %v793_v60 }
 0x17b   : > { %4036 = vmatpush2.bf16.msra.mxu0 %v5786_v2  ;;  %4077 = vmatpush2.bf16.msra.mxu1 %v5914_v3  ;;  %v921_v63 = vld [vmem:[%s8481_s0 + $0xe30] sm:$0xff]  ;;  %v5731_v2 = vcombine.high %v789_v5, %v793_v60  ;;  %v5445_v60 = vcombine.high %v502_v48, %v506_v50 }
 0x17c   : > { %4037 = vmatprep.subr.bf16.mxu0 %v5779_v4  ;;  %4078 = vmatprep.subr.bf16.mxu1 %v5907_v7  ;;  %v5859_v3 = vcombine.high %v917_v61, %v921_v63  ;;  %v526_v4 = vld [vmem:[%s8481_s0 + $0x1d8] sm:$0xff] }
 0x17d   : > { %v530_v7 = vld [vmem:[%s8481_s0 + $0x1f8] sm:$0xff] }
 0x17f   : > { %4038 = vmatpush2.bf16.msra.mxu0 %v5778_v14  ;;  %4079 = vmatpush2.bf16.msra.mxu1 %v5906_v52  ;;  %v5858_v14 = vcombine.low %v917_v61, %v921_v63  ;;  %v5469_v52 = vcombine.high %v526_v4, %v530_v7 }
 0x180   : > { %4039 = vmatprep.subr.bf16.mxu0 %v5771_v55  ;;  %4080 = vmatprep.subr.bf16.mxu1 %v5899_v16  ;;  %v5597_v55 = vcombine.high %v654_v10, %v658_v11  ;;  %v995_v16 = vsub.s32 3, %v7213_v26 }
 0x182   : > { %v996_v25 = vrot.slane %v7231_v38, %v995_v16 }
 0x183   : > { %4040 = vmatpush2.bf16.msra.mxu0 %v5770_v21  ;;  %4081 = vmatpush2.bf16.msra.mxu1 %v5898_v22  ;;  %v992_v21 = vrot.slane %v7231_v38, %v991_v13  ;;  %v5468_v22 = vcombine.low %v526_v4, %v530_v7  ;;  %v642_v38 = vld [vmem:[%s8481_s0 + $0x578] sm:$0xff] }
 0x184   : > { %4041 = vmatprep.subr.bf16.mxu0 %v5763_v23  ;;  %4082 = vmatprep.subr.bf16.mxu1 %v5891_v24  ;;  %v5596_v23 = vcombine.low %v654_v10, %v658_v11  ;;  %v5461_v24 = vcombine.high %v518_v17, %v522_v18  ;;  %v486_v11 = vld [vmem:[%s8481_s0 + $0x98] sm:$0xff] }
 0x185   : > { %v614_v13 = vld [vmem:[%s8481_s0 + $0x498] sm:$0xff] }
 0x186   : > { %v478_v18 = vld [vmem:[%s8481_s0 + $0x58] sm:$0xff] }
 0x187   : > { %4042 = vmatpush2.bf16.msra.mxu0 %v5762_v30  ;;  %4083 = vmatpush2.bf16.msra.mxu1 %v5890_v31  ;;  %v638_v31 = vld [vmem:[%s8481_s0 + $0x558] sm:$0xff] }
 0x188   : > { %4043 = vmatprep.subr.bf16.mxu0 %v5755_v6  ;;  %4084 = vmatprep.subr.bf16.mxu1 %v5883_v32 }
 0x18b   : > { %4044 = vmatpush2.bf16.msra.mxu0 %v5754_v43  ;;  %4085 = vmatpush2.bf16.msra.mxu1 %v5882_v45 }
 0x18c   : > { %4045 = vmatprep.subr.bf16.mxu0 %v5747_v46  ;;  %4086 = vmatprep.subr.bf16.mxu1 %v5875_v47  ;;  %v5581_v47 = vcombine.high %v638_v31, %v642_v38 }
 0x18f   : > { %4046 = vmatpush2.bf16.msra.mxu0 %v5746_v35  ;;  %4087 = vmatpush2.bf16.msra.mxu1 %v5874_v57  ;;  %v634_v35 = vld [vmem:[%s8481_s0 + $0x538] sm:$0xff] }
 0x190   : > { %4047 = vmatprep.subr.bf16.mxu0 %v5739_v58  ;;  %4088 = vmatprep.subr.bf16.mxu1 %v5867_v59  ;;  %v5452_v59 = vcombine.low %v510_v28, %v514_v29  ;;  %v5573_v63 = vcombine.high %v630_v54, %v634_v35  ;;  %v5572_v4 = vcombine.low %v630_v54, %v634_v35  ;;  %v474_v28 = vld [vmem:[%s8481_s0 + $0x38] sm:$0xff] }
 0x191   : > { %v598_v29 = vld [vmem:[%s8481_s0 + $0x418] sm:$0xff] }
 0x192   : > { %v710_v54 = vld [vmem:[%s8481_s0 + $0x798] sm:$0xff] }
 0x193   : > { %4048 = vmatpush2.bf16.msra.mxu0 %v5738_v15  ;;  %4089 = vmatpush2.bf16.msra.mxu1 %v5866_v1  ;;  %v494_v15 = vld [vmem:[%s8481_s0 + $0xd8] sm:$0xff] }
 0x194   : > { %4049 = vmatprep.subr.bf16.mxu0 %v5731_v2  ;;  %4090 = vmatprep.subr.bf16.mxu1 %v5859_v3  ;;  %v622_v1 = vld [vmem:[%s8481_s0 + $0x4d8] sm:$0xff]  ;;  %v5444_v3 = vcombine.low %v502_v48, %v506_v50 }
 0x195   : > { %v626_v2 = vld [vmem:[%s8481_s0 + $0x4f8] sm:$0xff] }
 0x196   : > { %v5565_v10 = vcombine.high %v622_v1, %v626_v2  ;;  %v582_v50 = vld [vmem:[%s8481_s0 + $0x398] sm:$0xff] }
 0x197   : > { %4050 = vmatpush2.bf16.msra.mxu0 %v5730_v12  ;;  %4091 = vmatpush2.bf16.msra.mxu1 %v5858_v14  ;;  %v490_v12 = vld [vmem:[%s8481_s0 + $0xb8] sm:$0xff] }
 0x198   : > { %4101 = vmatprep.subr.bf16.mxu0 %v5469_v52  ;;  %4142 = vmatprep.subr.bf16.mxu1 %v5597_v55  ;;  %v618_v14 = vld [vmem:[%s8481_s0 + $0x4b8] sm:$0xff]  ;;  %v5564_v55 = vcombine.low %v622_v1, %v626_v2  ;;  %v5429_v16 = vcombine.high %v486_v11, %v490_v12 }
 0x199   : > { %v5557_v17 = vcombine.high %v614_v13, %v618_v14  ;;  %v714_v35 = vld [vmem:[%s8481_s0 + $0x7b8] sm:$0xff] }
 0x19a   : > { %v3807_v30 = vpop.f32.mrf.mxu0  ;;  %4052 = vmatmul.mubr.bf16.vlgmr.msra.gmra.mxu0 %v6839_v8  ;;  %v3848_v32 = vpop.f32.mrf.mxu1  ;;  %4093 = vmatmul.mubr.bf16.vlgmr.msra.gmra.mxu1 %v6843_v9  ;;  %v5652_v1 = vcombine.low %v710_v54, %v714_v35 }
 0x19b   : > { %v3808_v6 = vadd.f32 %v3807_v30, %v992_v21  ;;  %4102 = vmatpush1.bf16.msra.mxu0 %v5468_v22  ;;  %4143 = vmatpush1.bf16.msra.mxu1 %v5596_v23  ;;  %v610_v21 = vld [vmem:[%s8481_s0 + $0x478] sm:$0xff]  ;;  %v5428_v22 = vcombine.low %v486_v11, %v490_v12  ;;  %v5556_v23 = vcombine.low %v614_v13, %v618_v14 }
 0x19c   : > { %v3809_v36 = vpop.f32.mrf.mxu0  ;;  %4103 = vmatprep.subr.bf16.mxu0 %v5461_v24  ;;  %v3850_v46 = vpop.f32.mrf.mxu1  ;;  %4144 = vmatprep.subr.bf16.mxu1 %v5589_v27  ;;  %v5421_v24 = vcombine.high %v478_v18, %v482_v19  ;;  %v470_v27 = vld [vmem:[%s8481_s0 + $0x18] sm:$0xff] }
 0x19d   : > { %v7672_v43 = vadd.f32 %v3848_v32, %v3808_v6  ;;  %v3810_v45 = vadd.f32 %v3809_v36, %v996_v25  ;;  %4133 = vmatprep.mubr.bf16.mxu0 %v6507_v37  ;;  %4174 = vmatprep.mubr.bf16.mxu1 %v6520_v44  ;;  %v5580_v37 = vcombine.low %v638_v31, %v642_v38  ;;  %v498_v44 = vld [vmem:[%s8481_s0 + $0xf8] sm:$0xff] }
 0x19e   : > { %v3811_v51 = vpop.f32.mrf.mxu0  ;;  %v3852_v58 = vpop.f32.mrf.mxu1  ;;  %v5437_v7 = vcombine.high %v494_v15, %v498_v44  ;;  %v5436_v52 = vcombine.low %v494_v15, %v498_v44  ;;  %v5549_v25 = vcombine.high %v606_v20, %v610_v21  ;;  %v602_v30 = vld [vmem:[%s8481_s0 + $0x438] sm:$0xff]  ;;  %v5420_v31 = vcombine.low %v478_v18, %v482_v19 }
 0x19f   : > { %v7688_v57 = vadd.f32 %v3850_v46, %v3810_v45  ;;  %4104 = vmatpush1.bf16.msra.mxu0 %v5460_v33  ;;  %4145 = vmatpush1.bf16.msra.mxu1 %v5588_v39  ;;  %v5548_v38 = vcombine.low %v606_v20, %v610_v21  ;;  %v5413_v6 = vcombine.high %v470_v27, %v474_v28  ;;  %v590_v33 = vld [vmem:[%s8481_s0 + $0x3d8] sm:$0xff] }
 0x1a0   : > { %v3812_v5 = vpop.f32.mrf.mxu0  ;;  %4105 = vmatprep.subr.bf16.mxu0 %v5453_v41  ;;  %v3853_v61 = vpop.f32.mrf.mxu1  ;;  %4146 = vmatprep.subr.bf16.mxu1 %v5581_v47  ;;  %v5541_v32 = vcombine.high %v598_v29, %v602_v30  ;;  %v594_v36 = vld [vmem:[%s8481_s0 + $0x3f8] sm:$0xff]  ;;  %v5412_v45 = vcombine.low %v470_v27, %v474_v28  ;;  %v5540_v46 = vcombine.low %v598_v29, %v602_v30 }
 0x1a1   : > { %v718_v39 = vld [vmem:[%s8481_s0 + $0x7d8] sm:$0xff]  ;;  %v5533_v47 = vcombine.high %v590_v33, %v594_v36  ;;  %v5532_v58 = vcombine.low %v590_v33, %v594_v36 }
 0x1a2   : > { %v722_v41 = vld [vmem:[%s8481_s0 + $0x7f8] sm:$0xff] }
 0x1a3   : > { %4106 = vmatpush1.bf16.msra.mxu0 %v5452_v59  ;;  %4147 = vmatpush1.bf16.msra.mxu1 %v5580_v37  ;;  %v5661_v48 = vcombine.high %v718_v39, %v722_v41  ;;  %v586_v51 = vld [vmem:[%s8481_s0 + $0x3b8] sm:$0xff]  ;;  %v5660_v59 = vcombine.low %v718_v39, %v722_v41  ;;  %v5653_v37 = vcombine.high %v710_v54, %v714_v35 }
 0x1a4   : > { %4107 = vmatprep.subr.bf16.mxu0 %v5445_v60  ;;  %4148 = vmatprep.subr.bf16.mxu1 %v5573_v63  ;;  %v5525_v5 = vcombine.high %v582_v50, %v586_v51  ;;  %v574_v60 = vld [vmem:[%s8481_s0 + $0x358] sm:$0xff]  ;;  %v5524_v44 = vcombine.low %v582_v50, %v586_v51 }
 0x1a5   : > { %v578_v61 = vld [vmem:[%s8481_s0 + $0x378] sm:$0xff] }
 0x1a6   : > { %v702_v63 = vld [vmem:[%s8481_s0 + $0x758] sm:$0xff]  ;;  %v5517_v2 = vcombine.high %v574_v60, %v578_v61  ;;  %v5516_v12 = vcombine.low %v574_v60, %v578_v61 }
 0x1a7   : > { %4108 = vmatpush1.bf16.msra.mxu0 %v5444_v3  ;;  %4149 = vmatpush1.bf16.msra.mxu1 %v5572_v4  ;;  %v706_v15 = vld [vmem:[%s8481_s0 + $0x778] sm:$0xff] }
 0x1a8   : > { %4109 = vmatprep.subr.bf16.mxu0 %v5437_v7  ;;  %4150 = vmatprep.subr.bf16.mxu1 %v5565_v10  ;;  %v5645_v3 = vcombine.high %v702_v63, %v706_v15  ;;  %v566_v4 = vld [vmem:[%s8481_s0 + $0x318] sm:$0xff]  ;;  %v5644_v13 = vcombine.low %v702_v63, %v706_v15 }
 0x1a9   : > { %v570_v7 = vld [vmem:[%s8481_s0 + $0x338] sm:$0xff] }
 0x1aa   : > { %v694_v10 = vld [vmem:[%s8481_s0 + $0x718] sm:$0xff]  ;;  %v5509_v14 = vcombine.high %v566_v4, %v570_v7  ;;  %v5508_v19 = vcombine.low %v566_v4, %v570_v7 }
 0x1ab   : > { %4110 = vmatpush1.bf16.msra.mxu0 %v5436_v52  ;;  %4151 = vmatpush1.bf16.msra.mxu1 %v5564_v55  ;;  %v698_v11 = vld [vmem:[%s8481_s0 + $0x738] sm:$0xff] }
 0x1ac   : > { %4111 = vmatprep.subr.bf16.mxu0 %v5429_v16  ;;  %4152 = vmatprep.subr.bf16.mxu1 %v5557_v17  ;;  %v5637_v52 = vcombine.high %v694_v10, %v698_v11  ;;  %v558_v55 = vld [vmem:[%s8481_s0 + $0x2d8] sm:$0xff]  ;;  %v5636_v20 = vcombine.low %v694_v10, %v698_v11 }
 0x1ad   : > { %v562_v16 = vld [vmem:[%s8481_s0 + $0x2f8] sm:$0xff] }
 0x1ae   : > { %v686_v17 = vld [vmem:[%s8481_s0 + $0x6d8] sm:$0xff]  ;;  %v5501_v21 = vcombine.high %v558_v55, %v562_v16  ;;  %v5500_v28 = vcombine.low %v558_v55, %v562_v16 }
 0x1af   : > { %4112 = vmatpush1.bf16.msra.mxu0 %v5428_v22  ;;  %4153 = vmatpush1.bf16.msra.mxu1 %v5556_v23  ;;  %v690_v18 = vld [vmem:[%s8481_s0 + $0x6f8] sm:$0xff] }
 0x1b0   : > { %4113 = vmatprep.subr.bf16.mxu0 %v5421_v24  ;;  %4154 = vmatprep.subr.bf16.mxu1 %v5549_v25  ;;  %v5629_v22 = vcombine.high %v686_v17, %v690_v18  ;;  %v550_v23 = vld [vmem:[%s8481_s0 + $0x298] sm:$0xff]  ;;  %v5628_v29 = vcombine.low %v686_v17, %v690_v18 }
 0x1b1   : > { %v554_v24 = vld [vmem:[%s8481_s0 + $0x2b8] sm:$0xff] }
 0x1b2   : > { %v678_v25 = vld [vmem:[%s8481_s0 + $0x698] sm:$0xff]  ;;  %v5493_v30 = vcombine.high %v550_v23, %v554_v24  ;;  %v5492_v36 = vcombine.low %v550_v23, %v554_v24 }
 0x1b3   : > { %4114 = vmatpush1.bf16.msra.mxu0 %v5420_v31  ;;  %4155 = vmatpush1.bf16.msra.mxu1 %v5548_v38  ;;  %v682_v27 = vld [vmem:[%s8481_s0 + $0x6b8] sm:$0xff] }
 0x1b4   : > { %4115 = vmatprep.subr.bf16.mxu0 %v5413_v6  ;;  %4156 = vmatprep.subr.bf16.mxu1 %v5541_v32  ;;  %v5621_v31 = vcombine.high %v678_v25, %v682_v27  ;;  %v542_v38 = vld [vmem:[%s8481_s0 + $0x258] sm:$0xff]  ;;  %v5620_v39 = vcombine.low %v678_v25, %v682_v27 }
 0x1b5   : > { %v546_v6 = vld [vmem:[%s8481_s0 + $0x278] sm:$0xff] }
 0x1b6   : > { %v670_v32 = vld [vmem:[%s8481_s0 + $0x658] sm:$0xff]  ;;  %v5485_v41 = vcombine.high %v542_v38, %v546_v6  ;;  %v5484_v51 = vcombine.low %v542_v38, %v546_v6 }
 0x1b7   : > { %4116 = vmatpush1.bf16.msra.mxu0 %v5412_v45  ;;  %4157 = vmatpush1.bf16.msra.mxu1 %v5540_v46  ;;  %v674_v33 = vld [vmem:[%s8481_s0 + $0x678] sm:$0xff] }
 0x1b8   : > { %4117 = vmatprep.subr.bf16.mxu0 %v5533_v47  ;;  %4158 = vmatprep.subr.bf16.mxu1 %v5661_v48  ;;  %v5613_v45 = vcombine.high %v670_v32, %v674_v33  ;;  %v534_v46 = vld [vmem:[%s8481_s0 + $0x218] sm:$0xff]  ;;  %v5612_v54 = vcombine.low %v670_v32, %v674_v33 }
 0x1b9   : > { %v538_v47 = vld [vmem:[%s8481_s0 + $0x238] sm:$0xff] }
 0x1ba   : > { %v662_v48 = vld [vmem:[%s8481_s0 + $0x618] sm:$0xff]  ;;  %v5477_v35 = vcombine.high %v534_v46, %v538_v47  ;;  %v5476_v61 = vcombine.low %v534_v46, %v538_v47 }
 0x1bb   : > { %4118 = vmatpush2.bf16.msra.mxu0 %v5532_v58  ;;  %4159 = vmatpush2.bf16.msra.mxu1 %v5660_v59  ;;  %v666_v50 = vld [vmem:[%s8481_s0 + $0x638] sm:$0xff] }
 0x1bc   : > { %4119 = vmatprep.subr.bf16.mxu0 %v5525_v5  ;;  %4160 = vmatprep.subr.bf16.mxu1 %v5653_v37  ;;  %v5605_v58 = vcombine.high %v662_v48, %v666_v50  ;;  %v782_v59 = vld [vmem:[%s8481_s0 + $0x9d8] sm:$0xff]  ;;  %v5604_v63 = vcombine.low %v662_v48, %v666_v50 }
 0x1bd   : > { %v786_v5 = vld [vmem:[%s8481_s0 + $0x9f8] sm:$0xff] }
 0x1be   : > { %v910_v37 = vld [vmem:[%s8481_s0 + $0xdd8] sm:$0xff]  ;;  %v5725_v15 = vcombine.high %v782_v59, %v786_v5  ;;  %v5724_v7 = vcombine.low %v782_v59, %v786_v5 }
 0x1bf   : > { %4120 = vmatpush2.bf16.msra.mxu0 %v5524_v44  ;;  %4161 = vmatpush2.bf16.msra.mxu1 %v5652_v1  ;;  %v914_v60 = vld [vmem:[%s8481_s0 + $0xdf8] sm:$0xff] }
 0x1c0   : > { %4121 = vmatprep.subr.bf16.mxu0 %v5517_v2  ;;  %4162 = vmatprep.subr.bf16.mxu1 %v5645_v3  ;;  %v5853_v44 = vcombine.high %v910_v37, %v914_v60  ;;  %v774_v1 = vld [vmem:[%s8481_s0 + $0x998] sm:$0xff]  ;;  %v5852_v10 = vcombine.low %v910_v37, %v914_v60 }
 0x1c1   : > { %v778_v2 = vld [vmem:[%s8481_s0 + $0x9b8] sm:$0xff] }
 0x1c2   : > { %v902_v3 = vld [vmem:[%s8481_s0 + $0xd98] sm:$0xff]  ;;  %v5717_v11 = vcombine.high %v774_v1, %v778_v2 }
 0x1c3   : > { %4122 = vmatpush2.bf16.msra.mxu0 %v5516_v12  ;;  %4163 = vmatpush2.bf16.msra.mxu1 %v5644_v13  ;;  %v906_v4 = vld [vmem:[%s8481_s0 + $0xdb8] sm:$0xff] }
 0x1c4   : > { %4123 = vmatprep.subr.bf16.mxu0 %v5509_v14  ;;  %4164 = vmatprep.subr.bf16.mxu1 %v5637_v52  ;;  %v5845_v12 = vcombine.high %v902_v3, %v906_v4  ;;  %v766_v13 = vld [vmem:[%s8481_s0 + $0x958] sm:$0xff] }
 0x1c5   : > { %v770_v14 = vld [vmem:[%s8481_s0 + $0x978] sm:$0xff] }
 0x1c6   : > { %v894_v55 = vld [vmem:[%s8481_s0 + $0xd58] sm:$0xff] }
 0x1c7   : > { %4124 = vmatpush2.bf16.msra.mxu0 %v5508_v19  ;;  %4165 = vmatpush2.bf16.msra.mxu1 %v5636_v20  ;;  %v898_v16 = vld [vmem:[%s8481_s0 + $0xd78] sm:$0xff]  ;;  %v5716_v19 = vcombine.low %v774_v1, %v778_v2 }
 0x1c8   : > { %4125 = vmatprep.subr.bf16.mxu0 %v5501_v21  ;;  %4166 = vmatprep.subr.bf16.mxu1 %v5629_v22  ;;  %v5709_v21 = vcombine.high %v766_v13, %v770_v14  ;;  %v5837_v24 = vcombine.high %v894_v55, %v898_v16  ;;  %v886_v27 = vld [vmem:[%s8481_s0 + $0xd18] sm:$0xff]  ;;  %v5836_v38 = vcombine.low %v894_v55, %v898_v16 }
 0x1c9   : > { %v750_v33 = vld [vmem:[%s8481_s0 + $0x8d8] sm:$0xff] }
 0x1ca   : > { %v742_v48 = vld [vmem:[%s8481_s0 + $0x898] sm:$0xff] }
 0x1cb   : > { %4126 = vmatpush2.bf16.msra.mxu0 %v5500_v28  ;;  %4167 = vmatpush2.bf16.msra.mxu1 %v5628_v29  ;;  %v890_v28 = vld [vmem:[%s8481_s0 + $0xd38] sm:$0xff] }
 0x1cc   : > { %4127 = vmatprep.subr.bf16.mxu0 %v5493_v30  ;;  %4168 = vmatprep.subr.bf16.mxu1 %v5621_v31  ;;  %v5708_v30 = vcombine.low %v766_v13, %v770_v14  ;;  %v5829_v32 = vcombine.high %v886_v27, %v890_v28  ;;  %v746_v50 = vld [vmem:[%s8481_s0 + $0x8b8] sm:$0xff] }
 0x1cd   : > { %v5685_v59 = vcombine.high %v742_v48, %v746_v50  ;;  %v734_v37 = vld [vmem:[%s8481_s0 + $0x858] sm:$0xff] }
 0x1ce   : > { %v738_v60 = vld [vmem:[%s8481_s0 + $0x878] sm:$0xff] }
 0x1cf   : > { %4128 = vmatpush2.bf16.msra.mxu0 %v5492_v36  ;;  %4169 = vmatpush2.bf16.msra.mxu1 %v5620_v39  ;;  %v754_v36 = vld [vmem:[%s8481_s0 + $0x8f8] sm:$0xff]  ;;  %v5677_v1 = vcombine.high %v734_v37, %v738_v60 }
 0x1d0   : > { %4129 = vmatprep.subr.bf16.mxu0 %v5485_v41  ;;  %4170 = vmatprep.subr.bf16.mxu1 %v5613_v45  ;;  %v882_v39 = vld [vmem:[%s8481_s0 + $0xcf8] sm:$0xff]  ;;  %v5828_v45 = vcombine.low %v886_v27, %v890_v28  ;;  %v5693_v46 = vcombine.high %v750_v33, %v754_v36 }
 0x1d1   : > { %v850_v55 = vld [vmem:[%s8481_s0 + $0xbf8] sm:$0xff] }
 0x1d2   : > { %v974_v16 = vld [vmem:[%s8481_s0 + $0xfd8] sm:$0xff] }
 0x1d3   : > { %4130 = vmatpush2.bf16.msra.mxu0 %v5484_v51  ;;  %4171 = vmatpush2.bf16.msra.mxu1 %v5612_v54  ;;  %v870_v51 = vld [vmem:[%s8481_s0 + $0xc98] sm:$0xff] }
 0x1d4   : > { %4131 = vmatprep.subr.bf16.mxu0 %v5477_v35  ;;  %4172 = vmatprep.subr.bf16.mxu1 %v5605_v58  ;;  %v874_v54 = vld [vmem:[%s8481_s0 + $0xcb8] sm:$0xff]  ;;  %v5692_v35 = vcombine.low %v750_v33, %v754_v36 }
 0x1d5   : > { %v5813_v5 = vcombine.high %v870_v51, %v874_v54 }
 0x1d7   : > { %4132 = vmatpush2.bf16.msra.mxu0 %v5476_v61  ;;  %4173 = vmatpush2.bf16.msra.mxu1 %v5604_v63  ;;  %v862_v61 = vld [vmem:[%s8481_s0 + $0xc58] sm:$0xff] }
 0x1d8   : > { %4183 = vmatprep.subr.bf16.mxu0 %v5725_v15  ;;  %4224 = vmatprep.subr.bf16.mxu1 %v5853_v44  ;;  %v866_v63 = vld [vmem:[%s8481_s0 + $0xc78] sm:$0xff]  ;;  %v5684_v15 = vcombine.low %v742_v48, %v746_v50  ;;  %v5812_v44 = vcombine.low %v870_v51, %v874_v54 }
 0x1d9   : > { %v5805_v2 = vcombine.high %v862_v61, %v866_v63  ;;  %v814_v54 = vld [vmem:[%s8481_s0 + $0xad8] sm:$0xff] }
 0x1da   : > { %v3889_v52 = vpop.f32.mrf.mxu0  ;;  %4134 = vmatmul.mubr.bf16.vlgmr.msra.gmra.mxu0 %v6617_v49  ;;  %v3930_v18 = vpop.f32.mrf.mxu1  ;;  %4175 = vmatmul.mubr.bf16.vlgmr.msra.gmra.mxu1 %v6629_v53  ;;  %v5844_v49 = vcombine.low %v902_v3, %v906_v4  ;;  %v762_v53 = vld [vmem:[%s8481_s0 + $0x938] sm:$0xff] }
 0x1db   : > { %v3890_v17 = vadd.f32 %v3889_v52, %v7672_v43  ;;  %4184 = vmatpush1.bf16.msra.mxu0 %v5724_v7  ;;  %4225 = vmatpush1.bf16.msra.mxu1 %v5852_v10  ;;  %v758_v43 = vld [vmem:[%s8481_s0 + $0x918] sm:$0xff] }
 0x1dc   : > { %v7873_v20 = vpop.f32.mrf.mxu0  ;;  %4185 = vmatprep.subr.bf16.mxu0 %v5717_v11  ;;  %v7877_v23 = vpop.f32.mrf.mxu1  ;;  %4226 = vmatprep.subr.bf16.mxu1 %v5845_v12  ;;  %v5701_v6 = vcombine.high %v758_v43, %v762_v53  ;;  %v5700_v41 = vcombine.low %v758_v43, %v762_v53  ;;  %v726_v3 = vld [vmem:[%s8481_s0 + $0x818] sm:$0xff]  ;;  %v5676_v11 = vcombine.low %v734_v37, %v738_v60 }
 0x1dd   : > { %v7875_v22 = vadd.f32 %v3930_v18, %v3890_v17  ;;  %4215 = vmatprep.mubr.bf16.mxu0 %v6641_v40  ;;  %4256 = vmatprep.mubr.bf16.mxu1 %v6652_v62  ;;  %v878_v62 = vld [vmem:[%s8481_s0 + $0xcd8] sm:$0xff]  ;;  %v5804_v12 = vcombine.low %v862_v61, %v866_v63 }
 0x1de   : > { %v3893_v25 = vpop.f32.mrf.mxu0  ;;  %v3934_v29 = vpop.f32.mrf.mxu1  ;;  %v5821_v47 = vcombine.high %v878_v62, %v882_v39  ;;  %v5820_v58 = vcombine.low %v878_v62, %v882_v39  ;;  %v730_v4 = vld [vmem:[%s8481_s0 + $0x838] sm:$0xff] }
 0x1df   : > { %4186 = vmatpush1.bf16.msra.mxu0 %v5716_v19  ;;  %4227 = vmatpush1.bf16.msra.mxu1 %v5844_v49  ;;  %v854_v7 = vld [vmem:[%s8481_s0 + $0xc18] sm:$0xff]  ;;  %v5669_v13 = vcombine.high %v726_v3, %v730_v4  ;;  %v5668_v18 = vcombine.low %v726_v3, %v730_v4 }
 0x1e0   : > { %v3894_v31 = vpop.f32.mrf.mxu0  ;;  %4187 = vmatprep.subr.bf16.mxu0 %v5709_v21  ;;  %v3935_v40 = vpop.f32.mrf.mxu1  ;;  %4228 = vmatprep.subr.bf16.mxu1 %v5837_v24  ;;  %v858_v10 = vld [vmem:[%s8481_s0 + $0xc38] sm:$0xff] }
 0x1e1   : > { %v5797_v14 = vcombine.high %v854_v7, %v858_v10  ;;  %v846_v52 = vld [vmem:[%s8481_s0 + $0xbd8] sm:$0xff]  ;;  %v5796_v19 = vcombine.low %v854_v7, %v858_v10 }
 0x1e2   : > { %v978_v17 = vld [vmem:[%s8481_s0 + $0xff8] sm:$0xff]  ;;  %v5789_v49 = vcombine.high %v846_v52, %v850_v55  ;;  %v5788_v27 = vcombine.low %v846_v52, %v850_v55 }
 0x1e3   : > { %4188 = vmatpush1.bf16.msra.mxu0 %v5708_v30  ;;  %4229 = vmatpush1.bf16.msra.mxu1 %v5836_v38  ;;  %v5917_v21 = vcombine.high %v974_v16, %v978_v17  ;;  %v838_v24 = vld [vmem:[%s8481_s0 + $0xb98] sm:$0xff]  ;;  %v5916_v28 = vcombine.low %v974_v16, %v978_v17 }
 0x1e4   : > { %4189 = vmatprep.subr.bf16.mxu0 %v5701_v6  ;;  %4230 = vmatprep.subr.bf16.mxu1 %v5829_v32  ;;  %v842_v43 = vld [vmem:[%s8481_s0 + $0xbb8] sm:$0xff] }
 0x1e5   : > { %v966_v53 = vld [vmem:[%s8481_s0 + $0xf98] sm:$0xff]  ;;  %v5781_v29 = vcombine.high %v838_v24, %v842_v43  ;;  %v5780_v32 = vcombine.low %v838_v24, %v842_v43 }
 0x1e6   : > { %v970_v25 = vld [vmem:[%s8481_s0 + $0xfb8] sm:$0xff] }
 0x1e7   : > { %4190 = vmatpush1.bf16.msra.mxu0 %v5700_v41  ;;  %4231 = vmatpush1.bf16.msra.mxu1 %v5828_v45  ;;  %v5909_v30 = vcombine.high %v966_v53, %v970_v25  ;;  %v830_v31 = vld [vmem:[%s8481_s0 + $0xb58] sm:$0xff]  ;;  %v5908_v33 = vcombine.low %v966_v53, %v970_v25 }
 0x1e8   : > { %4191 = vmatprep.subr.bf16.mxu0 %v5693_v46  ;;  %4232 = vmatprep.subr.bf16.mxu1 %v5821_v47  ;;  %v834_v38 = vld [vmem:[%s8481_s0 + $0xb78] sm:$0xff] }
 0x1e9   : > { %v958_v6 = vld [vmem:[%s8481_s0 + $0xf58] sm:$0xff]  ;;  %v5773_v36 = vcombine.high %v830_v31, %v834_v38  ;;  %v5772_v47 = vcombine.low %v830_v31, %v834_v38  ;;  %v4266_v31 = vmax.f32 %v7484_v0, 0.0  ;;  %v6075_v0 = vld [vmem:[%s8483_s2 + $0x64] ss:$8 sps:$4 sm:$0xff]  }
 0x1ea   : > { %v962_v40 = vld [vmem:[%s8481_s0 + $0xf78] sm:$0xff] }
 0x1eb   : > { %4192 = vmatpush1.bf16.msra.mxu0 %v5692_v35  ;;  %4233 = vmatpush1.bf16.msra.mxu1 %v5820_v58  ;;  %v5901_v62 = vcombine.high %v958_v6, %v962_v40  ;;  %v822_v39 = vld [vmem:[%s8481_s0 + $0xb18] sm:$0xff]  ;;  %v5900_v48 = vcombine.low %v958_v6, %v962_v40 }
 0x1ec   : > { %4193 = vmatprep.subr.bf16.mxu0 %v5685_v59  ;;  %4234 = vmatprep.subr.bf16.mxu1 %v5813_v5  ;;  %v826_v41 = vld [vmem:[%s8481_s0 + $0xb38] sm:$0xff] }
 0x1ed   : > { %v950_v45 = vld [vmem:[%s8481_s0 + $0xf18] sm:$0xff]  ;;  %v5765_v50 = vcombine.high %v822_v39, %v826_v41  ;;  %v5764_v5 = vcombine.low %v822_v39, %v826_v41 }
 0x1ee   : > { %v954_v46 = vld [vmem:[%s8481_s0 + $0xf38] sm:$0xff] }
 0x1ef   : > { %4194 = vmatpush1.bf16.msra.mxu0 %v5684_v15  ;;  %4235 = vmatpush1.bf16.msra.mxu1 %v5812_v44  ;;  %v5893_v51 = vcombine.high %v950_v45, %v954_v46  ;;  %v818_v35 = vld [vmem:[%s8481_s0 + $0xaf8] sm:$0xff]  ;;  %v5892_v37 = vcombine.low %v950_v45, %v954_v46  ;;  %v6073_v46 = vld [vmem:[%s8483_s2 + $0x60] ss:$8 sps:$4 sm:$0xff]  }
 0x1f0   : > { %4195 = vmatprep.subr.bf16.mxu0 %v5677_v1  ;;  %4236 = vmatprep.subr.bf16.mxu1 %v5805_v2  ;;  %v942_v58 = vld [vmem:[%s8481_s0 + $0xed8] sm:$0xff]  ;;  %v5757_v60 = vcombine.high %v814_v54, %v818_v35  ;;  %v5756_v2 = vcombine.low %v814_v54, %v818_v35 }
 0x1f1   : > { %v946_v59 = vld [vmem:[%s8481_s0 + $0xef8] sm:$0xff] }
 0x1f2   : > { %v5885_v61 = vcombine.high %v942_v58, %v946_v59  ;;  %v806_v63 = vld [vmem:[%s8481_s0 + $0xa98] sm:$0xff]  ;;  %v5884_v3 = vcombine.low %v942_v58, %v946_v59 }
 0x1f3   : > { %4196 = vmatpush1.bf16.msra.mxu0 %v5676_v11  ;;  %4237 = vmatpush1.bf16.msra.mxu1 %v5804_v12  ;;  %v810_v15 = vld [vmem:[%s8481_s0 + $0xab8] sm:$0xff] }
 0x1f4   : > { %4197 = vmatprep.subr.bf16.mxu0 %v5669_v13  ;;  %4238 = vmatprep.subr.bf16.mxu1 %v5797_v14  ;;  %v934_v44 = vld [vmem:[%s8481_s0 + $0xe98] sm:$0xff]  ;;  %v5749_v4 = vcombine.high %v806_v63, %v810_v15  ;;  %v5748_v14 = vcombine.low %v806_v63, %v810_v15  ;;  %v6085_v63 = vld [vmem:[%s8483_s2 + $0x40] ss:$8 sps:$4 sm:$0xff]  }
 0x1f5   : > { %v938_v1 = vld [vmem:[%s8481_s0 + $0xeb8] sm:$0xff]  ;;  %v6088_v15 = vld [vmem:[%s8483_s2 + $0x140] ss:$8 sps:$4 sm:$0xff]  }
 0x1f6   : > { %v5877_v7 = vcombine.high %v934_v44, %v938_v1  ;;  %v798_v10 = vld [vmem:[%s8481_s0 + $0xa58] sm:$0xff]  ;;  %v5876_v52 = vcombine.low %v934_v44, %v938_v1 }
 0x1f7   : > { %4198 = vmatpush1.bf16.msra.mxu0 %v5668_v18  ;;  %4239 = vmatpush1.bf16.msra.mxu1 %v5796_v19  ;;  %v802_v11 = vld [vmem:[%s8481_s0 + $0xa78] sm:$0xff] }
 0x1f8   : > { %4199 = vmatprep.subr.bf16.mxu0 %v5789_v49  ;;  %4240 = vmatprep.subr.bf16.mxu1 %v5917_v21  ;;  %v926_v12 = vld [vmem:[%s8481_s0 + $0xe58] sm:$0xff]  ;;  %v5741_v55 = vcombine.high %v798_v10, %v802_v11  ;;  %v3892_v21 = vadd.f32 %v7873_v20, %v7688_v57  ;;  %v5740_v24 = vcombine.low %v798_v10, %v802_v11  ;;  %v6097_v10 = vld [vmem:[%s8483_s2 + $0x20] ss:$8 sps:$4 sm:$0xff]  }
 0x1f9   : > { %v930_v13 = vld [vmem:[%s8481_s0 + $0xe78] sm:$0xff]  ;;  %v6100_v11 = vld [vmem:[%s8483_s2 + $0x120] ss:$8 sps:$4 sm:$0xff]  }
 0x1fa   : > { %v5869_v16 = vcombine.high %v926_v12, %v930_v13  ;;  %v790_v17 = vld [vmem:[%s8481_s0 + $0xa18] sm:$0xff]  ;;  %v5868_v43 = vcombine.low %v926_v12, %v930_v13 }
 0x1fb   : > { %4200 = vmatpush2.bf16.msra.mxu0 %v5788_v27  ;;  %4241 = vmatpush2.bf16.msra.mxu1 %v5916_v28  ;;  %v794_v18 = vld [vmem:[%s8481_s0 + $0xa38] sm:$0xff]  ;;  %v3933_v27 = vadd.f32 %v7877_v23, %v3892_v21  ;;  %v8051_v23 = vld [vmem:[%s8482_s1] sm:$0xff] }
 0x1fc   : > { %4201 = vmatprep.subr.bf16.mxu0 %v5781_v29  ;;  %4242 = vmatprep.subr.bf16.mxu1 %v5909_v30  ;;  %v918_v19 = vld [vmem:[%s8481_s0 + $0xe18] sm:$0xff]  ;;  %v5733_v53 = vcombine.high %v790_v17, %v794_v18  ;;  %v5732_v28 = vcombine.low %v790_v17, %v794_v18  ;;  %v999_v29 = vsub.s32 4, %v7213_v26  ;;  %v6109_v17 = vld [vmem:[%s8483_s2] ss:$8 sps:$4 sm:$0xff]  }
 0x1fd   : > { %v922_v49 = vld [vmem:[%s8481_s0 + $0xe38] sm:$0xff]  ;;  %v4268_v38 = vmax.f32 %v3933_v27, 0.0  ;;  %v6112_v18 = vld [vmem:[%s8483_s2 + $0x100] ss:$8 sps:$4 sm:$0xff]  }
 0x1fe   : > { %v5861_v25 = vcombine.high %v918_v19, %v922_v49  ;;  %v5860_v30 = vcombine.low %v918_v19, %v922_v49  ;;  %v6069_v57 = vld [vmem:[%s8483_s2 + $0x74] ss:$8 sps:$4 sm:$0xff]   ;;  %v1000_v6 = vrot.slane %v8051_v23, %v999_v29  ;;  %v6067_v40 = vld [vmem:[%s8483_s2 + $0x70] ss:$8 sps:$4 sm:$0xff]   ;;  %v6124_v27 = vld [vmem:[%s8483_s2 + $0x1e0] ss:$8 sps:$4 sm:$0xff]  }
 0x1ff   : > { %4202 = vmatpush2.bf16.msra.mxu0 %v5780_v32  ;;  %4243 = vmatpush2.bf16.msra.mxu1 %v5908_v33  ;;  %v6072_v20 = vld [vmem:[%s8483_s2 + $0x174] ss:$8 sps:$4 sm:$0xff]   ;;  %v6070_v32 = vld [vmem:[%s8483_s2 + $0x170] ss:$8 sps:$4 sm:$0xff]   ;;  %v4274_v33 = vpack.c.bf16 %v4266_v31, %v4266_v31  ;;  %v4276_v39 = vpack.c.bf16 %v4268_v38, %v4268_v38  ;;  %v6138_v31 = vld [vmem:[%s8483_s2 + $0x1c4] ss:$8 sps:$4 sm:$0xff]  }
 0x200   : > { %4203 = vmatprep.subr.bf16.mxu0 %v5773_v36  ;;  %4244 = vmatprep.subr.bf16.mxu1 %v5901_v62  ;;  %v6078_v62 = vld [vmem:[%s8483_s2 + $0x164] ss:$8 sps:$4 sm:$0xff]   ;;  %v6079_v58 = vld [vmem:[%s8483_s2 + $0x50] ss:$8 sps:$4 sm:$0xff]   ;;  %v6093_v44 = vld [vmem:[%s8483_s2 + $0x34] ss:$8 sps:$4 sm:$0xff]  }
 0x201   : > { %v6096_v1 = vld [vmem:[%s8483_s2 + $0x134] ss:$8 sps:$4 sm:$0xff]   ;;  %v6115_v21 = vld [vmem:[%s8483_s2 + $0xf0] ss:$8 sps:$4 sm:$0xff]   ;;  %v6133_v38 = vld [vmem:[%s8483_s2 + $0xc0] ss:$8 sps:$4 sm:$0xff]  }
 0x202   : > { %v6105_v12 = vld [vmem:[%s8483_s2 + $0x14] ss:$8 sps:$4 sm:$0xff]  }
 0x203   : > { %4204 = vmatpush2.bf16.msra.mxu0 %v5772_v47  ;;  %4245 = vmatpush2.bf16.msra.mxu1 %v5900_v48  ;;  %v6081_v48 = vld [vmem:[%s8483_s2 + $0x54] ss:$8 sps:$4 sm:$0xff]  }
 0x204   : > { %4205 = vmatprep.subr.bf16.mxu0 %v5765_v50  ;;  %4246 = vmatprep.subr.bf16.mxu1 %v5893_v51  ;;  %v6084_v51 = vld [vmem:[%s8483_s2 + $0x154] ss:$8 sps:$4 sm:$0xff]  }
 0x205   : > { %v6108_v13 = vld [vmem:[%s8483_s2 + $0x114] ss:$8 sps:$4 sm:$0xff]  }
 0x206   : > { %v6117_v19 = vld [vmem:[%s8483_s2 + $0xf4] ss:$8 sps:$4 sm:$0xff]  }
 0x207   : > { %4206 = vmatpush2.bf16.msra.mxu0 %v5764_v5  ;;  %4247 = vmatpush2.bf16.msra.mxu1 %v5892_v37  ;;  %v6082_v5 = vld [vmem:[%s8483_s2 + $0x150] ss:$8 sps:$4 sm:$0xff]   ;;  %v6087_v37 = vld [vmem:[%s8483_s2 + $0x44] ss:$8 sps:$4 sm:$0xff]   ;;  %v6120_v49 = vld [vmem:[%s8483_s2 + $0x1f4] ss:$8 sps:$4 sm:$0xff]  }
 0x208   : > { %4207 = vmatprep.subr.bf16.mxu0 %v5757_v60  ;;  %4248 = vmatprep.subr.bf16.mxu1 %v5885_v61  ;;  %v6090_v61 = vld [vmem:[%s8483_s2 + $0x144] ss:$8 sps:$4 sm:$0xff]   ;;  %v6132_v29 = vld [vmem:[%s8483_s2 + $0x1d4] ss:$8 sps:$4 sm:$0xff]  }
 0x20b   : > { %4208 = vmatpush2.bf16.msra.mxu0 %v5756_v2  ;;  %4249 = vmatpush2.bf16.msra.mxu1 %v5884_v3  ;;  %v6091_v2 = vld [vmem:[%s8483_s2 + $0x30] ss:$8 sps:$4 sm:$0xff]  }
 0x20c   : > { %4209 = vmatprep.subr.bf16.mxu0 %v5749_v4  ;;  %4250 = vmatprep.subr.bf16.mxu1 %v5877_v7  ;;  %v6094_v3 = vld [vmem:[%s8483_s2 + $0x130] ss:$8 sps:$4 sm:$0xff]   ;;  %v6099_v4 = vld [vmem:[%s8483_s2 + $0x24] ss:$8 sps:$4 sm:$0xff]  }
 0x20d   : > { %v6102_v7 = vld [vmem:[%s8483_s2 + $0x124] ss:$8 sps:$4 sm:$0xff]  }
 0x20f   : > { %4210 = vmatpush2.bf16.msra.mxu0 %v5748_v14  ;;  %4251 = vmatpush2.bf16.msra.mxu1 %v5876_v52  ;;  %v6103_v14 = vld [vmem:[%s8483_s2 + $0x10] ss:$8 sps:$4 sm:$0xff]  }
 0x210   : > { %4211 = vmatprep.subr.bf16.mxu0 %v5741_v55  ;;  %4252 = vmatprep.subr.bf16.mxu1 %v5869_v16  ;;  %v6106_v52 = vld [vmem:[%s8483_s2 + $0x110] ss:$8 sps:$4 sm:$0xff]   ;;  %v6111_v55 = vld [vmem:[%s8483_s2 + $0x4] ss:$8 sps:$4 sm:$0xff]  }
 0x211   : > { %v6114_v16 = vld [vmem:[%s8483_s2 + $0x104] ss:$8 sps:$4 sm:$0xff]  }
 0x213   : > { %4212 = vmatpush2.bf16.msra.mxu0 %v5740_v24  ;;  %4253 = vmatpush2.bf16.msra.mxu1 %v5868_v43  ;;  %v6118_v24 = vld [vmem:[%s8483_s2 + $0x1f0] ss:$8 sps:$4 sm:$0xff]   ;;  %v6123_v43 = vld [vmem:[%s8483_s2 + $0xe4] ss:$8 sps:$4 sm:$0xff]  }
 0x214   : > { %4213 = vmatprep.subr.bf16.mxu0 %v5733_v53  ;;  %4254 = vmatprep.subr.bf16.mxu1 %v5861_v25  ;;  %v6126_v53 = vld [vmem:[%s8483_s2 + $0x1e4] ss:$8 sps:$4 sm:$0xff]   ;;  %v6121_v25 = vld [vmem:[%s8483_s2 + $0xe0] ss:$8 sps:$4 sm:$0xff]  }
 0x217   : > { %4214 = vmatpush2.bf16.msra.mxu0 %v5732_v28  ;;  %4255 = vmatpush2.bf16.msra.mxu1 %v5860_v30  ;;  %v6129_v28 = vld [vmem:[%s8483_s2 + $0xd4] ss:$8 sps:$4 sm:$0xff]   ;;  %v6127_v30 = vld [vmem:[%s8483_s2 + $0xd0] ss:$8 sps:$4 sm:$0xff]  }
 0x218   : > { %5061 = vmatprep.subr.bf16.mxu0 %v6069_v57  ;;  %5102 = vmatprep.subr.bf16.mxu1 %v6072_v20  ;;  %v6130_v57 = vld [vmem:[%s8483_s2 + $0x1d0] ss:$8 sps:$4 sm:$0xff]   ;;  %v6135_v20 = vld [vmem:[%s8483_s2 + $0xc4] ss:$8 sps:$4 sm:$0xff]  }
 0x21a   : > { %v3971_v36 = vpop.f32.mrf.mxu0  ;;  %4216 = vmatmul.mubr.bf16.vlgmr.msra.gmra.mxu0 %v6839_v8  ;;  %v4012_v45 = vpop.f32.mrf.mxu1  ;;  %4257 = vmatmul.mubr.bf16.vlgmr.msra.gmra.mxu1 %v6843_v9  ;;  %v6076_v8 = vld [vmem:[%s8483_s2 + $0x160] ss:$8 sps:$4 sm:$0xff]  }
 0x21b   : > { %v3972_v41 = vadd.f32 %v3971_v36, %v1000_v6  ;;  %5062 = vmatpush1.bf16.msra.mxu0 %v6067_v40  ;;  %5093 = vmatprep.mubr.bf16.mxu0 %v4274_v33  ;;  %v6136_v6 = vld [vmem:[%s8483_s2 + $0x1c0] ss:$8 sps:$4 sm:$0xff]   ;;  %v6141_v40 = vld [vmem:[%s8483_s2 + $0xb4] ss:$8 sps:$4 sm:$0xff]   ;;  %v6142_v33 = vld [vmem:[%s8483_s2 + $0x1b0] ss:$8 sps:$4 sm:$0xff]  }
 0x21c   : > { %5103 = vmatpush1.bf16.msra.mxu1 %v6070_v32  ;;  %v8071_v47 = vpop.f32.mrf.mxu0  ;;  %5134 = vmatprep.mubr.bf16.mxu1 %v4276_v39  ;;  %v8081_v9 = vpop.f32.mrf.mxu1  ;;  %v6144_v32 = vld [vmem:[%s8483_s2 + $0x1b4] ss:$8 sps:$4 sm:$0xff]   ;;  %v6147_v36 = vld [vmem:[%s8483_s2 + $0xa4] ss:$8 sps:$4 sm:$0xff]   ;;  %v6145_v39 = vld [vmem:[%s8483_s2 + $0xa0] ss:$8 sps:$4 sm:$0xff]  }
 0x21d   : > { %v8079_v50 = vadd.f32 %v4012_v45, %v3972_v41  ;;  %5063 = vmatprep.subr.bf16.mxu0 %v6075_v0  ;;  %5104 = vmatprep.subr.bf16.mxu1 %v6078_v62  ;;  %v6139_v0 = vld [vmem:[%s8483_s2 + $0xb0] ss:$8 sps:$4 sm:$0xff]   ;;  %v6150_v62 = vld [vmem:[%s8483_s2 + $0x1a4] ss:$8 sps:$4 sm:$0xff]   ;;  %v6148_v41 = vld [vmem:[%s8483_s2 + $0x1a0] ss:$8 sps:$4 sm:$0xff]  }
 0x21e   : > { %v3975_v54 = vpop.f32.mrf.mxu0  ;;  %v4016_v35 = vpop.f32.mrf.mxu1  ;;  %v6153_v45 = vld [vmem:[%s8483_s2 + $0x94] ss:$8 sps:$4 sm:$0xff]  }
 0x21f   : > { %5064 = vmatpush1.bf16.msra.mxu0 %v6073_v46  ;;  %v6156_v46 = vld [vmem:[%s8483_s2 + $0x194] ss:$8 sps:$4 sm:$0xff]   ;;  %v6159_v54 = vld [vmem:[%s8483_s2 + $0x84] ss:$8 sps:$4 sm:$0xff]  }
 0x220   : > { %5105 = vmatpush1.bf16.msra.mxu1 %v6076_v8  ;;  %v3976_v59 = vpop.f32.mrf.mxu0  ;;  %5065 = vmatprep.subr.bf16.mxu0 %v6081_v48  ;;  %v4017_v60 = vpop.f32.mrf.mxu1  ;;  %v1003_v8 = vsub.s32 5, %v7213_v26  ;;  %v6151_v48 = vld [vmem:[%s8483_s2 + $0x90] ss:$8 sps:$4 sm:$0xff]   ;;  %v6162_v35 = vld [vmem:[%s8483_s2 + $0x184] ss:$8 sps:$4 sm:$0xff]  }
 0x221   : > { %5106 = vmatprep.subr.bf16.mxu1 %v6084_v51  ;;  %v6154_v51 = vld [vmem:[%s8483_s2 + $0x190] ss:$8 sps:$4 sm:$0xff]   ;;  %v6157_v59 = vld [vmem:[%s8483_s2 + $0x80] ss:$8 sps:$4 sm:$0xff]   ;;  %v6165_v60 = vld [vmem:[%s8483_s2 + $0x274] ss:$8 sps:$4 sm:$0xff]  }
 0x223   : > { %5066 = vmatpush1.bf16.msra.mxu0 %v6079_v58  ;;  %v1004_v58 = vrot.slane %v8051_v23, %v1003_v8  ;;  %v6237_v8 = vld [vmem:[%s8483_s2 + $0x3f4] ss:$8 sps:$4 sm:$0xff]  }
 0x224   : > { %5107 = vmatpush1.bf16.msra.mxu1 %v6082_v5  ;;  %5067 = vmatprep.subr.bf16.mxu0 %v6087_v37  ;;  %v4265_v5 = vmax.f32 %v7467_v56, 0.0  ;;  %v6160_v37 = vld [vmem:[%s8483_s2 + $0x180] ss:$8 sps:$4 sm:$0xff]   ;;  %v6163_v56 = vld [vmem:[%s8483_s2 + $0x270] ss:$8 sps:$4 sm:$0xff]  }
 0x225   : > { %5108 = vmatprep.subr.bf16.mxu1 %v6090_v61  ;;  %v4267_v61 = vmax.f32 %v7875_v22, 0.0  ;;  %v6211_v22 = vld [vmem:[%s8483_s2 + $0x370] ss:$8 sps:$4 sm:$0xff]  }
 0x227   : > { %5068 = vmatpush1.bf16.msra.mxu0 %v6085_v63  ;;  %v6213_v63 = vld [vmem:[%s8483_s2 + $0x374] ss:$8 sps:$4 sm:$0xff]  }
 0x228   : > { %5109 = vmatpush1.bf16.msra.mxu1 %v6088_v15  ;;  %5069 = vmatprep.subr.bf16.mxu0 %v6093_v44  ;;  %v3974_v15 = vadd.f32 %v8071_v47, %v1004_v58  ;;  %v4273_v44 = vpack.c.bf16 %v4265_v5, %v4265_v5  ;;  %v6216_v47 = vld [vmem:[%s8483_s2 + $0x364] ss:$8 sps:$4 sm:$0xff]   ;;  %v6190_v58 = vld [vmem:[%s8483_s2 + $0x2e0] ss:$8 sps:$4 sm:$0xff]  }
 0x229   : > { %5110 = vmatprep.subr.bf16.mxu1 %v6096_v1  ;;  %v6168_v1 = vld [vmem:[%s8483_s2 + $0x264] ss:$8 sps:$4 sm:$0xff]   ;;  %v6238_v5 = vld [vmem:[%s8483_s2 + $0x3e0] ss:$8 sps:$4 sm:$0xff]  }
 0x22b   : > { %5070 = vmatpush1.bf16.msra.mxu0 %v6091_v2  ;;  %v4275_v2 = vpack.c.bf16 %v4267_v61, %v4267_v61  ;;  %v6198_v61 = vld [vmem:[%s8483_s2 + $0x2c4] ss:$8 sps:$4 sm:$0xff]  }
 0x22c   : > { %5111 = vmatpush1.bf16.msra.mxu1 %v6094_v3  ;;  %5071 = vmatprep.subr.bf16.mxu0 %v6099_v4  ;;  %v4015_v4 = vadd.f32 %v8081_v9, %v3974_v15  ;;  %v6246_v15 = vld [vmem:[%s8483_s2 + $0x3c4] ss:$8 sps:$4 sm:$0xff]  }
 0x22d   : > { %5112 = vmatprep.subr.bf16.mxu1 %v6102_v7 }
 0x22f   : > { %5072 = vmatpush1.bf16.msra.mxu0 %v6097_v10  ;;  %v6166_v10 = vld [vmem:[%s8483_s2 + $0x260] ss:$8 sps:$4 sm:$0xff]  }
 0x230   : > { %5113 = vmatpush1.bf16.msra.mxu1 %v6100_v11  ;;  %5073 = vmatprep.subr.bf16.mxu0 %v6105_v12  ;;  %v6171_v12 = vld [vmem:[%s8483_s2 + $0x254] ss:$8 sps:$4 sm:$0xff]  }
 0x231   : > { %5114 = vmatprep.subr.bf16.mxu1 %v6108_v13  ;;  %v6214_v13 = vld [vmem:[%s8483_s2 + $0x360] ss:$8 sps:$4 sm:$0xff]  }
 0x233   : > { %5074 = vmatpush1.bf16.msra.mxu0 %v6103_v14 }
 0x234   : > { %5115 = vmatpush1.bf16.msra.mxu1 %v6106_v52  ;;  %5075 = vmatprep.subr.bf16.mxu0 %v6111_v55  ;;  %v6219_v52 = vld [vmem:[%s8483_s2 + $0x354] ss:$8 sps:$4 sm:$0xff]  }
 0x235   : > { %5116 = vmatprep.subr.bf16.mxu1 %v6114_v16 }
 0x237   : > { %5076 = vmatpush1.bf16.msra.mxu0 %v6109_v17 }
 0x238   : > { %5117 = vmatpush1.bf16.msra.mxu1 %v6112_v18  ;;  %5077 = vmatprep.subr.bf16.mxu0 %v6117_v19  ;;  %v6169_v18 = vld [vmem:[%s8483_s2 + $0x250] ss:$8 sps:$4 sm:$0xff]  }
 0x239   : > { %5118 = vmatprep.subr.bf16.mxu1 %v6120_v49  ;;  %v6174_v49 = vld [vmem:[%s8483_s2 + $0x244] ss:$8 sps:$4 sm:$0xff]  }
 0x23b   : > { %5078 = vmatpush2.bf16.msra.mxu0 %v6115_v21  ;;  %v6217_v21 = vld [vmem:[%s8483_s2 + $0x350] ss:$8 sps:$4 sm:$0xff]  }
 0x23c   : > { %5119 = vmatpush2.bf16.msra.mxu1 %v6118_v24  ;;  %5079 = vmatprep.subr.bf16.mxu0 %v6123_v43 }
 0x23d   : > { %5120 = vmatprep.subr.bf16.mxu1 %v6126_v53  ;;  %v6222_v53 = vld [vmem:[%s8483_s2 + $0x344] ss:$8 sps:$4 sm:$0xff]  }
 0x23f   : > { %5080 = vmatpush2.bf16.msra.mxu0 %v6121_v25 }
 0x240   : > { %5121 = vmatpush2.bf16.msra.mxu1 %v6124_v27  ;;  %5081 = vmatprep.subr.bf16.mxu0 %v6129_v28  ;;  %v6172_v27 = vld [vmem:[%s8483_s2 + $0x240] ss:$8 sps:$4 sm:$0xff]   ;;  %v6177_v28 = vld [vmem:[%s8483_s2 + $0x234] ss:$8 sps:$4 sm:$0xff]  }
 0x241   : > { %5122 = vmatprep.subr.bf16.mxu1 %v6132_v29  ;;  %v6220_v29 = vld [vmem:[%s8483_s2 + $0x340] ss:$8 sps:$4 sm:$0xff]  }
 0x243   : > { %5082 = vmatpush2.bf16.msra.mxu0 %v6127_v30  ;;  %v6225_v30 = vld [vmem:[%s8483_s2 + $0x334] ss:$8 sps:$4 sm:$0xff]  }
 0x244   : > { %5123 = vmatpush2.bf16.msra.mxu1 %v6130_v57  ;;  %5083 = vmatprep.subr.bf16.mxu0 %v6135_v20  ;;  %v6175_v57 = vld [vmem:[%s8483_s2 + $0x230] ss:$8 sps:$4 sm:$0xff]   ;;  %v6180_v20 = vld [vmem:[%s8483_s2 + $0x224] ss:$8 sps:$4 sm:$0xff]  }
 0x245   : > { %5124 = vmatprep.subr.bf16.mxu1 %v6138_v31  ;;  %v6223_v31 = vld [vmem:[%s8483_s2 + $0x330] ss:$8 sps:$4 sm:$0xff]  }
 0x247   : > { %5084 = vmatpush2.bf16.msra.mxu0 %v6133_v38  ;;  %v6228_v38 = vld [vmem:[%s8483_s2 + $0x324] ss:$8 sps:$4 sm:$0xff]  }
 0x248   : > { %5125 = vmatpush2.bf16.msra.mxu1 %v6136_v6  ;;  %5085 = vmatprep.subr.bf16.mxu0 %v6141_v40  ;;  %v6178_v6 = vld [vmem:[%s8483_s2 + $0x220] ss:$8 sps:$4 sm:$0xff]   ;;  %v6183_v40 = vld [vmem:[%s8483_s2 + $0x214] ss:$8 sps:$4 sm:$0xff]  }
 0x249   : > { %5126 = vmatprep.subr.bf16.mxu1 %v6144_v32  ;;  %v6226_v32 = vld [vmem:[%s8483_s2 + $0x320] ss:$8 sps:$4 sm:$0xff]  }
 0x24b   : > { %5086 = vmatpush2.bf16.msra.mxu0 %v6139_v0  ;;  %v6231_v0 = vld [vmem:[%s8483_s2 + $0x314] ss:$8 sps:$4 sm:$0xff]  }
 0x24c   : > { %5127 = vmatpush2.bf16.msra.mxu1 %v6142_v33  ;;  %5087 = vmatprep.subr.bf16.mxu0 %v6147_v36  ;;  %v6181_v33 = vld [vmem:[%s8483_s2 + $0x210] ss:$8 sps:$4 sm:$0xff]   ;;  %v6186_v36 = vld [vmem:[%s8483_s2 + $0x204] ss:$8 sps:$4 sm:$0xff]  }
 0x24d   : > { %5128 = vmatprep.subr.bf16.mxu1 %v6150_v62  ;;  %v6229_v62 = vld [vmem:[%s8483_s2 + $0x310] ss:$8 sps:$4 sm:$0xff]  }
 0x24f   : > { %5088 = vmatpush2.bf16.msra.mxu0 %v6145_v39  ;;  %v6234_v39 = vld [vmem:[%s8483_s2 + $0x304] ss:$8 sps:$4 sm:$0xff]  }
 0x250   : > { %5129 = vmatpush2.bf16.msra.mxu1 %v6148_v41  ;;  %5089 = vmatprep.subr.bf16.mxu0 %v6153_v45  ;;  %v6184_v41 = vld [vmem:[%s8483_s2 + $0x200] ss:$8 sps:$4 sm:$0xff]   ;;  %v6189_v45 = vld [vmem:[%s8483_s2 + $0x2f4] ss:$8 sps:$4 sm:$0xff]  }
 0x251   : > { %5130 = vmatprep.subr.bf16.mxu1 %v6156_v46  ;;  %v6232_v46 = vld [vmem:[%s8483_s2 + $0x300] ss:$8 sps:$4 sm:$0xff]  }
 0x253   : > { %5090 = vmatpush2.bf16.msra.mxu0 %v6151_v48  ;;  %v6187_v48 = vld [vmem:[%s8483_s2 + $0x2f0] ss:$8 sps:$4 sm:$0xff]  }
 0x254   : > { %5131 = vmatpush2.bf16.msra.mxu1 %v6154_v51  ;;  %5091 = vmatprep.subr.bf16.mxu0 %v6159_v54  ;;  %v6192_v51 = vld [vmem:[%s8483_s2 + $0x2e4] ss:$8 sps:$4 sm:$0xff]   ;;  %v6235_v54 = vld [vmem:[%s8483_s2 + $0x3f0] ss:$8 sps:$4 sm:$0xff]  }
 0x255   : > { %5132 = vmatprep.subr.bf16.mxu1 %v6162_v35  ;;  %v6240_v35 = vld [vmem:[%s8483_s2 + $0x3e4] ss:$8 sps:$4 sm:$0xff]  }
 0x257   : > { %5092 = vmatpush2.bf16.msra.mxu0 %v6157_v59  ;;  %v6195_v59 = vld [vmem:[%s8483_s2 + $0x2d4] ss:$8 sps:$4 sm:$0xff]  }
 0x258   : > { %5133 = vmatpush2.bf16.msra.mxu1 %v6160_v37  ;;  %5143 = vmatprep.subr.bf16.mxu0 %v6165_v60  ;;  %v6243_v37 = vld [vmem:[%s8483_s2 + $0x3d4] ss:$8 sps:$4 sm:$0xff]   ;;  %v6193_v60 = vld [vmem:[%s8483_s2 + $0x2d0] ss:$8 sps:$4 sm:$0xff]  }
 0x259   : > { %5184 = vmatprep.subr.bf16.mxu1 %v6213_v63  ;;  %v6241_v63 = vld [vmem:[%s8483_s2 + $0x3d0] ss:$8 sps:$4 sm:$0xff]  }
 0x25a   : > { %v8271_v3 = vpop.f32.mrf.mxu0  ;;  %5094 = vmatmul.mubr.bf16.vlgmr.msra.gmra.mxu0 %v4273_v44  ;;  %v8274_v7 = vpop.f32.mrf.mxu1  ;;  %v6201_v44 = vld [vmem:[%s8483_s2 + $0x2b4] ss:$8 sps:$4 sm:$0xff]  }
 0x25b   : > { %5135 = vmatmul.mubr.bf16.vlgmr.msra.gmra.mxu1 %v4275_v2  ;;  %5144 = vmatpush1.bf16.msra.mxu0 %v6163_v56  ;;  %v6196_v56 = vld [vmem:[%s8483_s2 + $0x2c0] ss:$8 sps:$4 sm:$0xff]   ;;  %v6199_v2 = vld [vmem:[%s8483_s2 + $0x2b0] ss:$8 sps:$4 sm:$0xff]  }
 0x25c   : > { %v4055_v11 = vpop.f32.mrf.mxu0  ;;  %5145 = vmatprep.subr.bf16.mxu0 %v6168_v1  ;;  %5185 = vmatpush1.bf16.msra.mxu1 %v6211_v22  ;;  %v4096_v14 = vpop.f32.mrf.mxu1  ;;  %v6244_v1 = vld [vmem:[%s8483_s2 + $0x3c0] ss:$8 sps:$4 sm:$0xff]   ;;  %v6249_v22 = vld [vmem:[%s8483_s2 + $0x3b4] ss:$8 sps:$4 sm:$0xff]  }
 0x25d   : > { %v4056_v9 = vadd.f32 %v4055_v11, %v4015_v4  ;;  %5186 = vmatprep.subr.bf16.mxu1 %v6216_v47  ;;  %v6204_v47 = vld [vmem:[%s8483_s2 + $0x2a4] ss:$8 sps:$4 sm:$0xff]   ;;  %v6247_v4 = vld [vmem:[%s8483_s2 + $0x3b0] ss:$8 sps:$4 sm:$0xff]   ;;  %v6202_v11 = vld [vmem:[%s8483_s2 + $0x2a0] ss:$8 sps:$4 sm:$0xff]  }
 0x25e   : > { %v4057_v55 = vpop.f32.mrf.mxu0  ;;  %v4098_v17 = vpop.f32.mrf.mxu1 }
 0x25f   : > { %v4097_v16 = vadd.f32 %v4096_v14, %v4056_v9  ;;  %5146 = vmatpush1.bf16.msra.mxu0 %v6166_v10  ;;  %v6252_v10 = vld [vmem:[%s8483_s2 + $0x3a4] ss:$8 sps:$4 sm:$0xff]   ;;  %v6250_v9 = vld [vmem:[%s8483_s2 + $0x3a0] ss:$8 sps:$4 sm:$0xff]   ;;  %v6255_v14 = vld [vmem:[%s8483_s2 + $0x394] ss:$8 sps:$4 sm:$0xff]  }
 0x260   : > { %v4058_v19 = vpop.f32.mrf.mxu0  ;;  %5147 = vmatprep.subr.bf16.mxu0 %v6171_v12  ;;  %5187 = vmatpush1.bf16.msra.mxu1 %v6214_v13  ;;  %v4099_v43 = vpop.f32.mrf.mxu1  ;;  %v4054_v12 = vadd.f32 %v8271_v3, %v8079_v50  ;;  %v6207_v13 = vld [vmem:[%s8483_s2 + $0x294] ss:$8 sps:$4 sm:$0xff]   ;;  %v6205_v50 = vld [vmem:[%s8483_s2 + $0x290] ss:$8 sps:$4 sm:$0xff]  }
 0x261   : > { %v4270_v24 = vmax.f32 %v4097_v16, 0.0  ;;  %5188 = vmatprep.subr.bf16.mxu1 %v6219_v52  ;;  %v6210_v52 = vld [vmem:[%s8483_s2 + $0x284] ss:$8 sps:$4 sm:$0xff]   ;;  %v6253_v55 = vld [vmem:[%s8483_s2 + $0x390] ss:$8 sps:$4 sm:$0xff]  }
 0x262   : > { %v4095_v3 = vadd.f32 %v8274_v7, %v4054_v12  ;;  %v6258_v16 = vld [vmem:[%s8483_s2 + $0x384] ss:$8 sps:$4 sm:$0xff]   ;;  %v6208_v7 = vld [vmem:[%s8483_s2 + $0x280] ss:$8 sps:$4 sm:$0xff]  }
 0x263   : > { %v4278_v25 = vpack.c.bf16 %v4270_v24, %v4270_v24  ;;  %5148 = vmatpush1.bf16.msra.mxu0 %v6169_v18  ;;  %v6256_v18 = vld [vmem:[%s8483_s2 + $0x380] ss:$8 sps:$4 sm:$0xff]  }
 0x264   : > { %5149 = vmatprep.subr.bf16.mxu0 %v6174_v49  ;;  %5189 = vmatpush1.bf16.msra.mxu1 %v6217_v21  ;;  %v4269_v17 = vmax.f32 %v4095_v3, 0.0 }
 0x265   : > { %5175 = vmatprep.mubr.bf16.mxu0 %v4278_v25  ;;  %5190 = vmatprep.subr.bf16.mxu1 %v6222_v53 }
 0x266   : > { %v4277_v19 = vpack.c.bf16 %v4269_v17, %v4269_v17 }
 0x267   : > { %5150 = vmatpush1.bf16.msra.mxu0 %v6172_v27 }
 0x268   : > { %5151 = vmatprep.subr.bf16.mxu0 %v6177_v28  ;;  %5191 = vmatpush1.bf16.msra.mxu1 %v6220_v29  ;;  %v1007_v29 = vsub.s32 6, %v7213_v26 }
 0x269   : > { %5192 = vmatprep.subr.bf16.mxu1 %v6225_v30  ;;  %v1011_v30 = vsub.s32 7, %v7213_v26 }
 0x26b   : > { %5152 = vmatpush1.bf16.msra.mxu0 %v6175_v57  ;;  %v1008_v57 = vrot.slane %v8051_v23, %v1007_v29  ;;  %v6046_v29 = vld [vmem:[%s8485_s4] ss:$0 sm:$0xff] }
 0x26c   : > { %5153 = vmatprep.subr.bf16.mxu0 %v6180_v20  ;;  %5193 = vmatpush1.bf16.msra.mxu1 %v6223_v31  ;;  %v1012_v20 = vrot.slane %v8051_v23, %v1011_v30 }
 0x26d   : > { %5194 = vmatprep.subr.bf16.mxu1 %v6228_v38 }
 0x26f   : > { %5154 = vmatpush1.bf16.msra.mxu0 %v6178_v6 }
 0x270   : > { %5155 = vmatprep.subr.bf16.mxu0 %v6183_v40  ;;  %5195 = vmatpush1.bf16.msra.mxu1 %v6226_v32 }
 0x271   : > { %5196 = vmatprep.subr.bf16.mxu1 %v6231_v0 }
 0x273   : > { %5156 = vmatpush1.bf16.msra.mxu0 %v6181_v33 }
 0x274   : > { %5157 = vmatprep.subr.bf16.mxu0 %v6186_v36  ;;  %5197 = vmatpush1.bf16.msra.mxu1 %v6229_v62 }
 0x275   : > { %5198 = vmatprep.subr.bf16.mxu1 %v6234_v39 }
 0x277   : > { %5158 = vmatpush1.bf16.msra.mxu0 %v6184_v41 }
 0x278   : > { %5159 = vmatprep.subr.bf16.mxu0 %v6189_v45  ;;  %5199 = vmatpush1.bf16.msra.mxu1 %v6232_v46 }
 0x279   : > { %5200 = vmatprep.subr.bf16.mxu1 %v6237_v8 }
 0x27b   : > { %5160 = vmatpush2.bf16.msra.mxu0 %v6187_v48 }
 0x27c   : > { %5161 = vmatprep.subr.bf16.mxu0 %v6192_v51  ;;  %5201 = vmatpush2.bf16.msra.mxu1 %v6235_v54 }
 0x27d   : > { %5202 = vmatprep.subr.bf16.mxu1 %v6240_v35 }
 0x27f   : > { %5162 = vmatpush2.bf16.msra.mxu0 %v6190_v58 }
 0x280   : > { %5163 = vmatprep.subr.bf16.mxu0 %v6195_v59  ;;  %5203 = vmatpush2.bf16.msra.mxu1 %v6238_v5  ;;  %v4409_v59 = vld [vmem:[%s8484_s3] sm:$0x3] }
 0x281   : > { %5204 = vmatprep.subr.bf16.mxu1 %v6243_v37  ;;  %v4414_v5 = vrot.slane %v4409_v59, %v983_v34  ;;  %v4418_v37 = vrot.slane %v4409_v59, %v987_v42 }
 0x283   : > { %5164 = vmatpush2.bf16.msra.mxu0 %v6193_v60 }
 0x284   : > { %5165 = vmatprep.subr.bf16.mxu0 %v6198_v61  ;;  %5205 = vmatpush2.bf16.msra.mxu1 %v6241_v63 }
 0x285   : > { %5206 = vmatprep.subr.bf16.mxu1 %v6246_v15 }
 0x287   : > { %5166 = vmatpush2.bf16.msra.mxu0 %v6196_v56 }
 0x288   : > { %5167 = vmatprep.subr.bf16.mxu0 %v6201_v44  ;;  %5207 = vmatpush2.bf16.msra.mxu1 %v6244_v1 }
 0x289   : > { %5208 = vmatprep.subr.bf16.mxu1 %v6249_v22 }
 0x28b   : > { %5168 = vmatpush2.bf16.msra.mxu0 %v6199_v2 }
 0x28c   : > { %5169 = vmatprep.subr.bf16.mxu0 %v6204_v47  ;;  %5209 = vmatpush2.bf16.msra.mxu1 %v6247_v4 }
 0x28d   : > { %5210 = vmatprep.subr.bf16.mxu1 %v6252_v10 }
 0x28f   : > { %5170 = vmatpush2.bf16.msra.mxu0 %v6202_v11 }
 0x290   : > { %5171 = vmatprep.subr.bf16.mxu0 %v6207_v13  ;;  %5211 = vmatpush2.bf16.msra.mxu1 %v6250_v9 }
 0x291   : > { %5212 = vmatprep.subr.bf16.mxu1 %v6255_v14 }
 0x293   : > { %5172 = vmatpush2.bf16.msra.mxu0 %v6205_v50 }
 0x294   : > { %5173 = vmatprep.subr.bf16.mxu0 %v6210_v52  ;;  %5213 = vmatpush2.bf16.msra.mxu1 %v6253_v55 }
 0x295   : > { %5214 = vmatprep.subr.bf16.mxu1 %v6258_v16 }
 0x297   : > { %5174 = vmatpush2.bf16.msra.mxu0 %v6208_v7 }
 0x298   : > { %5215 = vmatpush2.bf16.msra.mxu1 %v6256_v18 }
 0x29a   : > { %v4135_v49 = vpop.f32.mrf.mxu0  ;;  %5176 = vmatmul.mubr.bf16.vlgmr.msra.gmra.mxu0 %v4277_v19  ;;  %v4176_v21 = vpop.f32.mrf.mxu1 }
 0x29b   : > { %v4136_v31 = vadd.f32 %v4135_v49, %v1008_v57 }
 0x29c   : > { %v4137_v24 = vpop.f32.mrf.mxu0  ;;  %v4178_v43 = vpop.f32.mrf.mxu1 }
 0x29d   : > { %v4138_v38 = vadd.f32 %v4137_v24, %v1012_v20  ;;  %v4177_v6 = vadd.f32 %v4176_v21, %v4136_v31 }
 0x29e   : > { %v4139_v53 = vpop.f32.mrf.mxu0  ;;  %v4180_v25 = vpop.f32.mrf.mxu1 }
 0x29f   : > { %v4179_v32 = vadd.f32 %v4178_v43, %v4138_v38 }
 0x2a0   : > { %v4140_v27 = vpop.f32.mrf.mxu0  ;;  %v4181_v28 = vpop.f32.mrf.mxu1 }
 0x2da   : > { %v4217_v40 = vpop.f32.mrf.mxu0  ;;  %v4258_v33 = vpop.f32.mrf.mxu1 }
 0x2db   : > { %v4218_v0 = vadd.f32 %v4217_v40, %v4177_v6 }
 0x2dc   : > { %v4219_v36 = vpop.f32.mrf.mxu0  ;;  %v4260_v41 = vpop.f32.mrf.mxu1 }
 0x2dd   : > { %v4259_v62 = vadd.f32 %v4258_v33, %v4218_v0  ;;  %v4220_v39 = vadd.f32 %v4219_v36, %v4179_v32  ;;  %v6047_v36 = vld [vmem:[%s8486_s5] ss:$0 sm:$0xff] }
 0x2de   : > { %v4221_v45 = vpop.f32.mrf.mxu0  ;;  %v4262_v8 = vpop.f32.mrf.mxu1 }
 0x2df   : > { %v4261_v46 = vadd.f32 %v4260_v41, %v4220_v39  ;;  %v4271_v48 = vmax.f32 %v4259_v62, 0.0 }
 0x2e0   : > { %v4222_v51 = vpop.f32.mrf.mxu0  ;;  %v4263_v35 = vpop.f32.mrf.mxu1 }
 0x2e1   : > { %v4272_v54 = vmax.f32 %v4261_v46, 0.0  ;;  %v4279_v23 = vpack.c.bf16 %v4271_v48, %v4271_v48 }
 0x2e3   : > { %v4280_v58 = vpack.c.bf16 %v4272_v54, %v4272_v54 }
 0x2e5   : > { %5216 = vmatprep.mubr.bf16.mxu1 %v4280_v58 }
 0x2e6   : > { %5217 = vmatmul.mubr.bf16.vlgmr.msra.gmra.mxu1 %v4279_v23 }
 0x31a   : > { %v5095_v60 = vpop.f32.mrf.mxu0 }
 0x31b   : > { %v5096_v61 = vadd.f32 %v5095_v60, %v4414_v5  ;;  %v5136_v63 = vpop.f32.mrf.mxu1 }
 0x31c   : > { %v5097_v15 = vpop.f32.mrf.mxu0 }
 0x31d   : > { %v5137_v56 = vadd.f32 %v5136_v63, %v5096_v61  ;;  %v5098_v44 = vadd.f32 %v5097_v15, %v4418_v37  ;;  %v5138_v1 = vpop.f32.mrf.mxu1 }
 0x31e   : > { %v5099_v22 = vpop.f32.mrf.mxu0 }
 0x31f   : > { %v5139_v2 = vadd.f32 %v5138_v1, %v5098_v44  ;;  %v5140_v47 = vpop.f32.mrf.mxu1 }
 0x320   : > { %v5100_v4 = vpop.f32.mrf.mxu0 }
 0x321   : > { %v5141_v10 = vpop.f32.mrf.mxu1 }
 0x35a   : > { %v5177_v11 = vpop.f32.mrf.mxu0 }
 0x35b   : > { %v5178_v12 = vadd.f32 %v5177_v11, %v5137_v56 }
 0x35c   : > { %v5179_v13 = vpop.f32.mrf.mxu0 }
 0x35d   : > { %v5180_v9 = vadd.f32 %v5179_v13, %v5139_v2 }
 0x35e   : > { %v5181_v34 = vpop.f32.mrf.mxu0 }
 0x360   : > { %v5182_v14 = vpop.f32.mrf.mxu0 }
 0x3a6   : > { %v5218_v26 = vpop.f32.mrf.mxu1 }
 0x3a7   : > { %v5219_v42 = vadd.f32 %v5218_v26, %v5178_v12 }
 0x3a8   : > { %v5220_v50 = vpop.f32.mrf.mxu1 }
 0x3a9   : > { %v5221_v3 = vadd.f32 %v5220_v50, %v5180_v9  ;;  %5225 = vmax.xlane.f32.xlu0 %v5219_v42 }
 0x3aa   : > { %v5222_v52 = vpop.f32.mrf.mxu1 }
 0x3ab   : > { %v5237_v55 = vrot.slane %v5221_v3, 4  ;;  %v5273_v57 = vsub.f32 %v5221_v3, %v6046_v29 }
 0x3ac   : > { %v5223_v16 = vpop.f32.mrf.mxu1 }
 0x3ad   : > { %v5238_v7 = vmax.f32 %v5221_v3, %v5237_v55  ;;  %v5255_v18 = vadd.f32 %v5237_v55, %v5221_v3  ;;  %v5274_v6 = vmul.f32 %v5273_v57, %v5273_v57 }
 0x3af   : > { %v5239_v17 = vrot.slane %v5238_v7, 2  ;;  %v5256_v21 = vrot.slane %v5255_v18, 2  ;;  %v5275_v33 = vsub.f32 0.0, %v5274_v6 }
 0x3b1   : > { %v5240_v19 = vmax.f32 %v5238_v7, %v5239_v17  ;;  %v5257_v53 = vadd.f32 %v5256_v21, %v5255_v18  ;;  %v5283_v45 = vmul.f32 %v6047_v36, %v5275_v33 }
 0x3b3   : > { %v5241_v49 = vrot.slane %v5240_v19, 1  ;;  %v5258_v27 = vrot.slane %v5257_v53, 1  ;;  %v5284_v48 = vmul.f32 1.442695, %v5283_v45 }
 0x3b5   : > { %v5242_v24 = vmax.f32 %v5240_v19, %v5241_v49  ;;  %v5259_v28 = vadd.f32 %v5258_v27, %v5257_v53 }
 0x3b7   : > { %v5243_v43 = vsub.f32 %v5221_v3, %v5242_v24  ;;  %v5260_v30 = vmul.f32 0.125, %v5259_v28 }
 0x3b9   : > { %v5244_v25 = vmul.f32 1.442695, %v5243_v43  ;;  %v5261_v20 = vsub.f32 %v5221_v3, %v5260_v30 }
 0x3bb   : > { %6259 = vpow2.f32 %v5244_v25  ;;  %v5262_v32 = vmul.f32 %v5261_v20, %v5261_v20 }
 0x3bd   : > { %v5263_v39 = vsub.f32 0.0, %v5262_v32 }
 0x3bf   : > { %v5264_v8 = vmul.f32 1.442695, %v5263_v39 }
 0x3c8   : > { %v6260_v31 = vpop.eup %6259 }
 0x3c9   : > { %v5246_v38 = vrot.slane %v6260_v31, 4 }
 0x3cb   : > { %v5247_v40 = vadd.f32 %v6260_v31, %v5246_v38 }
 0x3cd   : > { %v5248_v0 = vrot.slane %v5247_v40, 2 }
 0x3cf   : > { %v5249_v62 = vadd.f32 %v5248_v0, %v5247_v40 }
 0x3d1   : > { %v5250_v41 = vrot.slane %v5249_v62, 1 }
 0x3d3   : > { %v5251_v46 = vadd.f32 %v5250_v41, %v5249_v62 }
 0x3d5   : > { %6261 = vrcp.f32 %v5251_v46 }
 0x3d6   : > { %6263 = vpow2.f32 %v5264_v8 }
 0x3d7   : > { %6265 = vpow2.f32 %v5284_v48 }
 0x3e2   : > { %v6262_v51 = vpop.eup %6261 }
 0x3e3   : > { %v5253_v54 = vmul.f32 %v6262_v51, %v6260_v31  ;;  %v6264_v35 = vpop.eup %6263 }
 0x3e4   : > { %v6266_v23 = vpop.eup %6265 }
 0x3e5   : > { %v5286_v58 = vadd.f32 %v6264_v35, %v5253_v54 }
 0x3e7   : > { %v5287_v59 = vadd.f32 %v6266_v23, %v5286_v58 }
 0x3e9   : > { %v5288_v5 = vmul.f32 0.33333334, %v5287_v59 }
 0x3eb   : > { %5289 = vst [vmem:[%s318_s20] sm:$0xff] %v5288_v5 }
 0x432   : > { %v5226_v37 = vpop.xlane.xlu0 %5225 }
 0x433   : > { %v5227_v60 = vsub.f32 %v5219_v42, %v5226_v37 }
 0x435   : > { %v5228_v61 = vmul.f32 1.442695, %v5227_v60 }
 0x437   : > { %6267 = vpow2.f32 %v5228_v61 }
 0x444   : > { %v6268_v63 = vpop.eup %6267 }
 0x445   : > { %5230 = vadd.xlane.f32.xlu0 %v6268_v63 }
 0x4ce   : > { %v5231_v15 = vpop.xlane.xlu0 %5230 }
 0x4cf   : > { %6269 = vrcp.f32 %v5231_v15 }
 0x4dc   : > { %v6270_v56 = vpop.eup %6269 }
 0x4dd   : > { %v5233_v44 = vmul.f32 %v6270_v56, %v6268_v63 }
 0x4df   : > { %5234 = vst [vmem:[%s314_s21] sm:$0xff] %v5233_v44 }
 0x4e0 PF: > { %s19_s27 = sadd.s32 1, %s6278_s27  }
 0x4e1   : > { %p16_p5 = scmp.ge.s32.totalorder %s19_s27, 4  }
 0x4e3   :  { %18 = sbr.rel (!%p16_p5) target bundleno = 1 (0x1), region = 105 }

</bundles_post_ra>
